<compile_context>
chip_gen: v7x
topology: tpu7x:2x2x1
jax: 0.10.0
libtpu: 0.0.40
codegen_flags: <defaults>
</compile_context>

<pallas_src>
import functools

import numpy as np

import jax
import jax.numpy as jnp
from jax.experimental import pallas as pl
from jax.experimental.pallas import tpu as pltpu

BN_EPS = 1e-5
# per-resblock (kernelsize, stride, padding) as in the PyTorch module
RB_CFGS = ((4, 2, 1), (4, 2, 1), (4, 2, 1), (4, 2, 0))
LANE = 128
SUB = 8
_COMPILER_PARAMS = pltpu.CompilerParams(vmem_limit_bytes=32 * 1024 * 1024)


def _ceil_to(x, m):
    return ((x + m - 1) // m) * m


# ----------------------------------------------------------------------------
# Pallas kernels
# ----------------------------------------------------------------------------
def _conv_matmul_kernel(p_ref, w_ref, o_ref):
    # p: (Mp, Kp) f32 patches, w: (Kp, Cp) bf16  ->  o: (Mp, Cp) f32
    o_ref[...] = jnp.dot(p_ref[...].astype(jnp.bfloat16), w_ref[...],
                         preferred_element_type=jnp.float32)


def _resblock_kernel(x_ref, s1_ref, t1_ref, w1_ref, s2_ref, t2_ref,
                     w2_ref, wd_ref, bias_ref, o_ref):
    """Fully fused residual block on a lane-dense tap-stacked slab.

      x    : (Mp, T*Cin) f32     tap-concatenated im2col of the block input
      w1   : (T*Cin, T*Cin) bf16 block-diagonal 1x1-conv weight
      w2   : (T*Cin, Cp)  bf16   b * conv2 weight, tap-stacked along K
      wd   : (T*Cin, Cp)  bf16   a * scale_ds * downsample weight, tap-stacked
      bias : (Mp, Cp)     f32    a*(scale_ds*bias_ds + shift_ds) - pad correction
    """
    x = x_ref[...]
    h1 = jnp.maximum(x * s1_ref[...] + t1_ref[...], 0.0)
    y1 = jnp.dot(h1.astype(jnp.bfloat16), w1_ref[...],
                 preferred_element_type=jnp.float32)
    h2 = jnp.maximum(y1 * s2_ref[...] + t2_ref[...], 0.0)
    acc = jnp.dot(h2.astype(jnp.bfloat16), w2_ref[...],
                  preferred_element_type=jnp.float32)
    acc = acc + jnp.dot(x.astype(jnp.bfloat16), wd_ref[...],
                        preferred_element_type=jnp.float32)
    o_ref[...] = acc + bias_ref[...]


# ----------------------------------------------------------------------------
# XLA-side glue: rows layout, lane-dense im2col, pad bookkeeping, BN folding
# ----------------------------------------------------------------------------
def im2col_rows(rows, shp, kh, kw, stride, pad):
    """rows: (N*H*W, C) NHWC-ordered -> (N*Ho*Wo, kh*kw*C) lane-dense patches."""
    n, h, w = shp
    c = rows.shape[1]
    x = rows.reshape(n, h, w, c)
    if pad:
        x = jnp.pad(x, ((0, 0), (pad, pad), (pad, pad), (0, 0)))
    hp, wp = h + 2 * pad, w + 2 * pad
    ho = (hp - kh) // stride + 1
    wo = (wp - kw) // stride + 1
    taps = [x[:, i:i + stride * ho:stride, j:j + stride * wo:stride, :]
            .reshape(n * ho * wo, c)
            for i in range(kh) for j in range(kw)]
    return jnp.concatenate(taps, axis=-1), (n, ho, wo)


def _pad_tap_mask(n, h, w, kh, kw, stride, pad, ho, wo):
    """Static (N*Ho*Wo, kh*kw) 0/1 mask: 1 where the tap reads a zero-padded pixel."""
    oh = np.arange(ho) * stride - pad
    ow = np.arange(wo) * stride - pad
    m = np.zeros((n * ho * wo, kh * kw), np.float32)
    for i in range(kh):
        for j in range(kw):
            vh = (oh + i >= 0) & (oh + i < h)
            vw = (ow + j >= 0) & (ow + j < w)
            padded = 1.0 - (vh[:, None] & vw[None, :]).astype(np.float32)
            m[:, i * kw + j] = np.tile(padded.reshape(-1), n)
    return jnp.asarray(m)


def bn_fold(bn):
    gamma, beta, mean, var = bn
    scale = gamma / jnp.sqrt(var + BN_EPS)
    return scale, beta - mean * scale


# ----------------------------------------------------------------------------
# Layer wrappers (one pallas_call each)
# ----------------------------------------------------------------------------
def conv_first(rows, shp, weight, stride, pad):
    """Plain conv (no bias) as one matmul pallas_call on padded NHWC patches."""
    cout, cin, kh, kw = weight.shape
    patches, out_shp = im2col_rows(rows, shp, kh, kw, stride, pad)
    m, k = patches.shape
    mp, kp, cp = _ceil_to(m, SUB), _ceil_to(k, LANE), _ceil_to(cout, LANE)
    patches = jnp.pad(patches, ((0, mp - m), (0, kp - k)))
    wmat = weight.transpose(2, 3, 1, 0).reshape(k, cout)
    wmat = jnp.pad(wmat, ((0, kp - k), (0, cp - cout))).astype(jnp.bfloat16)
    out = pl.pallas_call(
        _conv_matmul_kernel,
        out_shape=jax.ShapeDtypeStruct((mp, cp), jnp.float32),
        compiler_params=_COMPILER_PARAMS,
    )(patches, wmat)
    return out[:m, :cout], out_shp


def res_block(rows, shp, p, cfg, a, b):
    ksize, stride, pad = cfg
    n, h, w = shp
    cin = rows.shape[1]
    cout = p["conv2_w"].shape[0]
    n_taps = ksize * ksize

    patches, out_shp = im2col_rows(rows, shp, ksize, ksize, stride, pad)
    _, ho, wo = out_shp
    m = n * ho * wo
    tk = n_taps * cin
    mp = _ceil_to(m, SUB)
    cp = _ceil_to(cout, LANE)

    # Fold BatchNorms, downsample bias and the a/b scalars into weights/biases.
    s1, t1 = bn_fold(p["bn1"])
    s2, t2 = bn_fold(p["bn2"])
    sd, td = bn_fold(p["ds_bn"])

    # 1x1 conv applied to every tap as one block-diagonal (T*Cin, T*Cin) matmul.
    w1 = p["conv1_w"].reshape(cin, cin).T                      # (cin_in, cin_out)
    w1_bd = jnp.kron(jnp.eye(n_taps, dtype=jnp.float32), w1).astype(jnp.bfloat16)

    # Tap-stacked (K = T*Cin) conv weights, Cout zero-padded to a full lane width.
    w2 = b * p["conv2_w"].transpose(2, 3, 1, 0).reshape(tk, cout)
    w2 = jnp.pad(w2, ((0, 0), (0, cp - cout))).astype(jnp.bfloat16)
    wd = a * sd[None, :] * p["ds_w"].transpose(2, 3, 1, 0).reshape(tk, cout)
    wd = jnp.pad(wd, ((0, 0), (0, cp - cout))).astype(jnp.bfloat16)

    # Lane-dense BN constants (tiled once per tap).
    s1t = jnp.tile(s1, n_taps).reshape(1, tk)
    t1t = jnp.tile(t1, n_taps).reshape(1, tk)
    s2t = jnp.tile(s2, n_taps).reshape(1, tk)
    t2t = jnp.tile(t2, n_taps).reshape(1, tk)

    # Zero-padded taps feed relu(bn(0)) != 0 into the main-path conv2.  Their
    # contribution is a constant per tap, so fold it out via a per-row bias,
    # computed with the same bf16 casts as the kernel (near-exact cancellation).
    base = jnp.pad(a * (sd * p["ds_b"] + td), (0, cp - cout))         # (cp,)
    h1_pad = jnp.maximum(t1, 0.0).astype(jnp.bfloat16)
    y1_pad = jnp.dot(h1_pad, w1.astype(jnp.bfloat16),
                     preferred_element_type=jnp.float32)
    h2_pad = jnp.maximum(y1_pad * s2 + t2, 0.0).astype(jnp.bfloat16)
    v = jnp.einsum("c,tcd->td", h2_pad.astype(jnp.float32),
                   w2.astype(jnp.float32).reshape(n_taps, cin, cp))   # (T, cp)
    pad_mask = _pad_tap_mask(n, h, w, ksize, ksize, stride, pad, ho, wo)
    bias_rows = base[None, :] - jnp.dot(pad_mask, v)                  # (m, cp)
    bias_rows = jnp.pad(bias_rows, ((0, mp - m), (0, 0)))

    patches = jnp.pad(patches, ((0, mp - m), (0, 0)))

    out = pl.pallas_call(
        _resblock_kernel,
        out_shape=jax.ShapeDtypeStruct((mp, cp), jnp.float32),
        compiler_params=_COMPILER_PARAMS,
    )(patches, s1t, t1t, w1_bd, s2t, t2t, w2, wd, bias_rows)
    return out[:m, :cout], out_shp


# ----------------------------------------------------------------------------
# Model forward (inference mode)
# ----------------------------------------------------------------------------
def feature_extractor_img(x, params, *, a, b):
    """x: NCHW f32 -> NCHW f32 forward of FeatureExtractorImg."""
    n, c, h, w = x.shape
    rows = x.transpose(0, 2, 3, 1).reshape(n * h * w, c)       # NHWC rows
    rows, shp = conv_first(rows, (n, h, w), params["conv1_w"], 2, 2)
    for name, cfg in zip(("rb1", "rb2", "rb3", "rb4"), RB_CFGS):
        rows, shp = res_block(rows, shp, params[name], cfg, a, b)
    n, ho, wo = shp
    return rows.reshape(n, ho, wo, -1).transpose(0, 3, 1, 2)


# ----------------------------------------------------------------------------
# Deterministic parameter init (synthetic)
# ----------------------------------------------------------------------------
def conv_init(key, cout, cin, kh, kw, bias):
    k1, k2 = jax.random.split(key)
    fan_in = cin * kh * kw
    w = jax.random.normal(k1, (cout, cin, kh, kw), jnp.float32) / jnp.sqrt(float(fan_in))
    b = 0.05 * jax.random.normal(k2, (cout,), jnp.float32) if bias else None
    return w, b


def bn_init(key, c):
    k1, k2, k3, k4 = jax.random.split(key, 4)
    gamma = 1.0 + 0.1 * jax.random.normal(k1, (c,), jnp.float32)
    beta = 0.1 * jax.random.normal(k2, (c,), jnp.float32)
    mean = 0.1 * jax.random.normal(k3, (c,), jnp.float32)
    var = 0.9 + 0.1 * jnp.abs(jax.random.normal(k4, (c,), jnp.float32))
    return (gamma, beta, mean, var)


def resblock_init(key, cin, cout, ksize):
    keys = jax.random.split(key, 6)
    conv1_w, _ = conv_init(keys[0], cin, cin, 1, 1, bias=False)
    conv2_w, _ = conv_init(keys[1], cout, cin, ksize, ksize, bias=False)
    ds_w, ds_b = conv_init(keys[2], cout, cin, ksize, ksize, bias=True)
    return dict(
        conv1_w=conv1_w, conv2_w=conv2_w, ds_w=ds_w, ds_b=ds_b,
        bn1=bn_init(keys[3], cin), bn2=bn_init(keys[4], cin),
        ds_bn=bn_init(keys[5], cout),
    )


def init_params(key, image_channels, dim):
    keys = jax.random.split(key, 5)
    conv1_w, _ = conv_init(keys[0], dim, image_channels, 3, 3, bias=False)
    params = {"conv1_w": conv1_w}
    chans = [dim, 2 * dim, 3 * dim, 4 * dim, 5 * dim]
    for i, name in enumerate(("rb1", "rb2", "rb3", "rb4")):
        params[name] = resblock_init(keys[i + 1], chans[i], chans[i + 1], RB_CFGS[i][0])
    return params


# ----------------------------------------------------------------------------
# Pure-JAX reference (for correctness check only)
# ----------------------------------------------------------------------------
def _ref_conv(x, w, b, stride, padding):
    y = jax.lax.conv_general_dilated(
        x, w, (stride, stride), [(padding, padding), (padding, padding)],
        dimension_numbers=("NCHW", "OIHW", "NCHW"))
    if b is not None:
        y = y + b[None, :, None, None]
    return y


def _ref_bn(x, bn):
    g, bb, m, v = bn
    return ((x - m[None, :, None, None]) / jnp.sqrt(v[None, :, None, None] + BN_EPS)
            * g[None, :, None, None] + bb[None, :, None, None])


def _ref_resblock(x, p, cfg, a, b):
    _, stride, padding = cfg
    h = jax.nn.relu(_ref_bn(x, p["bn1"]))
    h = _ref_conv(h, p["conv1_w"], None, 1, 0)
    h = jax.nn.relu(_ref_bn(h, p["bn2"]))
    h = _ref_conv(h, p["conv2_w"], None, stride, padding)
    res = _ref_bn(_ref_conv(x, p["ds_w"], p["ds_b"], stride, padding), p["ds_bn"])
    return a * res + b * h


def reference_forward(x, params, a, b):
    out = _ref_conv(x, params["conv1_w"], None, 2, 2)
    for name, cfg in zip(("rb1", "rb2", "rb3", "rb4"), RB_CFGS):
        out = _ref_resblock(out, params[name], cfg, a, b)
    return out


# ----------------------------------------------------------------------------
if __name__ == "__main__":
    # args: image_channels=3, DIM_img=8 (small), a=2.0, b=0.3, CelebA-style 64x64
    image_channels, dim_img = 3, 8
    a_val, b_val = 2.0, 0.3

    key = jax.random.PRNGKey(0)
    kx, kp = jax.random.split(key)
    x = jax.random.normal(kx, (2, image_channels, 64, 64), jnp.float32)
    params = init_params(kp, image_channels, dim_img)

    fwd = jax.jit(functools.partial(feature_extractor_img, a=a_val, b=b_val))
    out = fwd(x, params)
    out = jax.block_until_ready(out)

    assert out.shape == (2, 5 * dim_img, 1, 1), out.shape

    ref = reference_forward(x, params, a_val, b_val)
    denom = float(jnp.maximum(jnp.max(jnp.abs(ref)), 1.0))
    rel_err = float(jnp.max(jnp.abs(out - ref))) / denom
    assert rel_err < 5e-2, f"mismatch vs reference: rel_err={rel_err}"

    print("KERNEL_OK")
</pallas_src>

<mosaic_0001>
module attributes {stable_mosaic.version = 11 : i64} {
  func.func @_conv_matmul_kernel(%arg0: memref<2184x128xf32, #tpu.memory_space<vmem>>, %arg1: memref<128x128xbf16, #tpu.memory_space<vmem>>, %arg2: memref<2184x128xf32, #tpu.memory_space<vmem>>) attributes {dimension_semantics = [], scalar_prefetch = 0 : i64, scratch_operands = 0 : i64, tpu.core_type = #tpu.core_type<tc>} {
    %c0 = arith.constant 0 : index
    %c0_0 = arith.constant 0 : index
    %0 = vector.load %arg0[%c0, %c0_0] : memref<2184x128xf32, #tpu.memory_space<vmem>>, vector<2184x128xf32>
    %1 = arith.truncf %0 : vector<2184x128xf32> to vector<2184x128xbf16>
    %c0_1 = arith.constant 0 : index
    %c0_2 = arith.constant 0 : index
    %2 = vector.load %arg1[%c0_1, %c0_2] : memref<128x128xbf16, #tpu.memory_space<vmem>>, vector<128x128xbf16>
    %cst = arith.constant dense<0.000000e+00> : vector<2184x128xf32>
    %3 = tpu.matmul %1, %2, %cst {dimension_numbers = #tpu.dot_dimension_numbers<[1], [0], [0], [1], [0, 0, 1, 1], [], []>} : vector<2184x128xbf16>, vector<128x128xbf16>, vector<2184x128xf32> -> vector<2184x128xf32>
    %c0_3 = arith.constant 0 : index
    %c0_4 = arith.constant 0 : index
    %4 = vector.load %arg2[%c0_3, %c0_4] : memref<2184x128xf32, #tpu.memory_space<vmem>>, vector<2184x128xf32>
    tpu.vector_store %arg2[%c0_3, %c0_4], %3 {strides = array<i32>} : memref<2184x128xf32, #tpu.memory_space<vmem>>, vector<2184x128xf32>,
    return
  }
}

module attributes {stable_mosaic.version = 11 : i64} {
  func.func @_resblock_kernel(%arg0: memref<512x128xf32, #tpu.memory_space<vmem>>, %arg1: memref<1x128xf32, #tpu.memory_space<vmem>>, %arg2: memref<1x128xf32, #tpu.memory_space<vmem>>, %arg3: memref<128x128xbf16, #tpu.memory_space<vmem>>, %arg4: memref<1x128xf32, #tpu.memory_space<vmem>>, %arg5: memref<1x128xf32, #tpu.memory_space<vmem>>, %arg6: memref<128x128xbf16, #tpu.memory_space<vmem>>, %arg7: memref<128x128xbf16, #tpu.memory_space<vmem>>, %arg8: memref<512x128xf32, #tpu.memory_space<vmem>>, %arg9: memref<512x128xf32, #tpu.memory_space<vmem>>) attributes {dimension_semantics = [], scalar_prefetch = 0 : i64, scratch_operands = 0 : i64, tpu.core_type = #tpu.core_type<tc>} {
    %c0 = arith.constant 0 : index
    %c0_0 = arith.constant 0 : index
    %0 = vector.load %arg0[%c0, %c0_0] : memref<512x128xf32, #tpu.memory_space<vmem>>, vector<512x128xf32>
    %c0_1 = arith.constant 0 : index
    %c0_2 = arith.constant 0 : index
    %1 = vector.load %arg1[%c0_1, %c0_2] : memref<1x128xf32, #tpu.memory_space<vmem>>, vector<1x128xf32>
    %2 = vector.broadcast %1 : vector<1x128xf32> to vector<512x128xf32>
    %3 = arith.mulf %0, %2 : vector<512x128xf32>
    %c0_3 = arith.constant 0 : index
    %c0_4 = arith.constant 0 : index
    %4 = vector.load %arg2[%c0_3, %c0_4] : memref<1x128xf32, #tpu.memory_space<vmem>>, vector<1x128xf32>
    %5 = vector.broadcast %4 : vector<1x128xf32> to vector<512x128xf32>
    %6 = arith.addf %3, %5 : vector<512x128xf32>
    %cst = arith.constant 0.000000e+00 : f32
    %7 = vector.broadcast %cst : f32 to vector<512x128xf32>
    %8 = arith.maximumf %6, %7 : vector<512x128xf32>
    %9 = arith.truncf %8 : vector<512x128xf32> to vector<512x128xbf16>
    %c0_5 = arith.constant 0 : index
    %c0_6 = arith.constant 0 : index
    %10 = vector.load %arg3[%c0_5, %c0_6] : memref<128x128xbf16, #tpu.memory_space<vmem>>, vector<128x128xbf16>
    %cst_7 = arith.constant dense<0.000000e+00> : vector<512x128xf32>
    %11 = tpu.matmul %9, %10, %cst_7 {dimension_numbers = #tpu.dot_dimension_numbers<[1], [0], [0], [1], [0, 0, 1, 1], [], []>} : vector<512x128xbf16>, vector<128x128xbf16>, vector<512x128xf32> -> vector<512x128xf32>
    %c0_8 = arith.constant 0 : index
    %c0_9 = arith.constant 0 : index
    %12 = vector.load %arg4[%c0_8, %c0_9] : memref<1x128xf32, #tpu.memory_space<vmem>>, vector<1x128xf32>
    %13 = vector.broadcast %12 : vector<1x128xf32> to vector<512x128xf32>
    %14 = arith.mulf %11, %13 : vector<512x128xf32>
    %c0_10 = arith.constant 0 : index
    %c0_11 = arith.constant 0 : index
    %15 = vector.load %arg5[%c0_10, %c0_11] : memref<1x128xf32, #tpu.memory_space<vmem>>, vector<1x128xf32>
    %16 = vector.broadcast %15 : vector<1x128xf32> to vector<512x128xf32>
    %17 = arith.addf %14, %16 : vector<512x128xf32>
    %cst_12 = arith.constant 0.000000e+00 : f32
    %18 = vector.broadcast %cst_12 : f32 to vector<512x128xf32>
    %19 = arith.maximumf %17, %18 : vector<512x128xf32>
    %20 = arith.truncf %19 : vector<512x128xf32> to vector<512x128xbf16>
    %c0_13 = arith.constant 0 : index
    %c0_14 = arith.constant 0 : index
    %21 = vector.load %arg6[%c0_13, %c0_14] : memref<128x128xbf16, #tpu.memory_space<vmem>>, vector<128x128xbf16>
    %cst_15 = arith.constant dense<0.000000e+00> : vector<512x128xf32>
    %22 = tpu.matmul %20, %21, %cst_15 {dimension_numbers = #tpu.dot_dimension_numbers<[1], [0], [0], [1], [0, 0, 1, 1], [], []>} : vector<512x128xbf16>, vector<128x128xbf16>, vector<512x128xf32> -> vector<512x128xf32>
    %23 = arith.truncf %0 : vector<512x128xf32> to vector<512x128xbf16>
    %c0_16 = arith.constant 0 : index
    %c0_17 = arith.constant 0 : index
    %24 = vector.load %arg7[%c0_16, %c0_17] : memref<128x128xbf16, #tpu.memory_space<vmem>>, vector<128x128xbf16>
    %cst_18 = arith.constant dense<0.000000e+00> : vector<512x128xf32>
    %25 = tpu.matmul %23, %24, %cst_18 {dimension_numbers = #tpu.dot_dimension_numbers<[1], [0], [0], [1], [0, 0, 1, 1], [], []>} : vector<512x128xbf16>, vector<128x128xbf16>, vector<512x128xf32> -> vector<512x128xf32>
    %26 = arith.addf %22, %25 : vector<512x128xf32>
    %c0_19 = arith.constant 0 : index
    %c0_20 = arith.constant 0 : index
    %27 = vector.load %arg8[%c0_19, %c0_20] : memref<512x128xf32, #tpu.memory_space<vmem>>, vector<512x128xf32>
    %28 = arith.addf %26, %27 : vector<512x128xf32>
    %c0_21 = arith.constant 0 : index
    %c0_22 = arith.constant 0 : index
    %29 = vector.load %arg9[%c0_21, %c0_22] : memref<512x128xf32, #tpu.memory_space<vmem>>, vector<512x128xf32>
    tpu.vector_store %arg9[%c0_21, %c0_22], %28 {strides = array<i32>} : memref<512x128xf32, #tpu.memory_space<vmem>>, vector<512x128xf32>,
    return
  }
}

module attributes {stable_mosaic.version = 11 : i64} {
  func.func @_resblock_kernel(%arg0: memref<128x256xf32, #tpu.memory_space<vmem>>, %arg1: memref<1x256xf32, #tpu.memory_space<vmem>>, %arg2: memref<1x256xf32, #tpu.memory_space<vmem>>, %arg3: memref<256x256xbf16, #tpu.memory_space<vmem>>, %arg4: memref<1x256xf32, #tpu.memory_space<vmem>>, %arg5: memref<1x256xf32, #tpu.memory_space<vmem>>, %arg6: memref<256x128xbf16, #tpu.memory_space<vmem>>, %arg7: memref<256x128xbf16, #tpu.memory_space<vmem>>, %arg8: memref<128x128xf32, #tpu.memory_space<vmem>>, %arg9: memref<128x128xf32, #tpu.memory_space<vmem>>) attributes {dimension_semantics = [], scalar_prefetch = 0 : i64, scratch_operands = 0 : i64, tpu.core_type = #tpu.core_type<tc>} {
    %c0 = arith.constant 0 : index
    %c0_0 = arith.constant 0 : index
    %0 = vector.load %arg0[%c0, %c0_0] : memref<128x256xf32, #tpu.memory_space<vmem>>, vector<128x256xf32>
    %c0_1 = arith.constant 0 : index
    %c0_2 = arith.constant 0 : index
    %1 = vector.load %arg1[%c0_1, %c0_2] : memref<1x256xf32, #tpu.memory_space<vmem>>, vector<1x256xf32>
    %2 = vector.broadcast %1 : vector<1x256xf32> to vector<128x256xf32>
    %3 = arith.mulf %0, %2 : vector<128x256xf32>
    %c0_3 = arith.constant 0 : index
    %c0_4 = arith.constant 0 : index
    %4 = vector.load %arg2[%c0_3, %c0_4] : memref<1x256xf32, #tpu.memory_space<vmem>>, vector<1x256xf32>
    %5 = vector.broadcast %4 : vector<1x256xf32> to vector<128x256xf32>
    %6 = arith.addf %3, %5 : vector<128x256xf32>
    %cst = arith.constant 0.000000e+00 : f32
    %7 = vector.broadcast %cst : f32 to vector<128x256xf32>
    %8 = arith.maximumf %6, %7 : vector<128x256xf32>
    %9 = arith.truncf %8 : vector<128x256xf32> to vector<128x256xbf16>
    %c0_5 = arith.constant 0 : index
    %c0_6 = arith.constant 0 : index
    %10 = vector.load %arg3[%c0_5, %c0_6] : memref<256x256xbf16, #tpu.memory_space<vmem>>, vector<256x256xbf16>
    %cst_7 = arith.constant dense<0.000000e+00> : vector<128x256xf32>
    %11 = tpu.matmul %9, %10, %cst_7 {dimension_numbers = #tpu.dot_dimension_numbers<[1], [0], [0], [1], [0, 0, 1, 1], [], []>} : vector<128x256xbf16>, vector<256x256xbf16>, vector<128x256xf32> -> vector<128x256xf32>
    %c0_8 = arith.constant 0 : index
    %c0_9 = arith.constant 0 : index
    %12 = vector.load %arg4[%c0_8, %c0_9] : memref<1x256xf32, #tpu.memory_space<vmem>>, vector<1x256xf32>
    %13 = vector.broadcast %12 : vector<1x256xf32> to vector<128x256xf32>
    %14 = arith.mulf %11, %13 : vector<128x256xf32>
    %c0_10 = arith.constant 0 : index
    %c0_11 = arith.constant 0 : index
    %15 = vector.load %arg5[%c0_10, %c0_11] : memref<1x256xf32, #tpu.memory_space<vmem>>, vector<1x256xf32>
    %16 = vector.broadcast %15 : vector<1x256xf32> to vector<128x256xf32>
    %17 = arith.addf %14, %16 : vector<128x256xf32>
    %cst_12 = arith.constant 0.000000e+00 : f32
    %18 = vector.broadcast %cst_12 : f32 to vector<128x256xf32>
    %19 = arith.maximumf %17, %18 : vector<128x256xf32>
    %20 = arith.truncf %19 : vector<128x256xf32> to vector<128x256xbf16>
    %c0_13 = arith.constant 0 : index
    %c0_14 = arith.constant 0 : index
    %21 = vector.load %arg6[%c0_13, %c0_14] : memref<256x128xbf16, #tpu.memory_space<vmem>>, vector<256x128xbf16>
    %cst_15 = arith.constant dense<0.000000e+00> : vector<128x128xf32>
    %22 = tpu.matmul %20, %21, %cst_15 {dimension_numbers = #tpu.dot_dimension_numbers<[1], [0], [0], [1], [0, 0, 1, 1], [], []>} : vector<128x256xbf16>, vector<256x128xbf16>, vector<128x128xf32> -> vector<128x128xf32>
    %23 = arith.truncf %0 : vector<128x256xf32> to vector<128x256xbf16>
    %c0_16 = arith.constant 0 : index
    %c0_17 = arith.constant 0 : index
    %24 = vector.load %arg7[%c0_16, %c0_17] : memref<256x128xbf16, #tpu.memory_space<vmem>>, vector<256x128xbf16>
    %cst_18 = arith.constant dense<0.000000e+00> : vector<128x128xf32>
    %25 = tpu.matmul %23, %24, %cst_18 {dimension_numbers = #tpu.dot_dimension_numbers<[1], [0], [0], [1], [0, 0, 1, 1], [], []>} : vector<128x256xbf16>, vector<256x128xbf16>, vector<128x128xf32> -> vector<128x128xf32>
    %26 = arith.addf %22, %25 : vector<128x128xf32>
    %c0_19 = arith.constant 0 : index
    %c0_20 = arith.constant 0 : index
    %27 = vector.load %arg8[%c0_19, %c0_20] : memref<128x128xf32, #tpu.memory_space<vmem>>, vector<128x128xf32>
    %28 = arith.addf %26, %27 : vector<128x128xf32>
    %c0_21 = arith.constant 0 : index
    %c0_22 = arith.constant 0 : index
    %29 = vector.load %arg9[%c0_21, %c0_22] : memref<128x128xf32, #tpu.memory_space<vmem>>, vector<128x128xf32>
    tpu.vector_store %arg9[%c0_21, %c0_22], %28 {strides = array<i32>} : memref<128x128xf32, #tpu.memory_space<vmem>>, vector<128x128xf32>,
    return
  }
}

module attributes {stable_mosaic.version = 11 : i64} {
  func.func @_resblock_kernel(%arg0: memref<32x384xf32, #tpu.memory_space<vmem>>, %arg1: memref<1x384xf32, #tpu.memory_space<vmem>>, %arg2: memref<1x384xf32, #tpu.memory_space<vmem>>, %arg3: memref<384x384xbf16, #tpu.memory_space<vmem>>, %arg4: memref<1x384xf32, #tpu.memory_space<vmem>>, %arg5: memref<1x384xf32, #tpu.memory_space<vmem>>, %arg6: memref<384x128xbf16, #tpu.memory_space<vmem>>, %arg7: memref<384x128xbf16, #tpu.memory_space<vmem>>, %arg8: memref<32x128xf32, #tpu.memory_space<vmem>>, %arg9: memref<32x128xf32, #tpu.memory_space<vmem>>) attributes {dimension_semantics = [], scalar_prefetch = 0 : i64, scratch_operands = 0 : i64, tpu.core_type = #tpu.core_type<tc>} {
    %c0 = arith.constant 0 : index
    %c0_0 = arith.constant 0 : index
    %0 = vector.load %arg0[%c0, %c0_0] : memref<32x384xf32, #tpu.memory_space<vmem>>, vector<32x384xf32>
    %c0_1 = arith.constant 0 : index
    %c0_2 = arith.constant 0 : index
    %1 = vector.load %arg1[%c0_1, %c0_2] : memref<1x384xf32, #tpu.memory_space<vmem>>, vector<1x384xf32>
    %2 = vector.broadcast %1 : vector<1x384xf32> to vector<32x384xf32>
    %3 = arith.mulf %0, %2 : vector<32x384xf32>
    %c0_3 = arith.constant 0 : index
    %c0_4 = arith.constant 0 : index
    %4 = vector.load %arg2[%c0_3, %c0_4] : memref<1x384xf32, #tpu.memory_space<vmem>>, vector<1x384xf32>
    %5 = vector.broadcast %4 : vector<1x384xf32> to vector<32x384xf32>
    %6 = arith.addf %3, %5 : vector<32x384xf32>
    %cst = arith.constant 0.000000e+00 : f32
    %7 = vector.broadcast %cst : f32 to vector<32x384xf32>
    %8 = arith.maximumf %6, %7 : vector<32x384xf32>
    %9 = arith.truncf %8 : vector<32x384xf32> to vector<32x384xbf16>
    %c0_5 = arith.constant 0 : index
    %c0_6 = arith.constant 0 : index
    %10 = vector.load %arg3[%c0_5, %c0_6] : memref<384x384xbf16, #tpu.memory_space<vmem>>, vector<384x384xbf16>
    %cst_7 = arith.constant dense<0.000000e+00> : vector<32x384xf32>
    %11 = tpu.matmul %9, %10, %cst_7 {dimension_numbers = #tpu.dot_dimension_numbers<[1], [0], [0], [1], [0, 0, 1, 1], [], []>} : vector<32x384xbf16>, vector<384x384xbf16>, vector<32x384xf32> -> vector<32x384xf32>
    %c0_8 = arith.constant 0 : index
    %c0_9 = arith.constant 0 : index
    %12 = vector.load %arg4[%c0_8, %c0_9] : memref<1x384xf32, #tpu.memory_space<vmem>>, vector<1x384xf32>
    %13 = vector.broadcast %12 : vector<1x384xf32> to vector<32x384xf32>
    %14 = arith.mulf %11, %13 : vector<32x384xf32>
    %c0_10 = arith.constant 0 : index
    %c0_11 = arith.constant 0 : index
    %15 = vector.load %arg5[%c0_10, %c0_11] : memref<1x384xf32, #tpu.memory_space<vmem>>, vector<1x384xf32>
    %16 = vector.broadcast %15 : vector<1x384xf32> to vector<32x384xf32>
    %17 = arith.addf %14, %16 : vector<32x384xf32>
    %cst_12 = arith.constant 0.000000e+00 : f32
    %18 = vector.broadcast %cst_12 : f32 to vector<32x384xf32>
    %19 = arith.maximumf %17, %18 : vector<32x384xf32>
    %20 = arith.truncf %19 : vector<32x384xf32> to vector<32x384xbf16>
    %c0_13 = arith.constant 0 : index
    %c0_14 = arith.constant 0 : index
    %21 = vector.load %arg6[%c0_13, %c0_14] : memref<384x128xbf16, #tpu.memory_space<vmem>>, vector<384x128xbf16>
    %cst_15 = arith.constant dense<0.000000e+00> : vector<32x128xf32>
    %22 = tpu.matmul %20, %21, %cst_15 {dimension_numbers = #tpu.dot_dimension_numbers<[1], [0], [0], [1], [0, 0, 1, 1], [], []>} : vector<32x384xbf16>, vector<384x128xbf16>, vector<32x128xf32> -> vector<32x128xf32>
    %23 = arith.truncf %0 : vector<32x384xf32> to vector<32x384xbf16>
    %c0_16 = arith.constant 0 : index
    %c0_17 = arith.constant 0 : index
    %24 = vector.load %arg7[%c0_16, %c0_17] : memref<384x128xbf16, #tpu.memory_space<vmem>>, vector<384x128xbf16>
    %cst_18 = arith.constant dense<0.000000e+00> : vector<32x128xf32>
    %25 = tpu.matmul %23, %24, %cst_18 {dimension_numbers = #tpu.dot_dimension_numbers<[1], [0], [0], [1], [0, 0, 1, 1], [], []>} : vector<32x384xbf16>, vector<384x128xbf16>, vector<32x128xf32> -> vector<32x128xf32>
    %26 = arith.addf %22, %25 : vector<32x128xf32>
    %c0_19 = arith.constant 0 : index
    %c0_20 = arith.constant 0 : index
    %27 = vector.load %arg8[%c0_19, %c0_20] : memref<32x128xf32, #tpu.memory_space<vmem>>, vector<32x128xf32>
    %28 = arith.addf %26, %27 : vector<32x128xf32>
    %c0_21 = arith.constant 0 : index
    %c0_22 = arith.constant 0 : index
    %29 = vector.load %arg9[%c0_21, %c0_22] : memref<32x128xf32, #tpu.memory_space<vmem>>, vector<32x128xf32>
    tpu.vector_store %arg9[%c0_21, %c0_22], %28 {strides = array<i32>} : memref<32x128xf32, #tpu.memory_space<vmem>>, vector<32x128xf32>,
    return
  }
}

module attributes {stable_mosaic.version = 11 : i64} {
  func.func @_resblock_kernel(%arg0: memref<8x512xf32, #tpu.memory_space<vmem>>, %arg1: memref<1x512xf32, #tpu.memory_space<vmem>>, %arg2: memref<1x512xf32, #tpu.memory_space<vmem>>, %arg3: memref<512x512xbf16, #tpu.memory_space<vmem>>, %arg4: memref<1x512xf32, #tpu.memory_space<vmem>>, %arg5: memref<1x512xf32, #tpu.memory_space<vmem>>, %arg6: memref<512x128xbf16, #tpu.memory_space<vmem>>, %arg7: memref<512x128xbf16, #tpu.memory_space<vmem>>, %arg8: memref<8x128xf32, #tpu.memory_space<vmem>>, %arg9: memref<8x128xf32, #tpu.memory_space<vmem>>) attributes {dimension_semantics = [], scalar_prefetch = 0 : i64, scratch_operands = 0 : i64, tpu.core_type = #tpu.core_type<tc>} {
    %c0 = arith.constant 0 : index
    %c0_0 = arith.constant 0 : index
    %0 = vector.load %arg0[%c0, %c0_0] : memref<8x512xf32, #tpu.memory_space<vmem>>, vector<8x512xf32>
    %c0_1 = arith.constant 0 : index
    %c0_2 = arith.constant 0 : index
    %1 = vector.load %arg1[%c0_1, %c0_2] : memref<1x512xf32, #tpu.memory_space<vmem>>, vector<1x512xf32>
    %2 = vector.broadcast %1 : vector<1x512xf32> to vector<8x512xf32>
    %3 = arith.mulf %0, %2 : vector<8x512xf32>
    %c0_3 = arith.constant 0 : index
    %c0_4 = arith.constant 0 : index
    %4 = vector.load %arg2[%c0_3, %c0_4] : memref<1x512xf32, #tpu.memory_space<vmem>>, vector<1x512xf32>
    %5 = vector.broadcast %4 : vector<1x512xf32> to vector<8x512xf32>
    %6 = arith.addf %3, %5 : vector<8x512xf32>
    %cst = arith.constant 0.000000e+00 : f32
    %7 = vector.broadcast %cst : f32 to vector<8x512xf32>
    %8 = arith.maximumf %6, %7 : vector<8x512xf32>
    %9 = arith.truncf %8 : vector<8x512xf32> to vector<8x512xbf16>
    %c0_5 = arith.constant 0 : index
    %c0_6 = arith.constant 0 : index
    %10 = vector.load %arg3[%c0_5, %c0_6] : memref<512x512xbf16, #tpu.memory_space<vmem>>, vector<512x512xbf16>
    %cst_7 = arith.constant dense<0.000000e+00> : vector<8x512xf32>
    %11 = tpu.matmul %9, %10, %cst_7 {dimension_numbers = #tpu.dot_dimension_numbers<[1], [0], [0], [1], [0, 0, 1, 1], [], []>} : vector<8x512xbf16>, vector<512x512xbf16>, vector<8x512xf32> -> vector<8x512xf32>
    %c0_8 = arith.constant 0 : index
    %c0_9 = arith.constant 0 : index
    %12 = vector.load %arg4[%c0_8, %c0_9] : memref<1x512xf32, #tpu.memory_space<vmem>>, vector<1x512xf32>
    %13 = vector.broadcast %12 : vector<1x512xf32> to vector<8x512xf32>
    %14 = arith.mulf %11, %13 : vector<8x512xf32>
    %c0_10 = arith.constant 0 : index
    %c0_11 = arith.constant 0 : index
    %15 = vector.load %arg5[%c0_10, %c0_11] : memref<1x512xf32, #tpu.memory_space<vmem>>, vector<1x512xf32>
    %16 = vector.broadcast %15 : vector<1x512xf32> to vector<8x512xf32>
    %17 = arith.addf %14, %16 : vector<8x512xf32>
    %cst_12 = arith.constant 0.000000e+00 : f32
    %18 = vector.broadcast %cst_12 : f32 to vector<8x512xf32>
    %19 = arith.maximumf %17, %18 : vector<8x512xf32>
    %20 = arith.truncf %19 : vector<8x512xf32> to vector<8x512xbf16>
    %c0_13 = arith.constant 0 : index
    %c0_14 = arith.constant 0 : index
    %21 = vector.load %arg6[%c0_13, %c0_14] : memref<512x128xbf16, #tpu.memory_space<vmem>>, vector<512x128xbf16>
    %cst_15 = arith.constant dense<0.000000e+00> : vector<8x128xf32>
    %22 = tpu.matmul %20, %21, %cst_15 {dimension_numbers = #tpu.dot_dimension_numbers<[1], [0], [0], [1], [0, 0, 1, 1], [], []>} : vector<8x512xbf16>, vector<512x128xbf16>, vector<8x128xf32> -> vector<8x128xf32>
    %23 = arith.truncf %0 : vector<8x512xf32> to vector<8x512xbf16>
    %c0_16 = arith.constant 0 : index
    %c0_17 = arith.constant 0 : index
    %24 = vector.load %arg7[%c0_16, %c0_17] : memref<512x128xbf16, #tpu.memory_space<vmem>>, vector<512x128xbf16>
    %cst_18 = arith.constant dense<0.000000e+00> : vector<8x128xf32>
    %25 = tpu.matmul %23, %24, %cst_18 {dimension_numbers = #tpu.dot_dimension_numbers<[1], [0], [0], [1], [0, 0, 1, 1], [], []>} : vector<8x512xbf16>, vector<512x128xbf16>, vector<8x128xf32> -> vector<8x128xf32>
    %26 = arith.addf %22, %25 : vector<8x128xf32>
    %c0_19 = arith.constant 0 : index
    %c0_20 = arith.constant 0 : index
    %27 = vector.load %arg8[%c0_19, %c0_20] : memref<8x128xf32, #tpu.memory_space<vmem>>, vector<8x128xf32>
    %28 = arith.addf %26, %27 : vector<8x128xf32>
    %c0_21 = arith.constant 0 : index
    %c0_22 = arith.constant 0 : index
    %29 = vector.load %arg9[%c0_21, %c0_22] : memref<8x128xf32, #tpu.memory_space<vmem>>, vector<8x128xf32>
    tpu.vector_store %arg9[%c0_21, %c0_22], %28 {strides = array<i32>} : memref<8x128xf32, #tpu.memory_space<vmem>>, vector<8x128xf32>,
    return
  }
}

</mosaic_0001>

<bundles_post_ra>
// kernel: feature_extractor_img.5
= control target key start
LH: loop header
LB: loop body
LE: loop exit
PB: predicated region body
PF: predicated region fallthrough
CT: control target
= control target key end

     0   :  { %v2634_v0 = vmov 0.0   ;;  %vm2635_vm0 = vmmov 0   ;;  %s4603_s1 = inlined_call_operand.vmem [shape: bf16[128,128], index: 1, kind: input, shape index: {}]   ;;  %s4604_s0 = inlined_call_operand.vmem [shape: f32[2184,128], index: 0, kind: input, shape index: {}]   ;;  %s4605_s2 = inlined_call_operand.vmem [shape: f32[2184,128], index: 2, kind: output, shape index: {}]  }
   0x1   :  { %2044 = vmatprep.subr.bf16.mxu0 %v2634_v0  ;;  %v2626_v1 = vld [vmem:[%s4603_s1] sm:$0xff]   ;;  %2608 = vmatprep.subr.bf16.mxu1 %v2634_v0  ;;  %v2627_v2 = vld [vmem:[%s4603_s1 + $0x8] sm:$0xff]   ;;  %v2628_v3 = vld [vmem:[%s4603_s1 + $0x10] sm:$0xff]  }
   0x2   :  { %2060 = vmatprep.mubr.msk.bf16.mxu0 %vm2635_vm0, %v2634_v0  ;;  %2336 = vmatprep.mubr.msk.bf16.mxu1 %vm2635_vm0, %v2634_v0  ;;  %v2629_v4 = vld [vmem:[%s4603_s1 + $0x18] sm:$0xff]   ;;  %v2630_v5 = vld [vmem:[%s4603_s1 + $0x20] sm:$0xff]   ;;  %v2631_v6 = vld [vmem:[%s4603_s1 + $0x28] sm:$0xff]  }
   0x3   :  { %2045 = vmatpush3.bf16.msra.mxu0 %v2626_v1  ;;  %2616 = vmatpush3.bf16.msra.mxu1 %v2626_v1  ;;  %v2632_v7 = vld [vmem:[%s4603_s1 + $0x30] sm:$0xff]   ;;  %v2633_v8 = vld [vmem:[%s4603_s1 + $0x38] sm:$0xff]   ;;  %v12_v9 = vld [vmem:[%s4604_s0] sm:$0xff] }
   0x4   :  { %2046 = vmatprep.subr.bf16.mxu0 %v2634_v0  ;;  %2609 = vmatprep.subr.bf16.mxu1 %v2634_v0  ;;  %v13_v10 = vld [vmem:[%s4604_s0 + $0x8] sm:$0xff]  ;;  %v150_v11 = vld [vmem:[%s4604_s0 + $0x450] sm:$0xff]  ;;  %v151_v12 = vld [vmem:[%s4604_s0 + $0x458] sm:$0xff] }
   0x5   :  { %v285_v13 = vpack.c.bf16 %v13_v10, %v12_v9  ;;  %v354_v14 = vpack.c.bf16 %v151_v12, %v150_v11  ;;  %v14_v15 = vld [vmem:[%s4604_s0 + $0x10] sm:$0xff]  ;;  %v15_v16 = vld [vmem:[%s4604_s0 + $0x18] sm:$0xff]  ;;  %v152_v17 = vld [vmem:[%s4604_s0 + $0x460] sm:$0xff] }
   0x6   :  { %v153_v18 = vld [vmem:[%s4604_s0 + $0x468] sm:$0xff]  ;;  %v286_v19 = vpack.c.bf16 %v15_v16, %v14_v15  ;;  %v16_v21 = vld [vmem:[%s4604_s0 + $0x20] sm:$0xff]  ;;  %v154_v23 = vld [vmem:[%s4604_s0 + $0x470] sm:$0xff] }
   0x7   :  { %2047 = vmatpush3.bf16.msra.mxu0 %v2627_v2  ;;  %2617 = vmatpush3.bf16.msra.mxu1 %v2627_v2  ;;  %v355_v20 = vpack.c.bf16 %v153_v18, %v152_v17  ;;  %v17_v22 = vld [vmem:[%s4604_s0 + $0x28] sm:$0xff]  ;;  %v155_v24 = vld [vmem:[%s4604_s0 + $0x478] sm:$0xff]  ;;  %v18_v27 = vld [vmem:[%s4604_s0 + $0x30] sm:$0xff] }
   0x8   :  { %2048 = vmatprep.subr.bf16.mxu0 %v2634_v0  ;;  %2610 = vmatprep.subr.bf16.mxu1 %v2634_v0  ;;  %v287_v25 = vpack.c.bf16 %v17_v22, %v16_v21  ;;  %v356_v26 = vpack.c.bf16 %v155_v24, %v154_v23  ;;  %v19_v28 = vld [vmem:[%s4604_s0 + $0x38] sm:$0xff]  ;;  %v156_v29 = vld [vmem:[%s4604_s0 + $0x480] sm:$0xff]  ;;  %v157_v30 = vld [vmem:[%s4604_s0 + $0x488] sm:$0xff] }
   0x9   :  { %v288_v31 = vpack.c.bf16 %v19_v28, %v18_v27  ;;  %v357_v32 = vpack.c.bf16 %v157_v30, %v156_v29  ;;  %v20_v33 = vld [vmem:[%s4604_s0 + $0x40] sm:$0xff]  ;;  %v21_v34 = vld [vmem:[%s4604_s0 + $0x48] sm:$0xff]  ;;  %v158_v35 = vld [vmem:[%s4604_s0 + $0x490] sm:$0xff] }
   0xa   :  { %v159_v36 = vld [vmem:[%s4604_s0 + $0x498] sm:$0xff]  ;;  %v289_v37 = vpack.c.bf16 %v21_v34, %v20_v33  ;;  %v22_v39 = vld [vmem:[%s4604_s0 + $0x50] sm:$0xff]  ;;  %v160_v41 = vld [vmem:[%s4604_s0 + $0x4a0] sm:$0xff] }
   0xb   :  { %2049 = vmatpush3.bf16.msra.mxu0 %v2628_v3  ;;  %2618 = vmatpush3.bf16.msra.mxu1 %v2628_v3  ;;  %v358_v38 = vpack.c.bf16 %v159_v36, %v158_v35  ;;  %v23_v40 = vld [vmem:[%s4604_s0 + $0x58] sm:$0xff]  ;;  %v161_v42 = vld [vmem:[%s4604_s0 + $0x4a8] sm:$0xff]  ;;  %v24_v45 = vld [vmem:[%s4604_s0 + $0x60] sm:$0xff] }
   0xc   :  { %2050 = vmatprep.subr.bf16.mxu0 %v2634_v0  ;;  %2611 = vmatprep.subr.bf16.mxu1 %v2634_v0  ;;  %v290_v43 = vpack.c.bf16 %v23_v40, %v22_v39  ;;  %v359_v44 = vpack.c.bf16 %v161_v42, %v160_v41  ;;  %v25_v46 = vld [vmem:[%s4604_s0 + $0x68] sm:$0xff]  ;;  %v162_v47 = vld [vmem:[%s4604_s0 + $0x4b0] sm:$0xff]  ;;  %v163_v48 = vld [vmem:[%s4604_s0 + $0x4b8] sm:$0xff] }
   0xd   :  { %v291_v49 = vpack.c.bf16 %v25_v46, %v24_v45  ;;  %v360_v50 = vpack.c.bf16 %v163_v48, %v162_v47  ;;  %v26_v51 = vld [vmem:[%s4604_s0 + $0x70] sm:$0xff]  ;;  %v27_v52 = vld [vmem:[%s4604_s0 + $0x78] sm:$0xff]  ;;  %v164_v53 = vld [vmem:[%s4604_s0 + $0x4c0] sm:$0xff] }
   0xe   :  { %v165_v54 = vld [vmem:[%s4604_s0 + $0x4c8] sm:$0xff]  ;;  %v292_v55 = vpack.c.bf16 %v27_v52, %v26_v51  ;;  %v28_v57 = vld [vmem:[%s4604_s0 + $0x80] sm:$0xff]  ;;  %v166_v59 = vld [vmem:[%s4604_s0 + $0x4d0] sm:$0xff] }
   0xf   :  { %2051 = vmatpush3.bf16.msra.mxu0 %v2629_v4  ;;  %2619 = vmatpush3.bf16.msra.mxu1 %v2629_v4  ;;  %v361_v56 = vpack.c.bf16 %v165_v54, %v164_v53  ;;  %v29_v58 = vld [vmem:[%s4604_s0 + $0x88] sm:$0xff]  ;;  %v167_v60 = vld [vmem:[%s4604_s0 + $0x4d8] sm:$0xff]  ;;  %v30_v63 = vld [vmem:[%s4604_s0 + $0x90] sm:$0xff] }
  0x10   :  { %2052 = vmatprep.subr.bf16.mxu0 %v2634_v0  ;;  %2612 = vmatprep.subr.bf16.mxu1 %v2634_v0  ;;  %v293_v61 = vpack.c.bf16 %v29_v58, %v28_v57  ;;  %v362_v62 = vpack.c.bf16 %v167_v60, %v166_v59  ;;  %v31_v1 = vld [vmem:[%s4604_s0 + $0x98] sm:$0xff]  ;;  %v168_v2 = vld [vmem:[%s4604_s0 + $0x4e0] sm:$0xff]  ;;  %v169_v3 = vld [vmem:[%s4604_s0 + $0x4e8] sm:$0xff] }
  0x11   :  { %v294_v4 = vpack.c.bf16 %v31_v1, %v30_v63  ;;  %v171_v9 = vld [vmem:[%s4604_s0 + $0x4f8] sm:$0xff]  ;;  %v34_v12 = vld [vmem:[%s4604_s0 + $0xb0] sm:$0xff]  ;;  %v173_v15 = vld [vmem:[%s4604_s0 + $0x508] sm:$0xff] }
  0x12   :  { %v36_v18 = vld [vmem:[%s4604_s0 + $0xc0] sm:$0xff]  ;;  %v175_v21 = vld [vmem:[%s4604_s0 + $0x518] sm:$0xff]  ;;  %v38_v24 = vld [vmem:[%s4604_s0 + $0xd0] sm:$0xff] }
  0x13   :  { %2053 = vmatpush3.bf16.msra.mxu0 %v2630_v5  ;;  %2620 = vmatpush3.bf16.msra.mxu1 %v2630_v5  ;;  %v363_v5 = vpack.c.bf16 %v169_v3, %v168_v2  ;;  %v177_v27 = vld [vmem:[%s4604_s0 + $0x528] sm:$0xff]  ;;  %v40_v30 = vld [vmem:[%s4604_s0 + $0xe0] sm:$0xff]  ;;  %v179_v33 = vld [vmem:[%s4604_s0 + $0x538] sm:$0xff] }
  0x14   :  { %2054 = vmatprep.subr.bf16.mxu0 %v2634_v0  ;;  %2613 = vmatprep.subr.bf16.mxu1 %v2634_v0  ;;  %v42_v36 = vld [vmem:[%s4604_s0 + $0xf0] sm:$0xff]  ;;  %v181_v39 = vld [vmem:[%s4604_s0 + $0x548] sm:$0xff]  ;;  %v44_v42 = vld [vmem:[%s4604_s0 + $0x100] sm:$0xff] }
  0x15   :  { %v183_v45 = vld [vmem:[%s4604_s0 + $0x558] sm:$0xff]  ;;  %v46_v48 = vld [vmem:[%s4604_s0 + $0x110] sm:$0xff]  ;;  %v185_v51 = vld [vmem:[%s4604_s0 + $0x568] sm:$0xff] }
  0x16   :  { %v48_v54 = vld [vmem:[%s4604_s0 + $0x120] sm:$0xff]  ;;  %v187_v57 = vld [vmem:[%s4604_s0 + $0x578] sm:$0xff]  ;;  %v50_v60 = vld [vmem:[%s4604_s0 + $0x130] sm:$0xff] }
  0x17   :  { %2055 = vmatpush3.bf16.msra.mxu0 %v2631_v6  ;;  %2621 = vmatpush3.bf16.msra.mxu1 %v2631_v6  ;;  %v32_v6 = vld [vmem:[%s4604_s0 + $0xa0] sm:$0xff]  ;;  %v189_v63 = vld [vmem:[%s4604_s0 + $0x588] sm:$0xff] }
  0x18   :  { %2056 = vmatprep.subr.bf16.mxu0 %v2634_v0  ;;  %2614 = vmatprep.subr.bf16.mxu1 %v2634_v0  ;;  %v52_v3 = vld [vmem:[%s4604_s0 + $0x140] sm:$0xff] }
  0x1b   :  { %2057 = vmatpush3.bf16.msra.mxu0 %v2632_v7  ;;  %2622 = vmatpush3.bf16.msra.mxu1 %v2632_v7  ;;  %v33_v7 = vld [vmem:[%s4604_s0 + $0xa8] sm:$0xff] }
  0x1c   :  { %2058 = vmatprep.subr.bf16.mxu0 %v2634_v0  ;;  %2615 = vmatprep.subr.bf16.mxu1 %v2634_v0  ;;  %v295_v10 = vpack.c.bf16 %v33_v7, %v32_v6  ;;  %v191_v6 = vld [vmem:[%s4604_s0 + $0x598] sm:$0xff] }
  0x1f   :  { %2059 = vmatpush3.bf16.msra.mxu0 %v2633_v8  ;;  %2623 = vmatpush3.bf16.msra.mxu1 %v2633_v8  ;;  %v170_v8 = vld [vmem:[%s4604_s0 + $0x4f0] sm:$0xff] }
  0x20   :  { %v364_v11 = vpack.c.bf16 %v171_v9, %v170_v8  ;;  %v54_v9 = vld [vmem:[%s4604_s0 + $0x150] sm:$0xff] }
  0x22   :  { %2061 = vmatmul.mubr.bf16.vlgmr.msra.gmra.mrb[0].mxu0 %v285_v13  ;;  %2337 = vmatmul.mubr.bf16.vlgmr.msra.gmra.mrb[0].mxu1 %v354_v14  ;;  %v35_v13 = vld [vmem:[%s4604_s0 + $0xb8] sm:$0xff]  ;;  %v172_v14 = vld [vmem:[%s4604_s0 + $0x500] sm:$0xff] }
  0x23   :  { %2064 = vmatprep.mubr.msk.bf16.mxu0 %vm2635_vm0, %v2634_v0  ;;  %2340 = vmatprep.mubr.msk.bf16.mxu1 %vm2635_vm0, %v2634_v0  ;;  %v296_v16 = vpack.c.bf16 %v35_v13, %v34_v12  ;;  %v365_v17 = vpack.c.bf16 %v173_v15, %v172_v14  ;;  %v193_v12 = vld [vmem:[%s4604_s0 + $0x5a8] sm:$0xff]  ;;  %v56_v15 = vld [vmem:[%s4604_s0 + $0x160] sm:$0xff] }
  0x2a   :  { %2065 = vmatmul.mubr.bf16.gmra.mrb[4].mxu0 %v286_v19  ;;  %2341 = vmatmul.mubr.bf16.gmra.mrb[4].mxu1 %v355_v20  ;;  %v37_v19 = vld [vmem:[%s4604_s0 + $0xc8] sm:$0xff]  ;;  %v174_v20 = vld [vmem:[%s4604_s0 + $0x510] sm:$0xff] }
  0x2b   :  { %2068 = vmatprep.mubr.msk.bf16.mxu0 %vm2635_vm0, %v2634_v0  ;;  %2344 = vmatprep.mubr.msk.bf16.mxu1 %vm2635_vm0, %v2634_v0  ;;  %v297_v22 = vpack.c.bf16 %v37_v19, %v36_v18  ;;  %v366_v23 = vpack.c.bf16 %v175_v21, %v174_v20  ;;  %v195_v18 = vld [vmem:[%s4604_s0 + $0x5b8] sm:$0xff]  ;;  %v58_v21 = vld [vmem:[%s4604_s0 + $0x170] sm:$0xff] }
  0x32   :  { %2069 = vmatmul.mubr.bf16.gmra.mrb[8].mxu0 %v287_v25  ;;  %2345 = vmatmul.mubr.bf16.gmra.mrb[8].mxu1 %v356_v26  ;;  %v39_v25 = vld [vmem:[%s4604_s0 + $0xd8] sm:$0xff]  ;;  %v176_v26 = vld [vmem:[%s4604_s0 + $0x520] sm:$0xff] }
  0x33   :  { %2072 = vmatprep.mubr.msk.bf16.mxu0 %vm2635_vm0, %v2634_v0  ;;  %2348 = vmatprep.mubr.msk.bf16.mxu1 %vm2635_vm0, %v2634_v0  ;;  %v298_v28 = vpack.c.bf16 %v39_v25, %v38_v24  ;;  %v367_v29 = vpack.c.bf16 %v177_v27, %v176_v26  ;;  %v197_v24 = vld [vmem:[%s4604_s0 + $0x5c8] sm:$0xff]  ;;  %v60_v27 = vld [vmem:[%s4604_s0 + $0x180] sm:$0xff] }
  0x3a   :  { %2073 = vmatmul.mubr.bf16.gmra.mrb[12].mxu0 %v288_v31  ;;  %2349 = vmatmul.mubr.bf16.gmra.mrb[12].mxu1 %v357_v32  ;;  %v41_v31 = vld [vmem:[%s4604_s0 + $0xe8] sm:$0xff]  ;;  %v178_v32 = vld [vmem:[%s4604_s0 + $0x530] sm:$0xff] }
  0x3b   :  { %2076 = vmatprep.mubr.msk.bf16.mxu0 %vm2635_vm0, %v2634_v0  ;;  %2352 = vmatprep.mubr.msk.bf16.mxu1 %vm2635_vm0, %v2634_v0  ;;  %v299_v34 = vpack.c.bf16 %v41_v31, %v40_v30  ;;  %v368_v35 = vpack.c.bf16 %v179_v33, %v178_v32  ;;  %v199_v30 = vld [vmem:[%s4604_s0 + $0x5d8] sm:$0xff]  ;;  %v62_v33 = vld [vmem:[%s4604_s0 + $0x190] sm:$0xff] }
  0x42   :  { %2077 = vmatmul.mubr.bf16.gmra.mrb[16].mxu0 %v289_v37  ;;  %2353 = vmatmul.mubr.bf16.gmra.mrb[16].mxu1 %v358_v38  ;;  %v43_v37 = vld [vmem:[%s4604_s0 + $0xf8] sm:$0xff]  ;;  %v180_v38 = vld [vmem:[%s4604_s0 + $0x540] sm:$0xff] }
  0x43   :  { %2080 = vmatprep.mubr.msk.bf16.mxu0 %vm2635_vm0, %v2634_v0  ;;  %2356 = vmatprep.mubr.msk.bf16.mxu1 %vm2635_vm0, %v2634_v0  ;;  %v300_v40 = vpack.c.bf16 %v43_v37, %v42_v36  ;;  %v369_v41 = vpack.c.bf16 %v181_v39, %v180_v38  ;;  %v201_v36 = vld [vmem:[%s4604_s0 + $0x5e8] sm:$0xff]  ;;  %v64_v39 = vld [vmem:[%s4604_s0 + $0x1a0] sm:$0xff] }
  0x4a   :  { %2081 = vmatmul.mubr.bf16.gmra.mrb[20].mxu0 %v290_v43  ;;  %2357 = vmatmul.mubr.bf16.gmra.mrb[20].mxu1 %v359_v44  ;;  %v45_v43 = vld [vmem:[%s4604_s0 + $0x108] sm:$0xff]  ;;  %v182_v44 = vld [vmem:[%s4604_s0 + $0x550] sm:$0xff] }
  0x4b   :  { %2084 = vmatprep.mubr.msk.bf16.mxu0 %vm2635_vm0, %v2634_v0  ;;  %2360 = vmatprep.mubr.msk.bf16.mxu1 %vm2635_vm0, %v2634_v0  ;;  %v301_v46 = vpack.c.bf16 %v45_v43, %v44_v42  ;;  %v370_v47 = vpack.c.bf16 %v183_v45, %v182_v44  ;;  %v203_v42 = vld [vmem:[%s4604_s0 + $0x5f8] sm:$0xff]  ;;  %v66_v45 = vld [vmem:[%s4604_s0 + $0x1b0] sm:$0xff] }
  0x52   :  { %2085 = vmatmul.mubr.bf16.gmra.mrb[24].mxu0 %v291_v49  ;;  %2361 = vmatmul.mubr.bf16.gmra.mrb[24].mxu1 %v360_v50  ;;  %v47_v49 = vld [vmem:[%s4604_s0 + $0x118] sm:$0xff]  ;;  %v184_v50 = vld [vmem:[%s4604_s0 + $0x560] sm:$0xff] }
  0x53   :  { %2088 = vmatprep.mubr.msk.bf16.mxu0 %vm2635_vm0, %v2634_v0  ;;  %2364 = vmatprep.mubr.msk.bf16.mxu1 %vm2635_vm0, %v2634_v0  ;;  %v302_v52 = vpack.c.bf16 %v47_v49, %v46_v48  ;;  %v371_v53 = vpack.c.bf16 %v185_v51, %v184_v50  ;;  %v205_v48 = vld [vmem:[%s4604_s0 + $0x608] sm:$0xff] }
  0x5a   :  { %2089 = vmatmul.mubr.bf16.gmra.mrb[28].mxu0 %v292_v55  ;;  %2365 = vmatmul.mubr.bf16.gmra.mrb[28].mxu1 %v361_v56  ;;  %v49_v55 = vld [vmem:[%s4604_s0 + $0x128] sm:$0xff]  ;;  %v186_v56 = vld [vmem:[%s4604_s0 + $0x570] sm:$0xff] }
  0x5b   :  { %2092 = vmatprep.mubr.msk.bf16.mxu0 %vm2635_vm0, %v2634_v0  ;;  %2368 = vmatprep.mubr.msk.bf16.mxu1 %vm2635_vm0, %v2634_v0  ;;  %v303_v58 = vpack.c.bf16 %v49_v55, %v48_v54  ;;  %v372_v59 = vpack.c.bf16 %v187_v57, %v186_v56 }
  0x62   :  { %2093 = vmatmul.mubr.bf16.gmra.mrb[32].mxu0 %v293_v61  ;;  %2369 = vmatmul.mubr.bf16.gmra.mrb[32].mxu1 %v362_v62  ;;  %v51_v61 = vld [vmem:[%s4604_s0 + $0x138] sm:$0xff]  ;;  %v188_v62 = vld [vmem:[%s4604_s0 + $0x580] sm:$0xff] }
  0x63   :  { %2096 = vmatprep.mubr.msk.bf16.mxu0 %vm2635_vm0, %v2634_v0  ;;  %2372 = vmatprep.mubr.msk.bf16.mxu1 %vm2635_vm0, %v2634_v0  ;;  %v304_v1 = vpack.c.bf16 %v51_v61, %v50_v60  ;;  %v373_v2 = vpack.c.bf16 %v189_v63, %v188_v62  ;;  %v69_v60 = vld [vmem:[%s4604_s0 + $0x1c8] sm:$0xff]  ;;  %v206_v61 = vld [vmem:[%s4604_s0 + $0x610] sm:$0xff]  ;;  %v207_v62 = vld [vmem:[%s4604_s0 + $0x618] sm:$0xff] }
  0x6a   :  { %2097 = vmatmul.mubr.bf16.gmra.mrb[36].mxu0 %v294_v4  ;;  %2373 = vmatmul.mubr.bf16.gmra.mrb[36].mxu1 %v363_v5  ;;  %v53_v4 = vld [vmem:[%s4604_s0 + $0x148] sm:$0xff]  ;;  %v190_v5 = vld [vmem:[%s4604_s0 + $0x590] sm:$0xff] }
  0x6b   :  { %2100 = vmatprep.mubr.msk.bf16.mxu0 %vm2635_vm0, %v2634_v0  ;;  %2376 = vmatprep.mubr.msk.bf16.mxu1 %vm2635_vm0, %v2634_v0  ;;  %v305_v7 = vpack.c.bf16 %v53_v4, %v52_v3  ;;  %v374_v8 = vpack.c.bf16 %v191_v6, %v190_v5  ;;  %v382_v5 = vpack.c.bf16 %v207_v62, %v206_v61 }
  0x72   :  { %2101 = vmatmul.mubr.bf16.gmra.mrb[40].mxu0 %v295_v10  ;;  %2377 = vmatmul.mubr.bf16.gmra.mrb[40].mxu1 %v364_v11  ;;  %v55_v10 = vld [vmem:[%s4604_s0 + $0x158] sm:$0xff]  ;;  %v192_v11 = vld [vmem:[%s4604_s0 + $0x5a0] sm:$0xff] }
  0x73   :  { %2104 = vmatprep.mubr.msk.bf16.mxu0 %vm2635_vm0, %v2634_v0  ;;  %2380 = vmatprep.mubr.msk.bf16.mxu1 %vm2635_vm0, %v2634_v0  ;;  %v306_v13 = vpack.c.bf16 %v55_v10, %v54_v9  ;;  %v375_v14 = vpack.c.bf16 %v193_v12, %v192_v11  ;;  %v70_v10 = vld [vmem:[%s4604_s0 + $0x1d0] sm:$0xff]  ;;  %v71_v11 = vld [vmem:[%s4604_s0 + $0x1d8] sm:$0xff]  ;;  %v208_v12 = vld [vmem:[%s4604_s0 + $0x620] sm:$0xff] }
  0x7a   :  { %2105 = vmatmul.mubr.bf16.gmra.mrb[44].mxu0 %v296_v16  ;;  %2381 = vmatmul.mubr.bf16.gmra.mrb[44].mxu1 %v365_v17  ;;  %v57_v16 = vld [vmem:[%s4604_s0 + $0x168] sm:$0xff]  ;;  %v194_v17 = vld [vmem:[%s4604_s0 + $0x5b0] sm:$0xff] }
  0x7b   :  { %2108 = vmatprep.mubr.msk.bf16.mxu0 %vm2635_vm0, %v2634_v0  ;;  %2384 = vmatprep.mubr.msk.bf16.mxu1 %vm2635_vm0, %v2634_v0  ;;  %v307_v19 = vpack.c.bf16 %v57_v16, %v56_v15  ;;  %v376_v20 = vpack.c.bf16 %v195_v18, %v194_v17  ;;  %v314_v17 = vpack.c.bf16 %v71_v11, %v70_v10 }
  0x82   :  { %2109 = vmatmul.mubr.bf16.gmra.mrb[48].mxu0 %v297_v22  ;;  %2385 = vmatmul.mubr.bf16.gmra.mrb[48].mxu1 %v366_v23  ;;  %v59_v22 = vld [vmem:[%s4604_s0 + $0x178] sm:$0xff]  ;;  %v196_v23 = vld [vmem:[%s4604_s0 + $0x5c0] sm:$0xff] }
  0x83   :  { %2112 = vmatprep.mubr.msk.bf16.mxu0 %vm2635_vm0, %v2634_v0  ;;  %2388 = vmatprep.mubr.msk.bf16.mxu1 %vm2635_vm0, %v2634_v0  ;;  %v308_v25 = vpack.c.bf16 %v59_v22, %v58_v21  ;;  %v377_v26 = vpack.c.bf16 %v197_v24, %v196_v23  ;;  %v72_v24 = vld [vmem:[%s4604_s0 + $0x1e0] sm:$0xff] }
  0x8a   :  { %2113 = vmatmul.mubr.bf16.gmra.mrb[52].mxu0 %v298_v28  ;;  %2389 = vmatmul.mubr.bf16.gmra.mrb[52].mxu1 %v367_v29  ;;  %v61_v28 = vld [vmem:[%s4604_s0 + $0x188] sm:$0xff]  ;;  %v198_v29 = vld [vmem:[%s4604_s0 + $0x5d0] sm:$0xff] }
  0x8b   :  { %2116 = vmatprep.mubr.msk.bf16.mxu0 %vm2635_vm0, %v2634_v0  ;;  %2392 = vmatprep.mubr.msk.bf16.mxu1 %vm2635_vm0, %v2634_v0  ;;  %v309_v31 = vpack.c.bf16 %v61_v28, %v60_v27  ;;  %v378_v32 = vpack.c.bf16 %v199_v30, %v198_v29  ;;  %v211_v27 = vld [vmem:[%s4604_s0 + $0x638] sm:$0xff] }
  0x92   :  { %2117 = vmatmul.mubr.bf16.gmra.mrb[56].mxu0 %v299_v34  ;;  %2393 = vmatmul.mubr.bf16.gmra.mrb[56].mxu1 %v368_v35  ;;  %v63_v34 = vld [vmem:[%s4604_s0 + $0x198] sm:$0xff]  ;;  %v200_v35 = vld [vmem:[%s4604_s0 + $0x5e0] sm:$0xff] }
  0x93   :  { %2120 = vmatprep.mubr.msk.bf16.mxu0 %vm2635_vm0, %v2634_v0  ;;  %2396 = vmatprep.mubr.msk.bf16.mxu1 %vm2635_vm0, %v2634_v0  ;;  %v310_v37 = vpack.c.bf16 %v63_v34, %v62_v33  ;;  %v379_v38 = vpack.c.bf16 %v201_v36, %v200_v35 }
  0x9a   :  { %2121 = vmatmul.mubr.bf16.gmra.mrb[60].mxu0 %v300_v40  ;;  %2397 = vmatmul.mubr.bf16.gmra.mrb[60].mxu1 %v369_v41  ;;  %v65_v40 = vld [vmem:[%s4604_s0 + $0x1a8] sm:$0xff]  ;;  %v202_v41 = vld [vmem:[%s4604_s0 + $0x5f0] sm:$0xff] }
  0x9b   :  { %2124 = vmatprep.mubr.msk.bf16.mxu0 %vm2635_vm0, %v2634_v0  ;;  %2400 = vmatprep.mubr.msk.bf16.mxu1 %vm2635_vm0, %v2634_v0  ;;  %v311_v43 = vpack.c.bf16 %v65_v40, %v64_v39  ;;  %v380_v44 = vpack.c.bf16 %v203_v42, %v202_v41  ;;  %v75_v39 = vld [vmem:[%s4604_s0 + $0x1f8] sm:$0xff]  ;;  %v212_v40 = vld [vmem:[%s4604_s0 + $0x640] sm:$0xff]  ;;  %v213_v41 = vld [vmem:[%s4604_s0 + $0x648] sm:$0xff] }
  0xa2   :  { %2125 = vmatmul.mubr.bf16.gmra.mrb[64].mxu0 %v301_v46  ;;  %2401 = vmatmul.mubr.bf16.gmra.mrb[64].mxu1 %v370_v47  ;;  %v67_v46 = vld [vmem:[%s4604_s0 + $0x1b8] sm:$0xff]  ;;  %v204_v47 = vld [vmem:[%s4604_s0 + $0x600] sm:$0xff] }
  0xa3   :  { %2128 = vmatprep.mubr.msk.bf16.mxu0 %vm2635_vm0, %v2634_v0  ;;  %2404 = vmatprep.mubr.msk.bf16.mxu1 %vm2635_vm0, %v2634_v0  ;;  %v381_v54 = vpack.c.bf16 %v205_v48, %v204_v47  ;;  %v385_v47 = vpack.c.bf16 %v213_v41, %v212_v40 }
  0xaa   :  { %2129 = vmatmul.mubr.bf16.gmra.mrb[68].mxu0 %v302_v52  ;;  %2405 = vmatmul.mubr.bf16.gmra.mrb[68].mxu1 %v371_v53  ;;  %v312_v52 = vpack.c.bf16 %v67_v46, %v66_v45 }
  0xab   :  { %2132 = vmatprep.mubr.msk.bf16.mxu0 %vm2635_vm0, %v2634_v0  ;;  %2408 = vmatprep.mubr.msk.bf16.mxu1 %vm2635_vm0, %v2634_v0 }
  0xb2   :  { %2133 = vmatmul.mubr.bf16.gmra.mrb[72].mxu0 %v303_v58  ;;  %2409 = vmatmul.mubr.bf16.gmra.mrb[72].mxu1 %v372_v59  ;;  %v68_v59 = vld [vmem:[%s4604_s0 + $0x1c0] sm:$0xff] }
  0xb3   :  { %2136 = vmatprep.mubr.msk.bf16.mxu0 %vm2635_vm0, %v2634_v0  ;;  %2412 = vmatprep.mubr.msk.bf16.mxu1 %vm2635_vm0, %v2634_v0  ;;  %v313_v3 = vpack.c.bf16 %v69_v60, %v68_v59 }
  0xba   :  { %2137 = vmatmul.mubr.bf16.gmra.mrb[76].mxu0 %v304_v1  ;;  %2413 = vmatmul.mubr.bf16.gmra.mrb[76].mxu1 %v373_v2 }
  0xbb   :  { %2140 = vmatprep.mubr.msk.bf16.mxu0 %vm2635_vm0, %v2634_v0  ;;  %2416 = vmatprep.mubr.msk.bf16.mxu1 %vm2635_vm0, %v2634_v0 }
  0xc2   :  { %2141 = vmatmul.mubr.bf16.gmra.mrb[80].mxu0 %v305_v7  ;;  %2417 = vmatmul.mubr.bf16.gmra.mrb[80].mxu1 %v374_v8 }
  0xc3   :  { %2144 = vmatprep.mubr.msk.bf16.mxu0 %vm2635_vm0, %v2634_v0  ;;  %2420 = vmatprep.mubr.msk.bf16.mxu1 %vm2635_vm0, %v2634_v0 }
  0xca   :  { %2145 = vmatmul.mubr.bf16.gmra.mrb[84].mxu0 %v306_v13  ;;  %2421 = vmatmul.mubr.bf16.gmra.mrb[84].mxu1 %v375_v14  ;;  %v209_v13 = vld [vmem:[%s4604_s0 + $0x628] sm:$0xff] }
  0xcb   :  { %2148 = vmatprep.mubr.msk.bf16.mxu0 %vm2635_vm0, %v2634_v0  ;;  %2424 = vmatprep.mubr.msk.bf16.mxu1 %vm2635_vm0, %v2634_v0 }
  0xd2   :  { %2149 = vmatmul.mubr.bf16.gmra.mrb[88].mxu0 %v307_v19  ;;  %2425 = vmatmul.mubr.bf16.gmra.mrb[88].mxu1 %v376_v20  ;;  %v383_v19 = vpack.c.bf16 %v209_v13, %v208_v12 }
  0xd3   :  { %2152 = vmatprep.mubr.msk.bf16.mxu0 %vm2635_vm0, %v2634_v0  ;;  %2428 = vmatprep.mubr.msk.bf16.mxu1 %vm2635_vm0, %v2634_v0 }
  0xda   :  { %2153 = vmatmul.mubr.bf16.gmra.mrb[92].mxu0 %v308_v25  ;;  %2429 = vmatmul.mubr.bf16.gmra.mrb[92].mxu1 %v377_v26  ;;  %v73_v25 = vld [vmem:[%s4604_s0 + $0x1e8] sm:$0xff]  ;;  %v210_v26 = vld [vmem:[%s4604_s0 + $0x630] sm:$0xff] }
  0xdb   :  { %2156 = vmatprep.mubr.msk.bf16.mxu0 %vm2635_vm0, %v2634_v0  ;;  %2432 = vmatprep.mubr.msk.bf16.mxu1 %vm2635_vm0, %v2634_v0  ;;  %v384_v33 = vpack.c.bf16 %v211_v27, %v210_v26 }
  0xe2   :  { %2157 = vmatmul.mubr.bf16.gmra.mrb[96].mxu0 %v309_v31  ;;  %2433 = vmatmul.mubr.bf16.gmra.mrb[96].mxu1 %v378_v32  ;;  %v315_v31 = vpack.c.bf16 %v73_v25, %v72_v24 }
  0xe3   :  { %2160 = vmatprep.mubr.msk.bf16.mxu0 %vm2635_vm0, %v2634_v0  ;;  %2436 = vmatprep.mubr.msk.bf16.mxu1 %vm2635_vm0, %v2634_v0 }
  0xea   :  { %2161 = vmatmul.mubr.bf16.gmra.mrb[100].mxu0 %v310_v37  ;;  %2437 = vmatmul.mubr.bf16.gmra.mrb[100].mxu1 %v379_v38  ;;  %v74_v38 = vld [vmem:[%s4604_s0 + $0x1f0] sm:$0xff] }
  0xeb   :  { %2164 = vmatprep.mubr.msk.bf16.mxu0 %vm2635_vm0, %v2634_v0  ;;  %2440 = vmatprep.mubr.msk.bf16.mxu1 %vm2635_vm0, %v2634_v0  ;;  %v316_v45 = vpack.c.bf16 %v75_v39, %v74_v38 }
  0xf2   :  { %2165 = vmatmul.mubr.bf16.gmra.mrb[104].mxu0 %v311_v43  ;;  %2441 = vmatmul.mubr.bf16.gmra.mrb[104].mxu1 %v380_v44 }
  0xf3   :  { %2168 = vmatprep.mubr.msk.bf16.mxu0 %vm2635_vm0, %v2634_v0  ;;  %2444 = vmatprep.mubr.msk.bf16.mxu1 %vm2635_vm0, %v2634_v0 }
  0xf5   :  { %v520_v49 = vpop.f32.mrb[0].mxu0  ;;  %v1072_v50 = vpop.f32.mrb[0].mxu1 }
  0xf6   :  { %1614 = vst [vmem:[%s4605_s2] sm:$0xff] %v520_v49  ;;  %v2062_v51 = vpop.f32.mrb[1].mxu0  ;;  %1752 = vst [vmem:[%s4605_s2 + $0x450] sm:$0xff] %v1072_v50  ;;  %v2338_v53 = vpop.f32.mrb[1].mxu1 }
  0xf7   :  { %v523_v55 = vpop.f32.mrb[2].mxu0  ;;  %v1075_v56 = vpop.f32.mrb[2].mxu1  ;;  %v77_v53 = vld [vmem:[%s4604_s0 + $0x208] sm:$0xff] }
  0xf8   :  { %1615 = vst [vmem:[%s4605_s2 + $0x8] sm:$0xff] %v523_v55  ;;  %v2063_v57 = vpop.f32.mrb[3].mxu0  ;;  %1753 = vst [vmem:[%s4605_s2 + $0x458] sm:$0xff] %v1075_v56  ;;  %v2339_v58 = vpop.f32.mrb[3].mxu1  ;;  %v215_v55 = vld [vmem:[%s4604_s0 + $0x658] sm:$0xff] }
  0xfa   :  { %2169 = vmatmul.mubr.bf16.gmra.mrb[108].mxu0 %v312_v52  ;;  %2445 = vmatmul.mubr.bf16.gmra.mrb[108].mxu1 %v381_v54  ;;  %v76_v52 = vld [vmem:[%s4604_s0 + $0x200] sm:$0xff]  ;;  %v214_v54 = vld [vmem:[%s4604_s0 + $0x650] sm:$0xff] }
  0xfb   :  { %2172 = vmatprep.mubr.msk.bf16.mxu0 %vm2635_vm0, %v2634_v0  ;;  %2448 = vmatprep.mubr.msk.bf16.mxu1 %vm2635_vm0, %v2634_v0  ;;  %v317_v59 = vpack.c.bf16 %v77_v53, %v76_v52  ;;  %v386_v61 = vpack.c.bf16 %v215_v55, %v214_v54 }
  0xfd   :  { %v528_v63 = vpop.f32.mrb[4].mxu0  ;;  %v1080_v1 = vpop.f32.mrb[4].mxu1 }
  0xfe   :  { %1616 = vst [vmem:[%s4605_s2 + $0x10] sm:$0xff] %v528_v63  ;;  %v2066_v2 = vpop.f32.mrb[5].mxu0  ;;  %1754 = vst [vmem:[%s4605_s2 + $0x460] sm:$0xff] %v1080_v1  ;;  %v2342_v4 = vpop.f32.mrb[5].mxu1 }
  0xff   :  { %v531_v6 = vpop.f32.mrb[6].mxu0  ;;  %v1083_v7 = vpop.f32.mrb[6].mxu1  ;;  %v79_v4 = vld [vmem:[%s4604_s0 + $0x218] sm:$0xff] }
 0x100   :  { %1617 = vst [vmem:[%s4605_s2 + $0x18] sm:$0xff] %v531_v6  ;;  %v2067_v8 = vpop.f32.mrb[7].mxu0  ;;  %1755 = vst [vmem:[%s4605_s2 + $0x468] sm:$0xff] %v1083_v7  ;;  %v2343_v9 = vpop.f32.mrb[7].mxu1  ;;  %v217_v6 = vld [vmem:[%s4604_s0 + $0x668] sm:$0xff] }
 0x102   :  { %2173 = vmatmul.mubr.bf16.gmra.mrb[112].mxu0 %v313_v3  ;;  %2449 = vmatmul.mubr.bf16.gmra.mrb[112].mxu1 %v382_v5  ;;  %v78_v3 = vld [vmem:[%s4604_s0 + $0x210] sm:$0xff]  ;;  %v216_v5 = vld [vmem:[%s4604_s0 + $0x660] sm:$0xff] }
 0x103   :  { %2176 = vmatprep.mubr.msk.bf16.mxu0 %vm2635_vm0, %v2634_v0  ;;  %2452 = vmatprep.mubr.msk.bf16.mxu1 %vm2635_vm0, %v2634_v0  ;;  %v318_v10 = vpack.c.bf16 %v79_v4, %v78_v3  ;;  %v387_v12 = vpack.c.bf16 %v217_v6, %v216_v5 }
 0x105   :  { %v536_v14 = vpop.f32.mrb[8].mxu0  ;;  %v1088_v15 = vpop.f32.mrb[8].mxu1 }
 0x106   :  { %1618 = vst [vmem:[%s4605_s2 + $0x20] sm:$0xff] %v536_v14  ;;  %v2070_v16 = vpop.f32.mrb[9].mxu0  ;;  %1756 = vst [vmem:[%s4605_s2 + $0x470] sm:$0xff] %v1088_v15  ;;  %v2346_v18 = vpop.f32.mrb[9].mxu1 }
 0x107   :  { %v539_v20 = vpop.f32.mrb[10].mxu0  ;;  %v1091_v21 = vpop.f32.mrb[10].mxu1  ;;  %v81_v18 = vld [vmem:[%s4604_s0 + $0x228] sm:$0xff] }
 0x108   :  { %1619 = vst [vmem:[%s4605_s2 + $0x28] sm:$0xff] %v539_v20  ;;  %v2071_v22 = vpop.f32.mrb[11].mxu0  ;;  %1757 = vst [vmem:[%s4605_s2 + $0x478] sm:$0xff] %v1091_v21  ;;  %v2347_v23 = vpop.f32.mrb[11].mxu1  ;;  %v219_v20 = vld [vmem:[%s4604_s0 + $0x678] sm:$0xff] }
 0x10a   :  { %2177 = vmatmul.mubr.bf16.gmra.mrb[116].mxu0 %v314_v17  ;;  %2453 = vmatmul.mubr.bf16.gmra.mrb[116].mxu1 %v383_v19  ;;  %v80_v17 = vld [vmem:[%s4604_s0 + $0x220] sm:$0xff]  ;;  %v218_v19 = vld [vmem:[%s4604_s0 + $0x670] sm:$0xff] }
 0x10b   :  { %2180 = vmatprep.mubr.msk.bf16.mxu0 %vm2635_vm0, %v2634_v0  ;;  %2456 = vmatprep.mubr.msk.bf16.mxu1 %vm2635_vm0, %v2634_v0  ;;  %v319_v24 = vpack.c.bf16 %v81_v18, %v80_v17  ;;  %v388_v26 = vpack.c.bf16 %v219_v20, %v218_v19 }
 0x10d   :  { %v544_v28 = vpop.f32.mrb[12].mxu0  ;;  %v1096_v29 = vpop.f32.mrb[12].mxu1 }
 0x10e   :  { %1620 = vst [vmem:[%s4605_s2 + $0x30] sm:$0xff] %v544_v28  ;;  %v2074_v30 = vpop.f32.mrb[13].mxu0  ;;  %1758 = vst [vmem:[%s4605_s2 + $0x480] sm:$0xff] %v1096_v29  ;;  %v2350_v32 = vpop.f32.mrb[13].mxu1 }
 0x10f   :  { %v547_v34 = vpop.f32.mrb[14].mxu0  ;;  %v1099_v35 = vpop.f32.mrb[14].mxu1  ;;  %v83_v32 = vld [vmem:[%s4604_s0 + $0x238] sm:$0xff] }
 0x110   :  { %1621 = vst [vmem:[%s4605_s2 + $0x38] sm:$0xff] %v547_v34  ;;  %v2075_v36 = vpop.f32.mrb[15].mxu0  ;;  %1759 = vst [vmem:[%s4605_s2 + $0x488] sm:$0xff] %v1099_v35  ;;  %v2351_v37 = vpop.f32.mrb[15].mxu1  ;;  %v221_v34 = vld [vmem:[%s4604_s0 + $0x688] sm:$0xff] }
 0x112   :  { %2181 = vmatmul.mubr.bf16.gmra.mrb[120].mxu0 %v315_v31  ;;  %2457 = vmatmul.mubr.bf16.gmra.mrb[120].mxu1 %v384_v33  ;;  %v82_v31 = vld [vmem:[%s4604_s0 + $0x230] sm:$0xff]  ;;  %v220_v33 = vld [vmem:[%s4604_s0 + $0x680] sm:$0xff] }
 0x113   :  { %2184 = vmatprep.mubr.msk.bf16.mxu0 %vm2635_vm0, %v2634_v0  ;;  %2460 = vmatprep.mubr.msk.bf16.mxu1 %vm2635_vm0, %v2634_v0  ;;  %v320_v38 = vpack.c.bf16 %v83_v32, %v82_v31  ;;  %v389_v40 = vpack.c.bf16 %v221_v34, %v220_v33 }
 0x115   :  { %v552_v42 = vpop.f32.mrb[16].mxu0  ;;  %v1104_v43 = vpop.f32.mrb[16].mxu1 }
 0x116   :  { %1622 = vst [vmem:[%s4605_s2 + $0x40] sm:$0xff] %v552_v42  ;;  %v2078_v44 = vpop.f32.mrb[17].mxu0  ;;  %1760 = vst [vmem:[%s4605_s2 + $0x490] sm:$0xff] %v1104_v43  ;;  %v2354_v46 = vpop.f32.mrb[17].mxu1 }
 0x117   :  { %v555_v48 = vpop.f32.mrb[18].mxu0  ;;  %v1107_v49 = vpop.f32.mrb[18].mxu1  ;;  %v85_v46 = vld [vmem:[%s4604_s0 + $0x248] sm:$0xff] }
 0x118   :  { %1623 = vst [vmem:[%s4605_s2 + $0x48] sm:$0xff] %v555_v48  ;;  %v2079_v50 = vpop.f32.mrb[19].mxu0  ;;  %1761 = vst [vmem:[%s4605_s2 + $0x498] sm:$0xff] %v1107_v49  ;;  %v2355_v51 = vpop.f32.mrb[19].mxu1  ;;  %v223_v48 = vld [vmem:[%s4604_s0 + $0x698] sm:$0xff] }
 0x11a   :  { %2185 = vmatmul.mubr.bf16.gmra.mrb[124].mxu0 %v316_v45  ;;  %2461 = vmatmul.mubr.bf16.gmra.mrb[124].mxu1 %v385_v47  ;;  %v84_v45 = vld [vmem:[%s4604_s0 + $0x240] sm:$0xff]  ;;  %v222_v47 = vld [vmem:[%s4604_s0 + $0x690] sm:$0xff] }
 0x11b   :  { %2188 = vmatprep.mubr.msk.bf16.mxu0 %vm2635_vm0, %v2634_v0  ;;  %2464 = vmatprep.mubr.msk.bf16.mxu1 %vm2635_vm0, %v2634_v0  ;;  %v321_v52 = vpack.c.bf16 %v85_v46, %v84_v45  ;;  %v390_v54 = vpack.c.bf16 %v223_v48, %v222_v47 }
 0x11d   :  { %v560_v56 = vpop.f32.mrb[20].mxu0  ;;  %v1112_v57 = vpop.f32.mrb[20].mxu1 }
 0x11e   :  { %1624 = vst [vmem:[%s4605_s2 + $0x50] sm:$0xff] %v560_v56  ;;  %v2082_v58 = vpop.f32.mrb[21].mxu0  ;;  %1762 = vst [vmem:[%s4605_s2 + $0x4a0] sm:$0xff] %v1112_v57  ;;  %v2358_v60 = vpop.f32.mrb[21].mxu1 }
 0x11f   :  { %v563_v62 = vpop.f32.mrb[22].mxu0  ;;  %v1115_v63 = vpop.f32.mrb[22].mxu1  ;;  %v87_v60 = vld [vmem:[%s4604_s0 + $0x258] sm:$0xff] }
 0x120   :  { %1625 = vst [vmem:[%s4605_s2 + $0x58] sm:$0xff] %v563_v62  ;;  %v2083_v1 = vpop.f32.mrb[23].mxu0  ;;  %1763 = vst [vmem:[%s4605_s2 + $0x4a8] sm:$0xff] %v1115_v63  ;;  %v2359_v2 = vpop.f32.mrb[23].mxu1  ;;  %v225_v62 = vld [vmem:[%s4604_s0 + $0x6a8] sm:$0xff] }
 0x122   :  { %2189 = vmatmul.mubr.bf16.gmra.mrb[128].mxu0 %v317_v59  ;;  %2465 = vmatmul.mubr.bf16.gmra.mrb[128].mxu1 %v386_v61  ;;  %v86_v59 = vld [vmem:[%s4604_s0 + $0x250] sm:$0xff]  ;;  %v224_v61 = vld [vmem:[%s4604_s0 + $0x6a0] sm:$0xff] }
 0x123   :  { %2192 = vmatprep.mubr.msk.bf16.mxu0 %vm2635_vm0, %v2634_v0  ;;  %2468 = vmatprep.mubr.msk.bf16.mxu1 %vm2635_vm0, %v2634_v0  ;;  %v322_v3 = vpack.c.bf16 %v87_v60, %v86_v59  ;;  %v391_v5 = vpack.c.bf16 %v225_v62, %v224_v61 }
 0x125   :  { %v568_v7 = vpop.f32.mrb[24].mxu0  ;;  %v1120_v8 = vpop.f32.mrb[24].mxu1 }
 0x126   :  { %1626 = vst [vmem:[%s4605_s2 + $0x60] sm:$0xff] %v568_v7  ;;  %v2086_v9 = vpop.f32.mrb[25].mxu0  ;;  %1764 = vst [vmem:[%s4605_s2 + $0x4b0] sm:$0xff] %v1120_v8  ;;  %v2362_v11 = vpop.f32.mrb[25].mxu1 }
 0x127   :  { %v571_v13 = vpop.f32.mrb[26].mxu0  ;;  %v1123_v14 = vpop.f32.mrb[26].mxu1  ;;  %v89_v11 = vld [vmem:[%s4604_s0 + $0x268] sm:$0xff] }
 0x128   :  { %1627 = vst [vmem:[%s4605_s2 + $0x68] sm:$0xff] %v571_v13  ;;  %v2087_v15 = vpop.f32.mrb[27].mxu0  ;;  %1765 = vst [vmem:[%s4605_s2 + $0x4b8] sm:$0xff] %v1123_v14  ;;  %v2363_v16 = vpop.f32.mrb[27].mxu1  ;;  %v227_v13 = vld [vmem:[%s4604_s0 + $0x6b8] sm:$0xff] }
 0x12a   :  { %2193 = vmatmul.mubr.bf16.gmra.mrb[132].mxu0 %v318_v10  ;;  %2469 = vmatmul.mubr.bf16.gmra.mrb[132].mxu1 %v387_v12  ;;  %v88_v10 = vld [vmem:[%s4604_s0 + $0x260] sm:$0xff]  ;;  %v226_v12 = vld [vmem:[%s4604_s0 + $0x6b0] sm:$0xff] }
 0x12b   :  { %2196 = vmatprep.mubr.msk.bf16.mxu0 %vm2635_vm0, %v2634_v0  ;;  %2472 = vmatprep.mubr.msk.bf16.mxu1 %vm2635_vm0, %v2634_v0  ;;  %v323_v17 = vpack.c.bf16 %v89_v11, %v88_v10  ;;  %v392_v19 = vpack.c.bf16 %v227_v13, %v226_v12 }
 0x12d   :  { %v576_v21 = vpop.f32.mrb[28].mxu0  ;;  %v1128_v22 = vpop.f32.mrb[28].mxu1 }
 0x12e   :  { %1628 = vst [vmem:[%s4605_s2 + $0x70] sm:$0xff] %v576_v21  ;;  %v2090_v23 = vpop.f32.mrb[29].mxu0  ;;  %1766 = vst [vmem:[%s4605_s2 + $0x4c0] sm:$0xff] %v1128_v22  ;;  %v2366_v25 = vpop.f32.mrb[29].mxu1 }
 0x12f   :  { %v579_v27 = vpop.f32.mrb[30].mxu0  ;;  %v1131_v28 = vpop.f32.mrb[30].mxu1  ;;  %v91_v25 = vld [vmem:[%s4604_s0 + $0x278] sm:$0xff] }
 0x130   :  { %1629 = vst [vmem:[%s4605_s2 + $0x78] sm:$0xff] %v579_v27  ;;  %v2091_v29 = vpop.f32.mrb[31].mxu0  ;;  %1767 = vst [vmem:[%s4605_s2 + $0x4c8] sm:$0xff] %v1131_v28  ;;  %v2367_v30 = vpop.f32.mrb[31].mxu1  ;;  %v229_v27 = vld [vmem:[%s4604_s0 + $0x6c8] sm:$0xff] }
 0x132   :  { %2197 = vmatmul.mubr.bf16.gmra.mrb[136].mxu0 %v319_v24  ;;  %2473 = vmatmul.mubr.bf16.gmra.mrb[136].mxu1 %v388_v26  ;;  %v90_v24 = vld [vmem:[%s4604_s0 + $0x270] sm:$0xff]  ;;  %v228_v26 = vld [vmem:[%s4604_s0 + $0x6c0] sm:$0xff] }
 0x133   :  { %2200 = vmatprep.mubr.msk.bf16.mxu0 %vm2635_vm0, %v2634_v0  ;;  %2476 = vmatprep.mubr.msk.bf16.mxu1 %vm2635_vm0, %v2634_v0  ;;  %v324_v31 = vpack.c.bf16 %v91_v25, %v90_v24  ;;  %v393_v33 = vpack.c.bf16 %v229_v27, %v228_v26 }
 0x135   :  { %v584_v35 = vpop.f32.mrb[32].mxu0  ;;  %v1136_v36 = vpop.f32.mrb[32].mxu1 }
 0x136   :  { %1630 = vst [vmem:[%s4605_s2 + $0x80] sm:$0xff] %v584_v35  ;;  %v2094_v37 = vpop.f32.mrb[33].mxu0  ;;  %1768 = vst [vmem:[%s4605_s2 + $0x4d0] sm:$0xff] %v1136_v36  ;;  %v2370_v39 = vpop.f32.mrb[33].mxu1 }
 0x137   :  { %v587_v41 = vpop.f32.mrb[34].mxu0  ;;  %v1139_v42 = vpop.f32.mrb[34].mxu1  ;;  %v93_v39 = vld [vmem:[%s4604_s0 + $0x288] sm:$0xff] }
 0x138   :  { %1631 = vst [vmem:[%s4605_s2 + $0x88] sm:$0xff] %v587_v41  ;;  %v2095_v43 = vpop.f32.mrb[35].mxu0  ;;  %1769 = vst [vmem:[%s4605_s2 + $0x4d8] sm:$0xff] %v1139_v42  ;;  %v2371_v44 = vpop.f32.mrb[35].mxu1  ;;  %v231_v41 = vld [vmem:[%s4604_s0 + $0x6d8] sm:$0xff] }
 0x13a   :  { %2201 = vmatmul.mubr.bf16.gmra.mrb[140].mxu0 %v320_v38  ;;  %2477 = vmatmul.mubr.bf16.gmra.mrb[140].mxu1 %v389_v40  ;;  %v92_v38 = vld [vmem:[%s4604_s0 + $0x280] sm:$0xff]  ;;  %v230_v40 = vld [vmem:[%s4604_s0 + $0x6d0] sm:$0xff] }
 0x13b   :  { %2204 = vmatprep.mubr.msk.bf16.mxu0 %vm2635_vm0, %v2634_v0  ;;  %2480 = vmatprep.mubr.msk.bf16.mxu1 %vm2635_vm0, %v2634_v0  ;;  %v325_v45 = vpack.c.bf16 %v93_v39, %v92_v38  ;;  %v394_v47 = vpack.c.bf16 %v231_v41, %v230_v40 }
 0x13d   :  { %v592_v49 = vpop.f32.mrb[36].mxu0  ;;  %v1144_v50 = vpop.f32.mrb[36].mxu1 }
 0x13e   :  { %1632 = vst [vmem:[%s4605_s2 + $0x90] sm:$0xff] %v592_v49  ;;  %v2098_v51 = vpop.f32.mrb[37].mxu0  ;;  %1770 = vst [vmem:[%s4605_s2 + $0x4e0] sm:$0xff] %v1144_v50  ;;  %v2374_v53 = vpop.f32.mrb[37].mxu1 }
 0x13f   :  { %v595_v55 = vpop.f32.mrb[38].mxu0  ;;  %v1147_v56 = vpop.f32.mrb[38].mxu1  ;;  %v95_v53 = vld [vmem:[%s4604_s0 + $0x298] sm:$0xff] }
 0x140   :  { %1633 = vst [vmem:[%s4605_s2 + $0x98] sm:$0xff] %v595_v55  ;;  %v2099_v57 = vpop.f32.mrb[39].mxu0  ;;  %1771 = vst [vmem:[%s4605_s2 + $0x4e8] sm:$0xff] %v1147_v56  ;;  %v2375_v58 = vpop.f32.mrb[39].mxu1  ;;  %v233_v55 = vld [vmem:[%s4604_s0 + $0x6e8] sm:$0xff] }
 0x142   :  { %2205 = vmatmul.mubr.bf16.gmra.mrb[144].mxu0 %v321_v52  ;;  %2481 = vmatmul.mubr.bf16.gmra.mrb[144].mxu1 %v390_v54  ;;  %v94_v52 = vld [vmem:[%s4604_s0 + $0x290] sm:$0xff]  ;;  %v232_v54 = vld [vmem:[%s4604_s0 + $0x6e0] sm:$0xff] }
 0x143   :  { %2208 = vmatprep.mubr.msk.bf16.mxu0 %vm2635_vm0, %v2634_v0  ;;  %2484 = vmatprep.mubr.msk.bf16.mxu1 %vm2635_vm0, %v2634_v0  ;;  %v326_v59 = vpack.c.bf16 %v95_v53, %v94_v52  ;;  %v395_v61 = vpack.c.bf16 %v233_v55, %v232_v54 }
 0x145   :  { %v600_v63 = vpop.f32.mrb[40].mxu0  ;;  %v1152_v1 = vpop.f32.mrb[40].mxu1 }
 0x146   :  { %1634 = vst [vmem:[%s4605_s2 + $0xa0] sm:$0xff] %v600_v63  ;;  %v2102_v2 = vpop.f32.mrb[41].mxu0  ;;  %1772 = vst [vmem:[%s4605_s2 + $0x4f0] sm:$0xff] %v1152_v1  ;;  %v2378_v4 = vpop.f32.mrb[41].mxu1 }
 0x147   :  { %v603_v6 = vpop.f32.mrb[42].mxu0  ;;  %v1155_v7 = vpop.f32.mrb[42].mxu1  ;;  %v97_v4 = vld [vmem:[%s4604_s0 + $0x2a8] sm:$0xff] }
 0x148   :  { %1635 = vst [vmem:[%s4605_s2 + $0xa8] sm:$0xff] %v603_v6  ;;  %v2103_v8 = vpop.f32.mrb[43].mxu0  ;;  %1773 = vst [vmem:[%s4605_s2 + $0x4f8] sm:$0xff] %v1155_v7  ;;  %v2379_v9 = vpop.f32.mrb[43].mxu1  ;;  %v235_v6 = vld [vmem:[%s4604_s0 + $0x6f8] sm:$0xff] }
 0x14a   :  { %2209 = vmatmul.mubr.bf16.gmra.mrb[148].mxu0 %v322_v3  ;;  %2485 = vmatmul.mubr.bf16.gmra.mrb[148].mxu1 %v391_v5  ;;  %v96_v3 = vld [vmem:[%s4604_s0 + $0x2a0] sm:$0xff]  ;;  %v234_v5 = vld [vmem:[%s4604_s0 + $0x6f0] sm:$0xff] }
 0x14b   :  { %2212 = vmatprep.mubr.msk.bf16.mxu0 %vm2635_vm0, %v2634_v0  ;;  %2488 = vmatprep.mubr.msk.bf16.mxu1 %vm2635_vm0, %v2634_v0  ;;  %v327_v10 = vpack.c.bf16 %v97_v4, %v96_v3  ;;  %v396_v12 = vpack.c.bf16 %v235_v6, %v234_v5 }
 0x14d   :  { %v608_v14 = vpop.f32.mrb[44].mxu0  ;;  %v1160_v15 = vpop.f32.mrb[44].mxu1 }
 0x14e   :  { %1636 = vst [vmem:[%s4605_s2 + $0xb0] sm:$0xff] %v608_v14  ;;  %v2106_v16 = vpop.f32.mrb[45].mxu0  ;;  %1774 = vst [vmem:[%s4605_s2 + $0x500] sm:$0xff] %v1160_v15  ;;  %v2382_v18 = vpop.f32.mrb[45].mxu1 }
 0x14f   :  { %v611_v20 = vpop.f32.mrb[46].mxu0  ;;  %v1163_v21 = vpop.f32.mrb[46].mxu1  ;;  %v99_v18 = vld [vmem:[%s4604_s0 + $0x2b8] sm:$0xff] }
 0x150   :  { %1637 = vst [vmem:[%s4605_s2 + $0xb8] sm:$0xff] %v611_v20  ;;  %v2107_v22 = vpop.f32.mrb[47].mxu0  ;;  %1775 = vst [vmem:[%s4605_s2 + $0x508] sm:$0xff] %v1163_v21  ;;  %v2383_v23 = vpop.f32.mrb[47].mxu1  ;;  %v237_v20 = vld [vmem:[%s4604_s0 + $0x708] sm:$0xff] }
 0x152   :  { %2213 = vmatmul.mubr.bf16.gmra.mrb[152].mxu0 %v323_v17  ;;  %2489 = vmatmul.mubr.bf16.gmra.mrb[152].mxu1 %v392_v19  ;;  %v98_v17 = vld [vmem:[%s4604_s0 + $0x2b0] sm:$0xff]  ;;  %v236_v19 = vld [vmem:[%s4604_s0 + $0x700] sm:$0xff] }
 0x153   :  { %2216 = vmatprep.mubr.msk.bf16.mxu0 %vm2635_vm0, %v2634_v0  ;;  %2492 = vmatprep.mubr.msk.bf16.mxu1 %vm2635_vm0, %v2634_v0  ;;  %v328_v24 = vpack.c.bf16 %v99_v18, %v98_v17  ;;  %v397_v26 = vpack.c.bf16 %v237_v20, %v236_v19 }
 0x155   :  { %v616_v28 = vpop.f32.mrb[48].mxu0  ;;  %v1168_v29 = vpop.f32.mrb[48].mxu1 }
 0x156   :  { %1638 = vst [vmem:[%s4605_s2 + $0xc0] sm:$0xff] %v616_v28  ;;  %v2110_v30 = vpop.f32.mrb[49].mxu0  ;;  %1776 = vst [vmem:[%s4605_s2 + $0x510] sm:$0xff] %v1168_v29  ;;  %v2386_v32 = vpop.f32.mrb[49].mxu1 }
 0x157   :  { %v619_v34 = vpop.f32.mrb[50].mxu0  ;;  %v1171_v35 = vpop.f32.mrb[50].mxu1  ;;  %v101_v32 = vld [vmem:[%s4604_s0 + $0x2c8] sm:$0xff] }
 0x158   :  { %1639 = vst [vmem:[%s4605_s2 + $0xc8] sm:$0xff] %v619_v34  ;;  %v2111_v36 = vpop.f32.mrb[51].mxu0  ;;  %1777 = vst [vmem:[%s4605_s2 + $0x518] sm:$0xff] %v1171_v35  ;;  %v2387_v37 = vpop.f32.mrb[51].mxu1  ;;  %v239_v34 = vld [vmem:[%s4604_s0 + $0x718] sm:$0xff] }
 0x15a   :  { %2217 = vmatmul.mubr.bf16.gmra.mrb[156].mxu0 %v324_v31  ;;  %2493 = vmatmul.mubr.bf16.gmra.mrb[156].mxu1 %v393_v33  ;;  %v100_v31 = vld [vmem:[%s4604_s0 + $0x2c0] sm:$0xff]  ;;  %v238_v33 = vld [vmem:[%s4604_s0 + $0x710] sm:$0xff] }
 0x15b   :  { %2220 = vmatprep.mubr.msk.bf16.mxu0 %vm2635_vm0, %v2634_v0  ;;  %2496 = vmatprep.mubr.msk.bf16.mxu1 %vm2635_vm0, %v2634_v0  ;;  %v329_v38 = vpack.c.bf16 %v101_v32, %v100_v31  ;;  %v398_v40 = vpack.c.bf16 %v239_v34, %v238_v33 }
 0x15d   :  { %v624_v42 = vpop.f32.mrb[52].mxu0  ;;  %v1176_v43 = vpop.f32.mrb[52].mxu1 }
 0x15e   :  { %1640 = vst [vmem:[%s4605_s2 + $0xd0] sm:$0xff] %v624_v42  ;;  %v2114_v44 = vpop.f32.mrb[53].mxu0  ;;  %1778 = vst [vmem:[%s4605_s2 + $0x520] sm:$0xff] %v1176_v43  ;;  %v2390_v46 = vpop.f32.mrb[53].mxu1 }
 0x15f   :  { %v627_v48 = vpop.f32.mrb[54].mxu0  ;;  %v1179_v49 = vpop.f32.mrb[54].mxu1  ;;  %v103_v46 = vld [vmem:[%s4604_s0 + $0x2d8] sm:$0xff] }
 0x160   :  { %1641 = vst [vmem:[%s4605_s2 + $0xd8] sm:$0xff] %v627_v48  ;;  %v2115_v50 = vpop.f32.mrb[55].mxu0  ;;  %1779 = vst [vmem:[%s4605_s2 + $0x528] sm:$0xff] %v1179_v49  ;;  %v2391_v51 = vpop.f32.mrb[55].mxu1  ;;  %v241_v48 = vld [vmem:[%s4604_s0 + $0x728] sm:$0xff] }
 0x162   :  { %2221 = vmatmul.mubr.bf16.gmra.mrb[160].mxu0 %v325_v45  ;;  %2497 = vmatmul.mubr.bf16.gmra.mrb[160].mxu1 %v394_v47  ;;  %v102_v45 = vld [vmem:[%s4604_s0 + $0x2d0] sm:$0xff]  ;;  %v240_v47 = vld [vmem:[%s4604_s0 + $0x720] sm:$0xff] }
 0x163   :  { %2224 = vmatprep.mubr.msk.bf16.mxu0 %vm2635_vm0, %v2634_v0  ;;  %2500 = vmatprep.mubr.msk.bf16.mxu1 %vm2635_vm0, %v2634_v0  ;;  %v330_v52 = vpack.c.bf16 %v103_v46, %v102_v45  ;;  %v399_v54 = vpack.c.bf16 %v241_v48, %v240_v47 }
 0x165   :  { %v632_v56 = vpop.f32.mrb[56].mxu0  ;;  %v1184_v57 = vpop.f32.mrb[56].mxu1 }
 0x166   :  { %1642 = vst [vmem:[%s4605_s2 + $0xe0] sm:$0xff] %v632_v56  ;;  %v2118_v58 = vpop.f32.mrb[57].mxu0  ;;  %1780 = vst [vmem:[%s4605_s2 + $0x530] sm:$0xff] %v1184_v57  ;;  %v2394_v60 = vpop.f32.mrb[57].mxu1 }
 0x167   :  { %v635_v62 = vpop.f32.mrb[58].mxu0  ;;  %v1187_v63 = vpop.f32.mrb[58].mxu1  ;;  %v105_v60 = vld [vmem:[%s4604_s0 + $0x2e8] sm:$0xff] }
 0x168   :  { %1643 = vst [vmem:[%s4605_s2 + $0xe8] sm:$0xff] %v635_v62  ;;  %v2119_v1 = vpop.f32.mrb[59].mxu0  ;;  %1781 = vst [vmem:[%s4605_s2 + $0x538] sm:$0xff] %v1187_v63  ;;  %v2395_v2 = vpop.f32.mrb[59].mxu1  ;;  %v243_v62 = vld [vmem:[%s4604_s0 + $0x738] sm:$0xff] }
 0x16a   :  { %2225 = vmatmul.mubr.bf16.gmra.mrb[164].mxu0 %v326_v59  ;;  %2501 = vmatmul.mubr.bf16.gmra.mrb[164].mxu1 %v395_v61  ;;  %v104_v59 = vld [vmem:[%s4604_s0 + $0x2e0] sm:$0xff]  ;;  %v242_v61 = vld [vmem:[%s4604_s0 + $0x730] sm:$0xff] }
 0x16b   :  { %2228 = vmatprep.mubr.msk.bf16.mxu0 %vm2635_vm0, %v2634_v0  ;;  %2504 = vmatprep.mubr.msk.bf16.mxu1 %vm2635_vm0, %v2634_v0  ;;  %v331_v3 = vpack.c.bf16 %v105_v60, %v104_v59  ;;  %v400_v5 = vpack.c.bf16 %v243_v62, %v242_v61 }
 0x16d   :  { %v640_v7 = vpop.f32.mrb[60].mxu0  ;;  %v1192_v8 = vpop.f32.mrb[60].mxu1 }
 0x16e   :  { %1644 = vst [vmem:[%s4605_s2 + $0xf0] sm:$0xff] %v640_v7  ;;  %v2122_v9 = vpop.f32.mrb[61].mxu0  ;;  %1782 = vst [vmem:[%s4605_s2 + $0x540] sm:$0xff] %v1192_v8  ;;  %v2398_v11 = vpop.f32.mrb[61].mxu1 }
 0x16f   :  { %v643_v13 = vpop.f32.mrb[62].mxu0  ;;  %v1195_v14 = vpop.f32.mrb[62].mxu1  ;;  %v107_v11 = vld [vmem:[%s4604_s0 + $0x2f8] sm:$0xff] }
 0x170   :  { %1645 = vst [vmem:[%s4605_s2 + $0xf8] sm:$0xff] %v643_v13  ;;  %v2123_v15 = vpop.f32.mrb[63].mxu0  ;;  %1783 = vst [vmem:[%s4605_s2 + $0x548] sm:$0xff] %v1195_v14  ;;  %v2399_v16 = vpop.f32.mrb[63].mxu1  ;;  %v245_v13 = vld [vmem:[%s4604_s0 + $0x748] sm:$0xff] }
 0x172   :  { %2229 = vmatmul.mubr.bf16.gmra.mrb[168].mxu0 %v327_v10  ;;  %2505 = vmatmul.mubr.bf16.gmra.mrb[168].mxu1 %v396_v12  ;;  %v106_v10 = vld [vmem:[%s4604_s0 + $0x2f0] sm:$0xff]  ;;  %v244_v12 = vld [vmem:[%s4604_s0 + $0x740] sm:$0xff] }
 0x173   :  { %2232 = vmatprep.mubr.msk.bf16.mxu0 %vm2635_vm0, %v2634_v0  ;;  %2508 = vmatprep.mubr.msk.bf16.mxu1 %vm2635_vm0, %v2634_v0  ;;  %v332_v17 = vpack.c.bf16 %v107_v11, %v106_v10  ;;  %v401_v19 = vpack.c.bf16 %v245_v13, %v244_v12 }
 0x175   :  { %v648_v21 = vpop.f32.mrb[64].mxu0  ;;  %v1200_v22 = vpop.f32.mrb[64].mxu1 }
 0x176   :  { %1646 = vst [vmem:[%s4605_s2 + $0x100] sm:$0xff] %v648_v21  ;;  %v2126_v23 = vpop.f32.mrb[65].mxu0  ;;  %1784 = vst [vmem:[%s4605_s2 + $0x550] sm:$0xff] %v1200_v22  ;;  %v2402_v25 = vpop.f32.mrb[65].mxu1 }
 0x177   :  { %v651_v27 = vpop.f32.mrb[66].mxu0  ;;  %v1203_v28 = vpop.f32.mrb[66].mxu1  ;;  %v109_v25 = vld [vmem:[%s4604_s0 + $0x308] sm:$0xff] }
 0x178   :  { %1647 = vst [vmem:[%s4605_s2 + $0x108] sm:$0xff] %v651_v27  ;;  %v2127_v29 = vpop.f32.mrb[67].mxu0  ;;  %1785 = vst [vmem:[%s4605_s2 + $0x558] sm:$0xff] %v1203_v28  ;;  %v2403_v30 = vpop.f32.mrb[67].mxu1  ;;  %v247_v27 = vld [vmem:[%s4604_s0 + $0x758] sm:$0xff] }
 0x17a   :  { %2233 = vmatmul.mubr.bf16.gmra.mrb[172].mxu0 %v328_v24  ;;  %2509 = vmatmul.mubr.bf16.gmra.mrb[172].mxu1 %v397_v26  ;;  %v108_v24 = vld [vmem:[%s4604_s0 + $0x300] sm:$0xff]  ;;  %v246_v26 = vld [vmem:[%s4604_s0 + $0x750] sm:$0xff] }
 0x17b   :  { %2236 = vmatprep.mubr.msk.bf16.mxu0 %vm2635_vm0, %v2634_v0  ;;  %2512 = vmatprep.mubr.msk.bf16.mxu1 %vm2635_vm0, %v2634_v0  ;;  %v333_v31 = vpack.c.bf16 %v109_v25, %v108_v24  ;;  %v402_v33 = vpack.c.bf16 %v247_v27, %v246_v26 }
 0x17d   :  { %v656_v35 = vpop.f32.mrb[68].mxu0  ;;  %v1208_v36 = vpop.f32.mrb[68].mxu1 }
 0x17e   :  { %1648 = vst [vmem:[%s4605_s2 + $0x110] sm:$0xff] %v656_v35  ;;  %v2130_v37 = vpop.f32.mrb[69].mxu0  ;;  %1786 = vst [vmem:[%s4605_s2 + $0x560] sm:$0xff] %v1208_v36  ;;  %v2406_v39 = vpop.f32.mrb[69].mxu1 }
 0x17f   :  { %v659_v41 = vpop.f32.mrb[70].mxu0  ;;  %v1211_v42 = vpop.f32.mrb[70].mxu1  ;;  %v111_v39 = vld [vmem:[%s4604_s0 + $0x318] sm:$0xff] }
 0x180   :  { %1649 = vst [vmem:[%s4605_s2 + $0x118] sm:$0xff] %v659_v41  ;;  %v2131_v43 = vpop.f32.mrb[71].mxu0  ;;  %1787 = vst [vmem:[%s4605_s2 + $0x568] sm:$0xff] %v1211_v42  ;;  %v2407_v44 = vpop.f32.mrb[71].mxu1  ;;  %v249_v41 = vld [vmem:[%s4604_s0 + $0x768] sm:$0xff] }
 0x182   :  { %2237 = vmatmul.mubr.bf16.gmra.mrb[176].mxu0 %v329_v38  ;;  %2513 = vmatmul.mubr.bf16.gmra.mrb[176].mxu1 %v398_v40  ;;  %v110_v38 = vld [vmem:[%s4604_s0 + $0x310] sm:$0xff]  ;;  %v248_v40 = vld [vmem:[%s4604_s0 + $0x760] sm:$0xff] }
 0x183   :  { %2240 = vmatprep.mubr.msk.bf16.mxu0 %vm2635_vm0, %v2634_v0  ;;  %2516 = vmatprep.mubr.msk.bf16.mxu1 %vm2635_vm0, %v2634_v0  ;;  %v334_v45 = vpack.c.bf16 %v111_v39, %v110_v38  ;;  %v403_v47 = vpack.c.bf16 %v249_v41, %v248_v40 }
 0x185   :  { %v664_v49 = vpop.f32.mrb[72].mxu0  ;;  %v1216_v50 = vpop.f32.mrb[72].mxu1 }
 0x186   :  { %1650 = vst [vmem:[%s4605_s2 + $0x120] sm:$0xff] %v664_v49  ;;  %v2134_v51 = vpop.f32.mrb[73].mxu0  ;;  %1788 = vst [vmem:[%s4605_s2 + $0x570] sm:$0xff] %v1216_v50  ;;  %v2410_v53 = vpop.f32.mrb[73].mxu1 }
 0x187   :  { %v667_v55 = vpop.f32.mrb[74].mxu0  ;;  %v1219_v56 = vpop.f32.mrb[74].mxu1  ;;  %v113_v53 = vld [vmem:[%s4604_s0 + $0x328] sm:$0xff] }
 0x188   :  { %1651 = vst [vmem:[%s4605_s2 + $0x128] sm:$0xff] %v667_v55  ;;  %v2135_v57 = vpop.f32.mrb[75].mxu0  ;;  %1789 = vst [vmem:[%s4605_s2 + $0x578] sm:$0xff] %v1219_v56  ;;  %v2411_v58 = vpop.f32.mrb[75].mxu1  ;;  %v251_v55 = vld [vmem:[%s4604_s0 + $0x778] sm:$0xff] }
 0x18a   :  { %2241 = vmatmul.mubr.bf16.gmra.mrb[180].mxu0 %v330_v52  ;;  %2517 = vmatmul.mubr.bf16.gmra.mrb[180].mxu1 %v399_v54  ;;  %v112_v52 = vld [vmem:[%s4604_s0 + $0x320] sm:$0xff]  ;;  %v250_v54 = vld [vmem:[%s4604_s0 + $0x770] sm:$0xff] }
 0x18b   :  { %2244 = vmatprep.mubr.msk.bf16.mxu0 %vm2635_vm0, %v2634_v0  ;;  %2520 = vmatprep.mubr.msk.bf16.mxu1 %vm2635_vm0, %v2634_v0  ;;  %v335_v59 = vpack.c.bf16 %v113_v53, %v112_v52  ;;  %v404_v61 = vpack.c.bf16 %v251_v55, %v250_v54 }
 0x18d   :  { %v672_v63 = vpop.f32.mrb[76].mxu0  ;;  %v1224_v1 = vpop.f32.mrb[76].mxu1 }
 0x18e   :  { %1652 = vst [vmem:[%s4605_s2 + $0x130] sm:$0xff] %v672_v63  ;;  %v2138_v2 = vpop.f32.mrb[77].mxu0  ;;  %1790 = vst [vmem:[%s4605_s2 + $0x580] sm:$0xff] %v1224_v1  ;;  %v2414_v4 = vpop.f32.mrb[77].mxu1 }
 0x18f   :  { %v675_v6 = vpop.f32.mrb[78].mxu0  ;;  %v1227_v7 = vpop.f32.mrb[78].mxu1  ;;  %v115_v4 = vld [vmem:[%s4604_s0 + $0x338] sm:$0xff] }
 0x190   :  { %1653 = vst [vmem:[%s4605_s2 + $0x138] sm:$0xff] %v675_v6  ;;  %v2139_v8 = vpop.f32.mrb[79].mxu0  ;;  %1791 = vst [vmem:[%s4605_s2 + $0x588] sm:$0xff] %v1227_v7  ;;  %v2415_v9 = vpop.f32.mrb[79].mxu1  ;;  %v253_v6 = vld [vmem:[%s4604_s0 + $0x788] sm:$0xff] }
 0x192   :  { %2245 = vmatmul.mubr.bf16.gmra.mrb[184].mxu0 %v331_v3  ;;  %2521 = vmatmul.mubr.bf16.gmra.mrb[184].mxu1 %v400_v5  ;;  %v114_v3 = vld [vmem:[%s4604_s0 + $0x330] sm:$0xff]  ;;  %v252_v5 = vld [vmem:[%s4604_s0 + $0x780] sm:$0xff] }
 0x193   :  { %2248 = vmatprep.mubr.msk.bf16.mxu0 %vm2635_vm0, %v2634_v0  ;;  %2524 = vmatprep.mubr.msk.bf16.mxu1 %vm2635_vm0, %v2634_v0  ;;  %v336_v10 = vpack.c.bf16 %v115_v4, %v114_v3  ;;  %v405_v12 = vpack.c.bf16 %v253_v6, %v252_v5 }
 0x195   :  { %v680_v14 = vpop.f32.mrb[80].mxu0  ;;  %v1232_v15 = vpop.f32.mrb[80].mxu1 }
 0x196   :  { %1654 = vst [vmem:[%s4605_s2 + $0x140] sm:$0xff] %v680_v14  ;;  %v2142_v16 = vpop.f32.mrb[81].mxu0  ;;  %1792 = vst [vmem:[%s4605_s2 + $0x590] sm:$0xff] %v1232_v15  ;;  %v2418_v18 = vpop.f32.mrb[81].mxu1 }
 0x197   :  { %v683_v20 = vpop.f32.mrb[82].mxu0  ;;  %v1235_v21 = vpop.f32.mrb[82].mxu1  ;;  %v117_v18 = vld [vmem:[%s4604_s0 + $0x348] sm:$0xff] }
 0x198   :  { %1655 = vst [vmem:[%s4605_s2 + $0x148] sm:$0xff] %v683_v20  ;;  %v2143_v22 = vpop.f32.mrb[83].mxu0  ;;  %1793 = vst [vmem:[%s4605_s2 + $0x598] sm:$0xff] %v1235_v21  ;;  %v2419_v23 = vpop.f32.mrb[83].mxu1  ;;  %v255_v20 = vld [vmem:[%s4604_s0 + $0x798] sm:$0xff] }
 0x19a   :  { %2249 = vmatmul.mubr.bf16.gmra.mrb[188].mxu0 %v332_v17  ;;  %2525 = vmatmul.mubr.bf16.gmra.mrb[188].mxu1 %v401_v19  ;;  %v116_v17 = vld [vmem:[%s4604_s0 + $0x340] sm:$0xff]  ;;  %v254_v19 = vld [vmem:[%s4604_s0 + $0x790] sm:$0xff] }
 0x19b   :  { %2252 = vmatprep.mubr.msk.bf16.mxu0 %vm2635_vm0, %v2634_v0  ;;  %2528 = vmatprep.mubr.msk.bf16.mxu1 %vm2635_vm0, %v2634_v0  ;;  %v337_v24 = vpack.c.bf16 %v117_v18, %v116_v17  ;;  %v406_v26 = vpack.c.bf16 %v255_v20, %v254_v19 }
 0x19d   :  { %v688_v28 = vpop.f32.mrb[84].mxu0  ;;  %v1240_v29 = vpop.f32.mrb[84].mxu1 }
 0x19e   :  { %1656 = vst [vmem:[%s4605_s2 + $0x150] sm:$0xff] %v688_v28  ;;  %v2146_v30 = vpop.f32.mrb[85].mxu0  ;;  %1794 = vst [vmem:[%s4605_s2 + $0x5a0] sm:$0xff] %v1240_v29  ;;  %v2422_v32 = vpop.f32.mrb[85].mxu1 }
 0x19f   :  { %v691_v34 = vpop.f32.mrb[86].mxu0  ;;  %v1243_v35 = vpop.f32.mrb[86].mxu1  ;;  %v119_v32 = vld [vmem:[%s4604_s0 + $0x358] sm:$0xff] }
 0x1a0   :  { %1657 = vst [vmem:[%s4605_s2 + $0x158] sm:$0xff] %v691_v34  ;;  %v2147_v36 = vpop.f32.mrb[87].mxu0  ;;  %1795 = vst [vmem:[%s4605_s2 + $0x5a8] sm:$0xff] %v1243_v35  ;;  %v2423_v37 = vpop.f32.mrb[87].mxu1  ;;  %v257_v34 = vld [vmem:[%s4604_s0 + $0x7a8] sm:$0xff] }
 0x1a2   :  { %2253 = vmatmul.mubr.bf16.gmra.mrb[192].mxu0 %v333_v31  ;;  %2529 = vmatmul.mubr.bf16.gmra.mrb[192].mxu1 %v402_v33  ;;  %v118_v31 = vld [vmem:[%s4604_s0 + $0x350] sm:$0xff]  ;;  %v256_v33 = vld [vmem:[%s4604_s0 + $0x7a0] sm:$0xff] }
 0x1a3   :  { %2256 = vmatprep.mubr.msk.bf16.mxu0 %vm2635_vm0, %v2634_v0  ;;  %2532 = vmatprep.mubr.msk.bf16.mxu1 %vm2635_vm0, %v2634_v0  ;;  %v338_v38 = vpack.c.bf16 %v119_v32, %v118_v31  ;;  %v407_v40 = vpack.c.bf16 %v257_v34, %v256_v33 }
 0x1a5   :  { %v696_v42 = vpop.f32.mrb[88].mxu0  ;;  %v1248_v43 = vpop.f32.mrb[88].mxu1 }
 0x1a6   :  { %1658 = vst [vmem:[%s4605_s2 + $0x160] sm:$0xff] %v696_v42  ;;  %v2150_v44 = vpop.f32.mrb[89].mxu0  ;;  %1796 = vst [vmem:[%s4605_s2 + $0x5b0] sm:$0xff] %v1248_v43  ;;  %v2426_v46 = vpop.f32.mrb[89].mxu1 }
 0x1a7   :  { %v699_v48 = vpop.f32.mrb[90].mxu0  ;;  %v1251_v49 = vpop.f32.mrb[90].mxu1  ;;  %v121_v46 = vld [vmem:[%s4604_s0 + $0x368] sm:$0xff] }
 0x1a8   :  { %1659 = vst [vmem:[%s4605_s2 + $0x168] sm:$0xff] %v699_v48  ;;  %v2151_v50 = vpop.f32.mrb[91].mxu0  ;;  %1797 = vst [vmem:[%s4605_s2 + $0x5b8] sm:$0xff] %v1251_v49  ;;  %v2427_v51 = vpop.f32.mrb[91].mxu1  ;;  %v259_v48 = vld [vmem:[%s4604_s0 + $0x7b8] sm:$0xff] }
 0x1aa   :  { %2257 = vmatmul.mubr.bf16.gmra.mrb[196].mxu0 %v334_v45  ;;  %2533 = vmatmul.mubr.bf16.gmra.mrb[196].mxu1 %v403_v47  ;;  %v120_v45 = vld [vmem:[%s4604_s0 + $0x360] sm:$0xff]  ;;  %v258_v47 = vld [vmem:[%s4604_s0 + $0x7b0] sm:$0xff] }
 0x1ab   :  { %2260 = vmatprep.mubr.msk.bf16.mxu0 %vm2635_vm0, %v2634_v0  ;;  %2536 = vmatprep.mubr.msk.bf16.mxu1 %vm2635_vm0, %v2634_v0  ;;  %v339_v52 = vpack.c.bf16 %v121_v46, %v120_v45  ;;  %v408_v54 = vpack.c.bf16 %v259_v48, %v258_v47 }
 0x1ad   :  { %v704_v56 = vpop.f32.mrb[92].mxu0  ;;  %v1256_v57 = vpop.f32.mrb[92].mxu1 }
 0x1ae   :  { %1660 = vst [vmem:[%s4605_s2 + $0x170] sm:$0xff] %v704_v56  ;;  %v2154_v58 = vpop.f32.mrb[93].mxu0  ;;  %1798 = vst [vmem:[%s4605_s2 + $0x5c0] sm:$0xff] %v1256_v57  ;;  %v2430_v60 = vpop.f32.mrb[93].mxu1 }
 0x1af   :  { %v707_v62 = vpop.f32.mrb[94].mxu0  ;;  %v1259_v63 = vpop.f32.mrb[94].mxu1  ;;  %v123_v60 = vld [vmem:[%s4604_s0 + $0x378] sm:$0xff] }
 0x1b0   :  { %1661 = vst [vmem:[%s4605_s2 + $0x178] sm:$0xff] %v707_v62  ;;  %v2155_v1 = vpop.f32.mrb[95].mxu0  ;;  %1799 = vst [vmem:[%s4605_s2 + $0x5c8] sm:$0xff] %v1259_v63  ;;  %v2431_v2 = vpop.f32.mrb[95].mxu1  ;;  %v261_v62 = vld [vmem:[%s4604_s0 + $0x7c8] sm:$0xff] }
 0x1b2   :  { %2261 = vmatmul.mubr.bf16.gmra.mrb[200].mxu0 %v335_v59  ;;  %2537 = vmatmul.mubr.bf16.gmra.mrb[200].mxu1 %v404_v61  ;;  %v122_v59 = vld [vmem:[%s4604_s0 + $0x370] sm:$0xff]  ;;  %v260_v61 = vld [vmem:[%s4604_s0 + $0x7c0] sm:$0xff] }
 0x1b3   :  { %2264 = vmatprep.mubr.msk.bf16.mxu0 %vm2635_vm0, %v2634_v0  ;;  %2540 = vmatprep.mubr.msk.bf16.mxu1 %vm2635_vm0, %v2634_v0  ;;  %v340_v3 = vpack.c.bf16 %v123_v60, %v122_v59  ;;  %v409_v5 = vpack.c.bf16 %v261_v62, %v260_v61 }
 0x1b5   :  { %v712_v7 = vpop.f32.mrb[96].mxu0  ;;  %v1264_v8 = vpop.f32.mrb[96].mxu1 }
 0x1b6   :  { %1662 = vst [vmem:[%s4605_s2 + $0x180] sm:$0xff] %v712_v7  ;;  %v2158_v9 = vpop.f32.mrb[97].mxu0  ;;  %1800 = vst [vmem:[%s4605_s2 + $0x5d0] sm:$0xff] %v1264_v8  ;;  %v2434_v11 = vpop.f32.mrb[97].mxu1 }
 0x1b7   :  { %v715_v13 = vpop.f32.mrb[98].mxu0  ;;  %v1267_v14 = vpop.f32.mrb[98].mxu1  ;;  %v125_v11 = vld [vmem:[%s4604_s0 + $0x388] sm:$0xff] }
 0x1b8   :  { %1663 = vst [vmem:[%s4605_s2 + $0x188] sm:$0xff] %v715_v13  ;;  %v2159_v15 = vpop.f32.mrb[99].mxu0  ;;  %1801 = vst [vmem:[%s4605_s2 + $0x5d8] sm:$0xff] %v1267_v14  ;;  %v2435_v16 = vpop.f32.mrb[99].mxu1  ;;  %v263_v13 = vld [vmem:[%s4604_s0 + $0x7d8] sm:$0xff] }
 0x1ba   :  { %2265 = vmatmul.mubr.bf16.gmra.mrb[204].mxu0 %v336_v10  ;;  %2541 = vmatmul.mubr.bf16.gmra.mrb[204].mxu1 %v405_v12  ;;  %v124_v10 = vld [vmem:[%s4604_s0 + $0x380] sm:$0xff]  ;;  %v262_v12 = vld [vmem:[%s4604_s0 + $0x7d0] sm:$0xff] }
 0x1bb   :  { %2268 = vmatprep.mubr.msk.bf16.mxu0 %vm2635_vm0, %v2634_v0  ;;  %2544 = vmatprep.mubr.msk.bf16.mxu1 %vm2635_vm0, %v2634_v0  ;;  %v341_v17 = vpack.c.bf16 %v125_v11, %v124_v10  ;;  %v410_v19 = vpack.c.bf16 %v263_v13, %v262_v12 }
 0x1bd   :  { %v720_v21 = vpop.f32.mrb[100].mxu0  ;;  %v1272_v22 = vpop.f32.mrb[100].mxu1 }
 0x1be   :  { %1664 = vst [vmem:[%s4605_s2 + $0x190] sm:$0xff] %v720_v21  ;;  %v2162_v23 = vpop.f32.mrb[101].mxu0  ;;  %1802 = vst [vmem:[%s4605_s2 + $0x5e0] sm:$0xff] %v1272_v22  ;;  %v2438_v25 = vpop.f32.mrb[101].mxu1 }
 0x1bf   :  { %v723_v27 = vpop.f32.mrb[102].mxu0  ;;  %v1275_v28 = vpop.f32.mrb[102].mxu1  ;;  %v127_v25 = vld [vmem:[%s4604_s0 + $0x398] sm:$0xff] }
 0x1c0   :  { %1665 = vst [vmem:[%s4605_s2 + $0x198] sm:$0xff] %v723_v27  ;;  %v2163_v29 = vpop.f32.mrb[103].mxu0  ;;  %1803 = vst [vmem:[%s4605_s2 + $0x5e8] sm:$0xff] %v1275_v28  ;;  %v2439_v30 = vpop.f32.mrb[103].mxu1  ;;  %v265_v27 = vld [vmem:[%s4604_s0 + $0x7e8] sm:$0xff] }
 0x1c2   :  { %2269 = vmatmul.mubr.bf16.gmra.mrb[208].mxu0 %v337_v24  ;;  %2545 = vmatmul.mubr.bf16.gmra.mrb[208].mxu1 %v406_v26  ;;  %v126_v24 = vld [vmem:[%s4604_s0 + $0x390] sm:$0xff]  ;;  %v264_v26 = vld [vmem:[%s4604_s0 + $0x7e0] sm:$0xff] }
 0x1c3   :  { %2272 = vmatprep.mubr.msk.bf16.mxu0 %vm2635_vm0, %v2634_v0  ;;  %2548 = vmatprep.mubr.msk.bf16.mxu1 %vm2635_vm0, %v2634_v0  ;;  %v342_v31 = vpack.c.bf16 %v127_v25, %v126_v24  ;;  %v411_v33 = vpack.c.bf16 %v265_v27, %v264_v26 }
 0x1c5   :  { %v728_v35 = vpop.f32.mrb[104].mxu0  ;;  %v1280_v36 = vpop.f32.mrb[104].mxu1 }
 0x1c6   :  { %1666 = vst [vmem:[%s4605_s2 + $0x1a0] sm:$0xff] %v728_v35  ;;  %v2166_v37 = vpop.f32.mrb[105].mxu0  ;;  %1804 = vst [vmem:[%s4605_s2 + $0x5f0] sm:$0xff] %v1280_v36  ;;  %v2442_v39 = vpop.f32.mrb[105].mxu1 }
 0x1c7   :  { %v731_v41 = vpop.f32.mrb[106].mxu0  ;;  %v1283_v42 = vpop.f32.mrb[106].mxu1  ;;  %v129_v39 = vld [vmem:[%s4604_s0 + $0x3a8] sm:$0xff] }
 0x1c8   :  { %1667 = vst [vmem:[%s4605_s2 + $0x1a8] sm:$0xff] %v731_v41  ;;  %v2167_v43 = vpop.f32.mrb[107].mxu0  ;;  %1805 = vst [vmem:[%s4605_s2 + $0x5f8] sm:$0xff] %v1283_v42  ;;  %v2443_v44 = vpop.f32.mrb[107].mxu1  ;;  %v267_v41 = vld [vmem:[%s4604_s0 + $0x7f8] sm:$0xff] }
 0x1ca   :  { %2273 = vmatmul.mubr.bf16.gmra.mrb[212].mxu0 %v338_v38  ;;  %2549 = vmatmul.mubr.bf16.gmra.mrb[212].mxu1 %v407_v40  ;;  %v128_v38 = vld [vmem:[%s4604_s0 + $0x3a0] sm:$0xff]  ;;  %v266_v40 = vld [vmem:[%s4604_s0 + $0x7f0] sm:$0xff] }
 0x1cb   :  { %2276 = vmatprep.mubr.msk.bf16.mxu0 %vm2635_vm0, %v2634_v0  ;;  %2552 = vmatprep.mubr.msk.bf16.mxu1 %vm2635_vm0, %v2634_v0  ;;  %v343_v45 = vpack.c.bf16 %v129_v39, %v128_v38  ;;  %v412_v47 = vpack.c.bf16 %v267_v41, %v266_v40 }
 0x1cd   :  { %v736_v49 = vpop.f32.mrb[108].mxu0  ;;  %v1288_v50 = vpop.f32.mrb[108].mxu1 }
 0x1ce   :  { %1668 = vst [vmem:[%s4605_s2 + $0x1b0] sm:$0xff] %v736_v49  ;;  %v2170_v51 = vpop.f32.mrb[109].mxu0  ;;  %1806 = vst [vmem:[%s4605_s2 + $0x600] sm:$0xff] %v1288_v50  ;;  %v2446_v53 = vpop.f32.mrb[109].mxu1 }
 0x1cf   :  { %v739_v55 = vpop.f32.mrb[110].mxu0  ;;  %v1291_v56 = vpop.f32.mrb[110].mxu1  ;;  %v131_v53 = vld [vmem:[%s4604_s0 + $0x3b8] sm:$0xff] }
 0x1d0   :  { %1669 = vst [vmem:[%s4605_s2 + $0x1b8] sm:$0xff] %v739_v55  ;;  %v2171_v57 = vpop.f32.mrb[111].mxu0  ;;  %1807 = vst [vmem:[%s4605_s2 + $0x608] sm:$0xff] %v1291_v56  ;;  %v2447_v58 = vpop.f32.mrb[111].mxu1  ;;  %v269_v55 = vld [vmem:[%s4604_s0 + $0x808] sm:$0xff] }
 0x1d2   :  { %2277 = vmatmul.mubr.bf16.gmra.mrb[216].mxu0 %v339_v52  ;;  %2553 = vmatmul.mubr.bf16.gmra.mrb[216].mxu1 %v408_v54  ;;  %v130_v52 = vld [vmem:[%s4604_s0 + $0x3b0] sm:$0xff]  ;;  %v268_v54 = vld [vmem:[%s4604_s0 + $0x800] sm:$0xff] }
 0x1d3   :  { %2280 = vmatprep.mubr.msk.bf16.mxu0 %vm2635_vm0, %v2634_v0  ;;  %2556 = vmatprep.mubr.msk.bf16.mxu1 %vm2635_vm0, %v2634_v0  ;;  %v344_v59 = vpack.c.bf16 %v131_v53, %v130_v52  ;;  %v413_v61 = vpack.c.bf16 %v269_v55, %v268_v54 }
 0x1d5   :  { %v744_v63 = vpop.f32.mrb[112].mxu0  ;;  %v1296_v1 = vpop.f32.mrb[112].mxu1 }
 0x1d6   :  { %1670 = vst [vmem:[%s4605_s2 + $0x1c0] sm:$0xff] %v744_v63  ;;  %v2174_v2 = vpop.f32.mrb[113].mxu0  ;;  %1808 = vst [vmem:[%s4605_s2 + $0x610] sm:$0xff] %v1296_v1  ;;  %v2450_v4 = vpop.f32.mrb[113].mxu1 }
 0x1d7   :  { %v747_v6 = vpop.f32.mrb[114].mxu0  ;;  %v1299_v7 = vpop.f32.mrb[114].mxu1  ;;  %v133_v4 = vld [vmem:[%s4604_s0 + $0x3c8] sm:$0xff] }
 0x1d8   :  { %1671 = vst [vmem:[%s4605_s2 + $0x1c8] sm:$0xff] %v747_v6  ;;  %v2175_v8 = vpop.f32.mrb[115].mxu0  ;;  %1809 = vst [vmem:[%s4605_s2 + $0x618] sm:$0xff] %v1299_v7  ;;  %v2451_v9 = vpop.f32.mrb[115].mxu1  ;;  %v271_v6 = vld [vmem:[%s4604_s0 + $0x818] sm:$0xff] }
 0x1da   :  { %2281 = vmatmul.mubr.bf16.gmra.mrb[220].mxu0 %v340_v3  ;;  %2557 = vmatmul.mubr.bf16.gmra.mrb[220].mxu1 %v409_v5  ;;  %v132_v3 = vld [vmem:[%s4604_s0 + $0x3c0] sm:$0xff]  ;;  %v270_v5 = vld [vmem:[%s4604_s0 + $0x810] sm:$0xff] }
 0x1db   :  { %2284 = vmatprep.mubr.msk.bf16.mxu0 %vm2635_vm0, %v2634_v0  ;;  %2560 = vmatprep.mubr.msk.bf16.mxu1 %vm2635_vm0, %v2634_v0  ;;  %v345_v10 = vpack.c.bf16 %v133_v4, %v132_v3  ;;  %v414_v12 = vpack.c.bf16 %v271_v6, %v270_v5 }
 0x1dd   :  { %v752_v14 = vpop.f32.mrb[116].mxu0  ;;  %v1304_v15 = vpop.f32.mrb[116].mxu1 }
 0x1de   :  { %1672 = vst [vmem:[%s4605_s2 + $0x1d0] sm:$0xff] %v752_v14  ;;  %v2178_v16 = vpop.f32.mrb[117].mxu0  ;;  %1810 = vst [vmem:[%s4605_s2 + $0x620] sm:$0xff] %v1304_v15  ;;  %v2454_v18 = vpop.f32.mrb[117].mxu1 }
 0x1df   :  { %v755_v20 = vpop.f32.mrb[118].mxu0  ;;  %v1307_v21 = vpop.f32.mrb[118].mxu1  ;;  %v135_v18 = vld [vmem:[%s4604_s0 + $0x3d8] sm:$0xff] }
 0x1e0   :  { %1673 = vst [vmem:[%s4605_s2 + $0x1d8] sm:$0xff] %v755_v20  ;;  %v2179_v22 = vpop.f32.mrb[119].mxu0  ;;  %1811 = vst [vmem:[%s4605_s2 + $0x628] sm:$0xff] %v1307_v21  ;;  %v2455_v23 = vpop.f32.mrb[119].mxu1  ;;  %v273_v20 = vld [vmem:[%s4604_s0 + $0x828] sm:$0xff] }
 0x1e2   :  { %2285 = vmatmul.mubr.bf16.gmra.mrb[224].mxu0 %v341_v17  ;;  %2561 = vmatmul.mubr.bf16.gmra.mrb[224].mxu1 %v410_v19  ;;  %v134_v17 = vld [vmem:[%s4604_s0 + $0x3d0] sm:$0xff]  ;;  %v272_v19 = vld [vmem:[%s4604_s0 + $0x820] sm:$0xff] }
 0x1e3   :  { %2288 = vmatprep.mubr.msk.bf16.mxu0 %vm2635_vm0, %v2634_v0  ;;  %2564 = vmatprep.mubr.msk.bf16.mxu1 %vm2635_vm0, %v2634_v0  ;;  %v346_v24 = vpack.c.bf16 %v135_v18, %v134_v17  ;;  %v415_v26 = vpack.c.bf16 %v273_v20, %v272_v19 }
 0x1e5   :  { %v760_v28 = vpop.f32.mrb[120].mxu0  ;;  %v1312_v29 = vpop.f32.mrb[120].mxu1 }
 0x1e6   :  { %1674 = vst [vmem:[%s4605_s2 + $0x1e0] sm:$0xff] %v760_v28  ;;  %v2182_v30 = vpop.f32.mrb[121].mxu0  ;;  %1812 = vst [vmem:[%s4605_s2 + $0x630] sm:$0xff] %v1312_v29  ;;  %v2458_v32 = vpop.f32.mrb[121].mxu1 }
 0x1e7   :  { %v763_v34 = vpop.f32.mrb[122].mxu0  ;;  %v1315_v35 = vpop.f32.mrb[122].mxu1  ;;  %v137_v32 = vld [vmem:[%s4604_s0 + $0x3e8] sm:$0xff] }
 0x1e8   :  { %1675 = vst [vmem:[%s4605_s2 + $0x1e8] sm:$0xff] %v763_v34  ;;  %v2183_v36 = vpop.f32.mrb[123].mxu0  ;;  %1813 = vst [vmem:[%s4605_s2 + $0x638] sm:$0xff] %v1315_v35  ;;  %v2459_v37 = vpop.f32.mrb[123].mxu1  ;;  %v275_v34 = vld [vmem:[%s4604_s0 + $0x838] sm:$0xff] }
 0x1ea   :  { %2289 = vmatmul.mubr.bf16.gmra.mrb[228].mxu0 %v342_v31  ;;  %2565 = vmatmul.mubr.bf16.gmra.mrb[228].mxu1 %v411_v33  ;;  %v136_v31 = vld [vmem:[%s4604_s0 + $0x3e0] sm:$0xff]  ;;  %v274_v33 = vld [vmem:[%s4604_s0 + $0x830] sm:$0xff] }
 0x1eb   :  { %2292 = vmatprep.mubr.msk.bf16.mxu0 %vm2635_vm0, %v2634_v0  ;;  %2568 = vmatprep.mubr.msk.bf16.mxu1 %vm2635_vm0, %v2634_v0  ;;  %v347_v38 = vpack.c.bf16 %v137_v32, %v136_v31  ;;  %v416_v40 = vpack.c.bf16 %v275_v34, %v274_v33 }
 0x1ed   :  { %v768_v42 = vpop.f32.mrb[124].mxu0  ;;  %v1320_v43 = vpop.f32.mrb[124].mxu1 }
 0x1ee   :  { %1676 = vst [vmem:[%s4605_s2 + $0x1f0] sm:$0xff] %v768_v42  ;;  %v2186_v44 = vpop.f32.mrb[125].mxu0  ;;  %1814 = vst [vmem:[%s4605_s2 + $0x640] sm:$0xff] %v1320_v43  ;;  %v2462_v46 = vpop.f32.mrb[125].mxu1 }
 0x1ef   :  { %v771_v48 = vpop.f32.mrb[126].mxu0  ;;  %v1323_v49 = vpop.f32.mrb[126].mxu1  ;;  %v139_v46 = vld [vmem:[%s4604_s0 + $0x3f8] sm:$0xff] }
 0x1f0   :  { %1677 = vst [vmem:[%s4605_s2 + $0x1f8] sm:$0xff] %v771_v48  ;;  %v2187_v50 = vpop.f32.mrb[127].mxu0  ;;  %1815 = vst [vmem:[%s4605_s2 + $0x648] sm:$0xff] %v1323_v49  ;;  %v2463_v51 = vpop.f32.mrb[127].mxu1  ;;  %v277_v48 = vld [vmem:[%s4604_s0 + $0x848] sm:$0xff] }
 0x1f2   :  { %2293 = vmatmul.mubr.bf16.gmra.mrb[232].mxu0 %v343_v45  ;;  %2569 = vmatmul.mubr.bf16.gmra.mrb[232].mxu1 %v412_v47  ;;  %v138_v45 = vld [vmem:[%s4604_s0 + $0x3f0] sm:$0xff]  ;;  %v276_v47 = vld [vmem:[%s4604_s0 + $0x840] sm:$0xff] }
 0x1f3   :  { %2296 = vmatprep.mubr.msk.bf16.mxu0 %vm2635_vm0, %v2634_v0  ;;  %2572 = vmatprep.mubr.msk.bf16.mxu1 %vm2635_vm0, %v2634_v0  ;;  %v348_v52 = vpack.c.bf16 %v139_v46, %v138_v45  ;;  %v417_v54 = vpack.c.bf16 %v277_v48, %v276_v47 }
 0x1f5   :  { %v776_v56 = vpop.f32.mrb[128].mxu0  ;;  %v1328_v57 = vpop.f32.mrb[128].mxu1 }
 0x1f6   :  { %1678 = vst [vmem:[%s4605_s2 + $0x200] sm:$0xff] %v776_v56  ;;  %v2190_v58 = vpop.f32.mrb[129].mxu0  ;;  %1816 = vst [vmem:[%s4605_s2 + $0x650] sm:$0xff] %v1328_v57  ;;  %v2466_v60 = vpop.f32.mrb[129].mxu1 }
 0x1f7   :  { %v779_v62 = vpop.f32.mrb[130].mxu0  ;;  %v1331_v63 = vpop.f32.mrb[130].mxu1  ;;  %v141_v60 = vld [vmem:[%s4604_s0 + $0x408] sm:$0xff] }
 0x1f8   :  { %1679 = vst [vmem:[%s4605_s2 + $0x208] sm:$0xff] %v779_v62  ;;  %v2191_v1 = vpop.f32.mrb[131].mxu0  ;;  %1817 = vst [vmem:[%s4605_s2 + $0x658] sm:$0xff] %v1331_v63  ;;  %v2467_v2 = vpop.f32.mrb[131].mxu1  ;;  %v279_v62 = vld [vmem:[%s4604_s0 + $0x858] sm:$0xff] }
 0x1fa   :  { %2297 = vmatmul.mubr.bf16.gmra.mrb[236].mxu0 %v344_v59  ;;  %2573 = vmatmul.mubr.bf16.gmra.mrb[236].mxu1 %v413_v61  ;;  %v140_v59 = vld [vmem:[%s4604_s0 + $0x400] sm:$0xff]  ;;  %v278_v61 = vld [vmem:[%s4604_s0 + $0x850] sm:$0xff] }
 0x1fb   :  { %2300 = vmatprep.mubr.msk.bf16.mxu0 %vm2635_vm0, %v2634_v0  ;;  %2576 = vmatprep.mubr.msk.bf16.mxu1 %vm2635_vm0, %v2634_v0  ;;  %v349_v3 = vpack.c.bf16 %v141_v60, %v140_v59  ;;  %v418_v5 = vpack.c.bf16 %v279_v62, %v278_v61 }
 0x1fd   :  { %v784_v7 = vpop.f32.mrb[132].mxu0  ;;  %v1336_v8 = vpop.f32.mrb[132].mxu1 }
 0x1fe   :  { %1680 = vst [vmem:[%s4605_s2 + $0x210] sm:$0xff] %v784_v7  ;;  %v2194_v9 = vpop.f32.mrb[133].mxu0  ;;  %1818 = vst [vmem:[%s4605_s2 + $0x660] sm:$0xff] %v1336_v8  ;;  %v2470_v11 = vpop.f32.mrb[133].mxu1 }
 0x1ff   :  { %v787_v13 = vpop.f32.mrb[134].mxu0  ;;  %v1339_v14 = vpop.f32.mrb[134].mxu1  ;;  %v143_v11 = vld [vmem:[%s4604_s0 + $0x418] sm:$0xff] }
 0x200   :  { %1681 = vst [vmem:[%s4605_s2 + $0x218] sm:$0xff] %v787_v13  ;;  %v2195_v15 = vpop.f32.mrb[135].mxu0  ;;  %1819 = vst [vmem:[%s4605_s2 + $0x668] sm:$0xff] %v1339_v14  ;;  %v2471_v16 = vpop.f32.mrb[135].mxu1  ;;  %v281_v13 = vld [vmem:[%s4604_s0 + $0x868] sm:$0xff] }
 0x202   :  { %2301 = vmatmul.mubr.bf16.gmra.mrb[240].mxu0 %v345_v10  ;;  %2577 = vmatmul.mubr.bf16.gmra.mrb[240].mxu1 %v414_v12  ;;  %v142_v10 = vld [vmem:[%s4604_s0 + $0x410] sm:$0xff]  ;;  %v280_v12 = vld [vmem:[%s4604_s0 + $0x860] sm:$0xff] }
 0x203   :  { %2304 = vmatprep.mubr.msk.bf16.mxu0 %vm2635_vm0, %v2634_v0  ;;  %2580 = vmatprep.mubr.msk.bf16.mxu1 %vm2635_vm0, %v2634_v0  ;;  %v350_v17 = vpack.c.bf16 %v143_v11, %v142_v10  ;;  %v419_v19 = vpack.c.bf16 %v281_v13, %v280_v12 }
 0x205   :  { %v792_v21 = vpop.f32.mrb[136].mxu0  ;;  %v1344_v22 = vpop.f32.mrb[136].mxu1 }
 0x206   :  { %1682 = vst [vmem:[%s4605_s2 + $0x220] sm:$0xff] %v792_v21  ;;  %v2198_v23 = vpop.f32.mrb[137].mxu0  ;;  %1820 = vst [vmem:[%s4605_s2 + $0x670] sm:$0xff] %v1344_v22  ;;  %v2474_v25 = vpop.f32.mrb[137].mxu1 }
 0x207   :  { %v795_v27 = vpop.f32.mrb[138].mxu0  ;;  %v1347_v28 = vpop.f32.mrb[138].mxu1  ;;  %v145_v25 = vld [vmem:[%s4604_s0 + $0x428] sm:$0xff] }
 0x208   :  { %1683 = vst [vmem:[%s4605_s2 + $0x228] sm:$0xff] %v795_v27  ;;  %v2199_v29 = vpop.f32.mrb[139].mxu0  ;;  %1821 = vst [vmem:[%s4605_s2 + $0x678] sm:$0xff] %v1347_v28  ;;  %v2475_v30 = vpop.f32.mrb[139].mxu1  ;;  %v283_v27 = vld [vmem:[%s4604_s0 + $0x878] sm:$0xff] }
 0x20a   :  { %2305 = vmatmul.mubr.bf16.gmra.mrb[244].mxu0 %v346_v24  ;;  %2581 = vmatmul.mubr.bf16.gmra.mrb[244].mxu1 %v415_v26  ;;  %v144_v24 = vld [vmem:[%s4604_s0 + $0x420] sm:$0xff]  ;;  %v282_v26 = vld [vmem:[%s4604_s0 + $0x870] sm:$0xff] }
 0x20b   :  { %2308 = vmatprep.mubr.msk.bf16.mxu0 %vm2635_vm0, %v2634_v0  ;;  %2584 = vmatprep.mubr.msk.bf16.mxu1 %vm2635_vm0, %v2634_v0  ;;  %v351_v31 = vpack.c.bf16 %v145_v25, %v144_v24  ;;  %v420_v33 = vpack.c.bf16 %v283_v27, %v282_v26 }
 0x20d   :  { %v800_v35 = vpop.f32.mrb[140].mxu0  ;;  %v1352_v36 = vpop.f32.mrb[140].mxu1 }
 0x20e   :  { %1684 = vst [vmem:[%s4605_s2 + $0x230] sm:$0xff] %v800_v35  ;;  %v2202_v37 = vpop.f32.mrb[141].mxu0  ;;  %1822 = vst [vmem:[%s4605_s2 + $0x680] sm:$0xff] %v1352_v36  ;;  %v2478_v39 = vpop.f32.mrb[141].mxu1 }
 0x20f   :  { %v803_v41 = vpop.f32.mrb[142].mxu0  ;;  %v1355_v42 = vpop.f32.mrb[142].mxu1  ;;  %v147_v39 = vld [vmem:[%s4604_s0 + $0x438] sm:$0xff] }
 0x210   :  { %1685 = vst [vmem:[%s4605_s2 + $0x238] sm:$0xff] %v803_v41  ;;  %v2203_v43 = vpop.f32.mrb[143].mxu0  ;;  %1823 = vst [vmem:[%s4605_s2 + $0x688] sm:$0xff] %v1355_v42  ;;  %v2479_v44 = vpop.f32.mrb[143].mxu1 }
 0x212   :  { %2309 = vmatmul.mubr.bf16.gmra.mrb[248].mxu0 %v347_v38  ;;  %2585 = vmatmul.mubr.bf16.gmra.mrb[248].mxu1 %v416_v40  ;;  %v146_v38 = vld [vmem:[%s4604_s0 + $0x430] sm:$0xff]  ;;  %v284_v40 = vld [vmem:[%s4604_s0 + $0x880] sm:$0xff] }
 0x213   :  { %2312 = vmatprep.mubr.msk.bf16.mxu0 %vm2635_vm0, %v2634_v0  ;;  %2588 = vmatprep.mubr.msk.bf16.mxu1 %vm2635_vm0, %v2634_v0  ;;  %v352_v44 = vpack.c.bf16 %v147_v39, %v146_v38  ;;  %v421_v46 = vpack.c.bf16 %v284_v40, %v284_v40 }
 0x215   :  { %v808_v49 = vpop.f32.mrb[144].mxu0  ;;  %v1360_v50 = vpop.f32.mrb[144].mxu1 }
 0x216   :  { %1686 = vst [vmem:[%s4605_s2 + $0x240] sm:$0xff] %v808_v49  ;;  %v2206_v51 = vpop.f32.mrb[145].mxu0  ;;  %1824 = vst [vmem:[%s4605_s2 + $0x690] sm:$0xff] %v1360_v50  ;;  %v2482_v53 = vpop.f32.mrb[145].mxu1 }
 0x217   :  { %v811_v55 = vpop.f32.mrb[146].mxu0  ;;  %v1363_v56 = vpop.f32.mrb[146].mxu1  ;;  %v148_v51 = vld [vmem:[%s4604_s0 + $0x440] sm:$0xff] }
 0x218   :  { %1687 = vst [vmem:[%s4605_s2 + $0x248] sm:$0xff] %v811_v55  ;;  %v2207_v57 = vpop.f32.mrb[147].mxu0  ;;  %1825 = vst [vmem:[%s4605_s2 + $0x698] sm:$0xff] %v1363_v56  ;;  %v2483_v58 = vpop.f32.mrb[147].mxu1 }
 0x21a   :  { %2313 = vmatmul.mubr.bf16.gmra.mrb[252].mxu0 %v348_v52  ;;  %2589 = vmatmul.mubr.bf16.gmra.mrb[252].mxu1 %v417_v54  ;;  %v149_v52 = vld [vmem:[%s4604_s0 + $0x448] sm:$0xff] }
 0x21b   :  { %2316 = vmatprep.mubr.msk.bf16.mxu0 %vm2635_vm0, %v2634_v0  ;;  %2592 = vmatprep.mubr.msk.bf16.mxu1 %vm2635_vm0, %v2634_v0  ;;  %v353_v56 = vpack.c.bf16 %v149_v52, %v148_v51 }
 0x21d   :  { %v816_v63 = vpop.f32.mrb[148].mxu0  ;;  %v1368_v1 = vpop.f32.mrb[148].mxu1 }
 0x21e   :  { %1688 = vst [vmem:[%s4605_s2 + $0x250] sm:$0xff] %v816_v63  ;;  %v2210_v2 = vpop.f32.mrb[149].mxu0  ;;  %1826 = vst [vmem:[%s4605_s2 + $0x6a0] sm:$0xff] %v1368_v1  ;;  %v2486_v4 = vpop.f32.mrb[149].mxu1 }
 0x21f   :  { %v819_v6 = vpop.f32.mrb[150].mxu0  ;;  %v1371_v7 = vpop.f32.mrb[150].mxu1 }
 0x220   :  { %1689 = vst [vmem:[%s4605_s2 + $0x258] sm:$0xff] %v819_v6  ;;  %v2211_v8 = vpop.f32.mrb[151].mxu0  ;;  %1827 = vst [vmem:[%s4605_s2 + $0x6a8] sm:$0xff] %v1371_v7  ;;  %v2487_v9 = vpop.f32.mrb[151].mxu1 }
 0x222   :  { %2317 = vmatmul.mubr.bf16.gmra.mrb[0].mxu0 %v349_v3  ;;  %2593 = vmatmul.mubr.bf16.gmra.mrb[0].mxu1 %v418_v5 }
 0x223   :  { %2320 = vmatprep.mubr.msk.bf16.mxu0 %vm2635_vm0, %v2634_v0  ;;  %2596 = vmatprep.mubr.msk.bf16.mxu1 %vm2635_vm0, %v2634_v0 }
 0x225   :  { %v824_v14 = vpop.f32.mrb[152].mxu0  ;;  %v1376_v15 = vpop.f32.mrb[152].mxu1 }
 0x226   :  { %1690 = vst [vmem:[%s4605_s2 + $0x260] sm:$0xff] %v824_v14  ;;  %v2214_v16 = vpop.f32.mrb[153].mxu0  ;;  %1828 = vst [vmem:[%s4605_s2 + $0x6b0] sm:$0xff] %v1376_v15  ;;  %v2490_v18 = vpop.f32.mrb[153].mxu1 }
 0x227   :  { %v827_v20 = vpop.f32.mrb[154].mxu0  ;;  %v1379_v21 = vpop.f32.mrb[154].mxu1 }
 0x228   :  { %1691 = vst [vmem:[%s4605_s2 + $0x268] sm:$0xff] %v827_v20  ;;  %v2215_v22 = vpop.f32.mrb[155].mxu0  ;;  %1829 = vst [vmem:[%s4605_s2 + $0x6b8] sm:$0xff] %v1379_v21  ;;  %v2491_v23 = vpop.f32.mrb[155].mxu1 }
 0x22a   :  { %2321 = vmatmul.mubr.bf16.gmra.mrb[4].mxu0 %v350_v17  ;;  %2597 = vmatmul.mubr.bf16.gmra.mrb[4].mxu1 %v419_v19 }
 0x22b   :  { %2324 = vmatprep.mubr.msk.bf16.mxu0 %vm2635_vm0, %v2634_v0  ;;  %2600 = vmatprep.mubr.msk.bf16.mxu1 %vm2635_vm0, %v2634_v0 }
 0x22d   :  { %v832_v28 = vpop.f32.mrb[156].mxu0  ;;  %v1384_v29 = vpop.f32.mrb[156].mxu1 }
 0x22e   :  { %1692 = vst [vmem:[%s4605_s2 + $0x270] sm:$0xff] %v832_v28  ;;  %v2218_v30 = vpop.f32.mrb[157].mxu0  ;;  %1830 = vst [vmem:[%s4605_s2 + $0x6c0] sm:$0xff] %v1384_v29  ;;  %v2494_v32 = vpop.f32.mrb[157].mxu1 }
 0x22f   :  { %v835_v34 = vpop.f32.mrb[158].mxu0  ;;  %v1387_v35 = vpop.f32.mrb[158].mxu1 }
 0x230   :  { %1693 = vst [vmem:[%s4605_s2 + $0x278] sm:$0xff] %v835_v34  ;;  %v2219_v36 = vpop.f32.mrb[159].mxu0  ;;  %1831 = vst [vmem:[%s4605_s2 + $0x6c8] sm:$0xff] %v1387_v35  ;;  %v2495_v37 = vpop.f32.mrb[159].mxu1 }
 0x232   :  { %2325 = vmatmul.mubr.bf16.gmra.mrb[8].mxu0 %v351_v31  ;;  %2601 = vmatmul.mubr.bf16.gmra.mrb[8].mxu1 %v420_v33 }
 0x233   :  { %2328 = vmatprep.mubr.msk.bf16.mxu0 %vm2635_vm0, %v2634_v0  ;;  %2604 = vmatprep.mubr.msk.bf16.mxu1 %vm2635_vm0, %v2634_v0 }
 0x235   :  { %v840_v41 = vpop.f32.mrb[160].mxu0  ;;  %v1392_v42 = vpop.f32.mrb[160].mxu1 }
 0x236   :  { %1694 = vst [vmem:[%s4605_s2 + $0x280] sm:$0xff] %v840_v41  ;;  %v2222_v43 = vpop.f32.mrb[161].mxu0  ;;  %1832 = vst [vmem:[%s4605_s2 + $0x6d0] sm:$0xff] %v1392_v42  ;;  %v2498_v45 = vpop.f32.mrb[161].mxu1 }
 0x237   :  { %v843_v47 = vpop.f32.mrb[162].mxu0  ;;  %v1395_v48 = vpop.f32.mrb[162].mxu1 }
 0x238   :  { %1695 = vst [vmem:[%s4605_s2 + $0x288] sm:$0xff] %v843_v47  ;;  %v2223_v49 = vpop.f32.mrb[163].mxu0  ;;  %1833 = vst [vmem:[%s4605_s2 + $0x6d8] sm:$0xff] %v1395_v48  ;;  %v2499_v50 = vpop.f32.mrb[163].mxu1 }
 0x23a   :  { %2329 = vmatmul.mubr.bf16.gmra.mrb[12].mxu0 %v352_v44  ;;  %2605 = vmatmul.mubr.bf16.gmra.mrb[12].mxu1 %v421_v46 }
 0x23b   :  { %2332 = vmatprep.mubr.msk.bf16.mxu0 %vm2635_vm0, %v2634_v0 }
 0x23d   :  { %v848_v53 = vpop.f32.mrb[164].mxu0  ;;  %v1400_v54 = vpop.f32.mrb[164].mxu1 }
 0x23e   :  { %1696 = vst [vmem:[%s4605_s2 + $0x290] sm:$0xff] %v848_v53  ;;  %v2226_v55 = vpop.f32.mrb[165].mxu0  ;;  %1834 = vst [vmem:[%s4605_s2 + $0x6e0] sm:$0xff] %v1400_v54  ;;  %v2502_v0 = vpop.f32.mrb[165].mxu1 }
 0x23f   :  { %v851_v57 = vpop.f32.mrb[166].mxu0  ;;  %v1403_v58 = vpop.f32.mrb[166].mxu1 }
 0x240   :  { %1697 = vst [vmem:[%s4605_s2 + $0x298] sm:$0xff] %v851_v57  ;;  %v2227_v59 = vpop.f32.mrb[167].mxu0  ;;  %1835 = vst [vmem:[%s4605_s2 + $0x6e8] sm:$0xff] %v1403_v58  ;;  %v2503_v60 = vpop.f32.mrb[167].mxu1 }
 0x242   :  { %2333 = vmatmul.mubr.bf16.gmra.mrb[16].mxu0 %v353_v56 }
 0x245   :  { %v856_v61 = vpop.f32.mrb[168].mxu0  ;;  %v1408_v62 = vpop.f32.mrb[168].mxu1 }
 0x246   :  { %1698 = vst [vmem:[%s4605_s2 + $0x2a0] sm:$0xff] %v856_v61  ;;  %v2230_v63 = vpop.f32.mrb[169].mxu0  ;;  %1836 = vst [vmem:[%s4605_s2 + $0x6f0] sm:$0xff] %v1408_v62  ;;  %v2506_v1 = vpop.f32.mrb[169].mxu1 }
 0x247   :  { %v859_v2 = vpop.f32.mrb[170].mxu0  ;;  %v1411_v3 = vpop.f32.mrb[170].mxu1 }
 0x248   :  { %1699 = vst [vmem:[%s4605_s2 + $0x2a8] sm:$0xff] %v859_v2  ;;  %v2231_v4 = vpop.f32.mrb[171].mxu0  ;;  %1837 = vst [vmem:[%s4605_s2 + $0x6f8] sm:$0xff] %v1411_v3  ;;  %v2507_v5 = vpop.f32.mrb[171].mxu1 }
 0x24d   :  { %v864_v6 = vpop.f32.mrb[172].mxu0  ;;  %v1416_v7 = vpop.f32.mrb[172].mxu1 }
 0x24e   :  { %1700 = vst [vmem:[%s4605_s2 + $0x2b0] sm:$0xff] %v864_v6  ;;  %v2234_v8 = vpop.f32.mrb[173].mxu0  ;;  %1838 = vst [vmem:[%s4605_s2 + $0x700] sm:$0xff] %v1416_v7  ;;  %v2510_v9 = vpop.f32.mrb[173].mxu1 }
 0x24f   :  { %v867_v10 = vpop.f32.mrb[174].mxu0  ;;  %v1419_v11 = vpop.f32.mrb[174].mxu1 }
 0x250   :  { %1701 = vst [vmem:[%s4605_s2 + $0x2b8] sm:$0xff] %v867_v10  ;;  %v2235_v12 = vpop.f32.mrb[175].mxu0  ;;  %1839 = vst [vmem:[%s4605_s2 + $0x708] sm:$0xff] %v1419_v11  ;;  %v2511_v13 = vpop.f32.mrb[175].mxu1 }
 0x255   :  { %v872_v14 = vpop.f32.mrb[176].mxu0  ;;  %v1424_v15 = vpop.f32.mrb[176].mxu1 }
 0x256   :  { %1702 = vst [vmem:[%s4605_s2 + $0x2c0] sm:$0xff] %v872_v14  ;;  %v2238_v16 = vpop.f32.mrb[177].mxu0  ;;  %1840 = vst [vmem:[%s4605_s2 + $0x710] sm:$0xff] %v1424_v15  ;;  %v2514_v17 = vpop.f32.mrb[177].mxu1 }
 0x257   :  { %v875_v18 = vpop.f32.mrb[178].mxu0  ;;  %v1427_v19 = vpop.f32.mrb[178].mxu1 }
 0x258   :  { %1703 = vst [vmem:[%s4605_s2 + $0x2c8] sm:$0xff] %v875_v18  ;;  %v2239_v20 = vpop.f32.mrb[179].mxu0  ;;  %1841 = vst [vmem:[%s4605_s2 + $0x718] sm:$0xff] %v1427_v19  ;;  %v2515_v21 = vpop.f32.mrb[179].mxu1 }
 0x25d   :  { %v880_v22 = vpop.f32.mrb[180].mxu0  ;;  %v1432_v23 = vpop.f32.mrb[180].mxu1 }
 0x25e   :  { %1704 = vst [vmem:[%s4605_s2 + $0x2d0] sm:$0xff] %v880_v22  ;;  %v2242_v24 = vpop.f32.mrb[181].mxu0  ;;  %1842 = vst [vmem:[%s4605_s2 + $0x720] sm:$0xff] %v1432_v23  ;;  %v2518_v25 = vpop.f32.mrb[181].mxu1 }
 0x25f   :  { %v883_v26 = vpop.f32.mrb[182].mxu0  ;;  %v1435_v27 = vpop.f32.mrb[182].mxu1 }
 0x260   :  { %1705 = vst [vmem:[%s4605_s2 + $0x2d8] sm:$0xff] %v883_v26  ;;  %v2243_v28 = vpop.f32.mrb[183].mxu0  ;;  %1843 = vst [vmem:[%s4605_s2 + $0x728] sm:$0xff] %v1435_v27  ;;  %v2519_v29 = vpop.f32.mrb[183].mxu1 }
 0x265   :  { %v888_v30 = vpop.f32.mrb[184].mxu0  ;;  %v1440_v31 = vpop.f32.mrb[184].mxu1 }
 0x266   :  { %1706 = vst [vmem:[%s4605_s2 + $0x2e0] sm:$0xff] %v888_v30  ;;  %v2246_v32 = vpop.f32.mrb[185].mxu0  ;;  %1844 = vst [vmem:[%s4605_s2 + $0x730] sm:$0xff] %v1440_v31  ;;  %v2522_v33 = vpop.f32.mrb[185].mxu1 }
 0x267   :  { %v891_v34 = vpop.f32.mrb[186].mxu0  ;;  %v1443_v35 = vpop.f32.mrb[186].mxu1 }
 0x268   :  { %1707 = vst [vmem:[%s4605_s2 + $0x2e8] sm:$0xff] %v891_v34  ;;  %v2247_v36 = vpop.f32.mrb[187].mxu0  ;;  %1845 = vst [vmem:[%s4605_s2 + $0x738] sm:$0xff] %v1443_v35  ;;  %v2523_v37 = vpop.f32.mrb[187].mxu1 }
 0x26d   :  { %v896_v38 = vpop.f32.mrb[188].mxu0  ;;  %v1448_v39 = vpop.f32.mrb[188].mxu1 }
 0x26e   :  { %1708 = vst [vmem:[%s4605_s2 + $0x2f0] sm:$0xff] %v896_v38  ;;  %v2250_v40 = vpop.f32.mrb[189].mxu0  ;;  %1846 = vst [vmem:[%s4605_s2 + $0x740] sm:$0xff] %v1448_v39  ;;  %v2526_v41 = vpop.f32.mrb[189].mxu1 }
 0x26f   :  { %v899_v42 = vpop.f32.mrb[190].mxu0  ;;  %v1451_v43 = vpop.f32.mrb[190].mxu1 }
 0x270   :  { %1709 = vst [vmem:[%s4605_s2 + $0x2f8] sm:$0xff] %v899_v42  ;;  %v2251_v44 = vpop.f32.mrb[191].mxu0  ;;  %1847 = vst [vmem:[%s4605_s2 + $0x748] sm:$0xff] %v1451_v43  ;;  %v2527_v45 = vpop.f32.mrb[191].mxu1 }
 0x275   :  { %v904_v46 = vpop.f32.mrb[192].mxu0  ;;  %v1456_v47 = vpop.f32.mrb[192].mxu1 }
 0x276   :  { %1710 = vst [vmem:[%s4605_s2 + $0x300] sm:$0xff] %v904_v46  ;;  %v2254_v48 = vpop.f32.mrb[193].mxu0  ;;  %1848 = vst [vmem:[%s4605_s2 + $0x750] sm:$0xff] %v1456_v47  ;;  %v2530_v49 = vpop.f32.mrb[193].mxu1 }
 0x277   :  { %v907_v50 = vpop.f32.mrb[194].mxu0  ;;  %v1459_v51 = vpop.f32.mrb[194].mxu1 }
 0x278   :  { %1711 = vst [vmem:[%s4605_s2 + $0x308] sm:$0xff] %v907_v50  ;;  %v2255_v52 = vpop.f32.mrb[195].mxu0  ;;  %1849 = vst [vmem:[%s4605_s2 + $0x758] sm:$0xff] %v1459_v51  ;;  %v2531_v53 = vpop.f32.mrb[195].mxu1 }
 0x27d   :  { %v912_v54 = vpop.f32.mrb[196].mxu0  ;;  %v1464_v55 = vpop.f32.mrb[196].mxu1 }
 0x27e   :  { %1712 = vst [vmem:[%s4605_s2 + $0x310] sm:$0xff] %v912_v54  ;;  %v2258_v56 = vpop.f32.mrb[197].mxu0  ;;  %1850 = vst [vmem:[%s4605_s2 + $0x760] sm:$0xff] %v1464_v55  ;;  %v2534_v0 = vpop.f32.mrb[197].mxu1 }
 0x27f   :  { %v915_v57 = vpop.f32.mrb[198].mxu0  ;;  %v1467_v58 = vpop.f32.mrb[198].mxu1 }
 0x280   :  { %1713 = vst [vmem:[%s4605_s2 + $0x318] sm:$0xff] %v915_v57  ;;  %v2259_v59 = vpop.f32.mrb[199].mxu0  ;;  %1851 = vst [vmem:[%s4605_s2 + $0x768] sm:$0xff] %v1467_v58  ;;  %v2535_v60 = vpop.f32.mrb[199].mxu1 }
 0x285   :  { %v920_v61 = vpop.f32.mrb[200].mxu0  ;;  %v1472_v62 = vpop.f32.mrb[200].mxu1 }
 0x286   :  { %1714 = vst [vmem:[%s4605_s2 + $0x320] sm:$0xff] %v920_v61  ;;  %v2262_v63 = vpop.f32.mrb[201].mxu0  ;;  %1852 = vst [vmem:[%s4605_s2 + $0x770] sm:$0xff] %v1472_v62  ;;  %v2538_v1 = vpop.f32.mrb[201].mxu1 }
 0x287   :  { %v923_v2 = vpop.f32.mrb[202].mxu0  ;;  %v1475_v3 = vpop.f32.mrb[202].mxu1 }
 0x288   :  { %1715 = vst [vmem:[%s4605_s2 + $0x328] sm:$0xff] %v923_v2  ;;  %v2263_v4 = vpop.f32.mrb[203].mxu0  ;;  %1853 = vst [vmem:[%s4605_s2 + $0x778] sm:$0xff] %v1475_v3  ;;  %v2539_v5 = vpop.f32.mrb[203].mxu1 }
 0x28d   :  { %v928_v6 = vpop.f32.mrb[204].mxu0  ;;  %v1480_v7 = vpop.f32.mrb[204].mxu1 }
 0x28e   :  { %1716 = vst [vmem:[%s4605_s2 + $0x330] sm:$0xff] %v928_v6  ;;  %v2266_v8 = vpop.f32.mrb[205].mxu0  ;;  %1854 = vst [vmem:[%s4605_s2 + $0x780] sm:$0xff] %v1480_v7  ;;  %v2542_v9 = vpop.f32.mrb[205].mxu1 }
 0x28f   :  { %v931_v10 = vpop.f32.mrb[206].mxu0  ;;  %v1483_v11 = vpop.f32.mrb[206].mxu1 }
 0x290   :  { %1717 = vst [vmem:[%s4605_s2 + $0x338] sm:$0xff] %v931_v10  ;;  %v2267_v12 = vpop.f32.mrb[207].mxu0  ;;  %1855 = vst [vmem:[%s4605_s2 + $0x788] sm:$0xff] %v1483_v11  ;;  %v2543_v13 = vpop.f32.mrb[207].mxu1 }
 0x295   :  { %v936_v14 = vpop.f32.mrb[208].mxu0  ;;  %v1488_v15 = vpop.f32.mrb[208].mxu1 }
 0x296   :  { %1718 = vst [vmem:[%s4605_s2 + $0x340] sm:$0xff] %v936_v14  ;;  %v2270_v16 = vpop.f32.mrb[209].mxu0  ;;  %1856 = vst [vmem:[%s4605_s2 + $0x790] sm:$0xff] %v1488_v15  ;;  %v2546_v17 = vpop.f32.mrb[209].mxu1 }
 0x297   :  { %v939_v18 = vpop.f32.mrb[210].mxu0  ;;  %v1491_v19 = vpop.f32.mrb[210].mxu1 }
 0x298   :  { %1719 = vst [vmem:[%s4605_s2 + $0x348] sm:$0xff] %v939_v18  ;;  %v2271_v20 = vpop.f32.mrb[211].mxu0  ;;  %1857 = vst [vmem:[%s4605_s2 + $0x798] sm:$0xff] %v1491_v19  ;;  %v2547_v21 = vpop.f32.mrb[211].mxu1 }
 0x29d   :  { %v944_v22 = vpop.f32.mrb[212].mxu0  ;;  %v1496_v23 = vpop.f32.mrb[212].mxu1 }
 0x29e   :  { %1720 = vst [vmem:[%s4605_s2 + $0x350] sm:$0xff] %v944_v22  ;;  %v2274_v24 = vpop.f32.mrb[213].mxu0  ;;  %1858 = vst [vmem:[%s4605_s2 + $0x7a0] sm:$0xff] %v1496_v23  ;;  %v2550_v25 = vpop.f32.mrb[213].mxu1 }
 0x29f   :  { %v947_v26 = vpop.f32.mrb[214].mxu0  ;;  %v1499_v27 = vpop.f32.mrb[214].mxu1 }
 0x2a0   :  { %1721 = vst [vmem:[%s4605_s2 + $0x358] sm:$0xff] %v947_v26  ;;  %v2275_v28 = vpop.f32.mrb[215].mxu0  ;;  %1859 = vst [vmem:[%s4605_s2 + $0x7a8] sm:$0xff] %v1499_v27  ;;  %v2551_v29 = vpop.f32.mrb[215].mxu1 }
 0x2a5   :  { %v952_v30 = vpop.f32.mrb[216].mxu0  ;;  %v1504_v31 = vpop.f32.mrb[216].mxu1 }
 0x2a6   :  { %1722 = vst [vmem:[%s4605_s2 + $0x360] sm:$0xff] %v952_v30  ;;  %v2278_v32 = vpop.f32.mrb[217].mxu0  ;;  %1860 = vst [vmem:[%s4605_s2 + $0x7b0] sm:$0xff] %v1504_v31  ;;  %v2554_v33 = vpop.f32.mrb[217].mxu1 }
 0x2a7   :  { %v955_v34 = vpop.f32.mrb[218].mxu0  ;;  %v1507_v35 = vpop.f32.mrb[218].mxu1 }
 0x2a8   :  { %1723 = vst [vmem:[%s4605_s2 + $0x368] sm:$0xff] %v955_v34  ;;  %v2279_v36 = vpop.f32.mrb[219].mxu0  ;;  %1861 = vst [vmem:[%s4605_s2 + $0x7b8] sm:$0xff] %v1507_v35  ;;  %v2555_v37 = vpop.f32.mrb[219].mxu1 }
 0x2ad   :  { %v960_v38 = vpop.f32.mrb[220].mxu0  ;;  %v1512_v39 = vpop.f32.mrb[220].mxu1 }
 0x2ae   :  { %1724 = vst [vmem:[%s4605_s2 + $0x370] sm:$0xff] %v960_v38  ;;  %v2282_v40 = vpop.f32.mrb[221].mxu0  ;;  %1862 = vst [vmem:[%s4605_s2 + $0x7c0] sm:$0xff] %v1512_v39  ;;  %v2558_v41 = vpop.f32.mrb[221].mxu1 }
 0x2af   :  { %v963_v42 = vpop.f32.mrb[222].mxu0  ;;  %v1515_v43 = vpop.f32.mrb[222].mxu1 }
 0x2b0   :  { %1725 = vst [vmem:[%s4605_s2 + $0x378] sm:$0xff] %v963_v42  ;;  %v2283_v44 = vpop.f32.mrb[223].mxu0  ;;  %1863 = vst [vmem:[%s4605_s2 + $0x7c8] sm:$0xff] %v1515_v43  ;;  %v2559_v45 = vpop.f32.mrb[223].mxu1 }
 0x2b5   :  { %v968_v46 = vpop.f32.mrb[224].mxu0  ;;  %v1520_v47 = vpop.f32.mrb[224].mxu1 }
 0x2b6   :  { %1726 = vst [vmem:[%s4605_s2 + $0x380] sm:$0xff] %v968_v46  ;;  %v2286_v48 = vpop.f32.mrb[225].mxu0  ;;  %1864 = vst [vmem:[%s4605_s2 + $0x7d0] sm:$0xff] %v1520_v47  ;;  %v2562_v49 = vpop.f32.mrb[225].mxu1 }
 0x2b7   :  { %v971_v50 = vpop.f32.mrb[226].mxu0  ;;  %v1523_v51 = vpop.f32.mrb[226].mxu1 }
 0x2b8   :  { %1727 = vst [vmem:[%s4605_s2 + $0x388] sm:$0xff] %v971_v50  ;;  %v2287_v52 = vpop.f32.mrb[227].mxu0  ;;  %1865 = vst [vmem:[%s4605_s2 + $0x7d8] sm:$0xff] %v1523_v51  ;;  %v2563_v53 = vpop.f32.mrb[227].mxu1 }
 0x2bd   :  { %v976_v54 = vpop.f32.mrb[228].mxu0  ;;  %v1528_v55 = vpop.f32.mrb[228].mxu1 }
 0x2be   :  { %1728 = vst [vmem:[%s4605_s2 + $0x390] sm:$0xff] %v976_v54  ;;  %v2290_v56 = vpop.f32.mrb[229].mxu0  ;;  %1866 = vst [vmem:[%s4605_s2 + $0x7e0] sm:$0xff] %v1528_v55  ;;  %v2566_v0 = vpop.f32.mrb[229].mxu1 }
 0x2bf   :  { %v979_v57 = vpop.f32.mrb[230].mxu0  ;;  %v1531_v58 = vpop.f32.mrb[230].mxu1 }
 0x2c0   :  { %1729 = vst [vmem:[%s4605_s2 + $0x398] sm:$0xff] %v979_v57  ;;  %v2291_v59 = vpop.f32.mrb[231].mxu0  ;;  %1867 = vst [vmem:[%s4605_s2 + $0x7e8] sm:$0xff] %v1531_v58  ;;  %v2567_v60 = vpop.f32.mrb[231].mxu1 }
 0x2c5   :  { %v984_v61 = vpop.f32.mrb[232].mxu0  ;;  %v1536_v62 = vpop.f32.mrb[232].mxu1 }
 0x2c6   :  { %1730 = vst [vmem:[%s4605_s2 + $0x3a0] sm:$0xff] %v984_v61  ;;  %v2294_v63 = vpop.f32.mrb[233].mxu0  ;;  %1868 = vst [vmem:[%s4605_s2 + $0x7f0] sm:$0xff] %v1536_v62  ;;  %v2570_v1 = vpop.f32.mrb[233].mxu1 }
 0x2c7   :  { %v987_v2 = vpop.f32.mrb[234].mxu0  ;;  %v1539_v3 = vpop.f32.mrb[234].mxu1 }
 0x2c8   :  { %1731 = vst [vmem:[%s4605_s2 + $0x3a8] sm:$0xff] %v987_v2  ;;  %v2295_v4 = vpop.f32.mrb[235].mxu0  ;;  %1869 = vst [vmem:[%s4605_s2 + $0x7f8] sm:$0xff] %v1539_v3  ;;  %v2571_v5 = vpop.f32.mrb[235].mxu1 }
 0x2cd   :  { %v992_v6 = vpop.f32.mrb[236].mxu0  ;;  %v1544_v7 = vpop.f32.mrb[236].mxu1 }
 0x2ce   :  { %1732 = vst [vmem:[%s4605_s2 + $0x3b0] sm:$0xff] %v992_v6  ;;  %v2298_v8 = vpop.f32.mrb[237].mxu0  ;;  %1870 = vst [vmem:[%s4605_s2 + $0x800] sm:$0xff] %v1544_v7  ;;  %v2574_v9 = vpop.f32.mrb[237].mxu1 }
 0x2cf   :  { %v995_v10 = vpop.f32.mrb[238].mxu0  ;;  %v1547_v11 = vpop.f32.mrb[238].mxu1 }
 0x2d0   :  { %1733 = vst [vmem:[%s4605_s2 + $0x3b8] sm:$0xff] %v995_v10  ;;  %v2299_v12 = vpop.f32.mrb[239].mxu0  ;;  %1871 = vst [vmem:[%s4605_s2 + $0x808] sm:$0xff] %v1547_v11  ;;  %v2575_v13 = vpop.f32.mrb[239].mxu1 }
 0x2d5   :  { %v1000_v14 = vpop.f32.mrb[240].mxu0  ;;  %v1552_v15 = vpop.f32.mrb[240].mxu1 }
 0x2d6   :  { %1734 = vst [vmem:[%s4605_s2 + $0x3c0] sm:$0xff] %v1000_v14  ;;  %v2302_v16 = vpop.f32.mrb[241].mxu0  ;;  %1872 = vst [vmem:[%s4605_s2 + $0x810] sm:$0xff] %v1552_v15  ;;  %v2578_v17 = vpop.f32.mrb[241].mxu1 }
 0x2d7   :  { %v1003_v18 = vpop.f32.mrb[242].mxu0  ;;  %v1555_v19 = vpop.f32.mrb[242].mxu1 }
 0x2d8   :  { %1735 = vst [vmem:[%s4605_s2 + $0x3c8] sm:$0xff] %v1003_v18  ;;  %v2303_v20 = vpop.f32.mrb[243].mxu0  ;;  %1873 = vst [vmem:[%s4605_s2 + $0x818] sm:$0xff] %v1555_v19  ;;  %v2579_v21 = vpop.f32.mrb[243].mxu1 }
 0x2dd   :  { %v1008_v22 = vpop.f32.mrb[244].mxu0  ;;  %v1560_v23 = vpop.f32.mrb[244].mxu1 }
 0x2de   :  { %1736 = vst [vmem:[%s4605_s2 + $0x3d0] sm:$0xff] %v1008_v22  ;;  %v2306_v24 = vpop.f32.mrb[245].mxu0  ;;  %1874 = vst [vmem:[%s4605_s2 + $0x820] sm:$0xff] %v1560_v23  ;;  %v2582_v25 = vpop.f32.mrb[245].mxu1 }
 0x2df   :  { %v1011_v26 = vpop.f32.mrb[246].mxu0  ;;  %v1563_v27 = vpop.f32.mrb[246].mxu1 }
 0x2e0   :  { %1737 = vst [vmem:[%s4605_s2 + $0x3d8] sm:$0xff] %v1011_v26  ;;  %v2307_v28 = vpop.f32.mrb[247].mxu0  ;;  %1875 = vst [vmem:[%s4605_s2 + $0x828] sm:$0xff] %v1563_v27  ;;  %v2583_v29 = vpop.f32.mrb[247].mxu1 }
 0x2e5   :  { %v1016_v30 = vpop.f32.mrb[248].mxu0  ;;  %v1568_v31 = vpop.f32.mrb[248].mxu1 }
 0x2e6   :  { %1738 = vst [vmem:[%s4605_s2 + $0x3e0] sm:$0xff] %v1016_v30  ;;  %v2310_v32 = vpop.f32.mrb[249].mxu0  ;;  %1876 = vst [vmem:[%s4605_s2 + $0x830] sm:$0xff] %v1568_v31  ;;  %v2586_v33 = vpop.f32.mrb[249].mxu1 }
 0x2e7   :  { %v1019_v34 = vpop.f32.mrb[250].mxu0  ;;  %v1571_v35 = vpop.f32.mrb[250].mxu1 }
 0x2e8   :  { %1739 = vst [vmem:[%s4605_s2 + $0x3e8] sm:$0xff] %v1019_v34  ;;  %v2311_v36 = vpop.f32.mrb[251].mxu0  ;;  %1877 = vst [vmem:[%s4605_s2 + $0x838] sm:$0xff] %v1571_v35  ;;  %v2587_v37 = vpop.f32.mrb[251].mxu1 }
 0x2ed   :  { %v1024_v38 = vpop.f32.mrb[252].mxu0  ;;  %v1576_v39 = vpop.f32.mrb[252].mxu1 }
 0x2ee   :  { %1740 = vst [vmem:[%s4605_s2 + $0x3f0] sm:$0xff] %v1024_v38  ;;  %v2314_v40 = vpop.f32.mrb[253].mxu0  ;;  %1878 = vst [vmem:[%s4605_s2 + $0x840] sm:$0xff] %v1576_v39  ;;  %v2590_v41 = vpop.f32.mrb[253].mxu1 }
 0x2ef   :  { %v1027_v42 = vpop.f32.mrb[254].mxu0  ;;  %v1579_v43 = vpop.f32.mrb[254].mxu1 }
 0x2f0   :  { %1741 = vst [vmem:[%s4605_s2 + $0x3f8] sm:$0xff] %v1027_v42  ;;  %v2315_v44 = vpop.f32.mrb[255].mxu0  ;;  %1879 = vst [vmem:[%s4605_s2 + $0x848] sm:$0xff] %v1579_v43  ;;  %v2591_v45 = vpop.f32.mrb[255].mxu1 }
 0x2f5   :  { %v1032_v46 = vpop.f32.mrb[0].mxu0  ;;  %v1584_v47 = vpop.f32.mrb[0].mxu1 }
 0x2f6   :  { %1742 = vst [vmem:[%s4605_s2 + $0x400] sm:$0xff] %v1032_v46  ;;  %v2318_v48 = vpop.f32.mrb[1].mxu0  ;;  %1880 = vst [vmem:[%s4605_s2 + $0x850] sm:$0xff] %v1584_v47  ;;  %v2594_v49 = vpop.f32.mrb[1].mxu1 }
 0x2f7   :  { %v1035_v50 = vpop.f32.mrb[2].mxu0  ;;  %v1587_v51 = vpop.f32.mrb[2].mxu1 }
 0x2f8   :  { %1743 = vst [vmem:[%s4605_s2 + $0x408] sm:$0xff] %v1035_v50  ;;  %v2319_v52 = vpop.f32.mrb[3].mxu0  ;;  %1881 = vst [vmem:[%s4605_s2 + $0x858] sm:$0xff] %v1587_v51  ;;  %v2595_v53 = vpop.f32.mrb[3].mxu1 }
 0x2fd   :  { %v1040_v54 = vpop.f32.mrb[4].mxu0  ;;  %v1592_v55 = vpop.f32.mrb[4].mxu1 }
 0x2fe   :  { %1744 = vst [vmem:[%s4605_s2 + $0x410] sm:$0xff] %v1040_v54  ;;  %v2322_v56 = vpop.f32.mrb[5].mxu0  ;;  %1882 = vst [vmem:[%s4605_s2 + $0x860] sm:$0xff] %v1592_v55  ;;  %v2598_v0 = vpop.f32.mrb[5].mxu1 }
 0x2ff   :  { %v1043_v57 = vpop.f32.mrb[6].mxu0  ;;  %v1595_v58 = vpop.f32.mrb[6].mxu1 }
 0x300   :  { %1745 = vst [vmem:[%s4605_s2 + $0x418] sm:$0xff] %v1043_v57  ;;  %v2323_v59 = vpop.f32.mrb[7].mxu0  ;;  %1883 = vst [vmem:[%s4605_s2 + $0x868] sm:$0xff] %v1595_v58  ;;  %v2599_v60 = vpop.f32.mrb[7].mxu1 }
 0x305   :  { %v1048_v61 = vpop.f32.mrb[8].mxu0  ;;  %v1600_v62 = vpop.f32.mrb[8].mxu1 }
 0x306   :  { %1746 = vst [vmem:[%s4605_s2 + $0x420] sm:$0xff] %v1048_v61  ;;  %v2326_v63 = vpop.f32.mrb[9].mxu0  ;;  %1884 = vst [vmem:[%s4605_s2 + $0x870] sm:$0xff] %v1600_v62  ;;  %v2602_v1 = vpop.f32.mrb[9].mxu1 }
 0x307   :  { %v1051_v2 = vpop.f32.mrb[10].mxu0  ;;  %v1603_v3 = vpop.f32.mrb[10].mxu1 }
 0x308   :  { %1747 = vst [vmem:[%s4605_s2 + $0x428] sm:$0xff] %v1051_v2  ;;  %v2327_v4 = vpop.f32.mrb[11].mxu0  ;;  %1885 = vst [vmem:[%s4605_s2 + $0x878] sm:$0xff] %v1603_v3  ;;  %v2603_v5 = vpop.f32.mrb[11].mxu1 }
 0x30d   :  { %v1056_v6 = vpop.f32.mrb[12].mxu0  ;;  %v1608_v7 = vpop.f32.mrb[12].mxu1 }
 0x30e   :  { %1748 = vst [vmem:[%s4605_s2 + $0x430] sm:$0xff] %v1056_v6  ;;  %v2330_v8 = vpop.f32.mrb[13].mxu0  ;;  %1886 = vst [vmem:[%s4605_s2 + $0x880] sm:$0xff] %v1608_v7  ;;  %v2606_v9 = vpop.f32.mrb[13].mxu1 }
 0x30f   :  { %v1059_v10 = vpop.f32.mrb[14].mxu0  ;;  %v1611_v11 = vpop.f32.mrb[14].mxu1 }
 0x310   :  { %1749 = vst [vmem:[%s4605_s2 + $0x438] sm:$0xff] %v1059_v10  ;;  %v2331_v12 = vpop.f32.mrb[15].mxu0  ;;  %v2607_v13 = vpop.f32.mrb[15].mxu1 }
 0x315   :  { %v1064_v14 = vpop.f32.mrb[16].mxu0 }
 0x316   :  { %1750 = vst [vmem:[%s4605_s2 + $0x440] sm:$0xff] %v1064_v14  ;;  %v2334_v15 = vpop.f32.mrb[17].mxu0 }
 0x317   :  { %v1067_v16 = vpop.f32.mrb[18].mxu0 }
 0x318   :  { %1751 = vst [vmem:[%s4605_s2 + $0x448] sm:$0xff] %v1067_v16  ;;  %v2335_v17 = vpop.f32.mrb[19].mxu0 }

// kernel: tile.93
= control target key start
LH: loop header
LB: loop body
LE: loop exit
PB: predicated region body
PF: predicated region fallthrough
CT: control target
= control target key end

     0   :  { %s28_s0 = inlined_call_operand.vmem [shape: f32[8], index: 0, kind: input, shape index: {}]   ;;  %s29_s1 = inlined_call_operand.vmem [shape: f32[16,8], index: 1, kind: output, shape index: {}]  }
   0x1   :  { %v4_v0 = vld [vmem:[%s28_s0] ss:$0 sm:$0xff] }
   0x2   :  { %5 = vst [vmem:[%s29_s1] sm:$0xff] %v4_v0  ;;  %8 = vst [vmem:[%s29_s1 + $0x8] sm:$0xff] %v4_v0 }

// kernel: tile.94
= control target key start
LH: loop header
LB: loop body
LE: loop exit
PB: predicated region body
PF: predicated region fallthrough
CT: control target
= control target key end

     0   :  { %s131_s10 = smov 120   ;;  %s132_s11 = smov 104   ;;  %vm3_vm0 = vcmask 64512   ;;  %vm9_vm1 = vcmask 1048512   ;;  %vm15_vm2 = vcmask 982912   ;;  %vm21_vm3 = vcmask 917312   ;;  %s207_s0 = inlined_call_operand.vmem [shape: f32[16,8], index: 0, kind: input, shape index: {}]   ;;  %s208_s1 = inlined_call_operand.vmem [shape: f32[1,128], index: 1, kind: output, shape index: {}]  }
   0x1   :  { %v101_v0 = vld [vmem:[%s207_s0 + $0xf] sm:$0x1]   ;;  %v103_v1 = vld [vmem:[%s207_s0 + $0xd] sm:$0x1]   ;;  %v102_v2 = vld [vmem:[%s207_s0 + $0xe] sm:$0x1]  }
   0x2   :  { %7 = vrot.lane.b32.xlu0 %v101_v0, %s131_s10  ;;  %19 = vrot.lane.b32.xlu1 %v103_v1, %s132_s11  ;;  %v104_v3 = vld [vmem:[%s207_s0 + $0xc] sm:$0x1]   ;;  %s133_s16 = smov 112   ;;  %s134_s17 = smov 96   ;;  %v105_v4 = vld [vmem:[%s207_s0 + $0xb] sm:$0x1]  }
   0x3   :  { %v106_v5 = vld [vmem:[%s207_s0 + $0xa] sm:$0x1]   ;;  %v2_v6 = vld [vmem:[%s207_s0] sm:$0x1]   ;;  %s135_s24 = smov 88   ;;  %s136_s25 = smov 80  }
   0x4   :  { %4 = vst.msk [vmem:[#allocation0] sm:$0x1] %vm3_vm0, %v2_v6   ;;  %v107_v7 = vld [vmem:[%s207_s0 + $0x9] sm:$0x1]   ;;  %v108_v8 = vld [vmem:[%s207_s0 + $0x8] sm:$0x1]  }
   0x5   :  { %s137_s30 = smov 72   ;;  %s138_s2 = smov 64   ;;  %v109_v9 = vld [vmem:[%s207_s0 + $0x7] sm:$0x1]   ;;  %v110_v10 = vld [vmem:[%s207_s0 + $0x6] sm:$0x1]  }
   0x6   :  { %13 = vrot.lane.b32.xlu0 %v102_v2, %s133_s16  ;;  %25 = vrot.lane.b32.xlu1 %v104_v3, %s134_s17  ;;  %s139_s7 = smov 56   ;;  %s140_s8 = smov 48   ;;  %v111_v11 = vld [vmem:[%s207_s0 + $0x5] sm:$0x1]   ;;  %v112_v12 = vld [vmem:[%s207_s0 + $0x4] sm:$0x1]  }
   0x7   :  { %s141_s13 = smov 40   ;;  %s142_s14 = smov 32   ;;  %v113_v13 = vld [vmem:[%s207_s0 + $0x3] sm:$0x1]   ;;  %v114_v14 = vld [vmem:[%s207_s0 + $0x2] sm:$0x1]  }
   0x8   :  { %s143_s19 = smov 24   ;;  %s144_s20 = smov 16   ;;  %v115_v15 = vld [vmem:[%s207_s0 + $0x1] sm:$0x1]   ;;  %vm27_vm4 = vcmask 851712   ;;  %vm33_vm5 = vcmask 786112  }
   0x9   :  { %s145_s0 = smov 8   ;;  %vm39_vm6 = vcmask 720512   ;;  %vm45_vm7 = vcmask 654912   ;;  %vm51_vm8 = vcmask 589312   ;;  %vm57_vm9 = vcmask 523712  }
   0xa   :  { %31 = vrot.lane.b32.xlu0 %v105_v4, %s135_s24  ;;  %37 = vrot.lane.b32.xlu1 %v106_v5, %s136_s25  ;;  %vm63_vm10 = vcmask 458112   ;;  %vm69_vm11 = vcmask 392512   ;;  %vm75_vm12 = vcmask 326912   ;;  %vm81_vm13 = vcmask 261312  }
   0xb   :  { %vm87_vm14 = vcmask 195712   ;;  %vm93_vm15 = vcmask 130112  }
   0xe   :  { %43 = vrot.lane.b32.xlu0 %v107_v7, %s137_s30  ;;  %49 = vrot.lane.b32.xlu1 %v108_v8, %s138_s2 }
  0x12   :  { %55 = vrot.lane.b32.xlu0 %v109_v9, %s139_s7  ;;  %61 = vrot.lane.b32.xlu1 %v110_v10, %s140_s8 }
  0x16   :  { %67 = vrot.lane.b32.xlu0 %v111_v11, %s141_s13  ;;  %73 = vrot.lane.b32.xlu1 %v112_v12, %s142_s14 }
  0x1a   :  { %79 = vrot.lane.b32.xlu0 %v113_v13, %s143_s19  ;;  %85 = vrot.lane.b32.xlu1 %v114_v14, %s144_s20 }
  0x1e   :  { %91 = vrot.lane.b32.xlu0 %v115_v15, %s145_s0 }
  0x74   :  { %v8_v16 = vpop.permute.xlu0 %7   ;;  %v20_v17 = vpop.permute.xlu1 %19  }
  0x75   :  { %10 = vst.msk [vmem:[#allocation0] sm:$0x1] %vm9_vm1, %v8_v16  }
  0x78   :  { %v14_v18 = vpop.permute.xlu0 %13   ;;  %v26_v19 = vpop.permute.xlu1 %25  }
  0x79   :  { %16 = vst.msk [vmem:[#allocation0] sm:$0x1] %vm15_vm2, %v14_v18  }
  0x7a   :  { %22 = vst.msk [vmem:[#allocation0] sm:$0x1] %vm21_vm3, %v20_v17  }
  0x7b   :  { %28 = vst.msk [vmem:[#allocation0] sm:$0x1] %vm27_vm4, %v26_v19  }
  0x7c   :  { %v32_v20 = vpop.permute.xlu0 %31   ;;  %v38_v21 = vpop.permute.xlu1 %37  }
  0x7d   :  { %34 = vst.msk [vmem:[#allocation0] sm:$0x1] %vm33_vm5, %v32_v20  }
  0x7e   :  { %40 = vst.msk [vmem:[#allocation0] sm:$0x1] %vm39_vm6, %v38_v21  }
  0x80   :  { %v44_v22 = vpop.permute.xlu0 %43   ;;  %v50_v23 = vpop.permute.xlu1 %49  }
  0x81   :  { %46 = vst.msk [vmem:[#allocation0] sm:$0x1] %vm45_vm7, %v44_v22  }
  0x82   :  { %52 = vst.msk [vmem:[#allocation0] sm:$0x1] %vm51_vm8, %v50_v23  }
  0x84   :  { %v56_v24 = vpop.permute.xlu0 %55   ;;  %v62_v25 = vpop.permute.xlu1 %61  }
  0x85   :  { %58 = vst.msk [vmem:[#allocation0] sm:$0x1] %vm57_vm9, %v56_v24  }
  0x86   :  { %64 = vst.msk [vmem:[#allocation0] sm:$0x1] %vm63_vm10, %v62_v25  }
  0x88   :  { %v68_v26 = vpop.permute.xlu0 %67   ;;  %v74_v27 = vpop.permute.xlu1 %73  }
  0x89   :  { %70 = vst.msk [vmem:[#allocation0] sm:$0x1] %vm69_vm11, %v68_v26  }
  0x8a   :  { %76 = vst.msk [vmem:[#allocation0] sm:$0x1] %vm75_vm12, %v74_v27  }
  0x8c   :  { %v80_v28 = vpop.permute.xlu0 %79   ;;  %v86_v29 = vpop.permute.xlu1 %85  }
  0x8d   :  { %82 = vst.msk [vmem:[#allocation0] sm:$0x1] %vm81_vm13, %v80_v28  }
  0x8e   :  { %88 = vst.msk [vmem:[#allocation0] sm:$0x1] %vm87_vm14, %v86_v29  }
  0x90   :  { %v92_v30 = vpop.permute.xlu0 %91  }
  0x91   :  { %94 = vst.msk [vmem:[#allocation0] sm:$0x1] %vm93_vm15, %v92_v30  }
  0x98   :  { %v98_v31 = vld [vmem:[#allocation0] sm:$0x1] }
  0x99   :  { %100 = vst [vmem:[%s208_s1] sm:$0x1] %v98_v31 }

// kernel: feature_extractor_img.6
= control target key start
LH: loop header
LB: loop body
LE: loop exit
PB: predicated region body
PF: predicated region fallthrough
CT: control target
= control target key end

     0   :  { %s3756_s3 = inlined_call_operand.vmem [shape: bf16[128,128], index: 3, kind: input, shape index: {}]   ;;  %s3757_s0 = inlined_call_operand.vmem [shape: f32[512,128], index: 0, kind: input, shape index: {}]   ;;  %s3758_s1 = inlined_call_operand.vmem [shape: f32[1,128], index: 1, kind: input, shape index: {}]   ;;  %s3759_s2 = inlined_call_operand.vmem [shape: f32[1,128], index: 2, kind: input, shape index: {}]   ;;  %s3760_s7 = inlined_call_operand.vmem [shape: bf16[128,128], index: 7, kind: input, shape index: {}]   ;;  %s3761_s6 = inlined_call_operand.vmem [shape: bf16[128,128], index: 6, kind: input, shape index: {}]   ;;  %s3762_s4 = inlined_call_operand.vmem [shape: f32[1,128], index: 4, kind: input, shape index: {}]   ;;  %s3763_s5 = inlined_call_operand.vmem [shape: f32[1,128], index: 5, kind: input, shape index: {}]   ;;  %s3764_s8 = inlined_call_operand.vmem [shape: f32[512,128], index: 8, kind: input, shape index: {}]   ;;  %s3765_s9 = inlined_call_operand.vmem [shape: f32[512,128], index: 9, kind: output, shape index: {}]  }
   0x1   :  { %v2328_v0 = vld [vmem:[%s3756_s3] sm:$0xff]   ;;  %v2329_v1 = vld [vmem:[%s3756_s3 + $0x8] sm:$0xff]   ;;  %v2330_v2 = vld [vmem:[%s3756_s3 + $0x10] sm:$0xff]  }
   0x2   :  { %2008 = vmatprep.subr.bf16.mxu0 %v2328_v0  ;;  %v2331_v3 = vld [vmem:[%s3756_s3 + $0x18] sm:$0xff]   ;;  %v2417_v4 = vld [vmem:[%s3757_s0] sm:$0xff]  ;;  %v2422_v5 = vld [vmem:[%s3757_s0 + $0x8] sm:$0xff] }
   0x3   :  { %2009 = vmatpush3.bf16.msra.mxu0 %v2328_v0  ;;  %3802 = vst [vmem:[#allocation2_spill] sm:$0xff] %v2417_v4  ;;  %3803 = vst [vmem:[#allocation3_spill] sm:$0xff] %v2422_v5  ;;  %v2427_v6 = vld [vmem:[%s3758_s1] ss:$0 sm:$0xff]  ;;  %v2441_v10 = vld [vmem:[%s3757_s0 + $0x10] sm:$0xff] }
   0x4   :  { %2010 = vmatprep.subr.bf16.mxu0 %v2329_v1  ;;  %v104_v7 = vmul.f32 %v2427_v6, %v2417_v4  ;;  %v105_v8 = vmul.f32 %v2427_v6, %v2422_v5  ;;  %v2436_v9 = vld [vmem:[%s3759_s2] ss:$0 sm:$0xff]  ;;  %3804 = vst [vmem:[#allocation4_spill] sm:$0xff] %v2441_v10  ;;  %v2446_v11 = vld [vmem:[%s3757_s0 + $0x18] sm:$0xff]  ;;  %v106_v12 = vmul.f32 %v2427_v6, %v2441_v10  ;;  %v2462_v16 = vld [vmem:[%s3757_s0 + $0x28] sm:$0xff] }
   0x5   :  { %3805 = vst [vmem:[#allocation5_spill] sm:$0xff] %v2446_v11  ;;  %v107_v13 = vmul.f32 %v2427_v6, %v2446_v11  ;;  %v2457_v15 = vld [vmem:[%s3757_s0 + $0x20] sm:$0xff]  ;;  %3807 = vst [vmem:[#allocation7_spill] sm:$0xff] %v2462_v16  ;;  %v2467_v17 = vld [vmem:[%s3757_s0 + $0x30] sm:$0xff]  ;;  %v109_v21 = vmul.f32 %v2427_v6, %v2462_v16 }
   0x6   :  { %3806 = vst [vmem:[#allocation6_spill] sm:$0xff] %v2457_v15  ;;  %3808 = vst [vmem:[#allocation8_spill] sm:$0xff] %v2467_v17  ;;  %v175_v18 = vadd.f32 %v2436_v9, %v104_v7  ;;  %v176_v19 = vadd.f32 %v2436_v9, %v105_v8  ;;  %v108_v20 = vmul.f32 %v2427_v6, %v2457_v15  ;;  %v2478_v22 = vld [vmem:[%s3757_s0 + $0x38] sm:$0xff]  ;;  %v2332_v23 = vld [vmem:[%s3756_s3 + $0x20] sm:$0xff]  }
   0x7   :  { %2011 = vmatpush3.bf16.msra.mxu0 %v2329_v1  ;;  %3809 = vst [vmem:[#allocation9_spill] sm:$0xff] %v2478_v22  ;;  %v177_v24 = vadd.f32 %v2436_v9, %v106_v12  ;;  %v178_v25 = vadd.f32 %v2436_v9, %v107_v13  ;;  %v110_v26 = vmul.f32 %v2427_v6, %v2467_v17  ;;  %v2492_v28 = vld [vmem:[%s3757_s0 + $0x40] sm:$0xff]  ;;  %v2499_v33 = vld [vmem:[%s3757_s0 + $0x48] sm:$0xff]  ;;  %v2506_v36 = vld [vmem:[%s3757_s0 + $0x50] sm:$0xff] }
   0x8   :  { %2012 = vmatprep.subr.bf16.mxu0 %v2330_v2  ;;  %v111_v27 = vmul.f32 %v2427_v6, %v2478_v22  ;;  %3810 = vst [vmem:[#allocation10_spill] sm:$0xff] %v2492_v28  ;;  %v239_v29 = vmax.f32 %v175_v18, 0.0  ;;  %v240_v30 = vmax.f32 %v176_v19, 0.0  ;;  %v179_v31 = vadd.f32 %v2436_v9, %v108_v20  ;;  %3811 = vst [vmem:[#allocation11_spill] sm:$0xff] %v2499_v33  ;;  %v2511_v37 = vld [vmem:[%s3757_s0 + $0x58] sm:$0xff]  ;;  %v2518_v41 = vld [vmem:[%s3757_s0 + $0x60] sm:$0xff] }
   0x9   :  { %v180_v32 = vadd.f32 %v2436_v9, %v109_v21  ;;  %v181_v34 = vadd.f32 %v2436_v9, %v110_v26  ;;  %3812 = vst [vmem:[#allocation12_spill] sm:$0xff] %v2506_v36  ;;  %3813 = vst [vmem:[#allocation13_spill] sm:$0xff] %v2511_v37  ;;  %v241_v39 = vmax.f32 %v177_v24, 0.0  ;;  %v112_v40 = vmul.f32 %v2427_v6, %v2492_v28  ;;  %v2523_v42 = vld [vmem:[%s3757_s0 + $0x68] sm:$0xff]  ;;  %v2533_v48 = vld [vmem:[%s3757_s0 + $0x70] sm:$0xff] }
   0xa   :  { %v182_v35 = vadd.f32 %v2436_v9, %v111_v27  ;;  %v303_v38 = vpack.c.bf16 %v240_v30, %v239_v29  ;;  %3814 = vst [vmem:[#allocation14_spill] sm:$0xff] %v2518_v41  ;;  %3815 = vst [vmem:[#allocation15_spill] sm:$0xff] %v2523_v42  ;;  %v2333_v43 = vld [vmem:[%s3756_s3 + $0x28] sm:$0xff]   ;;  %v242_v44 = vmax.f32 %v178_v25, 0.0  ;;  %v243_v45 = vmax.f32 %v179_v31, 0.0  ;;  %v2542_v53 = vld [vmem:[%s3757_s0 + $0x78] sm:$0xff] }
   0xb   :  { %2013 = vmatpush3.bf16.msra.mxu0 %v2330_v2  ;;  %v244_v46 = vmax.f32 %v180_v32, 0.0  ;;  %v113_v47 = vmul.f32 %v2427_v6, %v2499_v33  ;;  %3816 = vst [vmem:[#allocation16_spill] sm:$0xff] %v2533_v48  ;;  %v245_v49 = vmax.f32 %v181_v34, 0.0  ;;  %v114_v51 = vmul.f32 %v2427_v6, %v2506_v36  ;;  %3817 = vst [vmem:[#allocation17_spill] sm:$0xff] %v2542_v53  ;;  %v2553_v58 = vld [vmem:[%s3757_s0 + $0x80] sm:$0xff]  ;;  %v2334_v62 = vld [vmem:[%s3756_s3 + $0x30] sm:$0xff]  }
   0xc   :  { %2014 = vmatprep.subr.bf16.mxu0 %v2331_v3  ;;  %2024 = vmatprep.mubr.bf16.mxu0 %v303_v38  ;;  %v246_v50 = vmax.f32 %v182_v35, 0.0  ;;  %v115_v52 = vmul.f32 %v2427_v6, %v2511_v37  ;;  %v183_v54 = vadd.f32 %v2436_v9, %v112_v40  ;;  %v116_v56 = vmul.f32 %v2427_v6, %v2518_v41  ;;  %v2583_v18 = vld [vmem:[%s3757_s0 + $0x90] sm:$0xff]  ;;  %v2588_v19 = vld [vmem:[%s3757_s0 + $0x98] sm:$0xff]  ;;  %v2594_v25 = vld [vmem:[%s3757_s0 + $0xa0] sm:$0xff] }
   0xd   :  { %v184_v55 = vadd.f32 %v2436_v9, %v113_v47  ;;  %v117_v57 = vmul.f32 %v2427_v6, %v2523_v42  ;;  %3818 = vst [vmem:[#allocation18_spill] sm:$0xff] %v2553_v58  ;;  %v185_v59 = vadd.f32 %v2436_v9, %v114_v51  ;;  %v118_v61 = vmul.f32 %v2427_v6, %v2533_v48  ;;  %v2599_v26 = vld [vmem:[%s3757_s0 + $0xa8] sm:$0xff]  ;;  %v2607_v32 = vld [vmem:[%s3757_s0 + $0xb0] sm:$0xff]  ;;  %v2335_v34 = vld [vmem:[%s3756_s3 + $0x38] sm:$0xff]  }
   0xe   :  { %v186_v60 = vadd.f32 %v2436_v9, %v115_v52  ;;  %v2562_v63 = vpack.c.bf16 %v242_v44, %v241_v39  ;;  %v187_v0 = vadd.f32 %v2436_v9, %v116_v56  ;;  %v119_v2 = vmul.f32 %v2427_v6, %v2542_v53  ;;  %3820 = vst [vmem:[#allocation20_spill] sm:$0xff] %v2583_v18  ;;  %v2752_v14 = vld [vmem:[%s3757_s0 + $0x128] sm:$0xff]  ;;  %v2853_v42 = vld [vmem:[%s3757_s0 + $0x170] sm:$0xff]  ;;  %v2914_v33 = vld [vmem:[%s3757_s0 + $0x1a0] sm:$0xff] }
   0xf   :  { %2015 = vmatpush3.bf16.msra.mxu0 %v2331_v3  ;;  %v188_v1 = vadd.f32 %v2436_v9, %v117_v57  ;;  %v2571_v3 = vld [vmem:[%s3757_s0 + $0x88] sm:$0xff]  ;;  %v2573_v7 = vpack.c.bf16 %v244_v46, %v243_v45  ;;  %v2575_v8 = vpack.c.bf16 %v246_v50, %v245_v49  ;;  %v189_v12 = vadd.f32 %v2436_v9, %v118_v61  ;;  %v2629_v49 = vld [vmem:[%s3757_s0 + $0xc0] sm:$0xff] }
  0x10   :  { %2016 = vmatprep.subr.bf16.mxu0 %v2332_v23  ;;  %3819 = vst [vmem:[#allocation19_spill] sm:$0xff] %v2571_v3  ;;  %v120_v13 = vmul.f32 %v2427_v6, %v2553_v58  ;;  %3821 = vst [vmem:[#allocation21_spill] sm:$0xff] %v2588_v19  ;;  %v247_v20 = vmax.f32 %v183_v54, 0.0  ;;  %v248_v21 = vmax.f32 %v184_v55, 0.0  ;;  %v190_v24 = vadd.f32 %v2436_v9, %v119_v2  ;;  %v2651_v2 = vld [vmem:[%s3757_s0 + $0xd0] sm:$0xff]  ;;  %v2919_v28 = vld [vmem:[%s3757_s0 + $0x1a8] sm:$0xff] }
  0x11   :  { %3822 = vst [vmem:[#allocation22_spill] sm:$0xff] %v2594_v25  ;;  %3823 = vst [vmem:[#allocation23_spill] sm:$0xff] %v2599_v26  ;;  %v250_v27 = vmax.f32 %v186_v60, 0.0  ;;  %v251_v29 = vmax.f32 %v187_v0, 0.0  ;;  %v121_v30 = vmul.f32 %v2427_v6, %v2571_v3  ;;  %v252_v35 = vmax.f32 %v188_v1, 0.0  ;;  %v2642_v60 = vld [vmem:[%s3757_s0 + $0xc8] sm:$0xff] }
  0x12   :  { %v191_v31 = vadd.f32 %v2436_v9, %v120_v13  ;;  %3824 = vst [vmem:[#allocation24_spill] sm:$0xff] %v2607_v32  ;;  %v253_v38 = vmax.f32 %v189_v12, 0.0  ;;  %v122_v39 = vmul.f32 %v2427_v6, %v2583_v18  ;;  %v123_v40 = vmul.f32 %v2427_v6, %v2588_v19  ;;  %3826 = vst [vmem:[#allocation26_spill] sm:$0xff] %v2629_v49  ;;  %v2656_v12 = vld [vmem:[%s3757_s0 + $0xd8] sm:$0xff]  ;;  %v2661_v13 = vld [vmem:[%s3757_s0 + $0xe0] sm:$0xff] }
  0x13   :  { %2017 = vmatpush3.bf16.msra.mxu0 %v2332_v23  ;;  %v249_v23 = vmax.f32 %v185_v59, 0.0  ;;  %v254_v44 = vmax.f32 %v190_v24, 0.0  ;;  %v192_v45 = vadd.f32 %v2436_v9, %v121_v30  ;;  %v124_v46 = vmul.f32 %v2427_v6, %v2594_v25  ;;  %3827 = vst [vmem:[#allocation27_spill] sm:$0xff] %v2642_v60  ;;  %3828 = vst [vmem:[#allocation28_spill] sm:$0xff] %v2651_v2 }
  0x14   :  { %2018 = vmatprep.subr.bf16.mxu0 %v2333_v43  ;;  %v125_v47 = vmul.f32 %v2427_v6, %v2599_v26  ;;  %v255_v50 = vmax.f32 %v191_v31, 0.0  ;;  %v193_v51 = vadd.f32 %v2436_v9, %v122_v39  ;;  %v194_v52 = vadd.f32 %v2436_v9, %v123_v40  ;;  %3829 = vst [vmem:[#allocation29_spill] sm:$0xff] %v2656_v12  ;;  %v2670_v31 = vld [vmem:[%s3757_s0 + $0xe8] sm:$0xff]  ;;  %v2675_v39 = vld [vmem:[%s3757_s0 + $0xf0] sm:$0xff]  ;;  %v2680_v40 = vld [vmem:[%s3757_s0 + $0xf8] sm:$0xff] }
  0x15   :  { %v126_v54 = vmul.f32 %v2427_v6, %v2607_v32  ;;  %v256_v55 = vmax.f32 %v192_v45, 0.0  ;;  %v195_v56 = vadd.f32 %v2436_v9, %v124_v46  ;;  %v2644_v61 = vpack.c.bf16 %v248_v21, %v247_v20  ;;  %3830 = vst [vmem:[#allocation30_spill] sm:$0xff] %v2661_v13  ;;  %3831 = vst [vmem:[#allocation31_spill] sm:$0xff] %v2670_v31  ;;  %v2695_v45 = vld [vmem:[%s3757_s0 + $0x100] sm:$0xff]  ;;  %v2818_v26 = vld [vmem:[%s3757_s0 + $0x158] sm:$0xff] }
  0x16   :  { %v196_v57 = vadd.f32 %v2436_v9, %v125_v47  ;;  %v257_v0 = vmax.f32 %v193_v51, 0.0  ;;  %v258_v1 = vmax.f32 %v194_v52, 0.0  ;;  %v2663_v20 = vpack.c.bf16 %v250_v27, %v249_v23  ;;  %3832 = vst [vmem:[#allocation32_spill] sm:$0xff] %v2675_v39  ;;  %3833 = vst [vmem:[#allocation33_spill] sm:$0xff] %v2680_v40  ;;  %v2336_v46 = vld [vmem:[%s3760_s7] sm:$0xff]   ;;  %v2337_v51 = vld [vmem:[%s3760_s7 + $0x8] sm:$0xff]  }
  0x17   :  { %2019 = vmatpush3.bf16.msra.mxu0 %v2333_v43  ;;  %v2619_v43 = vld [vmem:[%s3757_s0 + $0xb8] sm:$0xff]  ;;  %v2665_v21 = vpack.c.bf16 %v252_v35, %v251_v29  ;;  %v259_v24 = vmax.f32 %v195_v56, 0.0  ;;  %v2682_v23 = vpack.c.bf16 %v254_v44, %v253_v38  ;;  %v2684_v27 = vpack.c.bf16 %v256_v55, %v255_v50  ;;  %v2721_v55 = vld [vmem:[%s3757_s0 + $0x108] sm:$0xff]  ;;  %2248 = vmatprep.subr.bf16.mxu1 %v2336_v46 }
  0x18   :  { %2020 = vmatprep.subr.bf16.mxu0 %v2334_v62  ;;  %3825 = vst [vmem:[#allocation25_spill] sm:$0xff] %v2619_v43  ;;  %v127_v59 = vmul.f32 %v2427_v6, %v2619_v43  ;;  %v260_v30 = vmax.f32 %v196_v57, 0.0  ;;  %v2687_v29 = vadd.f32 %v2436_v9, %v126_v54  ;;  %v2700_v38 = vpack.c.bf16 %v258_v1, %v257_v0  ;;  %v2732_v1 = vld [vmem:[%s3757_s0 + $0x110] sm:$0xff] }
  0x19   :  { %v129_v44 = vmul.f32 %v2427_v6, %v2642_v60  ;;  %v130_v47 = vmul.f32 %v2427_v6, %v2651_v2  ;;  %v131_v50 = vmul.f32 %v2427_v6, %v2656_v12  ;;  %v133_v54 = vmul.f32 %v2427_v6, %v2670_v31  ;;  %2256 = vmatpush3.bf16.msra.mxu1 %v2336_v46  ;;  %v2768_v60 = vld [vmem:[%s3757_s0 + $0x130] sm:$0xff] }
  0x1a   :  { %v2690_v35 = vadd.f32 %v2436_v9, %v127_v59  ;;  %v2723_v56 = vpack.c.bf16 %v260_v30, %v259_v24  ;;  %v134_v0 = vmul.f32 %v2427_v6, %v2675_v39  ;;  %2249 = vmatprep.subr.bf16.mxu1 %v2337_v51  ;;  %v136_v39 = vmul.f32 %v2427_v6, %v2695_v45 }
  0x1b   :  { %2021 = vmatpush3.bf16.msra.mxu0 %v2334_v62  ;;  %v128_v62 = vmul.f32 %v2427_v6, %v2629_v49  ;;  %v201_v57 = vadd.f32 %v2436_v9, %v130_v47  ;;  %v202_v59 = vadd.f32 %v2436_v9, %v131_v50  ;;  %v204_v30 = vadd.f32 %v2436_v9, %v133_v54  ;;  %v2747_v50 = vld [vmem:[%s3757_s0 + $0x120] sm:$0xff] }
  0x1c   :  { %2022 = vmatprep.subr.bf16.mxu0 %v2335_v34  ;;  %v135_v47 = vmul.f32 %v2427_v6, %v2680_v40  ;;  %v205_v40 = vadd.f32 %v2436_v9, %v134_v0  ;;  %v2762_v31 = vadd.f32 %v2436_v9, %v129_v44  ;;  %v137_v44 = vmul.f32 %v2427_v6, %v2721_v55  ;;  %v2783_v0 = vld [vmem:[%s3757_s0 + $0x140] sm:$0xff] }
  0x1d   :  { %v2712_v52 = vadd.f32 %v2436_v9, %v128_v62  ;;  %v2737_v62 = vld [vmem:[%s3757_s0 + $0x118] sm:$0xff]  ;;  %v266_v54 = vmax.f32 %v202_v59, 0.0  ;;  %v268_v12 = vmax.f32 %v204_v30, 0.0  ;;  %v207_v59 = vadd.f32 %v2436_v9, %v136_v39  ;;  %2257 = vmatpush3.bf16.msra.mxu1 %v2337_v51 }
  0x1e   :  { %v206_v2 = vadd.f32 %v2436_v9, %v135_v47  ;;  %v138_v47 = vmul.f32 %v2427_v6, %v2732_v1  ;;  %v2339_v39 = vld [vmem:[%s3760_s7 + $0x18] sm:$0xff]   ;;  %v140_v49 = vmul.f32 %v2427_v6, %v2747_v50 }
  0x1f   :  { %2023 = vmatpush3.bf16.msra.mxu0 %v2335_v34  ;;  %v132_v34 = vmul.f32 %v2427_v6, %v2661_v13 }
  0x20   :  { %2088 = vmatprep.subr.bf16.mxu0 %v2336_v46  ;;  %v270_v30 = vmax.f32 %v206_v2, 0.0  ;;  %v141_v2 = vmul.f32 %v2427_v6, %v2752_v14  ;;  %v209_v43 = vadd.f32 %v2436_v9, %v138_v47 }
  0x21   :  { %v203_v24 = vadd.f32 %v2436_v9, %v132_v34  ;;  %v265_v34 = vmax.f32 %v201_v57, 0.0 }
  0x22   :  { %2025 = vmatmul.mubr.bf16.vlgmr.msra.gmra.mrb[0].mxu0 %v2562_v63  ;;  %v2338_v63 = vld [vmem:[%s3760_s7 + $0x10] sm:$0xff]   ;;  %v273_v25 = vmax.f32 %v209_v43, 0.0 }
  0x23   :  { %2028 = vmatprep.mubr.bf16.mxu0 %v2573_v7  ;;  %2089 = vmatpush3.bf16.msra.mxu0 %v2336_v46  ;;  %v267_v13 = vmax.f32 %v203_v24, 0.0  ;;  %v2773_v7 = vld [vmem:[%s3757_s0 + $0x138] sm:$0xff]  ;;  %v2775_v57 = vpack.c.bf16 %v266_v54, %v265_v34  ;;  %v269_v46 = vmax.f32 %v205_v40, 0.0  ;;  %v139_v40 = vmul.f32 %v2427_v6, %v2737_v62 }
  0x24   :  { %2090 = vmatprep.subr.bf16.mxu0 %v2337_v51  ;;  %2250 = vmatprep.subr.bf16.mxu1 %v2338_v63  ;;  %v208_v34 = vadd.f32 %v2436_v9, %v137_v44  ;;  %v271_v54 = vmax.f32 %v207_v59, 0.0  ;;  %v142_v44 = vmul.f32 %v2427_v6, %v2768_v60  ;;  %v2813_v59 = vld [vmem:[%s3757_s0 + $0x150] sm:$0xff]  ;;  %v143_v47 = vmul.f32 %v2427_v6, %v2773_v7 }
  0x25   :  { %v2785_v24 = vpack.c.bf16 %v268_v12, %v267_v13  ;;  %v2802_v12 = vld [vmem:[%s3757_s0 + $0x148] sm:$0xff]  ;;  %v2804_v13 = vpack.c.bf16 %v270_v30, %v269_v46  ;;  %v210_v32 = vadd.f32 %v2436_v9, %v139_v40  ;;  %v211_v46 = vadd.f32 %v2436_v9, %v140_v49  ;;  %v2827_v40 = vld [vmem:[%s3757_s0 + $0x160] sm:$0xff]  ;;  %2258 = vmatpush3.bf16.msra.mxu1 %v2338_v63 }
  0x26   :  { %v212_v30 = vadd.f32 %v2436_v9, %v141_v2  ;;  %v213_v18 = vadd.f32 %v2436_v9, %v142_v44  ;;  %v144_v49 = vmul.f32 %v2427_v6, %v2783_v0  ;;  %2251 = vmatprep.subr.bf16.mxu1 %v2339_v39  ;;  %v2340_v2 = vld [vmem:[%s3760_s7 + $0x20] sm:$0xff]   ;;  %v214_v44 = vadd.f32 %v2436_v9, %v143_v47 }
  0x27   :  { %2091 = vmatpush3.bf16.msra.mxu0 %v2337_v51  ;;  %v272_v51 = vmax.f32 %v208_v34, 0.0  ;;  %v274_v19 = vmax.f32 %v210_v32, 0.0  ;;  %v2836_v34 = vld [vmem:[%s3757_s0 + $0x168] sm:$0xff]  ;;  %v275_v32 = vmax.f32 %v211_v46, 0.0  ;;  %v145_v53 = vmul.f32 %v2427_v6, %v2802_v12  ;;  %v2874_v47 = vld [vmem:[%s3757_s0 + $0x180] sm:$0xff] }
  0x28   :  { %2092 = vmatprep.subr.bf16.mxu0 %v2338_v63  ;;  %v276_v43 = vmax.f32 %v212_v30, 0.0  ;;  %v277_v58 = vmax.f32 %v213_v18, 0.0  ;;  %v215_v48 = vadd.f32 %v2436_v9, %v144_v49  ;;  %v147_v18 = vmul.f32 %v2427_v6, %v2818_v26  ;;  %v2341_v49 = vld [vmem:[%s3760_s7 + $0x28] sm:$0xff]  }
  0x29   :  { %v2845_v3 = vpack.c.bf16 %v274_v19, %v273_v25  ;;  %v2864_v19 = vld [vmem:[%s3757_s0 + $0x178] sm:$0xff]  ;;  %2259 = vmatpush3.bf16.msra.mxu1 %v2339_v39  ;;  %v216_v25 = vadd.f32 %v2436_v9, %v145_v53  ;;  %v148_v46 = vmul.f32 %v2427_v6, %v2827_v40  ;;  %v149_v30 = vmul.f32 %v2427_v6, %v2836_v34 }
  0x2a   :  { %2029 = vmatmul.mubr.bf16.gmra.mrb[4].mxu0 %v2575_v8  ;;  %v2842_v8 = vpack.c.bf16 %v272_v51, %v271_v54  ;;  %v278_v54 = vmax.f32 %v214_v44, 0.0  ;;  %v279_v51 = vmax.f32 %v215_v48, 0.0  ;;  %2252 = vmatprep.subr.bf16.mxu1 %v2340_v2  ;;  %v218_v53 = vadd.f32 %v2436_v9, %v147_v18 }
  0x2b   :  { %2032 = vmatprep.mubr.bf16.mxu0 %v2644_v61  ;;  %2093 = vmatpush3.bf16.msra.mxu0 %v2338_v63  ;;  %v2855_v61 = vpack.c.bf16 %v276_v43, %v275_v32  ;;  %v146_v63 = vmul.f32 %v2427_v6, %v2813_v59  ;;  %v150_v43 = vmul.f32 %v2427_v6, %v2853_v42  ;;  %v280_v44 = vmax.f32 %v216_v25, 0.0  ;;  %v2900_v25 = vld [vmem:[%s3757_s0 + $0x190] sm:$0xff] }
  0x2c   :  { %2094 = vmatprep.subr.bf16.mxu0 %v2339_v39  ;;  %v2879_v32 = vpack.c.bf16 %v278_v54, %v277_v58  ;;  %v219_v41 = vadd.f32 %v2436_v9, %v148_v46  ;;  %v220_v37 = vadd.f32 %v2436_v9, %v149_v30  ;;  %v151_v36 = vmul.f32 %v2427_v6, %v2864_v19  ;;  %v2892_v58 = vld [vmem:[%s3757_s0 + $0x188] sm:$0xff]  ;;  %v2905_v46 = vld [vmem:[%s3757_s0 + $0x198] sm:$0xff] }
  0x2d   :  { %v217_v48 = vadd.f32 %v2436_v9, %v146_v63  ;;  %v282_v63 = vmax.f32 %v218_v53, 0.0  ;;  %v221_v18 = vadd.f32 %v2436_v9, %v150_v43  ;;  %2260 = vmatpush3.bf16.msra.mxu1 %v2340_v2  ;;  %v2908_v30 = vpack.c.bf16 %v280_v44, %v279_v51  ;;  %v2933_v44 = vld [vmem:[%s3757_s0 + $0x1b0] sm:$0xff] }
  0x2e   :  { %v284_v53 = vmax.f32 %v220_v37, 0.0  ;;  %v222_v43 = vadd.f32 %v2436_v9, %v151_v36  ;;  %2253 = vmatprep.subr.bf16.mxu1 %v2341_v49 }
  0x2f   :  { %2095 = vmatpush3.bf16.msra.mxu0 %v2339_v39  ;;  %v281_v54 = vmax.f32 %v217_v48, 0.0  ;;  %v152_v39 = vmul.f32 %v2427_v6, %v2874_v47  ;;  %v283_v48 = vmax.f32 %v219_v41, 0.0  ;;  %v285_v36 = vmax.f32 %v221_v18, 0.0 }
  0x30   :  { %2096 = vmatprep.subr.bf16.mxu0 %v2340_v2  ;;  %v153_v41 = vmul.f32 %v2427_v6, %v2892_v58  ;;  %v286_v17 = vmax.f32 %v222_v43, 0.0 }
  0x31   :  { %v2925_v37 = vpack.c.bf16 %v282_v63, %v281_v54  ;;  %v223_v51 = vadd.f32 %v2436_v9, %v152_v39  ;;  %v2935_v22 = vpack.c.bf16 %v284_v53, %v283_v48  ;;  %v155_v54 = vmul.f32 %v2427_v6, %v2905_v46  ;;  %v2944_v63 = vld [vmem:[%s3757_s0 + $0x1b8] sm:$0xff]  ;;  %v2954_v53 = vld [vmem:[%s3757_s0 + $0x1c0] sm:$0xff]  ;;  %2261 = vmatpush3.bf16.msra.mxu1 %v2341_v49 }
  0x32   :  { %2033 = vmatmul.mubr.bf16.gmra.mrb[8].mxu0 %v2663_v20  ;;  %v2342_v20 = vld [vmem:[%s3760_s7 + $0x30] sm:$0xff]   ;;  %v224_v18 = vadd.f32 %v2436_v9, %v153_v41  ;;  %v157_v48 = vmul.f32 %v2427_v6, %v2919_v28  ;;  %v2956_v43 = vpack.c.bf16 %v286_v17, %v285_v36  ;;  %v158_v41 = vmul.f32 %v2427_v6, %v2933_v44  ;;  %v2972_v36 = vld [vmem:[%s3757_s0 + $0x1c8] sm:$0xff] }
  0x33   :  { %2036 = vmatprep.mubr.bf16.mxu0 %v2665_v21  ;;  %3834 = vst [vmem:[#allocation34_spill] sm:$0xff] %v2925_v37  ;;  %2097 = vmatpush3.bf16.msra.mxu0 %v2340_v2  ;;  %3835 = vst [vmem:[#allocation35_spill] sm:$0xff] %v2935_v22  ;;  %v154_v21 = vmul.f32 %v2427_v6, %v2900_v25  ;;  %v287_v39 = vmax.f32 %v223_v51, 0.0  ;;  %v156_v2 = vmul.f32 %v2427_v6, %v2914_v33  ;;  %v2343_v51 = vld [vmem:[%s3760_s7 + $0x38] sm:$0xff]   ;;  %v2998_v22 = vld [vmem:[%s3757_s0 + $0x1e8] sm:$0xff] }
  0x34   :  { %2098 = vmatprep.subr.bf16.mxu0 %v2341_v49  ;;  %3836 = vst [vmem:[#allocation36_spill] sm:$0xff] %v2956_v43  ;;  %v226_v11 = vadd.f32 %v2436_v9, %v155_v54  ;;  %2254 = vmatprep.subr.bf16.mxu1 %v2342_v20  ;;  %v288_v16 = vmax.f32 %v224_v18, 0.0  ;;  %v228_v5 = vadd.f32 %v2436_v9, %v157_v48  ;;  %v2985_v48 = vld [vmem:[%s3757_s0 + $0x1d8] sm:$0xff]  ;;  %3840 = vst [vmem:[#allocation40_spill] sm:$0xff] %v2998_v22 }
  0x35   :  { %v225_v10 = vadd.f32 %v2436_v9, %v154_v21  ;;  %v227_v15 = vadd.f32 %v2436_v9, %v156_v2  ;;  %v159_v17 = vmul.f32 %v2427_v6, %v2944_v63  ;;  %v229_v4 = vadd.f32 %v2436_v9, %v158_v41  ;;  %v2980_v2 = vld [vmem:[%s3757_s0 + $0x1d0] sm:$0xff]  ;;  %3837 = vst [vmem:[#allocation37_spill] sm:$0xff] %v2985_v48  ;;  %v2993_v41 = vld [vmem:[%s3757_s0 + $0x1e0] sm:$0xff] }
  0x36   :  { %v290_v54 = vmax.f32 %v226_v11, 0.0  ;;  %v160_v18 = vmul.f32 %v2427_v6, %v2954_v53  ;;  %v2987_v43 = vpack.c.bf16 %v288_v16, %v287_v39  ;;  %v292_v11 = vmax.f32 %v228_v5, 0.0  ;;  %3839 = vst [vmem:[#allocation39_spill] sm:$0xff] %v2993_v41  ;;  %2262 = vmatpush3.bf16.msra.mxu1 %v2342_v20  ;;  %v3009_v39 = vld [vmem:[%s3757_s0 + $0x1f0] sm:$0xff] }
  0x37   :  { %2099 = vmatpush3.bf16.msra.mxu0 %v2341_v49  ;;  %v289_v21 = vmax.f32 %v225_v10, 0.0  ;;  %v291_v10 = vmax.f32 %v227_v15, 0.0  ;;  %v230_v49 = vadd.f32 %v2436_v9, %v159_v17  ;;  %v293_v16 = vmax.f32 %v229_v4, 0.0  ;;  %3842 = vst [vmem:[#allocation42_spill] sm:$0xff] %v3009_v39  ;;  %2255 = vmatprep.subr.bf16.mxu1 %v2343_v51  ;;  %v2344_v17 = vld [vmem:[%s3761_s6] sm:$0xff]  }
  0x38   :  { %2100 = vmatprep.subr.bf16.mxu0 %v2342_v20  ;;  %3838 = vst [vmem:[#allocation38_spill] sm:$0xff] %v2987_v43  ;;  %v161_v5 = vmul.f32 %v2427_v6, %v2972_v36  ;;  %v231_v15 = vadd.f32 %v2436_v9, %v160_v18  ;;  %v3024_v18 = vld [vmem:[%s3757_s0 + $0x1f8] sm:$0xff] }
  0x39   :  { %v3001_v37 = vpack.c.bf16 %v290_v54, %v289_v21  ;;  %v294_v4 = vmax.f32 %v230_v49, 0.0  ;;  %v162_v21 = vmul.f32 %v2427_v6, %v2980_v2  ;;  %v163_v54 = vmul.f32 %v2427_v6, %v2985_v48 }
  0x3a   :  { %2037 = vmatmul.mubr.bf16.gmra.mrb[12].mxu0 %v2682_v23  ;;  %v3015_v23 = vpack.c.bf16 %v292_v11, %v291_v10  ;;  %v295_v43 = vmax.f32 %v231_v15, 0.0  ;;  %v165_v10 = vmul.f32 %v2427_v6, %v2998_v22  ;;  %v166_v48 = vmul.f32 %v2427_v6, %v3009_v39  ;;  %2263 = vmatpush3.bf16.msra.mxu1 %v2343_v51 }
  0x3b   :  { %3841 = vst [vmem:[#allocation41_spill] sm:$0xff] %v3001_v37  ;;  %2040 = vmatprep.mubr.bf16.mxu0 %v2684_v27  ;;  %2101 = vmatpush3.bf16.msra.mxu0 %v2342_v20  ;;  %v232_v37 = vadd.f32 %v2436_v9, %v161_v5  ;;  %v164_v27 = vmul.f32 %v2427_v6, %v2993_v41 }
  0x3c   :  { %3843 = vst [vmem:[#allocation43_spill] sm:$0xff] %v3015_v23  ;;  %2102 = vmatprep.subr.bf16.mxu0 %v2343_v51  ;;  %v3031_v11 = vpack.c.bf16 %v294_v4, %v293_v16  ;;  %v233_v49 = vadd.f32 %v2436_v9, %v162_v21  ;;  %v234_v23 = vadd.f32 %v2436_v9, %v163_v54 }
  0x3d   :  { %v296_v20 = vmax.f32 %v232_v37, 0.0  ;;  %v235_v5 = vadd.f32 %v2436_v9, %v164_v27  ;;  %v236_v15 = vadd.f32 %v2436_v9, %v165_v10  ;;  %v167_v41 = vmul.f32 %v2427_v6, %v3024_v18  ;;  %2168 = vmatprep.subr.bf16.mxu1 %v2344_v17 }
  0x3e   :  { %3844 = vst [vmem:[#allocation44_spill] sm:$0xff] %v3031_v11  ;;  %v297_v22 = vmax.f32 %v233_v49, 0.0  ;;  %v298_v16 = vmax.f32 %v234_v23, 0.0  ;;  %v237_v4 = vadd.f32 %v2436_v9, %v166_v48  ;;  %v958_v21 = vpack.c.bf16 %v2721_v55, %v2695_v45  ;;  %v2345_v45 = vld [vmem:[%s3761_s6 + $0x8] sm:$0xff]   ;;  %v3861_v23 = vld [vmem:[#allocation4_spill] sm:$0xff]  ;;  %v3864_v49 = vld [vmem:[#allocation9_spill] sm:$0xff] }
  0x3f   :  { %2103 = vmatpush3.bf16.msra.mxu0 %v2343_v51  ;;  %v3044_v54 = vpack.c.bf16 %v296_v20, %v295_v43  ;;  %v299_v11 = vmax.f32 %v235_v5, 0.0  ;;  %v300_v37 = vmax.f32 %v236_v15, 0.0  ;;  %v238_v27 = vadd.f32 %v2436_v9, %v167_v41  ;;  %v3866_v5 = vld [vmem:[#allocation11_spill] sm:$0xff] }
  0x40   :  { %v3047_v39 = vpack.c.bf16 %v298_v16, %v297_v22  ;;  %v301_v10 = vmax.f32 %v237_v4, 0.0  ;;  %2136 = vmatprep.mubr.bf16.mxu1 %v958_v21  ;;  %v959_v6 = vpack.c.bf16 %v2737_v62, %v2732_v1  ;;  %v960_v48 = vpack.c.bf16 %v2752_v14, %v2747_v50  ;;  %v3867_v16 = vld [vmem:[#allocation12_spill] sm:$0xff]  ;;  %v3868_v4 = vld [vmem:[#allocation13_spill] sm:$0xff] }
  0x41   :  { %v261_v55 = vmax.f32 %v2687_v29, 0.0  ;;  %v262_v9 = vmax.f32 %v2690_v35, 0.0  ;;  %v3059_v22 = vpack.c.bf16 %v300_v37, %v299_v11  ;;  %v302_v43 = vmax.f32 %v238_v27, 0.0  ;;  %v2346_v29 = vld [vmem:[%s3761_s6 + $0x10] sm:$0xff]   ;;  %v3870_v37 = vld [vmem:[#allocation15_spill] sm:$0xff] }
  0x42   :  { %2041 = vmatmul.mubr.bf16.gmra.mrb[16].mxu0 %v2700_v38  ;;  %v263_v1 = vmax.f32 %v2712_v52, 0.0  ;;  %v264_v62 = vmax.f32 %v2762_v31, 0.0  ;;  %2137 = vmatmul.mubr.bf16.vlgmr.msra.gmra.mrb[0].mxu1 %v959_v6  ;;  %v961_v50 = vpack.c.bf16 %v2773_v7, %v2768_v60  ;;  %v962_v52 = vpack.c.bf16 %v2802_v12, %v2783_v0  ;;  %v2347_v31 = vld [vmem:[%s3761_s6 + $0x18] sm:$0xff]   ;;  %v2349_v0 = vld [vmem:[%s3761_s6 + $0x28] sm:$0xff]   ;;  %v3863_v11 = vld [vmem:[#allocation8_spill] sm:$0xff] }
  0x43   :  { %2044 = vmatprep.mubr.bf16.mxu0 %v2723_v56  ;;  %v3064_v14 = vpack.c.bf16 %v302_v43, %v301_v10  ;;  %2169 = vmatpush3.bf16.msra.mxu1 %v2344_v17  ;;  %v314_v35 = vpack.c.bf16 %v262_v9, %v261_v55  ;;  %v2348_v56 = vld [vmem:[%s3761_s6 + $0x20] sm:$0xff]   ;;  %v963_v60 = vpack.c.bf16 %v2818_v26, %v2813_v59  ;;  %v2350_v26 = vld [vmem:[%s3761_s6 + $0x30] sm:$0xff]   ;;  %v3860_v17 = vld [vmem:[#allocation5_spill] sm:$0xff] }
  0x44   :  { %2140 = vmatprep.mubr.bf16.mxu1 %v960_v48  ;;  %2170 = vmatprep.subr.bf16.mxu1 %v2345_v45  ;;  %v315_v38 = vpack.c.bf16 %v264_v62, %v263_v1  ;;  %v964_v7 = vpack.c.bf16 %v2836_v34, %v2827_v40  ;;  %v965_v12 = vpack.c.bf16 %v2864_v19, %v2853_v42  ;;  %v3847_v40 = vld [vmem:[#allocation35_spill] sm:$0xff]  ;;  %v3850_v19 = vld [vmem:[#allocation42_spill] sm:$0xff]  ;;  %v3871_v10 = vld [vmem:[#allocation16_spill] sm:$0xff] }
  0x45   :  { %v966_v59 = vpack.c.bf16 %v2892_v58, %v2874_v47  ;;  %v969_v42 = vpack.c.bf16 %v2944_v63, %v2933_v44  ;;  %v3848_v34 = vld [vmem:[#allocation39_spill] sm:$0xff]  ;;  %v973_v47 = vpack.c.bf16 %v3024_v18, %v3850_v19  ;;  %v3852_v58 = vld [vmem:[#allocation38_spill] sm:$0xff]  ;;  %v3855_v44 = vld [vmem:[#allocation44_spill] sm:$0xff]  ;;  %v3862_v18 = vpack.c.bf16 %v3860_v17, %v3861_v23 }
  0x46   :  { %v3856_v63 = vld [vmem:[#allocation2_spill] sm:$0xff]  ;;  %v945_v20 = vpack.c.bf16 %v3864_v49, %v3863_v11  ;;  %v947_v21 = vpack.c.bf16 %v3868_v4, %v3867_v16  ;;  %v3872_v6 = vld [vmem:[#allocation17_spill] sm:$0xff]  ;;  %v3874_v55 = vld [vmem:[#allocation19_spill] sm:$0xff] }
  0x47   :  { %2171 = vmatpush3.bf16.msra.mxu1 %v2345_v45  ;;  %v949_v48 = vpack.c.bf16 %v3872_v6, %v3871_v10  ;;  %v3873_v45 = vld [vmem:[#allocation18_spill] sm:$0xff]  ;;  %v3876_v43 = vld [vmem:[#allocation21_spill] sm:$0xff] }
  0x48   :  { %2172 = vmatprep.subr.bf16.mxu1 %v2346_v29  ;;  %v950_v9 = vpack.c.bf16 %v3874_v55, %v3873_v45  ;;  %v3877_v62 = vld [vmem:[#allocation22_spill] sm:$0xff] }
  0x4a   :  { %2045 = vmatmul.mubr.bf16.gmra.mrb[20].mxu0 %v314_v35  ;;  %2141 = vmatmul.mubr.bf16.gmra.mrb[4].mxu1 %v961_v50  ;;  %v3879_v35 = vld [vmem:[#allocation24_spill] sm:$0xff] }
  0x4b   :  { %2048 = vmatprep.mubr.bf16.mxu0 %v315_v38  ;;  %2144 = vmatprep.mubr.bf16.mxu1 %v962_v52  ;;  %v3880_v38 = vld [vmem:[#allocation25_spill] sm:$0xff]  ;;  %v3881_v52 = vld [vmem:[#allocation26_spill] sm:$0xff] }
  0x4c   :  { %2173 = vmatpush3.bf16.msra.mxu1 %v2346_v29  ;;  %v953_v50 = vpack.c.bf16 %v3880_v38, %v3879_v35 }
  0x4d   :  { %2174 = vmatprep.subr.bf16.mxu1 %v2347_v31 }
  0x50   :  { %2175 = vmatpush3.bf16.msra.mxu1 %v2347_v31  ;;  %v3882_v31 = vld [vmem:[#allocation27_spill] sm:$0xff] }
  0x51   :  { %2176 = vmatprep.subr.bf16.mxu1 %v2348_v56 }
  0x52   :  { %2049 = vmatmul.mubr.bf16.gmra.mrb[24].mxu0 %v2775_v57  ;;  %2145 = vmatmul.mubr.bf16.gmra.mrb[8].mxu1 %v963_v60  ;;  %v967_v57 = vpack.c.bf16 %v2905_v46, %v2900_v25  ;;  %v2351_v25 = vld [vmem:[%s3761_s6 + $0x38] sm:$0xff]   ;;  %v3883_v60 = vld [vmem:[#allocation28_spill] sm:$0xff] }
  0x53   :  { %2052 = vmatprep.mubr.bf16.mxu0 %v2785_v24  ;;  %2148 = vmatprep.mubr.bf16.mxu1 %v964_v7  ;;  %v968_v24 = vpack.c.bf16 %v2919_v28, %v2914_v33  ;;  %v3845_v28 = vld [vmem:[#allocation37_spill] sm:$0xff] }
  0x54   :  { %2177 = vmatpush3.bf16.msra.mxu1 %v2348_v56  ;;  %v971_v33 = vpack.c.bf16 %v3845_v28, %v2980_v2  ;;  %v3853_v46 = vld [vmem:[#allocation41_spill] sm:$0xff]  ;;  %v3859_v2 = vld [vmem:[#allocation7_spill] sm:$0xff]  ;;  %v954_v56 = vpack.c.bf16 %v3882_v31, %v3881_v52 }
  0x55   :  { %2178 = vmatprep.subr.bf16.mxu1 %v2349_v0  ;;  %v3884_v7 = vld [vmem:[#allocation29_spill] sm:$0xff] }
  0x58   :  { %2179 = vmatpush3.bf16.msra.mxu1 %v2349_v0  ;;  %v955_v0 = vpack.c.bf16 %v3884_v7, %v3883_v60 }
  0x59   :  { %2180 = vmatprep.subr.bf16.mxu1 %v2350_v26 }
  0x5a   :  { %2053 = vmatmul.mubr.bf16.gmra.mrb[28].mxu0 %v2804_v13  ;;  %2149 = vmatmul.mubr.bf16.gmra.mrb[12].mxu1 %v965_v12  ;;  %v970_v13 = vpack.c.bf16 %v2972_v36, %v2954_v53  ;;  %v3857_v53 = vld [vmem:[#allocation3_spill] sm:$0xff]  ;;  %v3858_v36 = vld [vmem:[#allocation6_spill] sm:$0xff] }
  0x5b   :  { %2056 = vmatprep.mubr.bf16.mxu0 %v2842_v8  ;;  %2152 = vmatprep.mubr.bf16.mxu1 %v966_v59  ;;  %v3849_v8 = vld [vmem:[#allocation40_spill] sm:$0xff]  ;;  %v942_v51 = vpack.c.bf16 %v3857_v53, %v3856_v63  ;;  %v944_v41 = vpack.c.bf16 %v3859_v2, %v3858_v36  ;;  %v3886_v12 = vld [vmem:[#allocation31_spill] sm:$0xff] }
  0x5c   :  { %2181 = vmatpush3.bf16.msra.mxu1 %v2350_v26  ;;  %v3885_v26 = vld [vmem:[#allocation30_spill] sm:$0xff] }
  0x5d   :  { %2182 = vmatprep.subr.bf16.mxu1 %v2351_v25  ;;  %v956_v59 = vpack.c.bf16 %v3886_v12, %v3885_v26 }
  0x60   :  { %2183 = vmatpush3.bf16.msra.mxu1 %v2351_v25 }
  0x62   :  { %2057 = vmatmul.mubr.bf16.gmra.mrb[32].mxu0 %v2845_v3  ;;  %2153 = vmatmul.mubr.bf16.gmra.mrb[16].mxu1 %v967_v57  ;;  %v3846_v3 = vld [vmem:[#allocation34_spill] sm:$0xff]  ;;  %v3887_v57 = vld [vmem:[#allocation32_spill] sm:$0xff] }
  0x63   :  { %2060 = vmatprep.mubr.bf16.mxu0 %v2855_v61  ;;  %2156 = vmatprep.mubr.bf16.mxu1 %v968_v24  ;;  %v972_v61 = vpack.c.bf16 %v3849_v8, %v3848_v34  ;;  %v3888_v24 = vld [vmem:[#allocation33_spill] sm:$0xff] }
  0x6a   :  { %2061 = vmatmul.mubr.bf16.gmra.mrb[36].mxu0 %v2879_v32  ;;  %2157 = vmatmul.mubr.bf16.gmra.mrb[20].mxu1 %v969_v42  ;;  %v3851_v32 = vld [vmem:[#allocation36_spill] sm:$0xff]  ;;  %v957_v42 = vpack.c.bf16 %v3888_v24, %v3887_v57 }
  0x6b   :  { %2064 = vmatprep.mubr.bf16.mxu0 %v2908_v30  ;;  %2160 = vmatprep.mubr.bf16.mxu1 %v970_v13  ;;  %v3854_v30 = vld [vmem:[#allocation43_spill] sm:$0xff]  ;;  %v3165_v13 = vld [vmem:[%s3762_s4] ss:$0 sm:$0xff] }
  0x72   :  { %2065 = vmatmul.mubr.bf16.gmra.mrb[40].mxu0 %v3846_v3  ;;  %2161 = vmatmul.mubr.bf16.gmra.mrb[24].mxu1 %v971_v33  ;;  %v3170_v33 = vld [vmem:[%s3763_s5] ss:$0 sm:$0xff] }
  0x73   :  { %2068 = vmatprep.mubr.bf16.mxu0 %v3847_v40  ;;  %2164 = vmatprep.mubr.bf16.mxu1 %v972_v61 }
  0x7a   :  { %2069 = vmatmul.mubr.bf16.gmra.mrb[44].mxu0 %v3851_v32  ;;  %2165 = vmatmul.mubr.bf16.gmra.mrb[28].mxu1 %v973_v47 }
  0x7b   :  { %2072 = vmatprep.mubr.bf16.mxu0 %v3852_v58 }
  0x82   :  { %2073 = vmatmul.mubr.bf16.gmra.mrb[48].mxu0 %v3853_v46 }
  0x83   :  { %2076 = vmatprep.mubr.bf16.mxu0 %v3854_v30 }
  0x8a   :  { %2077 = vmatmul.mubr.bf16.gmra.mrb[52].mxu0 %v3855_v44 }
  0x8b   :  { %2080 = vmatprep.mubr.bf16.mxu0 %v3044_v54  ;;  %v3869_v54 = vld [vmem:[#allocation14_spill] sm:$0xff] }
  0x8c   :  { %v948_v27 = vpack.c.bf16 %v3870_v37, %v3869_v54 }
  0x92   :  { %2081 = vmatmul.mubr.bf16.gmra.mrb[56].mxu0 %v3047_v39  ;;  %v3865_v39 = vld [vmem:[#allocation10_spill] sm:$0xff] }
  0x93   :  { %2084 = vmatprep.mubr.bf16.mxu0 %v3059_v22  ;;  %v946_v15 = vpack.c.bf16 %v3866_v5, %v3865_v39  ;;  %v3875_v22 = vld [vmem:[#allocation20_spill] sm:$0xff] }
  0x94   :  { %v951_v1 = vpack.c.bf16 %v3876_v43, %v3875_v22 }
  0x9a   :  { %2085 = vmatmul.mubr.bf16.gmra.mrb[60].mxu0 %v3064_v14  ;;  %v3878_v14 = vld [vmem:[#allocation23_spill] sm:$0xff] }
  0x9b   :  { %2104 = vmatprep.mubr.bf16.mxu0 %v942_v51  ;;  %v952_v29 = vpack.c.bf16 %v3878_v14, %v3877_v62 }
  0xa2   :  { %2105 = vmatmul.mubr.bf16.vlgmr.msra.gmra.mrb[64].mxu0 %v3862_v18 }
  0xa3   :  { %2108 = vmatprep.mubr.bf16.mxu0 %v944_v41 }
  0xaa   :  { %2109 = vmatmul.mubr.bf16.gmra.mrb[68].mxu0 %v945_v20 }
  0xab   :  { %2112 = vmatprep.mubr.bf16.mxu0 %v946_v15 }
  0xb2   :  { %2113 = vmatmul.mubr.bf16.gmra.mrb[72].mxu0 %v947_v21 }
  0xb3   :  { %2116 = vmatprep.mubr.bf16.mxu0 %v948_v27 }
  0xba   :  { %2117 = vmatmul.mubr.bf16.gmra.mrb[76].mxu0 %v949_v48 }
  0xbb   :  { %2120 = vmatprep.mubr.bf16.mxu0 %v950_v9 }
  0xc2   :  { %2121 = vmatmul.mubr.bf16.gmra.mrb[80].mxu0 %v951_v1 }
  0xc3   :  { %2124 = vmatprep.mubr.bf16.mxu0 %v952_v29 }
  0xca   :  { %2125 = vmatmul.mubr.bf16.gmra.mrb[84].mxu0 %v953_v50 }
  0xcb   :  { %2128 = vmatprep.mubr.bf16.mxu0 %v954_v56 }
  0xd2   :  { %2129 = vmatmul.mubr.bf16.gmra.mrb[88].mxu0 %v955_v0 }
  0xd3   :  { %2132 = vmatprep.mubr.bf16.mxu0 %v956_v59 }
  0xda   :  { %2133 = vmatmul.mubr.bf16.gmra.mrb[92].mxu0 %v957_v42 }
  0xf5   :  { %v2026_v28 = vpop.f32.mrb[0].mxu0 }
  0xf6   :  { %v697_v3 = vmul.f32 %v2026_v28, %v3165_v13  ;;  %v433_v40 = vpop.f32.mrb[1].mxu0 }
  0xf7   :  { %v695_v34 = vmul.f32 %v3165_v13, %v433_v40  ;;  %v2027_v8 = vpop.f32.mrb[2].mxu0 }
  0xf8   :  { %v768_v61 = vadd.f32 %v3170_v33, %v697_v3  ;;  %v698_v19 = vmul.f32 %v2027_v8, %v3165_v13  ;;  %v436_v47 = vpop.f32.mrb[3].mxu0 }
  0xf9   :  { %v766_v32 = vadd.f32 %v3170_v33, %v695_v34  ;;  %v696_v58 = vmul.f32 %v3165_v13, %v436_v47 }
  0xfa   :  { %v769_v25 = vadd.f32 %v3170_v33, %v698_v19  ;;  %v832_v30 = vmax.f32 %v768_v61, 0.0 }
  0xfb   :  { %v767_v46 = vadd.f32 %v3170_v33, %v696_v58  ;;  %v830_v63 = vmax.f32 %v766_v32, 0.0 }
  0xfc   :  { %v833_v44 = vmax.f32 %v769_v25, 0.0 }
  0xfd   :  { %v831_v53 = vmax.f32 %v767_v46, 0.0  ;;  %v2030_v51 = vpop.f32.mrb[4].mxu0 }
  0xfe   :  { %v895_v36 = vpack.c.bf16 %v833_v44, %v832_v30  ;;  %v701_v2 = vmul.f32 %v2030_v51, %v3165_v13  ;;  %v449_v41 = vpop.f32.mrb[5].mxu0 }
  0xff   :  { %v699_v17 = vmul.f32 %v3165_v13, %v449_v41  ;;  %v2031_v23 = vpop.f32.mrb[6].mxu0  ;;  %v894_v18 = vpack.c.bf16 %v831_v53, %v830_v63 }
 0x100   :  { %v772_v11 = vadd.f32 %v3170_v33, %v701_v2  ;;  %v702_v49 = vmul.f32 %v2031_v23, %v3165_v13  ;;  %v452_v20 = vpop.f32.mrb[7].mxu0 }
 0x101   :  { %v770_v39 = vadd.f32 %v3170_v33, %v699_v17  ;;  %v700_v5 = vmul.f32 %v3165_v13, %v452_v20  ;;  %2184 = vmatprep.mubr.bf16.mxu1 %v894_v18 }
 0x102   :  { %v773_v15 = vadd.f32 %v3170_v33, %v702_v49  ;;  %2185 = vmatmul.mubr.bf16.vlgmr.msra.gmra.mrb[32].mxu1 %v895_v36  ;;  %v836_v4 = vmax.f32 %v772_v11, 0.0 }
 0x103   :  { %v771_v16 = vadd.f32 %v3170_v33, %v700_v5  ;;  %v834_v54 = vmax.f32 %v770_v39, 0.0 }
 0x104   :  { %v837_v21 = vmax.f32 %v773_v15, 0.0 }
 0x105   :  { %v835_v37 = vmax.f32 %v771_v16, 0.0  ;;  %v2034_v27 = vpop.f32.mrb[8].mxu0 }
 0x106   :  { %v705_v10 = vmul.f32 %v2034_v27, %v3165_v13  ;;  %v465_v6 = vpop.f32.mrb[9].mxu0  ;;  %v897_v48 = vpack.c.bf16 %v837_v21, %v836_v4 }
 0x107   :  { %v703_v45 = vmul.f32 %v3165_v13, %v465_v6  ;;  %v2035_v55 = vpop.f32.mrb[10].mxu0  ;;  %v896_v9 = vpack.c.bf16 %v835_v37, %v834_v54 }
 0x108   :  { %v776_v22 = vadd.f32 %v3170_v33, %v705_v10  ;;  %v706_v43 = vmul.f32 %v2035_v55, %v3165_v13  ;;  %v468_v1 = vpop.f32.mrb[11].mxu0 }
 0x109   :  { %v774_v62 = vadd.f32 %v3170_v33, %v703_v45  ;;  %v704_v14 = vmul.f32 %v3165_v13, %v468_v1  ;;  %2188 = vmatprep.mubr.bf16.mxu1 %v896_v9 }
 0x10a   :  { %v777_v29 = vadd.f32 %v3170_v33, %v706_v43  ;;  %2189 = vmatmul.mubr.bf16.gmra.mrb[36].mxu1 %v897_v48  ;;  %v840_v38 = vmax.f32 %v776_v22, 0.0 }
 0x10b   :  { %v775_v35 = vadd.f32 %v3170_v33, %v704_v14  ;;  %v838_v52 = vmax.f32 %v774_v62, 0.0 }
 0x10c   :  { %v841_v50 = vmax.f32 %v777_v29, 0.0 }
 0x10d   :  { %v839_v31 = vmax.f32 %v775_v35, 0.0  ;;  %v2038_v56 = vpop.f32.mrb[12].mxu0 }
 0x10e   :  { %v709_v60 = vmul.f32 %v2038_v56, %v3165_v13  ;;  %v481_v7 = vpop.f32.mrb[13].mxu0  ;;  %v899_v0 = vpack.c.bf16 %v841_v50, %v840_v38 }
 0x10f   :  { %v707_v26 = vmul.f32 %v3165_v13, %v481_v7  ;;  %v2039_v12 = vpop.f32.mrb[14].mxu0  ;;  %v898_v59 = vpack.c.bf16 %v839_v31, %v838_v52 }
 0x110   :  { %v780_v57 = vadd.f32 %v3170_v33, %v709_v60  ;;  %v710_v24 = vmul.f32 %v2039_v12, %v3165_v13  ;;  %v484_v42 = vpop.f32.mrb[15].mxu0 }
 0x111   :  { %v778_v28 = vadd.f32 %v3170_v33, %v707_v26  ;;  %v708_v3 = vmul.f32 %v3165_v13, %v484_v42  ;;  %2192 = vmatprep.mubr.bf16.mxu1 %v898_v59 }
 0x112   :  { %v781_v40 = vadd.f32 %v3170_v33, %v710_v24  ;;  %2193 = vmatmul.mubr.bf16.gmra.mrb[40].mxu1 %v899_v0  ;;  %v844_v8 = vmax.f32 %v780_v57, 0.0 }
 0x113   :  { %v779_v34 = vadd.f32 %v3170_v33, %v708_v3  ;;  %v842_v19 = vmax.f32 %v778_v28, 0.0 }
 0x114   :  { %v845_v61 = vmax.f32 %v781_v40, 0.0 }
 0x115   :  { %v843_v47 = vmax.f32 %v779_v34, 0.0  ;;  %v2042_v32 = vpop.f32.mrb[16].mxu0 }
 0x116   :  { %v713_v58 = vmul.f32 %v2042_v32, %v3165_v13  ;;  %v497_v25 = vpop.f32.mrb[17].mxu0  ;;  %v901_v46 = vpack.c.bf16 %v845_v61, %v844_v8 }
 0x117   :  { %v711_v30 = vmul.f32 %v3165_v13, %v497_v25  ;;  %v2043_v44 = vpop.f32.mrb[18].mxu0  ;;  %v900_v63 = vpack.c.bf16 %v843_v47, %v842_v19 }
 0x118   :  { %v784_v53 = vadd.f32 %v3170_v33, %v713_v58  ;;  %v714_v51 = vmul.f32 %v2043_v44, %v3165_v13  ;;  %v500_v36 = vpop.f32.mrb[19].mxu0 }
 0x119   :  { %v782_v2 = vadd.f32 %v3170_v33, %v711_v30  ;;  %v712_v41 = vmul.f32 %v3165_v13, %v500_v36  ;;  %2196 = vmatprep.mubr.bf16.mxu1 %v900_v63 }
 0x11a   :  { %v785_v17 = vadd.f32 %v3170_v33, %v714_v51  ;;  %2197 = vmatmul.mubr.bf16.gmra.mrb[44].mxu1 %v901_v46  ;;  %v848_v18 = vmax.f32 %v784_v53, 0.0 }
 0x11b   :  { %v783_v23 = vadd.f32 %v3170_v33, %v712_v41  ;;  %v846_v49 = vmax.f32 %v782_v2, 0.0 }
 0x11c   :  { %v849_v11 = vmax.f32 %v785_v17, 0.0 }
 0x11d   :  { %v847_v20 = vmax.f32 %v783_v23, 0.0  ;;  %v2046_v39 = vpop.f32.mrb[20].mxu0 }
 0x11e   :  { %v717_v5 = vmul.f32 %v2046_v39, %v3165_v13  ;;  %v513_v15 = vpop.f32.mrb[21].mxu0  ;;  %v903_v16 = vpack.c.bf16 %v849_v11, %v848_v18 }
 0x11f   :  { %v715_v4 = vmul.f32 %v3165_v13, %v513_v15  ;;  %v2047_v21 = vpop.f32.mrb[22].mxu0  ;;  %v902_v54 = vpack.c.bf16 %v847_v20, %v846_v49 }
 0x120   :  { %v788_v37 = vadd.f32 %v3170_v33, %v717_v5  ;;  %v718_v27 = vmul.f32 %v2047_v21, %v3165_v13  ;;  %v516_v10 = vpop.f32.mrb[23].mxu0 }
 0x121   :  { %v786_v6 = vadd.f32 %v3170_v33, %v715_v4  ;;  %v716_v48 = vmul.f32 %v3165_v13, %v516_v10  ;;  %2200 = vmatprep.mubr.bf16.mxu1 %v902_v54 }
 0x122   :  { %v789_v45 = vadd.f32 %v3170_v33, %v718_v27  ;;  %2201 = vmatmul.mubr.bf16.gmra.mrb[48].mxu1 %v903_v16  ;;  %v852_v9 = vmax.f32 %v788_v37, 0.0 }
 0x123   :  { %v787_v55 = vadd.f32 %v3170_v33, %v716_v48  ;;  %v850_v43 = vmax.f32 %v786_v6, 0.0 }
 0x124   :  { %v853_v22 = vmax.f32 %v789_v45, 0.0 }
 0x125   :  { %v851_v1 = vmax.f32 %v787_v55, 0.0  ;;  %v2050_v62 = vpop.f32.mrb[24].mxu0 }
 0x126   :  { %v721_v14 = vmul.f32 %v2050_v62, %v3165_v13  ;;  %v529_v29 = vpop.f32.mrb[25].mxu0  ;;  %v905_v35 = vpack.c.bf16 %v853_v22, %v852_v9 }
 0x127   :  { %v719_v38 = vmul.f32 %v3165_v13, %v529_v29  ;;  %v2051_v50 = vpop.f32.mrb[26].mxu0  ;;  %v904_v52 = vpack.c.bf16 %v851_v1, %v850_v43 }
 0x128   :  { %v792_v31 = vadd.f32 %v3170_v33, %v721_v14  ;;  %v722_v56 = vmul.f32 %v2051_v50, %v3165_v13  ;;  %v532_v60 = vpop.f32.mrb[27].mxu0 }
 0x129   :  { %v790_v7 = vadd.f32 %v3170_v33, %v719_v38  ;;  %v720_v0 = vmul.f32 %v3165_v13, %v532_v60  ;;  %2204 = vmatprep.mubr.bf16.mxu1 %v904_v52 }
 0x12a   :  { %v793_v26 = vadd.f32 %v3170_v33, %v722_v56  ;;  %2205 = vmatmul.mubr.bf16.gmra.mrb[52].mxu1 %v905_v35  ;;  %v856_v59 = vmax.f32 %v792_v31, 0.0 }
 0x12b   :  { %v791_v12 = vadd.f32 %v3170_v33, %v720_v0  ;;  %v854_v24 = vmax.f32 %v790_v7, 0.0 }
 0x12c   :  { %v857_v57 = vmax.f32 %v793_v26, 0.0 }
 0x12d   :  { %v855_v42 = vmax.f32 %v791_v12, 0.0  ;;  %v2054_v28 = vpop.f32.mrb[28].mxu0 }
 0x12e   :  { %v725_v3 = vmul.f32 %v2054_v28, %v3165_v13  ;;  %v545_v40 = vpop.f32.mrb[29].mxu0  ;;  %v907_v34 = vpack.c.bf16 %v857_v57, %v856_v59 }
 0x12f   :  { %v723_v8 = vmul.f32 %v3165_v13, %v545_v40  ;;  %v2055_v61 = vpop.f32.mrb[30].mxu0  ;;  %v906_v19 = vpack.c.bf16 %v855_v42, %v854_v24 }
 0x130   :  { %v796_v47 = vadd.f32 %v3170_v33, %v725_v3  ;;  %v726_v32 = vmul.f32 %v2055_v61, %v3165_v13  ;;  %v548_v58 = vpop.f32.mrb[31].mxu0 }
 0x131   :  { %v794_v25 = vadd.f32 %v3170_v33, %v723_v8  ;;  %v724_v46 = vmul.f32 %v3165_v13, %v548_v58  ;;  %2208 = vmatprep.mubr.bf16.mxu1 %v906_v19 }
 0x132   :  { %v797_v30 = vadd.f32 %v3170_v33, %v726_v32  ;;  %2209 = vmatmul.mubr.bf16.gmra.mrb[56].mxu1 %v907_v34  ;;  %v860_v63 = vmax.f32 %v796_v47, 0.0 }
 0x133   :  { %v795_v44 = vadd.f32 %v3170_v33, %v724_v46  ;;  %v858_v51 = vmax.f32 %v794_v25, 0.0 }
 0x134   :  { %v861_v53 = vmax.f32 %v797_v30, 0.0 }
 0x135   :  { %v859_v36 = vmax.f32 %v795_v44, 0.0  ;;  %v2058_v2 = vpop.f32.mrb[32].mxu0 }
 0x136   :  { %v729_v41 = vmul.f32 %v2058_v2, %v3165_v13  ;;  %v561_v17 = vpop.f32.mrb[33].mxu0  ;;  %v909_v23 = vpack.c.bf16 %v861_v53, %v860_v63 }
 0x137   :  { %v727_v18 = vmul.f32 %v3165_v13, %v561_v17  ;;  %v2059_v11 = vpop.f32.mrb[34].mxu0  ;;  %v908_v49 = vpack.c.bf16 %v859_v36, %v858_v51 }
 0x138   :  { %v800_v20 = vadd.f32 %v3170_v33, %v729_v41  ;;  %v730_v39 = vmul.f32 %v2059_v11, %v3165_v13  ;;  %v564_v5 = vpop.f32.mrb[35].mxu0 }
 0x139   :  { %v798_v15 = vadd.f32 %v3170_v33, %v727_v18  ;;  %v728_v16 = vmul.f32 %v3165_v13, %v564_v5  ;;  %2212 = vmatprep.mubr.bf16.mxu1 %v908_v49 }
 0x13a   :  { %v801_v4 = vadd.f32 %v3170_v33, %v730_v39  ;;  %2213 = vmatmul.mubr.bf16.gmra.mrb[60].mxu1 %v909_v23  ;;  %v864_v54 = vmax.f32 %v800_v20, 0.0 }
 0x13b   :  { %v799_v21 = vadd.f32 %v3170_v33, %v728_v16  ;;  %v862_v27 = vmax.f32 %v798_v15, 0.0 }
 0x13c   :  { %v865_v37 = vmax.f32 %v801_v4, 0.0 }
 0x13d   :  { %v863_v10 = vmax.f32 %v799_v21, 0.0  ;;  %v2062_v6 = vpop.f32.mrb[36].mxu0 }
 0x13e   :  { %v733_v48 = vmul.f32 %v2062_v6, %v3165_v13  ;;  %v577_v45 = vpop.f32.mrb[37].mxu0  ;;  %v911_v55 = vpack.c.bf16 %v865_v37, %v864_v54 }
 0x13f   :  { %v731_v9 = vmul.f32 %v3165_v13, %v577_v45  ;;  %v2063_v22 = vpop.f32.mrb[38].mxu0  ;;  %v910_v43 = vpack.c.bf16 %v863_v10, %v862_v27 }
 0x140   :  { %v804_v1 = vadd.f32 %v3170_v33, %v733_v48  ;;  %v734_v62 = vmul.f32 %v2063_v22, %v3165_v13  ;;  %v580_v14 = vpop.f32.mrb[39].mxu0 }
 0x141   :  { %v802_v29 = vadd.f32 %v3170_v33, %v731_v9  ;;  %v732_v35 = vmul.f32 %v3165_v13, %v580_v14  ;;  %2216 = vmatprep.mubr.bf16.mxu1 %v910_v43 }
 0x142   :  { %v805_v38 = vadd.f32 %v3170_v33, %v734_v62  ;;  %2217 = vmatmul.mubr.bf16.gmra.mrb[0].mxu1 %v911_v55  ;;  %v868_v52 = vmax.f32 %v804_v1, 0.0 }
 0x143   :  { %v803_v50 = vadd.f32 %v3170_v33, %v732_v35  ;;  %v866_v56 = vmax.f32 %v802_v29, 0.0 }
 0x144   :  { %v869_v31 = vmax.f32 %v805_v38, 0.0 }
 0x145   :  { %v867_v60 = vmax.f32 %v803_v50, 0.0  ;;  %v2066_v7 = vpop.f32.mrb[40].mxu0 }
 0x146   :  { %v737_v0 = vmul.f32 %v2066_v7, %v3165_v13  ;;  %v593_v26 = vpop.f32.mrb[41].mxu0  ;;  %v913_v12 = vpack.c.bf16 %v869_v31, %v868_v52 }
 0x147   :  { %v735_v59 = vmul.f32 %v3165_v13, %v593_v26  ;;  %v2067_v57 = vpop.f32.mrb[42].mxu0  ;;  %v912_v24 = vpack.c.bf16 %v867_v60, %v866_v56 }
 0x148   :  { %v808_v42 = vadd.f32 %v3170_v33, %v737_v0  ;;  %v738_v28 = vmul.f32 %v2067_v57, %v3165_v13  ;;  %v596_v3 = vpop.f32.mrb[43].mxu0 }
 0x149   :  { %v806_v40 = vadd.f32 %v3170_v33, %v735_v59  ;;  %v736_v34 = vmul.f32 %v3165_v13, %v596_v3  ;;  %2220 = vmatprep.mubr.bf16.mxu1 %v912_v24 }
 0x14a   :  { %v809_v8 = vadd.f32 %v3170_v33, %v738_v28  ;;  %2221 = vmatmul.mubr.bf16.gmra.mrb[4].mxu1 %v913_v12  ;;  %v872_v19 = vmax.f32 %v808_v42, 0.0 }
 0x14b   :  { %v807_v61 = vadd.f32 %v3170_v33, %v736_v34  ;;  %v870_v32 = vmax.f32 %v806_v40, 0.0 }
 0x14c   :  { %v873_v47 = vmax.f32 %v809_v8, 0.0 }
 0x14d   :  { %v871_v58 = vmax.f32 %v807_v61, 0.0  ;;  %v2070_v25 = vpop.f32.mrb[44].mxu0 }
 0x14e   :  { %v741_v46 = vmul.f32 %v2070_v25, %v3165_v13  ;;  %v609_v30 = vpop.f32.mrb[45].mxu0  ;;  %v915_v44 = vpack.c.bf16 %v873_v47, %v872_v19 }
 0x14f   :  { %v739_v63 = vmul.f32 %v3165_v13, %v609_v30  ;;  %v2071_v53 = vpop.f32.mrb[46].mxu0  ;;  %v914_v51 = vpack.c.bf16 %v871_v58, %v870_v32 }
 0x150   :  { %v812_v36 = vadd.f32 %v3170_v33, %v741_v46  ;;  %v742_v2 = vmul.f32 %v2071_v53, %v3165_v13  ;;  %v612_v41 = vpop.f32.mrb[47].mxu0 }
 0x151   :  { %v810_v17 = vadd.f32 %v3170_v33, %v739_v63  ;;  %v740_v23 = vmul.f32 %v3165_v13, %v612_v41  ;;  %2224 = vmatprep.mubr.bf16.mxu1 %v914_v51 }
 0x152   :  { %v813_v18 = vadd.f32 %v3170_v33, %v742_v2  ;;  %2225 = vmatmul.mubr.bf16.gmra.mrb[8].mxu1 %v915_v44  ;;  %v876_v49 = vmax.f32 %v812_v36, 0.0 }
 0x153   :  { %v811_v11 = vadd.f32 %v3170_v33, %v740_v23  ;;  %v874_v39 = vmax.f32 %v810_v17, 0.0 }
 0x154   :  { %v877_v20 = vmax.f32 %v813_v18, 0.0 }
 0x155   :  { %v875_v5 = vmax.f32 %v811_v11, 0.0  ;;  %v2074_v15 = vpop.f32.mrb[48].mxu0 }
 0x156   :  { %v745_v16 = vmul.f32 %v2074_v15, %v3165_v13  ;;  %v625_v4 = vpop.f32.mrb[49].mxu0  ;;  %v917_v21 = vpack.c.bf16 %v877_v20, %v876_v49 }
 0x157   :  { %v743_v54 = vmul.f32 %v3165_v13, %v625_v4  ;;  %v2075_v37 = vpop.f32.mrb[50].mxu0  ;;  %v916_v27 = vpack.c.bf16 %v875_v5, %v874_v39 }
 0x158   :  { %v816_v10 = vadd.f32 %v3170_v33, %v745_v16  ;;  %v746_v6 = vmul.f32 %v2075_v37, %v3165_v13  ;;  %v628_v48 = vpop.f32.mrb[51].mxu0 }
 0x159   :  { %v814_v45 = vadd.f32 %v3170_v33, %v743_v54  ;;  %v744_v55 = vmul.f32 %v3165_v13, %v628_v48  ;;  %2228 = vmatprep.mubr.bf16.mxu1 %v916_v27 }
 0x15a   :  { %v817_v9 = vadd.f32 %v3170_v33, %v746_v6  ;;  %2229 = vmatmul.mubr.bf16.gmra.mrb[12].mxu1 %v917_v21  ;;  %v880_v43 = vmax.f32 %v816_v10, 0.0 }
 0x15b   :  { %v815_v22 = vadd.f32 %v3170_v33, %v744_v55  ;;  %v878_v62 = vmax.f32 %v814_v45, 0.0 }
 0x15c   :  { %v881_v1 = vmax.f32 %v817_v9, 0.0 }
 0x15d   :  { %v879_v14 = vmax.f32 %v815_v22, 0.0  ;;  %v2078_v29 = vpop.f32.mrb[52].mxu0 }
 0x15e   :  { %v749_v35 = vmul.f32 %v2078_v29, %v3165_v13  ;;  %v641_v38 = vpop.f32.mrb[53].mxu0  ;;  %v919_v50 = vpack.c.bf16 %v881_v1, %v880_v43 }
 0x15f   :  { %v747_v52 = vmul.f32 %v3165_v13, %v641_v38  ;;  %v2079_v31 = vpop.f32.mrb[54].mxu0  ;;  %v918_v56 = vpack.c.bf16 %v879_v14, %v878_v62 }
 0x160   :  { %v820_v60 = vadd.f32 %v3170_v33, %v749_v35  ;;  %v750_v7 = vmul.f32 %v2079_v31, %v3165_v13  ;;  %v644_v0 = vpop.f32.mrb[55].mxu0 }
 0x161   :  { %v818_v26 = vadd.f32 %v3170_v33, %v747_v52  ;;  %v748_v12 = vmul.f32 %v3165_v13, %v644_v0  ;;  %2232 = vmatprep.mubr.bf16.mxu1 %v918_v56 }
 0x162   :  { %v821_v59 = vadd.f32 %v3170_v33, %v750_v7  ;;  %2233 = vmatmul.mubr.bf16.gmra.mrb[16].mxu1 %v919_v50  ;;  %v884_v24 = vmax.f32 %v820_v60, 0.0 }
 0x163   :  { %v819_v57 = vadd.f32 %v3170_v33, %v748_v12  ;;  %v882_v28 = vmax.f32 %v818_v26, 0.0 }
 0x164   :  { %v885_v42 = vmax.f32 %v821_v59, 0.0 }
 0x165   :  { %v883_v3 = vmax.f32 %v819_v57, 0.0  ;;  %v2082_v40 = vpop.f32.mrb[56].mxu0 }
 0x166   :  { %v753_v34 = vmul.f32 %v2082_v40, %v3165_v13  ;;  %v657_v8 = vpop.f32.mrb[57].mxu0  ;;  %v921_v61 = vpack.c.bf16 %v885_v42, %v884_v24 }
 0x167   :  { %v751_v19 = vmul.f32 %v3165_v13, %v657_v8  ;;  %v2083_v47 = vpop.f32.mrb[58].mxu0  ;;  %v920_v32 = vpack.c.bf16 %v883_v3, %v882_v28 }
 0x168   :  { %v824_v58 = vadd.f32 %v3170_v33, %v753_v34  ;;  %v754_v25 = vmul.f32 %v2083_v47, %v3165_v13  ;;  %v660_v46 = vpop.f32.mrb[59].mxu0 }
 0x169   :  { %v822_v30 = vadd.f32 %v3170_v33, %v751_v19  ;;  %v752_v44 = vmul.f32 %v3165_v13, %v660_v46  ;;  %2236 = vmatprep.mubr.bf16.mxu1 %v920_v32 }
 0x16a   :  { %v825_v63 = vadd.f32 %v3170_v33, %v754_v25  ;;  %2237 = vmatmul.mubr.bf16.gmra.mrb[20].mxu1 %v921_v61  ;;  %v888_v51 = vmax.f32 %v824_v58, 0.0  ;;  %v1666_v58 = vld [vmem:[%s3764_s8 + $0x10] sm:$0xff] }
 0x16b   :  { %v823_v53 = vadd.f32 %v3170_v33, %v752_v44  ;;  %v886_v2 = vmax.f32 %v822_v30, 0.0  ;;  %v1664_v30 = vld [vmem:[%s3764_s8] sm:$0xff] }
 0x16c   :  { %v889_v36 = vmax.f32 %v825_v63, 0.0 }
 0x16d   :  { %v887_v41 = vmax.f32 %v823_v53, 0.0  ;;  %v2086_v17 = vpop.f32.mrb[60].mxu0  ;;  %v1667_v53 = vld [vmem:[%s3764_s8 + $0x18] sm:$0xff] }
 0x16e   :  { %v757_v23 = vmul.f32 %v2086_v17, %v3165_v13  ;;  %v673_v18 = vpop.f32.mrb[61].mxu0  ;;  %v923_v11 = vpack.c.bf16 %v889_v36, %v888_v51 }
 0x16f   :  { %v755_v49 = vmul.f32 %v3165_v13, %v673_v18  ;;  %v2087_v20 = vpop.f32.mrb[62].mxu0  ;;  %v922_v39 = vpack.c.bf16 %v887_v41, %v886_v2  ;;  %v1665_v41 = vld [vmem:[%s3764_s8 + $0x8] sm:$0xff] }
 0x170   :  { %v828_v5 = vadd.f32 %v3170_v33, %v757_v23  ;;  %v758_v15 = vmul.f32 %v2087_v20, %v3165_v13  ;;  %v676_v16 = vpop.f32.mrb[63].mxu0  ;;  %v1670_v20 = vld [vmem:[%s3764_s8 + $0x30] sm:$0xff] }
 0x171   :  { %v826_v4 = vadd.f32 %v3170_v33, %v755_v49  ;;  %v756_v21 = vmul.f32 %v3165_v13, %v676_v16  ;;  %2240 = vmatprep.mubr.bf16.mxu1 %v922_v39 }
 0x172   :  { %v829_v54 = vadd.f32 %v3170_v33, %v758_v15  ;;  %2241 = vmatmul.mubr.bf16.gmra.mrb[24].mxu1 %v923_v11  ;;  %v892_v27 = vmax.f32 %v828_v5, 0.0  ;;  %v1668_v15 = vld [vmem:[%s3764_s8 + $0x20] sm:$0xff] }
 0x173   :  { %v827_v37 = vadd.f32 %v3170_v33, %v756_v21  ;;  %v890_v6 = vmax.f32 %v826_v4, 0.0  ;;  %v1671_v21 = vld [vmem:[%s3764_s8 + $0x38] sm:$0xff] }
 0x174   :  { %v893_v10 = vmax.f32 %v829_v54, 0.0 }
 0x175   :  { %v891_v48 = vmax.f32 %v827_v37, 0.0  ;;  %v2106_v45 = vpop.f32.mrb[64].mxu0 }
 0x176   :  { %v925_v55 = vpack.c.bf16 %v893_v10, %v892_v27  ;;  %v1072_v9 = vpop.f32.mrb[65].mxu0  ;;  %v1669_v10 = vld [vmem:[%s3764_s8 + $0x28] sm:$0xff] }
 0x177   :  { %v924_v22 = vpack.c.bf16 %v891_v48, %v890_v6  ;;  %v2107_v43 = vpop.f32.mrb[66].mxu0 }
 0x178   :  { %v1075_v1 = vpop.f32.mrb[67].mxu0 }
 0x179   :  { %2244 = vmatprep.mubr.bf16.mxu1 %v924_v22  ;;  %v1674_v22 = vld [vmem:[%s3764_s8 + $0x50] sm:$0xff] }
 0x17a   :  { %2245 = vmatmul.mubr.bf16.gmra.mrb[28].mxu1 %v925_v55 }
 0x17d   :  { %v2110_v62 = vpop.f32.mrb[68].mxu0 }
 0x17e   :  { %v1088_v13 = vpop.f32.mrb[69].mxu0 }
 0x17f   :  { %v2111_v14 = vpop.f32.mrb[70].mxu0 }
 0x180   :  { %v1091_v29 = vpop.f32.mrb[71].mxu0 }
 0x185   :  { %v3300_v35 = vpop.f32.mrb[72].mxu0 }
 0x186   :  { %v3302_v38 = vpop.f32.mrb[73].mxu0 }
 0x187   :  { %v3304_v33 = vpop.f32.mrb[74].mxu0 }
 0x188   :  { %v3306_v50 = vpop.f32.mrb[75].mxu0 }
 0x18d   :  { %v3308_v52 = vpop.f32.mrb[76].mxu0 }
 0x18e   :  { %v3310_v31 = vpop.f32.mrb[77].mxu0 }
 0x18f   :  { %v3312_v56 = vpop.f32.mrb[78].mxu0 }
 0x190   :  { %v3314_v60 = vpop.f32.mrb[79].mxu0 }
 0x195   :  { %v3316_v7 = vpop.f32.mrb[80].mxu0 }
 0x196   :  { %v3318_v0 = vpop.f32.mrb[81].mxu0 }
 0x197   :  { %v3320_v26 = vpop.f32.mrb[82].mxu0 }
 0x198   :  { %v3322_v12 = vpop.f32.mrb[83].mxu0 }
 0x19d   :  { %v3324_v59 = vpop.f32.mrb[84].mxu0 }
 0x19e   :  { %v3326_v57 = vpop.f32.mrb[85].mxu0 }
 0x19f   :  { %v3328_v24 = vpop.f32.mrb[86].mxu0 }
 0x1a0   :  { %v3330_v42 = vpop.f32.mrb[87].mxu0 }
 0x1a5   :  { %v3332_v28 = vpop.f32.mrb[88].mxu0 }
 0x1a6   :  { %v3334_v3 = vpop.f32.mrb[89].mxu0 }
 0x1a7   :  { %v3336_v40 = vpop.f32.mrb[90].mxu0 }
 0x1a8   :  { %v3338_v34 = vpop.f32.mrb[91].mxu0 }
 0x1ad   :  { %v3340_v8 = vpop.f32.mrb[92].mxu0 }
 0x1ae   :  { %v3342_v61 = vpop.f32.mrb[93].mxu0 }
 0x1af   :  { %v3344_v19 = vpop.f32.mrb[94].mxu0 }
 0x1b0   :  { %v3346_v47 = vpop.f32.mrb[95].mxu0 }
 0x1d5   :  { %v2186_v32 = vpop.f32.mrb[32].mxu1 }
 0x1d6   :  { %v1418_v25 = vadd.f32 %v2186_v32, %v2106_v45  ;;  %v1409_v46 = vpop.f32.mrb[33].mxu1 }
 0x1d7   :  { %v1410_v44 = vadd.f32 %v1409_v46, %v1072_v9  ;;  %v2187_v63 = vpop.f32.mrb[34].mxu1 }
 0x1d8   :  { %v1730_v51 = vadd.f32 %v1666_v58, %v1418_v25  ;;  %v1421_v36 = vadd.f32 %v2187_v63, %v2107_v43  ;;  %v1412_v2 = vpop.f32.mrb[35].mxu1 }
 0x1d9   :  { %v1728_v17 = vadd.f32 %v1664_v30, %v1410_v44  ;;  %v1413_v23 = vadd.f32 %v1412_v2, %v1075_v1 }
 0x1da   :  { %1794 = vst [vmem:[%s3765_s9 + $0x10] sm:$0xff] %v1730_v51  ;;  %v1731_v18 = vadd.f32 %v1667_v53, %v1421_v36  ;;  %v1676_v51 = vld [vmem:[%s3764_s8 + $0x60] sm:$0xff] }
 0x1db   :  { %1792 = vst [vmem:[%s3765_s9] sm:$0xff] %v1728_v17  ;;  %v1729_v11 = vadd.f32 %v1665_v41, %v1413_v23  ;;  %v1679_v41 = vld [vmem:[%s3764_s8 + $0x78] sm:$0xff] }
 0x1dc   :  { %1795 = vst [vmem:[%s3765_s9 + $0x18] sm:$0xff] %v1731_v18 }
 0x1dd   :  { %1793 = vst [vmem:[%s3765_s9 + $0x8] sm:$0xff] %v1729_v11  ;;  %v2190_v49 = vpop.f32.mrb[36].mxu1 }
 0x1de   :  { %v1434_v39 = vadd.f32 %v2190_v49, %v2110_v62  ;;  %v1425_v5 = vpop.f32.mrb[37].mxu1  ;;  %v1672_v62 = vld [vmem:[%s3764_s8 + $0x40] sm:$0xff] }
 0x1df   :  { %v1426_v16 = vadd.f32 %v1425_v5, %v1088_v13  ;;  %v2191_v4 = vpop.f32.mrb[38].mxu1 }
 0x1e0   :  { %v1734_v54 = vadd.f32 %v1670_v20, %v1434_v39  ;;  %v1437_v37 = vadd.f32 %v2191_v4, %v2111_v14  ;;  %v1428_v27 = vpop.f32.mrb[39].mxu1 }
 0x1e1   :  { %v1732_v6 = vadd.f32 %v1668_v15, %v1426_v16  ;;  %v1429_v48 = vadd.f32 %v1428_v27, %v1091_v29  ;;  %v1675_v29 = vld [vmem:[%s3764_s8 + $0x58] sm:$0xff]  ;;  %v1680_v15 = vld [vmem:[%s3764_s8 + $0x80] sm:$0xff] }
 0x1e2   :  { %1798 = vst [vmem:[%s3765_s9 + $0x30] sm:$0xff] %v1734_v54  ;;  %v1735_v45 = vadd.f32 %v1671_v21, %v1437_v37  ;;  %v1683_v21 = vld [vmem:[%s3764_s8 + $0x98] sm:$0xff] }
 0x1e3   :  { %1796 = vst [vmem:[%s3765_s9 + $0x20] sm:$0xff] %v1732_v6  ;;  %v1733_v55 = vadd.f32 %v1669_v10, %v1429_v48 }
 0x1e4   :  { %1799 = vst [vmem:[%s3765_s9 + $0x38] sm:$0xff] %v1735_v45 }
 0x1e5   :  { %1797 = vst [vmem:[%s3765_s9 + $0x28] sm:$0xff] %v1733_v55  ;;  %v2194_v9 = vpop.f32.mrb[40].mxu1 }
 0x1e6   :  { %v1450_v43 = vadd.f32 %v2194_v9, %v3300_v35  ;;  %v1441_v1 = vpop.f32.mrb[41].mxu1  ;;  %v1673_v35 = vld [vmem:[%s3764_s8 + $0x48] sm:$0xff]  ;;  %v1684_v9 = vld [vmem:[%s3764_s8 + $0xa0] sm:$0xff] }
 0x1e7   :  { %v1442_v13 = vadd.f32 %v1441_v1, %v3302_v38  ;;  %v2195_v14 = vpop.f32.mrb[42].mxu1  ;;  %v1687_v1 = vld [vmem:[%s3764_s8 + $0xb8] sm:$0xff] }
 0x1e8   :  { %v1738_v32 = vadd.f32 %v1674_v22, %v1450_v43  ;;  %v1453_v58 = vadd.f32 %v2195_v14, %v3304_v33  ;;  %v1444_v25 = vpop.f32.mrb[43].mxu1 }
 0x1e9   :  { %v1736_v46 = vadd.f32 %v1672_v62, %v1442_v13  ;;  %v1445_v30 = vadd.f32 %v1444_v25, %v3306_v50  ;;  %v1678_v50 = vld [vmem:[%s3764_s8 + $0x70] sm:$0xff] }
 0x1ea   :  { %1802 = vst [vmem:[%s3765_s9 + $0x50] sm:$0xff] %v1738_v32  ;;  %v1739_v38 = vadd.f32 %v1675_v29, %v1453_v58 }
 0x1eb   :  { %1800 = vst [vmem:[%s3765_s9 + $0x40] sm:$0xff] %v1736_v46  ;;  %v1737_v44 = vadd.f32 %v1673_v35, %v1445_v30  ;;  %v1688_v46 = vld [vmem:[%s3764_s8 + $0xc0] sm:$0xff] }
 0x1ec   :  { %1803 = vst [vmem:[%s3765_s9 + $0x58] sm:$0xff] %v1739_v38 }
 0x1ed   :  { %1801 = vst [vmem:[%s3765_s9 + $0x48] sm:$0xff] %v1737_v44  ;;  %v2198_v33 = vpop.f32.mrb[44].mxu1  ;;  %v1691_v44 = vld [vmem:[%s3764_s8 + $0xd8] sm:$0xff] }
 0x1ee   :  { %v1466_v63 = vadd.f32 %v2198_v33, %v3308_v52  ;;  %v1457_v53 = vpop.f32.mrb[45].mxu1  ;;  %v1677_v52 = vld [vmem:[%s3764_s8 + $0x68] sm:$0xff] }
 0x1ef   :  { %v1458_v36 = vadd.f32 %v1457_v53, %v3310_v31  ;;  %v2199_v2 = vpop.f32.mrb[46].mxu1 }
 0x1f0   :  { %v1742_v17 = vadd.f32 %v1678_v50, %v1466_v63  ;;  %v1469_v23 = vadd.f32 %v2199_v2, %v3312_v56  ;;  %v1460_v18 = vpop.f32.mrb[47].mxu1 }
 0x1f1   :  { %v1740_v11 = vadd.f32 %v1676_v51, %v1458_v36  ;;  %v1461_v49 = vadd.f32 %v1460_v18, %v3314_v60  ;;  %v1682_v60 = vld [vmem:[%s3764_s8 + $0x90] sm:$0xff] }
 0x1f2   :  { %1806 = vst [vmem:[%s3765_s9 + $0x70] sm:$0xff] %v1742_v17  ;;  %v1743_v31 = vadd.f32 %v1679_v41, %v1469_v23  ;;  %v1692_v17 = vld [vmem:[%s3764_s8 + $0xe0] sm:$0xff] }
 0x1f3   :  { %1804 = vst [vmem:[%s3765_s9 + $0x60] sm:$0xff] %v1740_v11  ;;  %v1741_v20 = vadd.f32 %v1677_v52, %v1461_v49  ;;  %v1695_v52 = vld [vmem:[%s3764_s8 + $0xf8] sm:$0xff] }
 0x1f4   :  { %1807 = vst [vmem:[%s3765_s9 + $0x78] sm:$0xff] %v1743_v31 }
 0x1f5   :  { %1805 = vst [vmem:[%s3765_s9 + $0x68] sm:$0xff] %v1741_v20  ;;  %v2202_v56 = vpop.f32.mrb[48].mxu1 }
 0x1f6   :  { %v1482_v39 = vadd.f32 %v2202_v56, %v3316_v7  ;;  %v1473_v5 = vpop.f32.mrb[49].mxu1  ;;  %v1681_v7 = vld [vmem:[%s3764_s8 + $0x88] sm:$0xff] }
 0x1f7   :  { %v1474_v16 = vadd.f32 %v1473_v5, %v3318_v0  ;;  %v2203_v4 = vpop.f32.mrb[50].mxu1  ;;  %v1699_v5 = vld [vmem:[%s3764_s8 + $0x118] sm:$0xff] }
 0x1f8   :  { %v1746_v54 = vadd.f32 %v1682_v60, %v1482_v39  ;;  %v1485_v37 = vadd.f32 %v2203_v4, %v3320_v26  ;;  %v1476_v27 = vpop.f32.mrb[51].mxu1  ;;  %v1697_v4 = vld [vmem:[%s3764_s8 + $0x108] sm:$0xff] }
 0x1f9   :  { %v1744_v10 = vadd.f32 %v1680_v15, %v1474_v16  ;;  %v1477_v6 = vadd.f32 %v1476_v27, %v3322_v12  ;;  %v1686_v12 = vld [vmem:[%s3764_s8 + $0xb0] sm:$0xff] }
 0x1fa   :  { %1810 = vst [vmem:[%s3765_s9 + $0x90] sm:$0xff] %v1746_v54  ;;  %v1747_v0 = vadd.f32 %v1683_v21, %v1485_v37 }
 0x1fb   :  { %1808 = vst [vmem:[%s3765_s9 + $0x80] sm:$0xff] %v1744_v10  ;;  %v1745_v48 = vadd.f32 %v1681_v7, %v1477_v6  ;;  %v1702_v10 = vld [vmem:[%s3764_s8 + $0x130] sm:$0xff]  ;;  %v1700_v6 = vld [vmem:[%s3764_s8 + $0x120] sm:$0xff] }
 0x1fc   :  { %1811 = vst [vmem:[%s3765_s9 + $0x98] sm:$0xff] %v1747_v0 }
 0x1fd   :  { %1809 = vst [vmem:[%s3765_s9 + $0x88] sm:$0xff] %v1745_v48  ;;  %v2206_v26 = vpop.f32.mrb[52].mxu1  ;;  %v1703_v48 = vld [vmem:[%s3764_s8 + $0x138] sm:$0xff] }
 0x1fe   :  { %v1498_v45 = vadd.f32 %v2206_v26, %v3324_v59  ;;  %v1489_v55 = vpop.f32.mrb[53].mxu1  ;;  %v1685_v59 = vld [vmem:[%s3764_s8 + $0xa8] sm:$0xff] }
 0x1ff   :  { %v1490_v22 = vadd.f32 %v1489_v55, %v3326_v57  ;;  %v2207_v43 = vpop.f32.mrb[54].mxu1 }
 0x200   :  { %v1750_v62 = vadd.f32 %v1686_v12, %v1498_v45  ;;  %v1501_v13 = vadd.f32 %v2207_v43, %v3328_v24  ;;  %v1492_v14 = vpop.f32.mrb[55].mxu1  ;;  %v1701_v45 = vld [vmem:[%s3764_s8 + $0x128] sm:$0xff] }
 0x201   :  { %v1748_v29 = vadd.f32 %v1684_v9, %v1490_v22  ;;  %v1493_v32 = vadd.f32 %v1492_v14, %v3330_v42  ;;  %v1690_v42 = vld [vmem:[%s3764_s8 + $0xd0] sm:$0xff] }
 0x202   :  { %1814 = vst [vmem:[%s3765_s9 + $0xb0] sm:$0xff] %v1750_v62  ;;  %v1751_v57 = vadd.f32 %v1687_v1, %v1501_v13  ;;  %v1706_v62 = vld [vmem:[%s3764_s8 + $0x150] sm:$0xff]  ;;  %v1704_v13 = vld [vmem:[%s3764_s8 + $0x140] sm:$0xff] }
 0x203   :  { %1812 = vst [vmem:[%s3765_s9 + $0xa0] sm:$0xff] %v1748_v29  ;;  %v1749_v58 = vadd.f32 %v1685_v59, %v1493_v32  ;;  %v1707_v59 = vld [vmem:[%s3764_s8 + $0x158] sm:$0xff] }
 0x204   :  { %1815 = vst [vmem:[%s3765_s9 + $0xb8] sm:$0xff] %v1751_v57  ;;  %v1705_v57 = vld [vmem:[%s3764_s8 + $0x148] sm:$0xff] }
 0x205   :  { %1813 = vst [vmem:[%s3765_s9 + $0xa8] sm:$0xff] %v1749_v58  ;;  %v2210_v24 = vpop.f32.mrb[56].mxu1 }
 0x206   :  { %v1514_v25 = vadd.f32 %v2210_v24, %v3332_v28  ;;  %v1505_v35 = vpop.f32.mrb[57].mxu1  ;;  %v1689_v28 = vld [vmem:[%s3764_s8 + $0xc8] sm:$0xff] }
 0x207   :  { %v1506_v30 = vadd.f32 %v1505_v35, %v3334_v3  ;;  %v2211_v38 = vpop.f32.mrb[58].mxu1 }
 0x208   :  { %v1754_v33 = vadd.f32 %v1690_v42, %v1514_v25  ;;  %v1517_v50 = vadd.f32 %v2211_v38, %v3336_v40  ;;  %v1508_v63 = vpop.f32.mrb[59].mxu1 }
 0x209   :  { %v1752_v53 = vadd.f32 %v1688_v46, %v1506_v30  ;;  %v1509_v51 = vadd.f32 %v1508_v63, %v3338_v34  ;;  %v1694_v34 = vld [vmem:[%s3764_s8 + $0xf0] sm:$0xff]  ;;  %v1708_v30 = vld [vmem:[%s3764_s8 + $0x160] sm:$0xff]  ;;  %v1709_v63 = vld [vmem:[%s3764_s8 + $0x168] sm:$0xff] }
 0x20a   :  { %1818 = vst [vmem:[%s3765_s9 + $0xd0] sm:$0xff] %v1754_v33  ;;  %v1755_v3 = vadd.f32 %v1691_v44, %v1517_v50  ;;  %v1710_v46 = vld [vmem:[%s3764_s8 + $0x170] sm:$0xff]  ;;  %v1711_v44 = vld [vmem:[%s3764_s8 + $0x178] sm:$0xff] }
 0x20b   :  { %1816 = vst [vmem:[%s3765_s9 + $0xc0] sm:$0xff] %v1752_v53  ;;  %v1753_v36 = vadd.f32 %v1689_v28, %v1509_v51 }
 0x20c   :  { %1819 = vst [vmem:[%s3765_s9 + $0xd8] sm:$0xff] %v1755_v3 }
 0x20d   :  { %1817 = vst [vmem:[%s3765_s9 + $0xc8] sm:$0xff] %v1753_v36  ;;  %v2214_v40 = vpop.f32.mrb[60].mxu1 }
 0x20e   :  { %v1530_v2 = vadd.f32 %v2214_v40, %v3340_v8  ;;  %v1521_v41 = vpop.f32.mrb[61].mxu1  ;;  %v1693_v8 = vld [vmem:[%s3764_s8 + $0xe8] sm:$0xff]  ;;  %v1714_v40 = vld [vmem:[%s3764_s8 + $0x190] sm:$0xff] }
 0x20f   :  { %v1522_v23 = vadd.f32 %v1521_v41, %v3342_v61  ;;  %v2215_v18 = vpop.f32.mrb[62].mxu1  ;;  %v1715_v41 = vld [vmem:[%s3764_s8 + $0x198] sm:$0xff] }
 0x210   :  { %v1758_v11 = vadd.f32 %v1694_v34, %v1530_v2  ;;  %v1533_v49 = vadd.f32 %v2215_v18, %v3344_v19  ;;  %v1524_v31 = vpop.f32.mrb[63].mxu1  ;;  %v1698_v19 = vld [vmem:[%s3764_s8 + $0x110] sm:$0xff]  ;;  %v1712_v34 = vld [vmem:[%s3764_s8 + $0x180] sm:$0xff]  ;;  %v1713_v18 = vld [vmem:[%s3764_s8 + $0x188] sm:$0xff] }
 0x211   :  { %v1756_v20 = vadd.f32 %v1692_v17, %v1522_v23  ;;  %v1525_v56 = vadd.f32 %v1524_v31, %v3346_v47  ;;  %v1696_v47 = vld [vmem:[%s3764_s8 + $0x100] sm:$0xff] }
 0x212   :  { %1822 = vst [vmem:[%s3765_s9 + $0xf0] sm:$0xff] %v1758_v11  ;;  %v1759_v61 = vadd.f32 %v1695_v52, %v1533_v49 }
 0x213   :  { %1820 = vst [vmem:[%s3765_s9 + $0xe0] sm:$0xff] %v1756_v20  ;;  %v1757_v60 = vadd.f32 %v1693_v8, %v1525_v56  ;;  %v1718_v20 = vld [vmem:[%s3764_s8 + $0x1b0] sm:$0xff]  ;;  %v1716_v56 = vld [vmem:[%s3764_s8 + $0x1a0] sm:$0xff] }
 0x214   :  { %1823 = vst [vmem:[%s3765_s9 + $0xf8] sm:$0xff] %v1759_v61 }
 0x215   :  { %1821 = vst [vmem:[%s3765_s9 + $0xe8] sm:$0xff] %v1757_v60  ;;  %v2218_v39 = vpop.f32.mrb[0].mxu1  ;;  %v1719_v60 = vld [vmem:[%s3764_s8 + $0x1b8] sm:$0xff] }
 0x216   :  { %v1762_v15 = vadd.f32 %v2218_v39, %v1698_v19  ;;  %v1537_v16 = vpop.f32.mrb[1].mxu1  ;;  %v1717_v39 = vld [vmem:[%s3764_s8 + $0x1a8] sm:$0xff] }
 0x217   :  { %v1760_v21 = vadd.f32 %v1696_v47, %v1537_v16  ;;  %v2219_v54 = vpop.f32.mrb[2].mxu1 }
 0x218   :  { %1826 = vst [vmem:[%s3765_s9 + $0x110] sm:$0xff] %v1762_v15  ;;  %v1763_v37 = vadd.f32 %v2219_v54, %v1699_v5  ;;  %v1540_v27 = vpop.f32.mrb[3].mxu1  ;;  %v1722_v54 = vld [vmem:[%s3764_s8 + $0x1d0] sm:$0xff] }
 0x219   :  { %1824 = vst [vmem:[%s3765_s9 + $0x100] sm:$0xff] %v1760_v21  ;;  %v1761_v7 = vadd.f32 %v1697_v4, %v1540_v27 }
 0x21a   :  { %1827 = vst [vmem:[%s3765_s9 + $0x118] sm:$0xff] %v1763_v37  ;;  %v1720_v37 = vld [vmem:[%s3764_s8 + $0x1c0] sm:$0xff] }
 0x21b   :  { %1825 = vst [vmem:[%s3765_s9 + $0x108] sm:$0xff] %v1761_v7  ;;  %v1723_v7 = vld [vmem:[%s3764_s8 + $0x1d8] sm:$0xff] }
 0x21d   :  { %v2222_v0 = vpop.f32.mrb[4].mxu1 }
 0x21e   :  { %v1766_v26 = vadd.f32 %v2222_v0, %v1702_v10  ;;  %v1553_v12 = vpop.f32.mrb[5].mxu1  ;;  %v1721_v0 = vld [vmem:[%s3764_s8 + $0x1c8] sm:$0xff] }
 0x21f   :  { %v1764_v55 = vadd.f32 %v1700_v6, %v1553_v12  ;;  %v2223_v9 = vpop.f32.mrb[6].mxu1 }
 0x220   :  { %1830 = vst [vmem:[%s3765_s9 + $0x130] sm:$0xff] %v1766_v26  ;;  %v1767_v22 = vadd.f32 %v2223_v9, %v1703_v48  ;;  %v1556_v43 = vpop.f32.mrb[7].mxu1  ;;  %v1726_v9 = vld [vmem:[%s3764_s8 + $0x1f0] sm:$0xff] }
 0x221   :  { %1828 = vst [vmem:[%s3765_s9 + $0x120] sm:$0xff] %v1764_v55  ;;  %v1765_v1 = vadd.f32 %v1701_v45, %v1556_v43 }
 0x222   :  { %1831 = vst [vmem:[%s3765_s9 + $0x138] sm:$0xff] %v1767_v22  ;;  %v1724_v22 = vld [vmem:[%s3764_s8 + $0x1e0] sm:$0xff] }
 0x223   :  { %1829 = vst [vmem:[%s3765_s9 + $0x128] sm:$0xff] %v1765_v1  ;;  %v1727_v1 = vld [vmem:[%s3764_s8 + $0x1f8] sm:$0xff] }
 0x225   :  { %v2226_v14 = vpop.f32.mrb[8].mxu1 }
 0x226   :  { %v1770_v29 = vadd.f32 %v2226_v14, %v1706_v62  ;;  %v1569_v32 = vpop.f32.mrb[9].mxu1  ;;  %v1725_v14 = vld [vmem:[%s3764_s8 + $0x1e8] sm:$0xff] }
 0x227   :  { %v1768_v58 = vadd.f32 %v1704_v13, %v1569_v32  ;;  %v2227_v24 = vpop.f32.mrb[10].mxu1 }
 0x228   :  { %1834 = vst [vmem:[%s3765_s9 + $0x150] sm:$0xff] %v1770_v29  ;;  %v1771_v42 = vadd.f32 %v2227_v24, %v1707_v59  ;;  %v1572_v25 = vpop.f32.mrb[11].mxu1 }
 0x229   :  { %1832 = vst [vmem:[%s3765_s9 + $0x140] sm:$0xff] %v1768_v58  ;;  %v1769_v35 = vadd.f32 %v1705_v57, %v1572_v25 }
 0x22a   :  { %1835 = vst [vmem:[%s3765_s9 + $0x158] sm:$0xff] %v1771_v42 }
 0x22b   :  { %1833 = vst [vmem:[%s3765_s9 + $0x148] sm:$0xff] %v1769_v35 }
 0x22d   :  { %v2230_v38 = vpop.f32.mrb[12].mxu1 }
 0x22e   :  { %v1774_v33 = vadd.f32 %v2230_v38, %v1710_v46  ;;  %v1585_v50 = vpop.f32.mrb[13].mxu1 }
 0x22f   :  { %v1772_v28 = vadd.f32 %v1708_v30, %v1585_v50  ;;  %v2231_v53 = vpop.f32.mrb[14].mxu1 }
 0x230   :  { %1838 = vst [vmem:[%s3765_s9 + $0x170] sm:$0xff] %v1774_v33  ;;  %v1775_v51 = vadd.f32 %v2231_v53, %v1711_v44  ;;  %v1588_v3 = vpop.f32.mrb[15].mxu1 }
 0x231   :  { %1836 = vst [vmem:[%s3765_s9 + $0x160] sm:$0xff] %v1772_v28  ;;  %v1773_v36 = vadd.f32 %v1709_v63, %v1588_v3 }
 0x232   :  { %1839 = vst [vmem:[%s3765_s9 + $0x178] sm:$0xff] %v1775_v51 }
 0x233   :  { %1837 = vst [vmem:[%s3765_s9 + $0x168] sm:$0xff] %v1773_v36 }
 0x235   :  { %v2234_v2 = vpop.f32.mrb[16].mxu1 }
 0x236   :  { %v1778_v17 = vadd.f32 %v2234_v2, %v1714_v40  ;;  %v1601_v23 = vpop.f32.mrb[17].mxu1 }
 0x237   :  { %v1776_v52 = vadd.f32 %v1712_v34, %v1601_v23  ;;  %v2235_v11 = vpop.f32.mrb[18].mxu1 }
 0x238   :  { %1842 = vst [vmem:[%s3765_s9 + $0x190] sm:$0xff] %v1778_v17  ;;  %v1779_v49 = vadd.f32 %v2235_v11, %v1715_v41  ;;  %v1604_v31 = vpop.f32.mrb[19].mxu1 }
 0x239   :  { %1840 = vst [vmem:[%s3765_s9 + $0x180] sm:$0xff] %v1776_v52  ;;  %v1777_v8 = vadd.f32 %v1713_v18, %v1604_v31 }
 0x23a   :  { %1843 = vst [vmem:[%s3765_s9 + $0x198] sm:$0xff] %v1779_v49 }
 0x23b   :  { %1841 = vst [vmem:[%s3765_s9 + $0x188] sm:$0xff] %v1777_v8 }
 0x23d   :  { %v2238_v61 = vpop.f32.mrb[20].mxu1 }
 0x23e   :  { %v1782_v19 = vadd.f32 %v2238_v61, %v1718_v20  ;;  %v1617_v47 = vpop.f32.mrb[21].mxu1 }
 0x23f   :  { %v1780_v5 = vadd.f32 %v1716_v56, %v1617_v47  ;;  %v2239_v15 = vpop.f32.mrb[22].mxu1 }
 0x240   :  { %1846 = vst [vmem:[%s3765_s9 + $0x1b0] sm:$0xff] %v1782_v19  ;;  %v1783_v16 = vadd.f32 %v2239_v15, %v1719_v60  ;;  %v1620_v4 = vpop.f32.mrb[23].mxu1 }
 0x241   :  { %1844 = vst [vmem:[%s3765_s9 + $0x1a0] sm:$0xff] %v1780_v5  ;;  %v1781_v21 = vadd.f32 %v1717_v39, %v1620_v4 }
 0x242   :  { %1847 = vst [vmem:[%s3765_s9 + $0x1b8] sm:$0xff] %v1783_v16 }
 0x243   :  { %1845 = vst [vmem:[%s3765_s9 + $0x1a8] sm:$0xff] %v1781_v21 }
 0x245   :  { %v2242_v27 = vpop.f32.mrb[24].mxu1 }
 0x246   :  { %v1786_v10 = vadd.f32 %v2242_v27, %v1722_v54  ;;  %v1633_v6 = vpop.f32.mrb[25].mxu1 }
 0x247   :  { %v1784_v48 = vadd.f32 %v1720_v37, %v1633_v6  ;;  %v2243_v26 = vpop.f32.mrb[26].mxu1 }
 0x248   :  { %1850 = vst [vmem:[%s3765_s9 + $0x1d0] sm:$0xff] %v1786_v10  ;;  %v1787_v12 = vadd.f32 %v2243_v26, %v1723_v7  ;;  %v1636_v45 = vpop.f32.mrb[27].mxu1 }
 0x249   :  { %1848 = vst [vmem:[%s3765_s9 + $0x1c0] sm:$0xff] %v1784_v48  ;;  %v1785_v55 = vadd.f32 %v1721_v0, %v1636_v45 }
 0x24a   :  { %1851 = vst [vmem:[%s3765_s9 + $0x1d8] sm:$0xff] %v1787_v12 }
 0x24b   :  { %1849 = vst [vmem:[%s3765_s9 + $0x1c8] sm:$0xff] %v1785_v55 }
 0x24d   :  { %v2246_v43 = vpop.f32.mrb[28].mxu1 }
 0x24e   :  { %v1790_v62 = vadd.f32 %v2246_v43, %v1726_v9  ;;  %v1649_v13 = vpop.f32.mrb[29].mxu1 }
 0x24f   :  { %v1788_v59 = vadd.f32 %v1724_v22, %v1649_v13  ;;  %v2247_v29 = vpop.f32.mrb[30].mxu1 }
 0x250   :  { %1854 = vst [vmem:[%s3765_s9 + $0x1f0] sm:$0xff] %v1790_v62  ;;  %v1791_v32 = vadd.f32 %v2247_v29, %v1727_v1  ;;  %v1652_v57 = vpop.f32.mrb[31].mxu1 }
 0x251   :  { %1852 = vst [vmem:[%s3765_s9 + $0x1e0] sm:$0xff] %v1788_v59  ;;  %v1789_v58 = vadd.f32 %v1725_v14, %v1652_v57 }
 0x252   :  { %1855 = vst [vmem:[%s3765_s9 + $0x1f8] sm:$0xff] %v1791_v32 }
 0x253   :  { %1853 = vst [vmem:[%s3765_s9 + $0x1e8] sm:$0xff] %v1789_v58 }

// kernel: tile.113
= control target key start
LH: loop header
LB: loop body
LE: loop exit
PB: predicated region body
PF: predicated region fallthrough
CT: control target
= control target key end

     0   :  { %s28_s0 = inlined_call_operand.vmem [shape: f32[16], index: 0, kind: input, shape index: {}]   ;;  %s29_s1 = inlined_call_operand.vmem [shape: f32[16,16], index: 1, kind: output, shape index: {}]  }
   0x1   :  { %v4_v0 = vld [vmem:[%s28_s0] ss:$0 sm:$0xff] }
   0x2   :  { %5 = vst [vmem:[%s29_s1] sm:$0xff] %v4_v0  ;;  %8 = vst [vmem:[%s29_s1 + $0x8] sm:$0xff] %v4_v0 }

// kernel: tile.114
= control target key start
LH: loop header
LB: loop body
LE: loop exit
PB: predicated region body
PF: predicated region fallthrough
CT: control target
= control target key end

     0   :  { %s7_s6 = smov 3  ;;  %s21_s9 = smov 3  ;;  %vm4_vm0 = vcmask 130048   ;;  %vm11_vm1 = vcmask 1048448   ;;  %vm18_vm2 = vcmask 917248   ;;  %vm25_vm3 = vcmask 786048   ;;  %s128_s0 = inlined_call_operand.vmem [shape: f32[16,16], index: 0, kind: input, shape index: {}]   ;;  %s129_s1 = inlined_call_operand.vmem [shape: f32[1,256], index: 1, kind: output, shape index: {}]  }
   0x1   :  { %v66_v0 = vld [vmem:[%s128_s0 + $0x7] ss:$8 sm:%s7_s6]   ;;  %s81_s10 = smov 112   ;;  %v68_v1 = vld [vmem:[%s128_s0 + $0x5] ss:$8 sm:%s21_s9]   ;;  %s14_s13 = smov 3 }
   0x2   :  { %9 = vrot.lane.b32.xlu0 %v66_v0, %s81_s10  ;;  %s82_s14 = smov 80   ;;  %v67_v2 = vld [vmem:[%s128_s0 + $0x6] ss:$8 sm:%s14_s13]   ;;  %s28_s17 = smov 3  ;;  %vm32_vm4 = vcmask 654848   ;;  %vm39_vm5 = vcmask 523648  }
   0x3   :  { %23 = vrot.lane.b32.xlu1 %v68_v1, %s82_s14  ;;  %v69_v3 = vld [vmem:[%s128_s0 + $0x4] ss:$8 sm:%s28_s17]   ;;  %s35_s20 = smov 3  ;;  %s42_s21 = smov 3  ;;  %vm46_vm6 = vcmask 392448   ;;  %vm53_vm7 = vcmask 261248  }
   0x4   :  { %s83_s22 = smov 96   ;;  %s84_s23 = smov 64   ;;  %v70_v4 = vld [vmem:[%s128_s0 + $0x3] ss:$8 sm:%s35_s20]   ;;  %v71_v5 = vld [vmem:[%s128_s0 + $0x2] ss:$8 sm:%s42_s21]  }
   0x5   :  { %s2_s26 = smov 3  ;;  %s49_s29 = smov 3 }
   0x6   :  { %16 = vrot.lane.b32.xlu0 %v67_v2, %s83_s22  ;;  %v3_v6 = vld [vmem:[%s128_s0] ss:$8 sm:%s2_s26]   ;;  %s85_s3 = smov 48   ;;  %s86_s4 = smov 32  }
   0x7   :  { %30 = vrot.lane.b32.xlu1 %v69_v3, %s84_s23  ;;  %5 = vst.msk [vmem:[#allocation0] ss:$8 sm:$0x3] %vm4_vm0, %v3_v6   ;;  %v72_v7 = vld [vmem:[%s128_s0 + $0x1] ss:$8 sm:%s49_s29]   ;;  %s87_s0 = smov 16  }
   0xa   :  { %37 = vrot.lane.b32.xlu0 %v70_v4, %s85_s3 }
   0xb   :  { %44 = vrot.lane.b32.xlu1 %v71_v5, %s86_s4 }
   0xe   :  { %51 = vrot.lane.b32.xlu0 %v72_v7, %s87_s0 }
  0x74   :  { %v10_v8 = vpop.permute.xlu0 %9  }
  0x75   :  { %12 = vst.msk [vmem:[#allocation0] ss:$8 sm:$0x3] %vm11_vm1, %v10_v8   ;;  %v24_v9 = vpop.permute.xlu1 %23  }
  0x78   :  { %v17_v10 = vpop.permute.xlu0 %16  }
  0x79   :  { %19 = vst.msk [vmem:[#allocation0] ss:$8 sm:$0x3] %vm18_vm2, %v17_v10   ;;  %v31_v11 = vpop.permute.xlu1 %30  }
  0x7a   :  { %26 = vst.msk [vmem:[#allocation0] ss:$8 sm:$0x3] %vm25_vm3, %v24_v9  }
  0x7b   :  { %33 = vst.msk [vmem:[#allocation0] ss:$8 sm:$0x3] %vm32_vm4, %v31_v11  }
  0x7c   :  { %v38_v12 = vpop.permute.xlu0 %37  }
  0x7d   :  { %40 = vst.msk [vmem:[#allocation0] ss:$8 sm:$0x3] %vm39_vm5, %v38_v12   ;;  %v45_v13 = vpop.permute.xlu1 %44  }
  0x7e   :  { %47 = vst.msk [vmem:[#allocation0] ss:$8 sm:$0x3] %vm46_vm6, %v45_v13  }
  0x80   :  { %v52_v14 = vpop.permute.xlu0 %51  }
  0x81   :  { %54 = vst.msk [vmem:[#allocation0] ss:$8 sm:$0x3] %vm53_vm7, %v52_v14  }
  0x88   :  { %v58_v15 = vld [vmem:[#allocation0] sm:$0x1]  ;;  %v62_v16 = vld [vmem:[#allocation0 + $0x8] sm:$0x1] }
  0x89   :  { %60 = vst [vmem:[%s129_s1] sm:$0x1] %v58_v15  ;;  %73 = vst [vmem:[%s129_s1 + $0x1] sm:$0x1] %v62_v16 }

// kernel: feature_extractor_img.7
= control target key start
LH: loop header
LB: loop body
LE: loop exit
PB: predicated region body
PF: predicated region fallthrough
CT: control target
= control target key end

     0   :  { %v67_v8 = vlaneseq  ;;  %s2230_s3 = inlined_call_operand.vmem [shape: bf16[256,256], index: 3, kind: input, shape index: {}]   ;;  %s2231_s0 = inlined_call_operand.vmem [shape: f32[128,256], index: 0, kind: input, shape index: {}]   ;;  %s2232_s1 = inlined_call_operand.vmem [shape: f32[1,256], index: 1, kind: input, shape index: {}]   ;;  %s2233_s2 = inlined_call_operand.vmem [shape: f32[1,256], index: 2, kind: input, shape index: {}]   ;;  %s2234_s7 = inlined_call_operand.vmem [shape: bf16[256,128], index: 7, kind: input, shape index: {}]   ;;  %s2235_s6 = inlined_call_operand.vmem [shape: bf16[256,128], index: 6, kind: input, shape index: {}]   ;;  %s2236_s4 = inlined_call_operand.vmem [shape: f32[1,256], index: 4, kind: input, shape index: {}]   ;;  %s2237_s5 = inlined_call_operand.vmem [shape: f32[1,256], index: 5, kind: input, shape index: {}]   ;;  %s2238_s8 = inlined_call_operand.vmem [shape: f32[128,128], index: 8, kind: input, shape index: {}]   ;;  %s2239_s9 = inlined_call_operand.vmem [shape: f32[128,128], index: 9, kind: output, shape index: {}]  }
   0x1   :  { %v1368_v0 = vld [vmem:[%s2230_s3 + $0x4] ss:$8 sps:$4 sm:$0xff]   ;;  %v1370_v1 = vld [vmem:[%s2230_s3] ss:$8 sps:$4 sm:$0xff]   ;;  %v1371_v2 = vld [vmem:[%s2230_s3 + $0x14] ss:$8 sps:$4 sm:$0xff]  }
   0x2   :  { %393 = vmatprep.subr.bf16.mxu0 %v1368_v0  ;;  %v1373_v3 = vld [vmem:[%s2230_s3 + $0x10] ss:$8 sps:$4 sm:$0xff]   ;;  %v1374_v4 = vld [vmem:[%s2230_s3 + $0x24] ss:$8 sps:$4 sm:$0xff]   ;;  %v1376_v5 = vld [vmem:[%s2230_s3 + $0x20] ss:$8 sps:$4 sm:$0xff]  }
   0x3   :  { %394 = vmatpush1.bf16.msra.mxu0 %v1370_v1  ;;  %v1377_v6 = vld [vmem:[%s2230_s3 + $0x34] ss:$8 sps:$4 sm:$0xff]   ;;  %v1379_v7 = vld [vmem:[%s2230_s3 + $0x30] ss:$8 sps:$4 sm:$0xff]   ;;  %v1380_v9 = vld [vmem:[%s2230_s3 + $0x44] ss:$8 sps:$4 sm:$0xff]  }
   0x4   :  { %395 = vmatprep.subr.bf16.mxu0 %v1371_v2  ;;  %v1382_v10 = vld [vmem:[%s2230_s3 + $0x40] ss:$8 sps:$4 sm:$0xff]   ;;  %v1528_v11 = vshrl.u32 %v67_v8, 7  ;;  %v1383_v12 = vld [vmem:[%s2230_s3 + $0x54] ss:$8 sps:$4 sm:$0xff]  }
   0x5   :  { %v1385_v13 = vld [vmem:[%s2230_s3 + $0x50] ss:$8 sps:$4 sm:$0xff]   ;;  %v1386_v15 = vld [vmem:[%s2230_s3 + $0x64] ss:$8 sps:$4 sm:$0xff]   ;;  %v1555_v18 = vld [vmem:[%s2232_s1] sm:$0x3] }
   0x6   :  { %v1537_v14 = vsub.s32 1, %v1528_v11  ;;  %v1545_v16 = vld [vmem:[%s2231_s0 + $0x8] sm:$0xff]  ;;  %v1550_v17 = vld [vmem:[%s2231_s0 + $0x18] sm:$0xff]  ;;  %v1560_v19 = vld [vmem:[%s2233_s2] sm:$0x3]  ;;  %v1674_v54 = vsub.s32 0, %v1528_v11 }
   0x7   :  { %396 = vmatpush1.bf16.msra.mxu0 %v1373_v3  ;;  %v1388_v20 = vld [vmem:[%s2230_s3 + $0x60] ss:$8 sps:$4 sm:$0xff]   ;;  %v1581_v24 = vld [vmem:[%s2231_s0 + $0x10] sm:$0xff]  ;;  %v1392_v32 = vld [vmem:[%s2230_s3 + $0x84] ss:$8 sps:$4 sm:$0xff]  }
   0x8   :  { %397 = vmatprep.subr.bf16.mxu0 %v1374_v4  ;;  %v1567_v21 = vrot.slane %v1555_v18, %v1537_v14  ;;  %v1571_v22 = vrot.slane %v1560_v19, %v1537_v14  ;;  %v1576_v23 = vld [vmem:[%s2231_s0] sm:$0xff]  ;;  %v1389_v25 = vld [vmem:[%s2230_s3 + $0x74] ss:$8 sps:$4 sm:$0xff]   ;;  %v1391_v29 = vld [vmem:[%s2230_s3 + $0x70] ss:$8 sps:$4 sm:$0xff]   ;;  %v1710_v2 = vrot.slane %v1555_v18, %v1674_v54 }
   0x9   :  { %v674_v26 = vpack.c.bf16 %v1581_v24, %v1576_v23  ;;  %v1394_v35 = vld [vmem:[%s2230_s3 + $0x80] ss:$8 sps:$4 sm:$0xff]   ;;  %v1395_v37 = vld [vmem:[%s2230_s3 + $0x94] ss:$8 sps:$4 sm:$0xff]   ;;  %v1397_v38 = vld [vmem:[%s2230_s3 + $0x90] ss:$8 sps:$4 sm:$0xff]  }
   0xa   :  { %v78_v27 = vmul.f32 %v1567_v21, %v1545_v16  ;;  %v80_v28 = vmul.f32 %v1567_v21, %v1550_v17  ;;  %v1398_v39 = vld [vmem:[%s2230_s3 + $0xa4] ss:$8 sps:$4 sm:$0xff]   ;;  %v1400_v44 = vld [vmem:[%s2230_s3 + $0xa0] ss:$8 sps:$4 sm:$0xff]   ;;  %v1639_v45 = vld [vmem:[%s2231_s0 + $0xb8] sm:$0xff] }
   0xb   :  { %398 = vmatpush1.bf16.msra.mxu0 %v1376_v5  ;;  %v1615_v40 = vld [vmem:[%s2234_s7 + $0x40] sm:$0xff]   ;;  %v1625_v42 = vld [vmem:[%s2234_s7 + $0x48] sm:$0xff]   ;;  %v1401_v47 = vld [vmem:[%s2230_s3 + $0xb4] ss:$8 sps:$4 sm:$0xff]   ;;  %v100_v51 = vmul.f32 %v1567_v21, %v1639_v45 }
   0xc   :  { %399 = vmatprep.subr.bf16.mxu0 %v1377_v6  ;;  %v122_v30 = vadd.f32 %v1571_v22, %v78_v27  ;;  %v124_v31 = vadd.f32 %v1571_v22, %v80_v28  ;;  %v1620_v41 = vld [vmem:[%s2234_s7] sm:$0xff]   ;;  %v1630_v43 = vld [vmem:[%s2231_s0 + $0xa8] sm:$0xff]  ;;  %1352 = vmatprep.subr.bf16.mxu1 %v1615_v40  ;;  %v1654_v48 = vld [vmem:[%s2234_s7 + $0x50] sm:$0xff]   ;;  %v77_v27 = vmul.f32 %v1710_v2, %v1576_v23 }
   0xd   :  { %1360 = vmatpush3.bf16.msra.mxu1 %v1620_v41  ;;  %v1645_v46 = vld [vmem:[%s2234_s7 + $0x8] sm:$0xff]   ;;  %v98_v50 = vmul.f32 %v1567_v21, %v1630_v43  ;;  %v1668_v52 = vld [vmem:[%s2231_s0 + $0xd8] sm:$0xff]  ;;  %v1680_v55 = vld [vmem:[%s2234_s7 + $0x10] sm:$0xff]   ;;  %v144_v57 = vadd.f32 %v1571_v22, %v100_v51 }
   0xe   :  { %v154_v33 = vmax.f32 %v122_v30, 0.0  ;;  %v156_v34 = vmax.f32 %v124_v31, 0.0  ;;  %1353 = vmatprep.subr.bf16.mxu1 %v1625_v42  ;;  %v1659_v49 = vld [vmem:[%s2231_s0 + $0xc8] sm:$0xff]  ;;  %v1403_v53 = vld [vmem:[%s2230_s3 + $0xb0] ss:$8 sps:$4 sm:$0xff]   ;;  %v104_v4 = vmul.f32 %v1567_v21, %v1668_v52  ;;  %v1765_v31 = vld [vmem:[%s2234_s7 + $0x20] sm:$0xff]  }
   0xf   :  { %400 = vmatpush1.bf16.msra.mxu0 %v1379_v7  ;;  %v142_v56 = vadd.f32 %v1571_v22, %v98_v50  ;;  %v1688_v58 = vld [vmem:[%s2234_s7 + $0x58] sm:$0xff]   ;;  %v1404_v59 = vld [vmem:[%s2230_s3 + $0xc4] ss:$8 sps:$4 sm:$0xff]   ;;  %v102_v60 = vmul.f32 %v1567_v21, %v1659_v49  ;;  %v176_v62 = vmax.f32 %v144_v57, 0.0  ;;  %v1406_v1 = vld [vmem:[%s2230_s3 + $0xc0] ss:$8 sps:$4 sm:$0xff]  }
  0x10   :  { %401 = vmatprep.subr.bf16.mxu0 %v1380_v9  ;;  %v186_v36 = vpack.c.bf16 %v156_v34, %v154_v33  ;;  %v1698_v63 = vld [vmem:[%s2231_s0 + $0xe8] sm:$0xff]  ;;  %v1703_v0 = vld [vmem:[%s2231_s0 + $0xf8] sm:$0xff]  ;;  %v1794_v51 = vld [vmem:[%s2231_s0 + $0x20] sm:$0xff] }
  0x11   :  { %1361 = vmatpush3.bf16.msra.mxu1 %v1645_v46  ;;  %v174_v61 = vmax.f32 %v142_v56, 0.0  ;;  %v1715_v3 = vld [vmem:[%s2231_s0 + $0x28] sm:$0xff]  ;;  %v146_v5 = vadd.f32 %v1571_v22, %v102_v60  ;;  %v1724_v6 = vld [vmem:[%s2234_s7 + $0x18] sm:$0xff]   ;;  %v106_v18 = vmul.f32 %v1567_v21, %v1698_v63 }
  0x12   :  { %425 = vmatprep.mubr.bf16.mxu0 %v186_v36  ;;  %1354 = vmatprep.subr.bf16.mxu1 %v1654_v48  ;;  %v1407_v7 = vld [vmem:[%s2230_s3 + $0xd4] ss:$8 sps:$4 sm:$0xff]   ;;  %v42_v11 = vld [vmem:[%s2231_s0 + $0x48] sm:$0xff]  ;;  %v82_v33 = vmul.f32 %v1567_v21, %v1715_v3 }
  0x13   :  { %402 = vmatpush1.bf16.msra.mxu0 %v1382_v10  ;;  %v1732_v8 = vld [vmem:[%s2231_s0 + $0x38] sm:$0xff]  ;;  %v1734_v9 = vpack.c.bf16 %v176_v62, %v174_v61  ;;  %v1740_v10 = vld [vmem:[%s2234_s7 + $0x60] sm:$0xff]   ;;  %v1778_v34 = vld [vmem:[%s2234_s7 + $0x68] sm:$0xff]  }
  0x14   :  { %403 = vmatprep.subr.bf16.mxu0 %v1383_v12  ;;  %v44_v12 = vld [vmem:[%s2231_s0 + $0x58] sm:$0xff]  ;;  %v84_v36 = vmul.f32 %v1567_v21, %v1732_v8  ;;  %v1802_v56 = vld [vmem:[%s2234_s7 + $0x28] sm:$0xff]   ;;  %v126_v60 = vadd.f32 %v1571_v22, %v82_v33  ;;  %v1816_v62 = vld [vmem:[%s2231_s0 + $0x30] sm:$0xff] }
  0x15   :  { %1362 = vmatpush3.bf16.msra.mxu1 %v1680_v55  ;;  %v1852_v33 = vld [vmem:[%s2234_s7 + $0x38] sm:$0xff]  }
  0x16   :  { %1355 = vmatprep.subr.bf16.mxu1 %v1688_v58  ;;  %v128_v61 = vadd.f32 %v1571_v22, %v84_v36  ;;  %v46_v36 = vld [vmem:[%s2231_s0 + $0x68] sm:$0xff] }
  0x17   :  { %404 = vmatpush1.bf16.msra.mxu0 %v1385_v13  ;;  %v148_v13 = vadd.f32 %v1571_v22, %v104_v4  ;;  %v1415_v4 = vld [vmem:[%s2230_s3 + $0xf0] ss:$8 sps:$4 sm:$0xff]  }
  0x18   :  { %405 = vmatprep.subr.bf16.mxu0 %v1386_v15  ;;  %v178_v15 = vmax.f32 %v146_v5, 0.0 }
  0x19   :  { %v180_v28 = vmax.f32 %v148_v13, 0.0  ;;  %1363 = vmatpush3.bf16.msra.mxu1 %v1724_v6 }
  0x1a   :  { %1356 = vmatprep.subr.bf16.mxu1 %v1740_v10 }
  0x1b   :  { %406 = vmatpush1.bf16.msra.mxu0 %v1388_v20  ;;  %v108_v20 = vmul.f32 %v1567_v21, %v1703_v0 }
  0x1c   :  { %407 = vmatprep.subr.bf16.mxu0 %v1389_v25  ;;  %v1755_v25 = vrot.slane %v1560_v19, %v1674_v54  ;;  %v1409_v19 = vld [vmem:[%s2230_s3 + $0xd0] ss:$8 sps:$4 sm:$0xff]  }
  0x1d   :  { %v152_v30 = vadd.f32 %v1571_v22, %v108_v20  ;;  %1364 = vmatpush3.bf16.msra.mxu1 %v1765_v31  ;;  %v1838_v20 = vld [vmem:[%s2234_s7 + $0x78] sm:$0xff]  }
  0x1e   :  { %v121_v50 = vadd.f32 %v1755_v25, %v77_v27  ;;  %1357 = vmatprep.subr.bf16.mxu1 %v1778_v34  ;;  %v158_v27 = vmax.f32 %v126_v60, 0.0  ;;  %v1433_v60 = vld [vmem:[%s2235_s6] sm:$0xff]  }
  0x1f   :  { %408 = vmatpush1.bf16.msra.mxu0 %v1391_v29  ;;  %v150_v29 = vadd.f32 %v1571_v22, %v106_v18  ;;  %v83_v18 = vmul.f32 %v1710_v2, %v1816_v62 }
  0x20   :  { %409 = vmatprep.subr.bf16.mxu0 %v1392_v32  ;;  %v79_v32 = vmul.f32 %v1710_v2, %v1581_v24  ;;  %v153_v5 = vmax.f32 %v121_v50, 0.0 }
  0x21   :  { %1365 = vmatpush3.bf16.msra.mxu1 %v1802_v56 }
  0x22   :  { %v123_v57 = vadd.f32 %v1755_v25, %v79_v32  ;;  %v43_v32 = vld [vmem:[%s2231_s0 + $0x50] sm:$0xff] }
  0x23   :  { %410 = vmatpush1.bf16.msra.mxu0 %v1394_v35  ;;  %v679_v35 = vpack.c.bf16 %v44_v12, %v42_v11 }
  0x24   :  { %411 = vmatprep.subr.bf16.mxu0 %v1395_v37  ;;  %v1782_v37 = vpack.c.bf16 %v180_v28, %v178_v15  ;;  %v155_v13 = vmax.f32 %v123_v57, 0.0  ;;  %v81_v15 = vmul.f32 %v1710_v2, %v1794_v51  ;;  %v160_v28 = vmax.f32 %v128_v61, 0.0 }
  0x25   :  { %866 = vmatprep.mubr.bf16.mxu1 %v679_v35 }
  0x26   :  { %v185_v35 = vpack.c.bf16 %v155_v13, %v153_v5  ;;  %v87_v13 = vmul.f32 %v1710_v2, %v43_v32 }
  0x27   :  { %412 = vmatpush1.bf16.msra.mxu0 %v1397_v38  ;;  %v182_v38 = vmax.f32 %v150_v29, 0.0  ;;  %v86_v29 = vmul.f32 %v1567_v21, %v42_v11  ;;  %v125_v11 = vadd.f32 %v1755_v25, %v81_v15  ;;  %v1434_v15 = vld [vmem:[%s2235_s6 + $0x48] sm:$0xff]  }
  0x28   :  { %413 = vmatprep.subr.bf16.mxu0 %v1398_v39  ;;  %v184_v39 = vmax.f32 %v152_v30, 0.0  ;;  %v88_v30 = vmul.f32 %v1567_v21, %v44_v12  ;;  %v127_v12 = vadd.f32 %v1755_v25, %v83_v18 }
  0x2a   :  { %v132_v50 = vadd.f32 %v1571_v22, %v88_v30  ;;  %v159_v5 = vmax.f32 %v127_v12, 0.0  ;;  %v45_v12 = vld [vmem:[%s2231_s0 + $0x60] sm:$0xff] }
  0x2b   :  { %414 = vmatpush1.bf16.msra.mxu0 %v1400_v44  ;;  %v1410_v44 = vld [vmem:[%s2230_s3 + $0xe4] ss:$8 sps:$4 sm:$0xff]  }
  0x2c   :  { %415 = vmatprep.subr.bf16.mxu0 %v1401_v47  ;;  %v1412_v47 = vld [vmem:[%s2230_s3 + $0xe0] ss:$8 sps:$4 sm:$0xff]   ;;  %v164_v18 = vmax.f32 %v132_v50, 0.0  ;;  %v1437_v50 = vld [vmem:[%s2235_s6 + $0x10] sm:$0xff]  }
  0x2f   :  { %416 = vmatpush1.bf16.msra.mxu0 %v1403_v53  ;;  %v1796_v53 = vpack.c.bf16 %v184_v39, %v182_v38  ;;  %v48_v38 = vld [vmem:[%s2231_s0 + $0x78] sm:$0xff]  ;;  %v1432_v39 = vld [vmem:[%s2235_s6 + $0x40] sm:$0xff]  }
  0x30   :  { %417 = vmatprep.subr.bf16.mxu0 %v1404_v59  ;;  %v1809_v59 = vld [vmem:[%s2234_s7 + $0x70] sm:$0xff]   ;;  %v681_v61 = vpack.c.bf16 %v48_v38, %v46_v36 }
  0x31   :  { %1358 = vmatprep.subr.bf16.mxu1 %v1809_v59 }
  0x33   :  { %418 = vmatpush1.bf16.msra.mxu0 %v1406_v1  ;;  %v1413_v1 = vld [vmem:[%s2230_s3 + $0xf4] ss:$8 sps:$4 sm:$0xff]  }
  0x34   :  { %419 = vmatprep.subr.bf16.mxu0 %v1407_v7  ;;  %v1828_v7 = vld [vmem:[%s2234_s7 + $0x30] sm:$0xff]  }
  0x35   :  { %1366 = vmatpush3.bf16.msra.mxu1 %v1828_v7 }
  0x36   :  { %1359 = vmatprep.subr.bf16.mxu1 %v1838_v20 }
  0x37   :  { %420 = vmatpush1.bf16.msra.mxu0 %v1409_v19  ;;  %v41_v19 = vld [vmem:[%s2231_s0 + $0x40] sm:$0xff] }
  0x38   :  { %421 = vmatprep.subr.bf16.mxu0 %v1410_v44  ;;  %v188_v44 = vpack.c.bf16 %v160_v28, %v158_v27  ;;  %v678_v57 = vpack.c.bf16 %v43_v32, %v41_v19  ;;  %v90_v27 = vmul.f32 %v1567_v21, %v46_v36  ;;  %v92_v28 = vmul.f32 %v1567_v21, %v48_v38  ;;  %v47_v36 = vld [vmem:[%s2231_s0 + $0x70] sm:$0xff]  ;;  %v50_v38 = vld [vmem:[%s2231_s0 + $0x88] sm:$0xff] }
  0x39   :  { %1367 = vmatpush3.bf16.msra.mxu1 %v1852_v33  ;;  %v131_v32 = vadd.f32 %v1755_v25, %v87_v13 }
  0x3a   :  { %1288 = vmatprep.subr.bf16.mxu1 %v1432_v39  ;;  %v52_v39 = vld [vmem:[%s2231_s0 + $0x98] sm:$0xff] }
  0x3b   :  { %422 = vmatpush1.bf16.msra.mxu0 %v1412_v47  ;;  %v130_v47 = vadd.f32 %v1571_v22, %v86_v29  ;;  %v1435_v29 = vld [vmem:[%s2235_s6 + $0x8] sm:$0xff]   ;;  %v96_v13 = vmul.f32 %v1567_v21, %v52_v39 }
  0x3c   :  { %423 = vmatprep.subr.bf16.mxu0 %v1413_v1  ;;  %v157_v1 = vmax.f32 %v125_v11, 0.0  ;;  %867 = vmatmul.mubr.bf16.vlgmr.msra.gmra.mrb[0].mxu1 %v678_v57  ;;  %v134_v11 = vadd.f32 %v1571_v22, %v90_v27 }
  0x3d   :  { %1289 = vmatpush3.bf16.msra.mxu1 %v1433_v60  ;;  %874 = vmatprep.mubr.bf16.mxu1 %v681_v61  ;;  %v89_v60 = vmul.f32 %v1710_v2, %v45_v12  ;;  %v91_v61 = vmul.f32 %v1710_v2, %v47_v36 }
  0x3e   :  { %v187_v30 = vpack.c.bf16 %v159_v5, %v157_v1  ;;  %1290 = vmatprep.subr.bf16.mxu1 %v1434_v15  ;;  %v1438_v1 = vld [vmem:[%s2235_s6 + $0x58] sm:$0xff]  }
  0x3f   :  { %424 = vmatpush1.bf16.msra.mxu0 %v1415_v4  ;;  %v85_v4 = vmul.f32 %v1710_v2, %v41_v19  ;;  %v1439_v15 = vld [vmem:[%s2235_s6 + $0x18] sm:$0xff]   ;;  %v135_v27 = vadd.f32 %v1755_v25, %v91_v61  ;;  %v59_v61 = vld [vmem:[%s2231_s0 + $0xd0] sm:$0xff] }
  0x40   :  { %1224 = vmatprep.subr.bf16.mxu0 %v1615_v40  ;;  %v162_v40 = vmax.f32 %v130_v47, 0.0  ;;  %v683_v47 = vpack.c.bf16 %v52_v39, %v50_v38 }
  0x41   :  { %v129_v19 = vadd.f32 %v1755_v25, %v85_v4  ;;  %1291 = vmatpush3.bf16.msra.mxu1 %v1435_v29  ;;  %v94_v4 = vmul.f32 %v1567_v21, %v50_v38  ;;  %v1440_v21 = vld [vmem:[%s2235_s6 + $0x60] sm:$0xff]  }
  0x42   :  { %426 = vmatmul.mubr.bf16.vlgmr.msra.gmra.mrb[0].mxu0 %v185_v35  ;;  %v1436_v35 = vld [vmem:[%s2235_s6 + $0x50] sm:$0xff]   ;;  %v49_v29 = vld [vmem:[%s2231_s0 + $0x80] sm:$0xff] }
  0x43   :  { %435 = vmatprep.mubr.bf16.mxu0 %v188_v44  ;;  %1225 = vmatpush3.bf16.msra.mxu0 %v1620_v41  ;;  %v190_v41 = vpack.c.bf16 %v164_v18, %v162_v40  ;;  %v680_v44 = vpack.c.bf16 %v47_v36, %v45_v12  ;;  %v161_v57 = vmax.f32 %v129_v19, 0.0  ;;  %v133_v18 = vadd.f32 %v1755_v25, %v89_v60 }
  0x44   :  { %1226 = vmatprep.subr.bf16.mxu0 %v1625_v42  ;;  %v136_v42 = vadd.f32 %v1571_v22, %v92_v28  ;;  %1292 = vmatprep.subr.bf16.mxu1 %v1436_v35  ;;  %v138_v28 = vadd.f32 %v1571_v22, %v94_v4 }
  0x45   :  { %875 = vmatmul.mubr.bf16.gmra.mrb[4].mxu1 %v680_v44  ;;  %v165_v35 = vmax.f32 %v133_v18, 0.0 }
  0x46   :  { %v168_v5 = vmax.f32 %v136_v42, 0.0  ;;  %882 = vmatprep.mubr.bf16.mxu1 %v683_v47  ;;  %1293 = vmatpush3.bf16.msra.mxu1 %v1437_v50  ;;  %v687_v47 = vpack.c.bf16 %v1668_v52, %v1659_v49  ;;  %v57_v52 = vld [vmem:[%s2231_s0 + $0xc0] sm:$0xff] }
  0x47   :  { %1227 = vmatpush3.bf16.msra.mxu0 %v1645_v46  ;;  %v163_v46 = vmax.f32 %v131_v32, 0.0  ;;  %1294 = vmatprep.subr.bf16.mxu1 %v1438_v1  ;;  %v685_v32 = vpack.c.bf16 %v1639_v45, %v1630_v43  ;;  %v1443_v43 = vld [vmem:[%s2235_s6 + $0x28] sm:$0xff]  }
  0x48   :  { %1228 = vmatprep.subr.bf16.mxu0 %v1654_v48  ;;  %v166_v48 = vmax.f32 %v134_v11, 0.0  ;;  %v93_v11 = vmul.f32 %v1710_v2, %v49_v29 }
  0x49   :  { %v189_v40 = vpack.c.bf16 %v163_v46, %v161_v57 }
  0x4a   :  { %436 = vmatmul.mubr.bf16.gmra.mrb[4].mxu0 %v187_v30  ;;  %v51_v30 = vld [vmem:[%s2231_s0 + $0x90] sm:$0xff]  ;;  %1295 = vmatpush3.bf16.msra.mxu1 %v1439_v15  ;;  %v137_v36 = vadd.f32 %v1755_v25, %v93_v11 }
  0x4b   :  { %445 = vmatprep.mubr.bf16.mxu0 %v190_v41  ;;  %1229 = vmatpush3.bf16.msra.mxu0 %v1680_v55  ;;  %v192_v55 = vpack.c.bf16 %v168_v5, %v166_v48  ;;  %v682_v19 = vpack.c.bf16 %v51_v30, %v49_v29  ;;  %v167_v41 = vmax.f32 %v135_v27, 0.0  ;;  %v95_v42 = vmul.f32 %v1710_v2, %v51_v30 }
  0x4c   :  { %1230 = vmatprep.subr.bf16.mxu0 %v1688_v58  ;;  %v140_v58 = vadd.f32 %v1571_v22, %v96_v13  ;;  %v1441_v22 = vld [vmem:[%s2235_s6 + $0x20] sm:$0xff]   ;;  %1296 = vmatprep.subr.bf16.mxu1 %v1440_v21  ;;  %v169_v50 = vmax.f32 %v137_v36, 0.0  ;;  %v101_v48 = vmul.f32 %v1710_v2, %v57_v52  ;;  %v103_v5 = vmul.f32 %v1710_v2, %v59_v61 }
  0x4d   :  { %883 = vmatmul.mubr.bf16.gmra.mrb[8].mxu1 %v682_v19  ;;  %v191_v45 = vpack.c.bf16 %v167_v41, %v165_v35  ;;  %v139_v38 = vadd.f32 %v1755_v25, %v95_v42  ;;  %v676_v35 = vpack.c.bf16 %v1816_v62, %v1794_v51  ;;  %v506_v41 = vld [vmem:[%s2236_s4] sm:$0x3] }
  0x4e   :  { %v172_v12 = vmax.f32 %v140_v58, 0.0  ;;  %890 = vmatprep.mubr.bf16.mxu1 %v685_v32  ;;  %1297 = vmatpush3.bf16.msra.mxu1 %v1441_v22  ;;  %v145_v13 = vadd.f32 %v1755_v25, %v101_v48  ;;  %v147_v15 = vadd.f32 %v1755_v25, %v103_v5  ;;  %v689_v32 = vpack.c.bf16 %v1703_v0, %v1698_v63  ;;  %v1447_v63 = vld [vmem:[%s2235_s6 + $0x38] sm:$0xff]  }
  0x4f   :  { %1231 = vmatpush3.bf16.msra.mxu0 %v1724_v6  ;;  %v1442_v6 = vld [vmem:[%s2235_s6 + $0x68] sm:$0xff]   ;;  %v171_v57 = vmax.f32 %v139_v38, 0.0  ;;  %v675_v0 = vpack.c.bf16 %v1550_v17, %v1545_v16  ;;  %v550_v16 = vld [vmem:[%s2237_s5] sm:$0x3]  ;;  %v2023_v17 = vrot.slane %v506_v41, %v1674_v54  ;;  %v2026_v23 = vrot.slane %v506_v41, %v1537_v14 }
  0x50   :  { %1232 = vmatprep.subr.bf16.mxu0 %v1740_v10  ;;  %v170_v10 = vmax.f32 %v138_v28, 0.0  ;;  %1298 = vmatprep.subr.bf16.mxu1 %v1442_v6  ;;  %v177_v18 = vmax.f32 %v145_v13, 0.0  ;;  %v179_v27 = vmax.f32 %v147_v15, 0.0  ;;  %v2029_v24 = vrot.slane %v550_v16, %v1674_v54 }
  0x52   :  { %446 = vmatmul.mubr.bf16.gmra.mrb[8].mxu0 %v189_v40  ;;  %v194_v39 = vpack.c.bf16 %v172_v12, %v170_v10  ;;  %1299 = vmatpush3.bf16.msra.mxu1 %v1443_v43  ;;  %v63_v40 = vld [vmem:[%s2231_s0 + $0xf0] sm:$0xff] }
  0x53   :  { %455 = vmatprep.mubr.bf16.mxu0 %v192_v55  ;;  %1233 = vmatpush3.bf16.msra.mxu0 %v1765_v31  ;;  %v53_v31 = vld [vmem:[%s2231_s0 + $0xa0] sm:$0xff]  ;;  %v197_v55 = vpack.c.bf16 %v179_v27, %v177_v18 }
  0x54   :  { %1234 = vmatprep.subr.bf16.mxu0 %v1778_v34  ;;  %v55_v34 = vld [vmem:[%s2231_s0 + $0xb0] sm:$0xff]  ;;  %v97_v46 = vmul.f32 %v1710_v2, %v53_v31 }
  0x55   :  { %v684_v44 = vpack.c.bf16 %v55_v34, %v53_v31  ;;  %v99_v60 = vmul.f32 %v1710_v2, %v55_v34 }
  0x57   :  { %1235 = vmatpush3.bf16.msra.mxu0 %v1802_v56  ;;  %891 = vmatmul.mubr.bf16.gmra.mrb[12].mxu1 %v684_v44  ;;  %v193_v56 = vpack.c.bf16 %v171_v57, %v169_v50  ;;  %v143_v49 = vadd.f32 %v1755_v25, %v99_v60 }
  0x58   :  { %1236 = vmatprep.subr.bf16.mxu0 %v1809_v59  ;;  %898 = vmatprep.mubr.bf16.mxu1 %v687_v47  ;;  %v141_v59 = vadd.f32 %v1755_v25, %v97_v46 }
  0x5a   :  { %456 = vmatmul.mubr.bf16.gmra.mrb[12].mxu0 %v191_v45  ;;  %v173_v1 = vmax.f32 %v141_v59, 0.0 }
  0x5b   :  { %465 = vmatprep.mubr.bf16.mxu0 %v194_v39  ;;  %1237 = vmatpush3.bf16.msra.mxu0 %v1828_v7  ;;  %v686_v7 = vpack.c.bf16 %v59_v61, %v57_v52 }
  0x5c   :  { %1238 = vmatprep.subr.bf16.mxu0 %v1838_v20  ;;  %v175_v20 = vmax.f32 %v143_v49, 0.0 }
  0x5e   :  { %v195_v4 = vpack.c.bf16 %v175_v20, %v173_v1 }
  0x5f   :  { %1239 = vmatpush3.bf16.msra.mxu0 %v1852_v33  ;;  %899 = vmatmul.mubr.bf16.gmra.mrb[16].mxu1 %v686_v7  ;;  %v61_v33 = vld [vmem:[%s2231_s0 + $0xe0] sm:$0xff] }
  0x60   :  { %v105_v21 = vmul.f32 %v1710_v2, %v61_v33  ;;  %v688_v22 = vpack.c.bf16 %v63_v40, %v61_v33  ;;  %906 = vmatprep.mubr.bf16.mxu1 %v689_v32 }
  0x62   :  { %466 = vmatmul.mubr.bf16.gmra.mrb[16].mxu0 %v193_v56  ;;  %v149_v28 = vadd.f32 %v1755_v25, %v105_v21 }
  0x63   :  { %475 = vmatprep.mubr.bf16.mxu0 %v1734_v9  ;;  %v107_v9 = vmul.f32 %v1710_v2, %v63_v40  ;;  %v1444_v2 = vld [vmem:[%s2235_s6 + $0x70] sm:$0xff]  }
  0x64   :  { %v181_v29 = vmax.f32 %v149_v28, 0.0  ;;  %1300 = vmatprep.subr.bf16.mxu1 %v1444_v2 }
  0x65   :  { %v151_v58 = vadd.f32 %v1755_v25, %v107_v9  ;;  %v1445_v25 = vld [vmem:[%s2235_s6 + $0x30] sm:$0xff]  }
  0x66   :  { %1301 = vmatpush3.bf16.msra.mxu1 %v1445_v25 }
  0x67   :  { %v183_v30 = vmax.f32 %v151_v58, 0.0  ;;  %907 = vmatmul.mubr.bf16.gmra.mrb[20].mxu1 %v688_v22 }
  0x69   :  { %v199_v19 = vpack.c.bf16 %v183_v30, %v181_v29 }
  0x6a   :  { %476 = vmatmul.mubr.bf16.gmra.mrb[20].mxu0 %v195_v4 }
  0x6b   :  { %485 = vmatprep.mubr.bf16.mxu0 %v1782_v37  ;;  %v1446_v37 = vld [vmem:[%s2235_s6 + $0x78] sm:$0xff]  }
  0x6c   :  { %1302 = vmatprep.subr.bf16.mxu1 %v1446_v37 }
  0x6d   :  { %1303 = vmatpush3.bf16.msra.mxu1 %v1447_v63 }
  0x72   :  { %486 = vmatmul.mubr.bf16.gmra.mrb[24].mxu0 %v197_v55 }
  0x73   :  { %495 = vmatprep.mubr.bf16.mxu0 %v1796_v53  ;;  %v677_v53 = vpack.c.bf16 %v1732_v8, %v1715_v3  ;;  %v2032_v3 = vrot.slane %v550_v16, %v1537_v14 }
  0x7a   :  { %496 = vmatmul.mubr.bf16.gmra.mrb[28].mxu0 %v199_v19 }
  0x7b   :  { %850 = vmatprep.mubr.bf16.mxu0 %v675_v0 }
  0x82   :  { %851 = vmatmul.mubr.bf16.vlgmr.msra.gmra.mrb[32].mxu0 %v674_v26 }
  0x83   :  { %858 = vmatprep.mubr.bf16.mxu0 %v677_v53 }
  0x8a   :  { %859 = vmatmul.mubr.bf16.gmra.mrb[36].mxu0 %v676_v35 }
 0x10f   :  { %v1252_v42 = vpop.f32.mrb[0].mxu1 }
 0x110   :  { %v1253_v43 = vpop.f32.mrb[1].mxu1 }
 0x111   :  { %v2040_v36 = vadd.f32 %v1253_v43, %v1252_v42  ;;  %v1255_v14 = vpop.f32.mrb[2].mxu1 }
 0x112   :  { %v1256_v39 = vpop.f32.mrb[3].mxu1 }
 0x113   :  { %v2044_v34 = vadd.f32 %v1256_v39, %v1255_v14 }
 0x115   :  { %v427_v26 = vpop.f32.mrb[0].mxu0 }
 0x116   :  { %v518_v8 = vmul.f32 %v2023_v17, %v427_v26  ;;  %v429_v51 = vpop.f32.mrb[1].mxu0 }
 0x117   :  { %v519_v62 = vmul.f32 %v2026_v23, %v429_v51  ;;  %v431_v11 = vpop.f32.mrb[2].mxu0 }
 0x118   :  { %v562_v6 = vadd.f32 %v2029_v24, %v518_v8  ;;  %v520_v10 = vmul.f32 %v2023_v17, %v431_v11  ;;  %v433_v12 = vpop.f32.mrb[3].mxu0  ;;  %v1258_v7 = vpop.f32.mrb[4].mxu1 }
 0x119   :  { %v563_v54 = vadd.f32 %v2032_v3, %v519_v62  ;;  %v521_v45 = vmul.f32 %v2026_v23, %v433_v12  ;;  %v1259_v5 = vpop.f32.mrb[5].mxu1 }
 0x11a   :  { %v564_v38 = vadd.f32 %v2029_v24, %v520_v10  ;;  %v594_v44 = vmax.f32 %v562_v6, 0.0  ;;  %v2052_v15 = vadd.f32 %v1259_v5, %v1258_v7  ;;  %v1261_v33 = vpop.f32.mrb[6].mxu1 }
 0x11b   :  { %v565_v31 = vadd.f32 %v2032_v3, %v521_v45  ;;  %v595_v50 = vmax.f32 %v563_v54, 0.0  ;;  %v1262_v18 = vpop.f32.mrb[7].mxu1 }
 0x11c   :  { %v596_v47 = vmax.f32 %v564_v38, 0.0  ;;  %v2056_v21 = vadd.f32 %v1262_v18, %v1261_v33 }
 0x11d   :  { %v597_v57 = vmax.f32 %v565_v31, 0.0  ;;  %v437_v46 = vpop.f32.mrb[4].mxu0 }
 0x11e   :  { %v626_v60 = vpack.c.bf16 %v596_v47, %v594_v44  ;;  %v522_v56 = vmul.f32 %v2023_v17, %v437_v46  ;;  %v439_v59 = vpop.f32.mrb[5].mxu0 }
 0x11f   :  { %v523_v49 = vmul.f32 %v2026_v23, %v439_v59  ;;  %v441_v52 = vpop.f32.mrb[6].mxu0  ;;  %v627_v61 = vpack.c.bf16 %v597_v57, %v595_v50 }
 0x120   :  { %v566_v1 = vadd.f32 %v2029_v24, %v522_v56  ;;  %v524_v20 = vmul.f32 %v2023_v17, %v441_v52  ;;  %v443_v48 = vpop.f32.mrb[7].mxu0  ;;  %v1264_v37 = vpop.f32.mrb[8].mxu1 }
 0x121   :  { %v567_v4 = vadd.f32 %v2032_v3, %v523_v49  ;;  %v525_v13 = vmul.f32 %v2026_v23, %v443_v48  ;;  %1043 = vmatprep.mubr.bf16.mxu1 %v627_v61  ;;  %v1265_v35 = vpop.f32.mrb[9].mxu1 }
 0x122   :  { %v568_v40 = vadd.f32 %v2029_v24, %v524_v20  ;;  %1044 = vmatmul.mubr.bf16.vlgmr.msra.gmra.mrb[24].mxu1 %v626_v60  ;;  %v598_v9 = vmax.f32 %v566_v1, 0.0  ;;  %v2064_v26 = vadd.f32 %v1265_v35, %v1264_v37  ;;  %v1267_v8 = vpop.f32.mrb[10].mxu1 }
 0x123   :  { %v569_v27 = vadd.f32 %v2032_v3, %v525_v13  ;;  %v599_v28 = vmax.f32 %v567_v4, 0.0  ;;  %v1268_v62 = vpop.f32.mrb[11].mxu1 }
 0x124   :  { %v600_v55 = vmax.f32 %v568_v40, 0.0  ;;  %v2068_v42 = vadd.f32 %v1268_v62, %v1267_v8 }
 0x125   :  { %v601_v58 = vmax.f32 %v569_v27, 0.0  ;;  %v447_v29 = vpop.f32.mrb[8].mxu0 }
 0x126   :  { %v526_v30 = vmul.f32 %v2023_v17, %v447_v29  ;;  %v449_v19 = vpop.f32.mrb[9].mxu0  ;;  %v628_v32 = vpack.c.bf16 %v600_v55, %v598_v9 }
 0x127   :  { %v527_v22 = vmul.f32 %v2026_v23, %v449_v19  ;;  %v451_v2 = vpop.f32.mrb[10].mxu0  ;;  %v629_v25 = vpack.c.bf16 %v601_v58, %v599_v28 }
 0x128   :  { %v570_v63 = vadd.f32 %v2029_v24, %v526_v30  ;;  %v528_v0 = vmul.f32 %v2023_v17, %v451_v2  ;;  %v453_v53 = vpop.f32.mrb[11].mxu0 }
 0x129   :  { %v571_v41 = vadd.f32 %v2032_v3, %v527_v22  ;;  %v529_v16 = vmul.f32 %v2026_v23, %v453_v53  ;;  %1051 = vmatprep.mubr.bf16.mxu1 %v629_v25 }
 0x12a   :  { %v572_v51 = vadd.f32 %v2029_v24, %v528_v0  ;;  %1052 = vmatmul.mubr.bf16.gmra.mrb[28].mxu1 %v628_v32  ;;  %v602_v6 = vmax.f32 %v570_v63, 0.0  ;;  %v1270_v47 = vpop.f32.mrb[12].mxu1 }
 0x12b   :  { %v573_v11 = vadd.f32 %v2032_v3, %v529_v16  ;;  %v603_v12 = vmax.f32 %v571_v41, 0.0  ;;  %v1271_v60 = vpop.f32.mrb[13].mxu1 }
 0x12c   :  { %v604_v10 = vmax.f32 %v572_v51, 0.0  ;;  %v2076_v49 = vadd.f32 %v1271_v60, %v1270_v47  ;;  %v1273_v52 = vpop.f32.mrb[14].mxu1 }
 0x12d   :  { %v605_v43 = vmax.f32 %v573_v11, 0.0  ;;  %v457_v54 = vpop.f32.mrb[12].mxu0  ;;  %v1274_v7 = vpop.f32.mrb[15].mxu1 }
 0x12e   :  { %v530_v45 = vmul.f32 %v2023_v17, %v457_v54  ;;  %v459_v14 = vpop.f32.mrb[13].mxu0  ;;  %v630_v38 = vpack.c.bf16 %v604_v10, %v602_v6  ;;  %v2080_v20 = vadd.f32 %v1274_v7, %v1273_v52 }
 0x12f   :  { %v531_v39 = vmul.f32 %v2026_v23, %v459_v14  ;;  %v461_v31 = vpop.f32.mrb[14].mxu0  ;;  %v631_v44 = vpack.c.bf16 %v605_v43, %v603_v12 }
 0x130   :  { %v574_v50 = vadd.f32 %v2029_v24, %v530_v45  ;;  %v532_v57 = vmul.f32 %v2023_v17, %v461_v31  ;;  %v463_v46 = vpop.f32.mrb[15].mxu0 }
 0x131   :  { %v575_v56 = vadd.f32 %v2032_v3, %v531_v39  ;;  %v533_v59 = vmul.f32 %v2026_v23, %v463_v46  ;;  %1059 = vmatprep.mubr.bf16.mxu1 %v631_v44 }
 0x132   :  { %v576_v61 = vadd.f32 %v2029_v24, %v532_v57  ;;  %1060 = vmatmul.mubr.bf16.gmra.mrb[32].mxu1 %v630_v38  ;;  %v606_v48 = vmax.f32 %v574_v50, 0.0  ;;  %v1276_v58 = vpop.f32.mrb[16].mxu1 }
 0x133   :  { %v577_v1 = vadd.f32 %v2032_v3, %v533_v59  ;;  %v607_v4 = vmax.f32 %v575_v56, 0.0  ;;  %v1277_v32 = vpop.f32.mrb[17].mxu1 }
 0x134   :  { %v608_v5 = vmax.f32 %v576_v61, 0.0  ;;  %v2088_v25 = vadd.f32 %v1277_v32, %v1276_v58  ;;  %v1279_v37 = vpop.f32.mrb[18].mxu1 }
 0x135   :  { %v609_v13 = vmax.f32 %v577_v1, 0.0  ;;  %v467_v33 = vpop.f32.mrb[16].mxu0  ;;  %v1280_v0 = vpop.f32.mrb[19].mxu1 }
 0x136   :  { %v534_v40 = vmul.f32 %v2023_v17, %v467_v33  ;;  %v469_v18 = vpop.f32.mrb[17].mxu0  ;;  %v632_v27 = vpack.c.bf16 %v608_v5, %v606_v48  ;;  %v2092_v35 = vadd.f32 %v1280_v0, %v1279_v37 }
 0x137   :  { %v535_v9 = vmul.f32 %v2026_v23, %v469_v18  ;;  %v471_v55 = vpop.f32.mrb[18].mxu0  ;;  %v633_v28 = vpack.c.bf16 %v609_v13, %v607_v4 }
 0x138   :  { %v578_v29 = vadd.f32 %v2029_v24, %v534_v40  ;;  %v536_v30 = vmul.f32 %v2023_v17, %v471_v55  ;;  %v473_v19 = vpop.f32.mrb[19].mxu0 }
 0x139   :  { %v579_v22 = vadd.f32 %v2032_v3, %v535_v9  ;;  %v537_v2 = vmul.f32 %v2026_v23, %v473_v19  ;;  %1067 = vmatprep.mubr.bf16.mxu1 %v633_v28 }
 0x13a   :  { %v580_v63 = vadd.f32 %v2029_v24, %v536_v30  ;;  %1068 = vmatmul.mubr.bf16.gmra.mrb[36].mxu1 %v632_v27  ;;  %v610_v41 = vmax.f32 %v578_v29, 0.0 }
 0x13b   :  { %v581_v53 = vadd.f32 %v2032_v3, %v537_v2  ;;  %v611_v8 = vmax.f32 %v579_v22, 0.0 }
 0x13c   :  { %v612_v16 = vmax.f32 %v580_v63, 0.0 }
 0x13d   :  { %v613_v51 = vmax.f32 %v581_v53, 0.0  ;;  %v477_v62 = vpop.f32.mrb[20].mxu0 }
 0x13e   :  { %v538_v11 = vmul.f32 %v2023_v17, %v477_v62  ;;  %v479_v6 = vpop.f32.mrb[21].mxu0  ;;  %v634_v10 = vpack.c.bf16 %v612_v16, %v610_v41 }
 0x13f   :  { %v539_v12 = vmul.f32 %v2026_v23, %v479_v6  ;;  %v481_v43 = vpop.f32.mrb[22].mxu0  ;;  %v635_v54 = vpack.c.bf16 %v613_v51, %v611_v8 }
 0x140   :  { %v582_v45 = vadd.f32 %v2029_v24, %v538_v11  ;;  %v540_v14 = vmul.f32 %v2023_v17, %v481_v43  ;;  %v483_v38 = vpop.f32.mrb[23].mxu0 }
 0x141   :  { %v583_v39 = vadd.f32 %v2032_v3, %v539_v12  ;;  %v541_v31 = vmul.f32 %v2026_v23, %v483_v38  ;;  %1075 = vmatprep.mubr.bf16.mxu1 %v635_v54 }
 0x142   :  { %v584_v44 = vadd.f32 %v2029_v24, %v540_v14  ;;  %1076 = vmatmul.mubr.bf16.gmra.mrb[40].mxu1 %v634_v10  ;;  %v614_v50 = vmax.f32 %v582_v45, 0.0 }
 0x143   :  { %v585_v47 = vadd.f32 %v2032_v3, %v541_v31  ;;  %v615_v46 = vmax.f32 %v583_v39, 0.0 }
 0x144   :  { %v616_v57 = vmax.f32 %v584_v44, 0.0 }
 0x145   :  { %v617_v60 = vmax.f32 %v585_v47, 0.0  ;;  %v487_v56 = vpop.f32.mrb[24].mxu0 }
 0x146   :  { %v542_v59 = vmul.f32 %v2023_v17, %v487_v56  ;;  %v489_v52 = vpop.f32.mrb[25].mxu0  ;;  %v636_v61 = vpack.c.bf16 %v616_v57, %v614_v50 }
 0x147   :  { %v543_v7 = vmul.f32 %v2026_v23, %v489_v52  ;;  %v491_v1 = vpop.f32.mrb[26].mxu0  ;;  %v637_v48 = vpack.c.bf16 %v617_v60, %v615_v46 }
 0x148   :  { %v586_v5 = vadd.f32 %v2029_v24, %v542_v59  ;;  %v544_v4 = vmul.f32 %v2023_v17, %v491_v1  ;;  %v493_v13 = vpop.f32.mrb[27].mxu0 }
 0x149   :  { %v587_v33 = vadd.f32 %v2032_v3, %v543_v7  ;;  %v545_v40 = vmul.f32 %v2026_v23, %v493_v13  ;;  %1083 = vmatprep.mubr.bf16.mxu1 %v637_v48  ;;  %v1108_v48 = vld [vmem:[%s2238_s8] sm:$0xff] }
 0x14a   :  { %v588_v18 = vadd.f32 %v2029_v24, %v544_v4  ;;  %1084 = vmatmul.mubr.bf16.gmra.mrb[44].mxu1 %v636_v61  ;;  %v618_v9 = vmax.f32 %v586_v5, 0.0 }
 0x14b   :  { %v589_v27 = vadd.f32 %v2032_v3, %v545_v40  ;;  %v619_v28 = vmax.f32 %v587_v33, 0.0  ;;  %v1109_v33 = vld [vmem:[%s2238_s8 + $0x8] sm:$0xff] }
 0x14c   :  { %v620_v55 = vmax.f32 %v588_v18, 0.0 }
 0x14d   :  { %v621_v58 = vmax.f32 %v589_v27, 0.0  ;;  %v497_v29 = vpop.f32.mrb[28].mxu0 }
 0x14e   :  { %v546_v30 = vmul.f32 %v2023_v17, %v497_v29  ;;  %v499_v19 = vpop.f32.mrb[29].mxu0  ;;  %v638_v32 = vpack.c.bf16 %v620_v55, %v618_v9  ;;  %v1110_v29 = vld [vmem:[%s2238_s8 + $0x10] sm:$0xff] }
 0x14f   :  { %v547_v22 = vmul.f32 %v2026_v23, %v499_v19  ;;  %v501_v2 = vpop.f32.mrb[30].mxu0  ;;  %v639_v37 = vpack.c.bf16 %v621_v58, %v619_v28 }
 0x150   :  { %v590_v63 = vadd.f32 %v2029_v24, %v546_v30  ;;  %v548_v0 = vmul.f32 %v2023_v17, %v501_v2  ;;  %v503_v53 = vpop.f32.mrb[31].mxu0  ;;  %v1282_v17 = vpop.f32.mrb[20].mxu1 }
 0x151   :  { %v591_v41 = vadd.f32 %v2032_v3, %v547_v22  ;;  %v549_v16 = vmul.f32 %v2026_v23, %v503_v53  ;;  %1091 = vmatprep.mubr.bf16.mxu1 %v639_v37  ;;  %v1283_v54 = vpop.f32.mrb[21].mxu1  ;;  %v1111_v22 = vld [vmem:[%s2238_s8 + $0x18] sm:$0xff] }
 0x152   :  { %v592_v8 = vadd.f32 %v2029_v24, %v548_v0  ;;  %1092 = vmatmul.mubr.bf16.gmra.mrb[48].mxu1 %v638_v32  ;;  %v622_v62 = vmax.f32 %v590_v63, 0.0  ;;  %v2118_v45 = vadd.f32 %v1283_v54, %v1282_v17  ;;  %v1285_v14 = vpop.f32.mrb[22].mxu1 }
 0x153   :  { %v593_v51 = vadd.f32 %v2032_v3, %v549_v16  ;;  %v623_v6 = vmax.f32 %v591_v41, 0.0  ;;  %v1286_v23 = vpop.f32.mrb[23].mxu1 }
 0x154   :  { %v624_v11 = vmax.f32 %v592_v8, 0.0  ;;  %v2120_v38 = vadd.f32 %v1286_v23, %v1285_v14  ;;  %v1112_v8 = vld [vmem:[%s2238_s8 + $0x20] sm:$0xff]  ;;  %v1114_v23 = vld [vmem:[%s2238_s8 + $0x30] sm:$0xff] }
 0x155   :  { %v625_v10 = vmax.f32 %v593_v51, 0.0  ;;  %v1240_v24 = vpop.f32.mrb[32].mxu0 }
 0x156   :  { %v640_v12 = vpack.c.bf16 %v624_v11, %v622_v62  ;;  %v1241_v39 = vpop.f32.mrb[33].mxu0 }
 0x157   :  { %v641_v43 = vpack.c.bf16 %v625_v10, %v623_v6  ;;  %v1242_v31 = vadd.f32 %v1241_v39, %v1240_v24  ;;  %v1243_v3 = vpop.f32.mrb[34].mxu0  ;;  %v1113_v6 = vld [vmem:[%s2238_s8 + $0x28] sm:$0xff] }
 0x158   :  { %v1244_v44 = vpop.f32.mrb[35].mxu0 }
 0x159   :  { %1099 = vmatprep.mubr.bf16.mxu1 %v641_v43  ;;  %v1245_v47 = vadd.f32 %v1244_v44, %v1243_v3 }
 0x15a   :  { %1100 = vmatmul.mubr.bf16.gmra.mrb[52].mxu1 %v640_v12 }
 0x15d   :  { %v1246_v50 = vpop.f32.mrb[36].mxu0 }
 0x15e   :  { %v1247_v57 = vpop.f32.mrb[37].mxu0 }
 0x15f   :  { %v1248_v46 = vadd.f32 %v1247_v57, %v1246_v50  ;;  %v1249_v60 = vpop.f32.mrb[38].mxu0 }
 0x160   :  { %v1250_v56 = vpop.f32.mrb[39].mxu0 }
 0x161   :  { %v1251_v59 = vadd.f32 %v1250_v56, %v1249_v60  ;;  %v1116_v60 = vld [vmem:[%s2238_s8 + $0x40] sm:$0xff] }
 0x1f5   :  { %v1304_v52 = vpop.f32.mrb[24].mxu1 }
 0x1f6   :  { %v1305_v61 = vpop.f32.mrb[25].mxu1 }
 0x1f7   :  { %v1306_v7 = vadd.f32 %v1305_v61, %v1304_v52  ;;  %v1307_v1 = vpop.f32.mrb[26].mxu1  ;;  %v1117_v52 = vld [vmem:[%s2238_s8 + $0x48] sm:$0xff] }
 0x1f8   :  { %v1308_v5 = vpop.f32.mrb[27].mxu1 }
 0x1f9   :  { %v1046_v4 = vadd.f32 %v1306_v7, %v1242_v31  ;;  %v1309_v13 = vadd.f32 %v1308_v5, %v1307_v1  ;;  %v1115_v31 = vld [vmem:[%s2238_s8 + $0x38] sm:$0xff] }
 0x1fb   :  { %v1124_v40 = vadd.f32 %v1108_v48, %v1046_v4  ;;  %v1049_v18 = vadd.f32 %v1309_v13, %v1245_v47  ;;  %v1118_v13 = vld [vmem:[%s2238_s8 + $0x50] sm:$0xff] }
 0x1fd   :  { %1140 = vst [vmem:[%s2239_s9] sm:$0xff] %v1124_v40  ;;  %v1125_v27 = vadd.f32 %v1109_v33, %v1049_v18  ;;  %v1310_v9 = vpop.f32.mrb[28].mxu1  ;;  %v1119_v18 = vld [vmem:[%s2238_s8 + $0x58] sm:$0xff] }
 0x1fe   :  { %v1311_v55 = vpop.f32.mrb[29].mxu1 }
 0x1ff   :  { %1141 = vst [vmem:[%s2239_s9 + $0x8] sm:$0xff] %v1125_v27  ;;  %v1312_v28 = vadd.f32 %v1311_v55, %v1310_v9  ;;  %v1313_v58 = vpop.f32.mrb[30].mxu1 }
 0x200   :  { %v1314_v30 = vpop.f32.mrb[31].mxu1 }
 0x201   :  { %v1054_v19 = vadd.f32 %v1312_v28, %v1248_v46  ;;  %v1315_v32 = vadd.f32 %v1314_v30, %v1313_v58  ;;  %v1120_v30 = vld [vmem:[%s2238_s8 + $0x60] sm:$0xff] }
 0x203   :  { %v1126_v2 = vadd.f32 %v1110_v29, %v1054_v19  ;;  %v1057_v37 = vadd.f32 %v1315_v32, %v1251_v59 }
 0x205   :  { %1142 = vst [vmem:[%s2239_s9 + $0x10] sm:$0xff] %v1126_v2  ;;  %v1127_v63 = vadd.f32 %v1111_v22, %v1057_v37  ;;  %v1316_v0 = vpop.f32.mrb[32].mxu1  ;;  %v1121_v22 = vld [vmem:[%s2238_s8 + $0x68] sm:$0xff] }
 0x206   :  { %v1317_v53 = vpop.f32.mrb[33].mxu1 }
 0x207   :  { %1143 = vst [vmem:[%s2239_s9 + $0x18] sm:$0xff] %v1127_v63  ;;  %v1318_v41 = vadd.f32 %v1317_v53, %v1316_v0  ;;  %v1319_v16 = vpop.f32.mrb[34].mxu1 }
 0x208   :  { %v1320_v51 = vpop.f32.mrb[35].mxu1 }
 0x209   :  { %v1062_v62 = vadd.f32 %v1318_v41, %v2040_v36  ;;  %v1321_v11 = vadd.f32 %v1320_v51, %v1319_v16  ;;  %v1122_v16 = vld [vmem:[%s2238_s8 + $0x70] sm:$0xff] }
 0x20b   :  { %v1128_v10 = vadd.f32 %v1112_v8, %v1062_v62  ;;  %v1065_v12 = vadd.f32 %v1321_v11, %v2044_v34  ;;  %v1123_v62 = vld [vmem:[%s2238_s8 + $0x78] sm:$0xff] }
 0x20d   :  { %1144 = vst [vmem:[%s2239_s9 + $0x20] sm:$0xff] %v1128_v10  ;;  %v1129_v43 = vadd.f32 %v1113_v6, %v1065_v12  ;;  %v1322_v17 = vpop.f32.mrb[36].mxu1 }
 0x20e   :  { %v1323_v54 = vpop.f32.mrb[37].mxu1 }
 0x20f   :  { %1145 = vst [vmem:[%s2239_s9 + $0x28] sm:$0xff] %v1129_v43  ;;  %v1324_v36 = vadd.f32 %v1323_v54, %v1322_v17  ;;  %v1325_v14 = vpop.f32.mrb[38].mxu1 }
 0x210   :  { %v1326_v24 = vpop.f32.mrb[39].mxu1 }
 0x211   :  { %v1070_v34 = vadd.f32 %v1324_v36, %v2052_v15  ;;  %v1327_v39 = vadd.f32 %v1326_v24, %v1325_v14 }
 0x213   :  { %v1130_v3 = vadd.f32 %v1114_v23, %v1070_v34  ;;  %v1073_v44 = vadd.f32 %v1327_v39, %v2056_v21 }
 0x215   :  { %1146 = vst [vmem:[%s2239_s9 + $0x30] sm:$0xff] %v1130_v3  ;;  %v1131_v47 = vadd.f32 %v1115_v31, %v1073_v44  ;;  %v1328_v50 = vpop.f32.mrb[40].mxu1 }
 0x216   :  { %v1329_v57 = vpop.f32.mrb[41].mxu1 }
 0x217   :  { %1147 = vst [vmem:[%s2239_s9 + $0x38] sm:$0xff] %v1131_v47  ;;  %v1330_v15 = vadd.f32 %v1329_v57, %v1328_v50  ;;  %v1331_v46 = vpop.f32.mrb[42].mxu1 }
 0x218   :  { %v1332_v56 = vpop.f32.mrb[43].mxu1 }
 0x219   :  { %v1078_v21 = vadd.f32 %v1330_v15, %v2064_v26  ;;  %v1333_v59 = vadd.f32 %v1332_v56, %v1331_v46 }
 0x21b   :  { %v1132_v61 = vadd.f32 %v1116_v60, %v1078_v21  ;;  %v1081_v7 = vadd.f32 %v1333_v59, %v2068_v42 }
 0x21d   :  { %1148 = vst [vmem:[%s2239_s9 + $0x40] sm:$0xff] %v1132_v61  ;;  %v1133_v1 = vadd.f32 %v1117_v52, %v1081_v7  ;;  %v1334_v48 = vpop.f32.mrb[44].mxu1 }
 0x21e   :  { %v1335_v5 = vpop.f32.mrb[45].mxu1 }
 0x21f   :  { %1149 = vst [vmem:[%s2239_s9 + $0x48] sm:$0xff] %v1133_v1  ;;  %v1336_v26 = vadd.f32 %v1335_v5, %v1334_v48  ;;  %v1337_v4 = vpop.f32.mrb[46].mxu1 }
 0x220   :  { %v1338_v33 = vpop.f32.mrb[47].mxu1 }
 0x221   :  { %v1086_v42 = vadd.f32 %v1336_v26, %v2076_v49  ;;  %v1339_v40 = vadd.f32 %v1338_v33, %v1337_v4 }
 0x223   :  { %v1134_v27 = vadd.f32 %v1118_v13, %v1086_v42  ;;  %v1089_v9 = vadd.f32 %v1339_v40, %v2080_v20 }
 0x225   :  { %1150 = vst [vmem:[%s2239_s9 + $0x50] sm:$0xff] %v1134_v27  ;;  %v1135_v55 = vadd.f32 %v1119_v18, %v1089_v9  ;;  %v1340_v28 = vpop.f32.mrb[48].mxu1 }
 0x226   :  { %v1341_v58 = vpop.f32.mrb[49].mxu1 }
 0x227   :  { %1151 = vst [vmem:[%s2239_s9 + $0x58] sm:$0xff] %v1135_v55  ;;  %v1342_v49 = vadd.f32 %v1341_v58, %v1340_v28  ;;  %v1343_v29 = vpop.f32.mrb[50].mxu1 }
 0x228   :  { %v1344_v19 = vpop.f32.mrb[51].mxu1 }
 0x229   :  { %v1094_v20 = vadd.f32 %v1342_v49, %v2088_v25  ;;  %v1345_v32 = vadd.f32 %v1344_v19, %v1343_v29 }
 0x22b   :  { %v1136_v2 = vadd.f32 %v1120_v30, %v1094_v20  ;;  %v1097_v37 = vadd.f32 %v1345_v32, %v2092_v35 }
 0x22d   :  { %1152 = vst [vmem:[%s2239_s9 + $0x60] sm:$0xff] %v1136_v2  ;;  %v1137_v63 = vadd.f32 %v1121_v22, %v1097_v37  ;;  %v1346_v0 = vpop.f32.mrb[52].mxu1 }
 0x22e   :  { %v1347_v53 = vpop.f32.mrb[53].mxu1 }
 0x22f   :  { %1153 = vst [vmem:[%s2239_s9 + $0x68] sm:$0xff] %v1137_v63  ;;  %v1348_v25 = vadd.f32 %v1347_v53, %v1346_v0  ;;  %v1349_v41 = vpop.f32.mrb[54].mxu1 }
 0x230   :  { %v1350_v8 = vpop.f32.mrb[55].mxu1 }
 0x231   :  { %v1102_v35 = vadd.f32 %v1348_v25, %v2118_v45  ;;  %v1351_v51 = vadd.f32 %v1350_v8, %v1349_v41 }
 0x233   :  { %v1138_v11 = vadd.f32 %v1122_v16, %v1102_v35  ;;  %v1105_v6 = vadd.f32 %v1351_v51, %v2120_v38 }
 0x235   :  { %1154 = vst [vmem:[%s2239_s9 + $0x70] sm:$0xff] %v1138_v11  ;;  %v1139_v10 = vadd.f32 %v1123_v62, %v1105_v6 }
 0x237   :  { %1155 = vst [vmem:[%s2239_s9 + $0x78] sm:$0xff] %v1139_v10 }

// kernel: tile.133
= control target key start
LH: loop header
LB: loop body
LE: loop exit
PB: predicated region body
PF: predicated region fallthrough
CT: control target
= control target key end

     0   :  { %s28_s0 = inlined_call_operand.vmem [shape: f32[24], index: 0, kind: input, shape index: {}]   ;;  %s29_s1 = inlined_call_operand.vmem [shape: f32[16,24], index: 1, kind: output, shape index: {}]  }
   0x1   :  { %v4_v0 = vld [vmem:[%s28_s0] ss:$0 sm:$0xff] }
   0x2   :  { %5 = vst [vmem:[%s29_s1] sm:$0xff] %v4_v0  ;;  %8 = vst [vmem:[%s29_s1 + $0x8] sm:$0xff] %v4_v0 }

// kernel: tile.134
= control target key start
LH: loop header
LB: loop body
LE: loop exit
PB: predicated region body
PF: predicated region fallthrough
CT: control target
= control target key end

     0   :  { %vm9_vm0 = vcmask 64512   ;;  %vm13_vm1 = vcmask 130048   ;;  %s171_s14 = smov 120   ;;  %s172_s15 = smov 104   ;;  %vm3_vm2 = vcmask 195584   ;;  %vm16_vm3 = vcmask 1048512   ;;  %s263_s0 = inlined_call_operand.vmem [shape: f32[16,24], index: 0, kind: input, shape index: {}]   ;;  %s264_s1 = inlined_call_operand.vmem [shape: f32[1,384], index: 1, kind: output, shape index: {}]  }
   0x1   :  { %v137_v0 = vld [vmem:[%s263_s0 + $0x5] sm:$0x1]   ;;  %v141_v3 = vld [vmem:[%s263_s0 + $0xf] sm:$0x1]   ;;  %v139_v4 = vld [vmem:[%s263_s0 + $0xa] sm:$0x1]  }
   0x2   :  { %v138_v1 = vld [vmem:[%s263_s0 + $0x5] sm:$0x1]   ;;  %34 = vrot.lane.b32.xlu1 %v141_v3, %s172_s15  ;;  %v140_v5 = vld [vmem:[%s263_s0 + $0xa] sm:$0x1]   ;;  %v142_v7 = vld [vmem:[%s263_s0 + $0x4] sm:$0x1]  }
   0x3   :  { %v10_v2 = vsel %vm9_vm0, %v138_v1, %v137_v0  ;;  %v23_v6 = vsel %vm13_vm1, %v140_v5, %v139_v4  ;;  %s173_s20 = smov 112   ;;  %s174_s21 = smov 96   ;;  %v143_v8 = vld [vmem:[%s263_s0 + $0x9] sm:$0x1]   ;;  %v144_v9 = vld [vmem:[%s263_s0 + $0xe] sm:$0x1]  }
   0x4   :  { %11 = vrot.lane.b32.xlu0 %v10_v2, %s171_s14  ;;  %v2_v10 = vld [vmem:[%s263_s0] sm:$0x1]   ;;  %s175_s28 = smov 88   ;;  %s176_s29 = smov 80   ;;  %v145_v11 = vld [vmem:[%s263_s0 + $0x3] sm:$0x1]  }
   0x5   :  { %4 = vst.msk [vmem:[#allocation0] sm:$0x1] %vm3_vm2, %v2_v10   ;;  %v146_v12 = vld [vmem:[%s263_s0 + $0x8] sm:$0x1]   ;;  %s177_s5 = smov 72   ;;  %s178_s6 = smov 64  }
   0x6   :  { %41 = vrot.lane.b32.xlu1 %v142_v7, %s174_s21  ;;  %v147_v13 = vld [vmem:[%s263_s0 + $0xd] sm:$0x1]   ;;  %v148_v14 = vld [vmem:[%s263_s0 + $0x2] sm:$0x1]   ;;  %s179_s11 = smov 56   ;;  %s180_s12 = smov 48  }
   0x7   :  { %v149_v15 = vld [vmem:[%s263_s0 + $0x7] sm:$0x1]   ;;  %v150_v16 = vld [vmem:[%s263_s0 + $0xc] sm:$0x1]   ;;  %s181_s17 = smov 40   ;;  %s182_s18 = smov 32  }
   0x8   :  { %24 = vrot.lane.b32.xlu0 %v23_v6, %s173_s20  ;;  %v151_v17 = vld [vmem:[%s263_s0 + $0x1] sm:$0x1]   ;;  %v152_v18 = vld [vmem:[%s263_s0 + $0x6] sm:$0x1]   ;;  %s183_s23 = smov 24   ;;  %s184_s24 = smov 16  }
   0x9   :  { %v153_v19 = vld [vmem:[%s263_s0 + $0xb] sm:$0x1]   ;;  %s185_s0 = smov 8   ;;  %vm29_vm4 = vcmask 1048448   ;;  %vm43_vm5 = vcmask 982784   ;;  %vm36_vm6 = vcmask 1048384  }
   0xa   :  { %54 = vrot.lane.b32.xlu1 %v144_v9, %s176_s29  ;;  %vm49_vm7 = vcmask 917184   ;;  %vm56_vm8 = vcmask 851584   ;;  %vm63_vm9 = vcmask 785984   ;;  %vm69_vm10 = vcmask 720384  }
   0xb   :  { %vm76_vm11 = vcmask 654784   ;;  %vm83_vm12 = vcmask 589184   ;;  %vm89_vm13 = vcmask 523584   ;;  %vm96_vm14 = vcmask 457984  }
   0xc   :  { %47 = vrot.lane.b32.xlu0 %v143_v8, %s175_s28  ;;  %vm103_vm15 = vcmask 392384  }
   0xe   :  { %67 = vrot.lane.b32.xlu1 %v146_v12, %s178_s6 }
  0x10   :  { %61 = vrot.lane.b32.xlu0 %v145_v11, %s177_s5 }
  0x12   :  { %81 = vrot.lane.b32.xlu1 %v148_v14, %s180_s12 }
  0x14   :  { %74 = vrot.lane.b32.xlu0 %v147_v13, %s179_s11 }
  0x16   :  { %94 = vrot.lane.b32.xlu1 %v150_v16, %s182_s18 }
  0x18   :  { %87 = vrot.lane.b32.xlu0 %v149_v15, %s181_s17 }
  0x1a   :  { %107 = vrot.lane.b32.xlu1 %v152_v18, %s184_s24 }
  0x1c   :  { %101 = vrot.lane.b32.xlu0 %v151_v17, %s183_s23 }
  0x20   :  { %114 = vrot.lane.b32.xlu0 %v153_v19, %s185_s0 }
  0x74   :  { %v35_v21 = vpop.permute.xlu1 %34  }
  0x76   :  { %v12_v20 = vpop.permute.xlu0 %11  }
  0x77   :  { %15 = vst.msk [vmem:[#allocation0 + $0x8] sm:$0x1] %vm13_vm1, %v12_v20   ;;  %vm116_vm1 = vcmask 261184  }
  0x78   :  { %17 = vst.msk [vmem:[#allocation0] sm:$0x1] %vm16_vm3, %v12_v20   ;;  %v42_v23 = vpop.permute.xlu1 %41  }
  0x79   :  { %44 = vst.msk [vmem:[#allocation0] sm:$0x1] %vm43_vm5, %v42_v23  }
  0x7a   :  { %v25_v22 = vpop.permute.xlu0 %24  }
  0x7b   :  { %28 = vst.msk [vmem:[#allocation0 + $0x10] sm:$0x1] %vm9_vm0, %v25_v22   ;;  %vm109_vm0 = vcmask 326784  }
  0x7c   :  { %31 = vst.msk [vmem:[#allocation0 + $0x8] sm:$0x1] %vm29_vm4, %v25_v22   ;;  %v55_v25 = vpop.permute.xlu1 %54  }
  0x7d   :  { %38 = vst.msk [vmem:[#allocation0 + $0x10] sm:$0x1] %vm36_vm6, %v35_v21  }
  0x7e   :  { %v48_v24 = vpop.permute.xlu0 %47   ;;  %58 = vst.msk [vmem:[#allocation0 + $0x10] sm:$0x1] %vm56_vm8, %v55_v25  }
  0x7f   :  { %51 = vst.msk [vmem:[#allocation0 + $0x8] sm:$0x1] %vm49_vm7, %v48_v24  }
  0x80   :  { %v68_v27 = vpop.permute.xlu1 %67  }
  0x81   :  { %71 = vst.msk [vmem:[#allocation0 + $0x8] sm:$0x1] %vm69_vm10, %v68_v27  }
  0x82   :  { %v62_v26 = vpop.permute.xlu0 %61  }
  0x83   :  { %64 = vst.msk [vmem:[#allocation0] sm:$0x1] %vm63_vm9, %v62_v26  }
  0x84   :  { %v82_v29 = vpop.permute.xlu1 %81  }
  0x85   :  { %84 = vst.msk [vmem:[#allocation0] sm:$0x1] %vm83_vm12, %v82_v29  }
  0x86   :  { %v75_v28 = vpop.permute.xlu0 %74  }
  0x87   :  { %78 = vst.msk [vmem:[#allocation0 + $0x10] sm:$0x1] %vm76_vm11, %v75_v28  }
  0x88   :  { %v95_v31 = vpop.permute.xlu1 %94  }
  0x89   :  { %98 = vst.msk [vmem:[#allocation0 + $0x10] sm:$0x1] %vm96_vm14, %v95_v31  }
  0x8a   :  { %v88_v30 = vpop.permute.xlu0 %87  }
  0x8b   :  { %91 = vst.msk [vmem:[#allocation0 + $0x8] sm:$0x1] %vm89_vm13, %v88_v30  }
  0x8c   :  { %v108_v33 = vpop.permute.xlu1 %107  }
  0x8d   :  { %111 = vst.msk [vmem:[#allocation0 + $0x8] sm:$0x1] %vm109_vm0, %v108_v33  }
  0x8e   :  { %v102_v32 = vpop.permute.xlu0 %101  }
  0x8f   :  { %104 = vst.msk [vmem:[#allocation0] sm:$0x1] %vm103_vm15, %v102_v32  }
  0x92   :  { %v115_v34 = vpop.permute.xlu0 %114  }
  0x93   :  { %118 = vst.msk [vmem:[#allocation0 + $0x10] sm:$0x1] %vm116_vm1, %v115_v34  }
  0x94   :  { %v126_v36 = vld [vmem:[#allocation0 + $0x8] sm:$0x1] }
  0x95   :  { %154 = vst [vmem:[%s264_s1 + $0x1] sm:$0x1] %v126_v36 }
  0x96   :  { %v122_v35 = vld [vmem:[#allocation0] sm:$0x1] }
  0x97   :  { %124 = vst [vmem:[%s264_s1] sm:$0x1] %v122_v35 }
  0x9a   :  { %v131_v37 = vld [vmem:[#allocation0 + $0x10] sm:$0x1] }
  0x9b   :  { %155 = vst [vmem:[%s264_s1 + $0x2] sm:$0x1] %v131_v37 }

// kernel: feature_extractor_img.8
= control target key start
LH: loop header
LB: loop body
LE: loop exit
PB: predicated region body
PF: predicated region fallthrough
CT: control target
= control target key end

     0   :  { %v47_v21 = vlaneseq  ;;  %s2509_s3 = inlined_call_operand.vmem [shape: bf16[384,384], index: 3, kind: input, shape index: {}]   ;;  %s2510_s0 = inlined_call_operand.vmem [shape: f32[32,384], index: 0, kind: input, shape index: {}]   ;;  %s2511_s1 = inlined_call_operand.vmem [shape: f32[1,384], index: 1, kind: input, shape index: {}]   ;;  %s2512_s2 = inlined_call_operand.vmem [shape: f32[1,384], index: 2, kind: input, shape index: {}]   ;;  %s2513_s7 = inlined_call_operand.vmem [shape: bf16[384,128], index: 7, kind: input, shape index: {}]   ;;  %s2514_s6 = inlined_call_operand.vmem [shape: bf16[384,128], index: 6, kind: input, shape index: {}]   ;;  %s2515_s4 = inlined_call_operand.vmem [shape: f32[1,384], index: 4, kind: input, shape index: {}]   ;;  %s2516_s5 = inlined_call_operand.vmem [shape: f32[1,384], index: 5, kind: input, shape index: {}]   ;;  %s2517_s8 = inlined_call_operand.vmem [shape: f32[32,128], index: 8, kind: input, shape index: {}]   ;;  %s2518_s9 = inlined_call_operand.vmem [shape: f32[32,128], index: 9, kind: output, shape index: {}]  }
   0x1   :  { %v1798_v0 = vld [vmem:[%s2509_s3 + $0x4] ss:$12 sps:$4 sm:$0xff]   ;;  %v1800_v1 = vld [vmem:[%s2509_s3] ss:$12 sps:$4 sm:$0xff]   ;;  %v1801_v2 = vld [vmem:[%s2509_s3 + $0x1c] ss:$12 sps:$4 sm:$0xff]  }
   0x2   :  { %601 = vmatprep.subr.bf16.mxu0 %v1798_v0  ;;  %v1803_v3 = vld [vmem:[%s2509_s3 + $0x18] ss:$12 sps:$4 sm:$0xff]   ;;  %v1804_v4 = vld [vmem:[%s2509_s3 + $0x34] ss:$12 sps:$4 sm:$0xff]   ;;  %v1807_v7 = vld [vmem:[%s2509_s3 + $0x30] ss:$12 sps:$4 sm:$0xff]  }
   0x3   :  { %602 = vmatpush1.bf16.msra.mxu0 %v1800_v1  ;;  %v1806_v5 = vld [vmem:[%s2509_s3 + $0xc8] ss:$12 sps:$4 sm:$0xff]   ;;  %v1811_v8 = vld [vmem:[%s2509_s3 + $0xe0] ss:$12 sps:$4 sm:$0xff]   ;;  %v1814_v12 = vld [vmem:[%s2509_s3 + $0x64] ss:$12 sps:$4 sm:$0xff]  }
   0x4   :  { %603 = vmatprep.subr.bf16.mxu0 %v1801_v2  ;;  %v1808_v6 = vld [vmem:[%s2509_s3 + $0x8] ss:$12 sps:$4 sm:$0xff]   ;;  %1603 = vmatprep.subr.bf16.mxu1 %v1806_v5  ;;  %v1809_v9 = vld [vmem:[%s2509_s3 + $0x4c] ss:$12 sps:$4 sm:$0xff]   ;;  %v1821_v16 = vld [vmem:[%s2509_s3 + $0x110] ss:$12 sps:$4 sm:$0xff]  }
   0x5   :  { %1604 = vmatpush3.bf16.msra.mxu1 %v1808_v6  ;;  %v1813_v10 = vld [vmem:[%s2509_s3 + $0x20] ss:$12 sps:$4 sm:$0xff]   ;;  %v1812_v11 = vld [vmem:[%s2509_s3 + $0x48] ss:$12 sps:$4 sm:$0xff]   ;;  %v1816_v13 = vld [vmem:[%s2509_s3 + $0xf8] ss:$12 sps:$4 sm:$0xff]  }
   0x6   :  { %1605 = vmatprep.subr.bf16.mxu1 %v1811_v8  ;;  %v1818_v14 = vld [vmem:[%s2509_s3 + $0x38] ss:$12 sps:$4 sm:$0xff]   ;;  %v1817_v15 = vld [vmem:[%s2509_s3 + $0x60] ss:$12 sps:$4 sm:$0xff]   ;;  %v1823_v17 = vld [vmem:[%s2509_s3 + $0x50] ss:$12 sps:$4 sm:$0xff]  }
   0x7   :  { %604 = vmatpush1.bf16.msra.mxu0 %v1803_v3  ;;  %v1819_v18 = vld [vmem:[%s2509_s3 + $0x7c] ss:$12 sps:$4 sm:$0xff]   ;;  %v1822_v20 = vld [vmem:[%s2509_s3 + $0x78] ss:$12 sps:$4 sm:$0xff]   ;;  %v1824_v23 = vld [vmem:[%s2509_s3 + $0x94] ss:$12 sps:$4 sm:$0xff]  }
   0x8   :  { %605 = vmatprep.subr.bf16.mxu0 %v1804_v4  ;;  %v1826_v19 = vld [vmem:[%s2509_s3 + $0x128] ss:$12 sps:$4 sm:$0xff]   ;;  %v1831_v24 = vld [vmem:[%s2509_s3 + $0x140] ss:$12 sps:$4 sm:$0xff]   ;;  %v1827_v25 = vld [vmem:[%s2509_s3 + $0x90] ss:$12 sps:$4 sm:$0xff]  }
   0x9   :  { %1606 = vmatpush3.bf16.msra.mxu1 %v1813_v10  ;;  %v1828_v22 = vld [vmem:[%s2509_s3 + $0x68] ss:$12 sps:$4 sm:$0xff]   ;;  %v2068_v26 = vshrl.u32 %v47_v21, 7  ;;  %v1833_v27 = vld [vmem:[%s2509_s3 + $0x80] ss:$12 sps:$4 sm:$0xff]   ;;  %v2139_v48 = vld [vmem:[%s2510_s0 + $0x18] sm:$0xff] }
   0xa   :  { %1607 = vmatprep.subr.bf16.mxu1 %v1816_v13  ;;  %v1829_v28 = vld [vmem:[%s2509_s3 + $0xac] ss:$12 sps:$4 sm:$0xff]   ;;  %v1832_v30 = vld [vmem:[%s2509_s3 + $0xa8] ss:$12 sps:$4 sm:$0xff]   ;;  %v1834_v31 = vld [vmem:[%s2509_s3 + $0xc4] ss:$12 sps:$4 sm:$0xff]  }
   0xb   :  { %606 = vmatpush1.bf16.msra.mxu0 %v1807_v7  ;;  %v1836_v29 = vld [vmem:[%s2509_s3 + $0x158] ss:$12 sps:$4 sm:$0xff]   ;;  %v2086_v32 = vsub.s32 1, %v2068_v26  ;;  %v2089_v33 = vsub.s32 0, %v2068_v26  ;;  %v1841_v35 = vld [vmem:[%s2509_s3 + $0x170] ss:$12 sps:$4 sm:$0xff]  }
   0xc   :  { %607 = vmatprep.subr.bf16.mxu0 %v1809_v9  ;;  %v1838_v34 = vld [vmem:[%s2509_s3 + $0x98] ss:$12 sps:$4 sm:$0xff]   ;;  %v1837_v36 = vld [vmem:[%s2509_s3 + $0xc0] ss:$12 sps:$4 sm:$0xff]   ;;  %v1843_v37 = vld [vmem:[%s2509_s3 + $0xb0] ss:$12 sps:$4 sm:$0xff]  }
   0xd   :  { %1608 = vmatpush3.bf16.msra.mxu1 %v1818_v14  ;;  %v2106_v38 = vld [vmem:[%s2510_s0 + $0x8] sm:$0xff]  ;;  %v2111_v39 = vld [vmem:[%s2510_s0 + $0x20] sm:$0xff]  ;;  %v1847_v63 = vld [vmem:[%s2509_s3 + $0xf0] ss:$12 sps:$4 sm:$0xff]   ;;  %v2169_v6 = vsub.s32 2, %v2068_v26 }
   0xe   :  { %1609 = vmatprep.subr.bf16.mxu1 %v1821_v16  ;;  %v45_v40 = vld [vmem:[%s2511_s1] sm:$0x7]  ;;  %v1839_v42 = vld [vmem:[%s2509_s3 + $0xdc] ss:$12 sps:$4 sm:$0xff]   ;;  %v1842_v54 = vld [vmem:[%s2509_s3 + $0xd8] ss:$12 sps:$4 sm:$0xff]  }
   0xf   :  { %608 = vmatpush1.bf16.msra.mxu0 %v1812_v11  ;;  %v2119_v41 = vld [vmem:[%s2512_s2] sm:$0x7]  ;;  %v54_v43 = vrot.slane %v45_v40, %v2086_v32  ;;  %v1846_v45 = vld [vmem:[%s2509_s3 + $0x188] ss:$12 sps:$4 sm:$0xff]   ;;  %v50_v46 = vrot.slane %v45_v40, %v2089_v33  ;;  %v1848_v2 = vld [vmem:[%s2509_s3 + $0x10c] ss:$12 sps:$4 sm:$0xff]   ;;  %v58_v16 = vrot.slane %v45_v40, %v2169_v6 }
  0x10   :  { %609 = vmatprep.subr.bf16.mxu0 %v1814_v12  ;;  %v83_v44 = vrot.slane %v2119_v41, %v2086_v32  ;;  %v2134_v47 = vld [vmem:[%s2510_s0] sm:$0xff]  ;;  %v79_v49 = vrot.slane %v2119_v41, %v2089_v33  ;;  %v1851_v5 = vld [vmem:[%s2509_s3 + $0x108] ss:$12 sps:$4 sm:$0xff]   ;;  %v2180_v9 = vld [vmem:[%s2510_s0 + $0x38] sm:$0xff] }
  0x11   :  { %1610 = vmatpush3.bf16.msra.mxu1 %v1823_v17  ;;  %v63_v50 = vmul.f32 %v54_v43, %v2106_v38  ;;  %v66_v51 = vmul.f32 %v54_v43, %v2111_v39  ;;  %v62_v52 = vmul.f32 %v50_v46, %v2134_v47  ;;  %v65_v53 = vmul.f32 %v50_v46, %v2139_v48  ;;  %v1844_v55 = vld [vmem:[%s2509_s3 + $0xf4] ss:$12 sps:$4 sm:$0xff]   ;;  %v1852_v7 = vld [vmem:[%s2509_s3 + $0x124] ss:$12 sps:$4 sm:$0xff]   ;;  %v1856_v13 = vld [vmem:[%s2509_s3 + $0x13c] ss:$12 sps:$4 sm:$0xff]  }
  0x12   :  { %1611 = vmatprep.subr.bf16.mxu1 %v1826_v19  ;;  %v1850_v4 = vld [vmem:[%s2509_s3 + $0x1a0] ss:$12 sps:$4 sm:$0xff]   ;;  %v1854_v8 = vld [vmem:[%s2509_s3 + $0x1b8] ss:$12 sps:$4 sm:$0xff]   ;;  %v2185_v10 = vld [vmem:[%s2510_s0 + $0x50] sm:$0xff]  ;;  %v69_v11 = vmul.f32 %v54_v43, %v2180_v9 }
  0x13   :  { %610 = vmatpush1.bf16.msra.mxu0 %v1817_v15  ;;  %v92_v56 = vadd.f32 %v83_v44, %v63_v50  ;;  %v95_v57 = vadd.f32 %v83_v44, %v66_v51  ;;  %v91_v58 = vadd.f32 %v79_v49, %v62_v52  ;;  %v94_v59 = vadd.f32 %v79_v49, %v65_v53  ;;  %v1855_v12 = vld [vmem:[%s2509_s3 + $0x120] ss:$12 sps:$4 sm:$0xff]   ;;  %v2198_v15 = vld [vmem:[%s2510_s0 + $0x30] sm:$0xff]  ;;  %v2248_v52 = vld [vmem:[%s2510_s0 + $0x58] sm:$0xff] }
  0x14   :  { %611 = vmatprep.subr.bf16.mxu0 %v1819_v18  ;;  %v72_v14 = vmul.f32 %v54_v43, %v2185_v10  ;;  %v98_v17 = vadd.f32 %v83_v44, %v69_v11  ;;  %v2204_v18 = vld [vmem:[%s2510_s0 + $0x48] sm:$0xff]  ;;  %v68_v19 = vmul.f32 %v50_v46, %v2198_v15  ;;  %v2243_v51 = vld [vmem:[%s2510_s0 + $0x40] sm:$0xff] }
  0x15   :  { %1612 = vmatpush3.bf16.msra.mxu1 %v1828_v22  ;;  %v104_v60 = vmax.f32 %v92_v56, 0.0  ;;  %v107_v61 = vmax.f32 %v95_v57, 0.0  ;;  %v103_v62 = vmax.f32 %v91_v58, 0.0  ;;  %v106_v0 = vmax.f32 %v94_v59, 0.0  ;;  %v1866_v53 = vld [vmem:[%s2509_s3 + $0x200] ss:$12 sps:$4 sm:$0xff]  }
  0x16   :  { %1613 = vmatprep.subr.bf16.mxu1 %v1831_v24  ;;  %v101_v21 = vadd.f32 %v83_v44, %v72_v14  ;;  %v71_v22 = vmul.f32 %v50_v46, %v2204_v18  ;;  %v1859_v24 = vld [vmem:[%s2509_s3 + $0x138] ss:$12 sps:$4 sm:$0xff]   ;;  %v97_v26 = vadd.f32 %v79_v49, %v68_v19  ;;  %v1863_v44 = vld [vmem:[%s2509_s3 + $0x150] ss:$12 sps:$4 sm:$0xff]   ;;  %v70_v56 = vmul.f32 %v58_v16, %v2243_v51  ;;  %v1879_v14 = vld [vmem:[%s2509_s3 + $0x1c8] ss:$12 sps:$4 sm:$0xff]  }
  0x17   :  { %612 = vmatpush1.bf16.msra.mxu0 %v1822_v20  ;;  %v116_v1 = vpack.c.bf16 %v107_v61, %v104_v60  ;;  %v2159_v3 = vpack.c.bf16 %v106_v0, %v103_v62  ;;  %v1858_v20 = vld [vmem:[%s2509_s3 + $0x1d0] ss:$12 sps:$4 sm:$0xff]   ;;  %v73_v57 = vmul.f32 %v58_v16, %v2248_v52  ;;  %v1871_v59 = vld [vmem:[%s2509_s3 + $0x218] ss:$12 sps:$4 sm:$0xff]   ;;  %v1868_v60 = vld [vmem:[%s2509_s3 + $0x180] ss:$12 sps:$4 sm:$0xff]  }
  0x18   :  { %613 = vmatprep.subr.bf16.mxu0 %v1824_v23  ;;  %v87_v23 = vrot.slane %v2119_v41, %v2169_v6  ;;  %v1870_v58 = vld [vmem:[%s2509_s3 + $0x184] ss:$12 sps:$4 sm:$0xff]   ;;  %v1881_v11 = vld [vmem:[%s2509_s3 + $0x1cc] ss:$12 sps:$4 sm:$0xff]  }
  0x19   :  { %1614 = vmatpush3.bf16.msra.mxu1 %v1833_v27  ;;  %739 = vmatprep.mubr.bf16.mxu1 %v116_v1  ;;  %v2219_v27 = vld [vmem:[%s2510_s0 + $0x10] sm:$0xff]  ;;  %v1904_v19 = vld [vmem:[%s2513_s7 + $0x8] sm:$0xff]  }
  0x1a   :  { %1615 = vmatprep.subr.bf16.mxu1 %v1836_v29  ;;  %633 = vmatprep.mubr.bf16.mxu0 %v116_v1  ;;  %v100_v29 = vadd.f32 %v79_v49, %v71_v22  ;;  %v99_v61 = vadd.f32 %v87_v23, %v70_v56  ;;  %v102_v62 = vadd.f32 %v87_v23, %v73_v57  ;;  %v1875_v0 = vld [vmem:[%s2509_s3 + $0x230] ss:$12 sps:$4 sm:$0xff]   ;;  %v1872_v1 = vld [vmem:[%s2509_s3 + $0x198] ss:$12 sps:$4 sm:$0xff]  }
  0x1b   :  { %614 = vmatpush1.bf16.msra.mxu0 %v1827_v25  ;;  %v110_v25 = vmax.f32 %v98_v17, 0.0  ;;  %v1942_v17 = vmov 0   ;;  %v1887_v22 = vld [vmem:[%s2509_s3 + $0x1fc] ss:$12 sps:$4 sm:$0xff]   ;;  %v1919_v56 = vld [vmem:[%s2513_s7 + $0x30] sm:$0xff]  }
  0x1c   :  { %615 = vmatprep.subr.bf16.mxu0 %v1829_v28  ;;  %v113_v28 = vmax.f32 %v101_v21, 0.0  ;;  %v112_v41 = vmax.f32 %v100_v29, 0.0  ;;  %v1882_v21 = vld [vmem:[%s2509_s3 + $0x1e0] ss:$12 sps:$4 sm:$0xff]   ;;  %v1920_v57 = vld [vmem:[%s2513_s7 + $0x78] sm:$0xff]  }
  0x1d   :  { %1616 = vmatpush3.bf16.msra.mxu1 %v1838_v34  ;;  %v1860_v34 = vld [vmem:[%s2509_s3 + $0x154] ss:$12 sps:$4 sm:$0xff]  }
  0x1e   :  { %1617 = vmatprep.subr.bf16.mxu1 %v1841_v35  ;;  %v109_v35 = vmax.f32 %v97_v26, 0.0  ;;  %v119_v40 = vpack.c.bf16 %v113_v28, %v110_v25  ;;  %v1890_v25 = vld [vmem:[%s2509_s3 + $0x214] ss:$12 sps:$4 sm:$0xff]   ;;  %v1908_v26 = vld [vmem:[%s2513_s7 + $0x58] sm:$0xff]  }
  0x1f   :  { %616 = vmatpush1.bf16.msra.mxu0 %v1832_v30  ;;  %v2224_v30 = vld [vmem:[%s2510_s0 + $0x28] sm:$0xff]  ;;  %v1910_v28 = vld [vmem:[%s2513_s7 + $0x18] sm:$0xff]   ;;  %v1911_v29 = vld [vmem:[%s2513_s7 + $0x60] sm:$0xff]  }
  0x20   :  { %617 = vmatprep.subr.bf16.mxu0 %v1834_v31  ;;  %v64_v31 = vmul.f32 %v58_v16, %v2219_v27  ;;  %v118_v46 = vpack.c.bf16 %v112_v41, %v109_v35  ;;  %v1913_v35 = vld [vmem:[%s2513_s7 + $0x20] sm:$0xff]   ;;  %v1895_v41 = vld [vmem:[%s2513_s7 + $0x88] sm:$0xff]  }
  0x21   :  { %1618 = vmatpush3.bf16.msra.mxu1 %v1843_v37  ;;  %v1862_v37 = vld [vmem:[%s2509_s3 + $0x1e8] ss:$12 sps:$4 sm:$0xff]  }
  0x22   :  { %1717 = vmatprep.subr.bf16.mxu1 %v1846_v45 }
  0x23   :  { %618 = vmatpush1.bf16.msra.mxu0 %v1837_v36  ;;  %v67_v36 = vmul.f32 %v58_v16, %v2224_v30  ;;  %v1884_v16 = vld [vmem:[%s2509_s3 + $0x1e4] ss:$12 sps:$4 sm:$0xff]  }
  0x24   :  { %619 = vmatprep.subr.bf16.mxu0 %v1839_v42  ;;  %740 = vmatmul.mubr.bf16.vlgmr.msra.gmra.mrb[0].mxu1 %v2159_v3  ;;  %v93_v42 = vadd.f32 %v87_v23, %v64_v31  ;;  %v1888_v31 = vld [vmem:[%s2509_s3 + $0x210] ss:$12 sps:$4 sm:$0xff]  }
  0x25   :  { %1718 = vmatpush3.bf16.msra.mxu1 %v1846_v45  ;;  %v96_v43 = vadd.f32 %v87_v23, %v67_v36  ;;  %v1864_v45 = vld [vmem:[%s2509_s3 + $0x16c] ss:$12 sps:$4 sm:$0xff]   ;;  %747 = vmatprep.mubr.bf16.mxu1 %v119_v40 }
  0x26   :  { %1719 = vmatprep.subr.bf16.mxu1 %v1850_v4  ;;  %v105_v49 = vmax.f32 %v93_v42, 0.0  ;;  %v1885_v23 = vld [vmem:[%s2509_s3 + $0x1f8] ss:$12 sps:$4 sm:$0xff]   ;;  %v1914_v36 = vld [vmem:[%s2513_s7 + $0x68] sm:$0xff]   ;;  %v1896_v42 = vld [vmem:[%s2513_s7 + $0x90] sm:$0xff]  }
  0x27   :  { %620 = vmatpush1.bf16.msra.mxu0 %v1842_v54  ;;  %v108_v50 = vmax.f32 %v96_v43, 0.0  ;;  %v931_v43 = vpack.c.bf16 %v2224_v30, %v2219_v27  ;;  %v1903_v27 = vld [vmem:[%s2513_s7 + $0xb0] sm:$0xff]   ;;  %v1906_v30 = vld [vmem:[%s2513_s7 + $0xb8] sm:$0xff]  }
  0x28   :  { %621 = vmatprep.subr.bf16.mxu0 %v1844_v55  ;;  %v1867_v55 = vld [vmem:[%s2509_s3 + $0x168] ss:$12 sps:$4 sm:$0xff]  }
  0x29   :  { %1720 = vmatpush3.bf16.msra.mxu1 %v1850_v4  ;;  %v2253_v54 = vpack.c.bf16 %v108_v50, %v105_v49  ;;  %v114_v4 = vmax.f32 %v102_v62, 0.0  ;;  %v1909_v49 = vld [vmem:[%s2514_s6 + $0x80] sm:$0xff]   ;;  %v934_v50 = vpack.c.bf16 %v2248_v52, %v2243_v51  ;;  %v1915_v51 = vld [vmem:[%s2514_s6 + $0x90] sm:$0xff]   ;;  %v1918_v52 = vld [vmem:[%s2514_s6 + $0x98] sm:$0xff]  }
  0x2a   :  { %1721 = vmatprep.subr.bf16.mxu1 %v1854_v8  ;;  %v1923_v62 = vld [vmem:[%s2514_s6 + $0xa8] sm:$0xff]  }
  0x2b   :  { %622 = vmatpush1.bf16.msra.mxu0 %v1847_v63  ;;  %v1874_v63 = vld [vmem:[%s2509_s3 + $0x19c] ss:$12 sps:$4 sm:$0xff]  }
  0x2c   :  { %623 = vmatprep.subr.bf16.mxu0 %v1848_v2  ;;  %748 = vmatmul.mubr.bf16.gmra.mrb[4].mxu1 %v118_v46  ;;  %v111_v2 = vmax.f32 %v99_v61, 0.0  ;;  %v929_v61 = vpack.c.bf16 %v2139_v48, %v2134_v47  ;;  %v1928_v47 = vld [vmem:[%s2514_s6 + $0x8] sm:$0xff]   ;;  %v1929_v48 = vld [vmem:[%s2514_s6 + $0xb8] sm:$0xff]  }
  0x2d   :  { %1722 = vmatpush3.bf16.msra.mxu1 %v1854_v8  ;;  %1733 = vmatprep.mubr.bf16.mxu1 %v2253_v54 }
  0x2e   :  { %1723 = vmatprep.subr.bf16.mxu1 %v1858_v20  ;;  %v120_v8 = vpack.c.bf16 %v114_v4, %v111_v2  ;;  %v1931_v2 = vld [vmem:[%s2514_s6 + $0x10] sm:$0xff]   ;;  %v1932_v4 = vld [vmem:[%s2514_s6 + $0x58] sm:$0xff]  }
  0x2f   :  { %624 = vmatpush1.bf16.msra.mxu0 %v1851_v5  ;;  %v1878_v5 = vld [vmem:[%s2509_s3 + $0x1b4] ss:$12 sps:$4 sm:$0xff]  }
  0x30   :  { %625 = vmatprep.subr.bf16.mxu0 %v1852_v7  ;;  %v1899_v7 = vld [vmem:[%s2513_s7 + $0x40] sm:$0xff]  }
  0x31   :  { %1724 = vmatpush3.bf16.msra.mxu1 %v1858_v20  ;;  %v1905_v20 = vld [vmem:[%s2513_s7 + $0x50] sm:$0xff]  }
  0x32   :  { %1725 = vmatprep.subr.bf16.mxu1 %v1862_v37 }
  0x33   :  { %626 = vmatpush1.bf16.msra.mxu0 %v1855_v12  ;;  %v1901_v12 = vld [vmem:[%s2513_s7] sm:$0xff]  }
  0x34   :  { %627 = vmatprep.subr.bf16.mxu0 %v1856_v13  ;;  %v1902_v13 = vld [vmem:[%s2513_s7 + $0x48] sm:$0xff]  }
  0x35   :  { %1726 = vmatpush3.bf16.msra.mxu1 %v1862_v37  ;;  %v1891_v37 = vld [vmem:[%s2509_s3 + $0x228] ss:$12 sps:$4 sm:$0xff]  }
  0x36   :  { %1727 = vmatprep.subr.bf16.mxu1 %v1866_v53 }
  0x37   :  { %628 = vmatpush1.bf16.msra.mxu0 %v1859_v24  ;;  %v1907_v24 = vld [vmem:[%s2513_s7 + $0x10] sm:$0xff]  }
  0x38   :  { %629 = vmatprep.subr.bf16.mxu0 %v1860_v34  ;;  %v1893_v34 = vld [vmem:[%s2509_s3 + $0x22c] ss:$12 sps:$4 sm:$0xff]  }
  0x39   :  { %1728 = vmatpush3.bf16.msra.mxu1 %v1866_v53  ;;  %v1916_v53 = vld [vmem:[%s2513_s7 + $0x28] sm:$0xff]  }
  0x3a   :  { %1729 = vmatprep.subr.bf16.mxu1 %v1871_v59 }
  0x3b   :  { %630 = vmatpush1.bf16.msra.mxu0 %v1863_v44  ;;  %v1897_v44 = vld [vmem:[%s2513_s7 + $0x98] sm:$0xff]  }
  0x3c   :  { %631 = vmatprep.subr.bf16.mxu0 %v1864_v45  ;;  %v1898_v45 = vld [vmem:[%s2513_s7 + $0xa0] sm:$0xff]  }
  0x3d   :  { %1730 = vmatpush3.bf16.msra.mxu1 %v1871_v59  ;;  %v1922_v59 = vld [vmem:[%s2513_s7 + $0x38] sm:$0xff]  }
  0x3e   :  { %1731 = vmatprep.subr.bf16.mxu1 %v1875_v0 }
  0x3f   :  { %632 = vmatpush1.bf16.msra.mxu0 %v1867_v55  ;;  %v1917_v55 = vld [vmem:[%s2513_s7 + $0x70] sm:$0xff]  }
  0x40   :  { %654 = vmatprep.subr.bf16.mxu0 %v1870_v58  ;;  %v1921_v58 = vld [vmem:[%s2514_s6 + $0xa0] sm:$0xff]  }
  0x41   :  { %1732 = vmatpush3.bf16.msra.mxu1 %v1875_v0  ;;  %v1925_v0 = vld [vmem:[%s2514_s6] sm:$0xff]  }
  0x42   :  { %634 = vmatmul.mubr.bf16.vlgmr.msra.gmra.mrb[0].mxu0 %v2159_v3  ;;  %v1876_v3 = vld [vmem:[%s2509_s3 + $0x1b0] ss:$12 sps:$4 sm:$0xff]   ;;  %1641 = vmatprep.subr.bf16.mxu1 %v1899_v7  ;;  %v1934_v7 = vld [vmem:[%s2514_s6 + $0x60] sm:$0xff]  }
  0x43   :  { %655 = vmatpush1.bf16.msra.mxu0 %v1868_v60  ;;  %643 = vmatprep.mubr.bf16.mxu0 %v119_v40  ;;  %v1894_v40 = vld [vmem:[%s2513_s7 + $0x80] sm:$0xff]   ;;  %v930_v60 = vpack.c.bf16 %v2111_v39, %v2106_v38  ;;  %v1926_v38 = vld [vmem:[%s2514_s6 + $0xb0] sm:$0xff]   ;;  %v1927_v39 = vld [vmem:[%s2514_s6 + $0x48] sm:$0xff]  }
  0x44   :  { %656 = vmatprep.subr.bf16.mxu0 %v1874_v63  ;;  %1734 = vmatmul.mubr.bf16.vlgmr.msra.gmra.mrb[8].mxu1 %v120_v8  ;;  %v1924_v63 = vld [vmem:[%s2514_s6 + $0x40] sm:$0xff]  }
  0x45   :  { %1642 = vmatpush3.bf16.msra.mxu1 %v1901_v12  ;;  %1159 = vmatprep.mubr.bf16.mxu1 %v930_v60  ;;  %v932_v12 = vpack.c.bf16 %v2204_v18, %v2198_v15  ;;  %v1941_v15 = vld [vmem:[%s2514_s6 + $0x38] sm:$0xff]  }
  0x46   :  { %1643 = vmatprep.subr.bf16.mxu1 %v1902_v13  ;;  %v1937_v13 = vld [vmem:[%s2514_s6 + $0x28] sm:$0xff]  }
  0x47   :  { %657 = vmatpush1.bf16.msra.mxu0 %v1872_v1  ;;  %v1930_v1 = vld [vmem:[%s2514_s6 + $0x50] sm:$0xff]  }
  0x48   :  { %658 = vmatprep.subr.bf16.mxu0 %v1878_v5  ;;  %v1933_v5 = vld [vmem:[%s2514_s6 + $0x18] sm:$0xff]  }
  0x49   :  { %1644 = vmatpush3.bf16.msra.mxu1 %v1904_v19 }
  0x4a   :  { %644 = vmatmul.mubr.bf16.gmra.mrb[4].mxu0 %v118_v46  ;;  %1645 = vmatprep.subr.bf16.mxu1 %v1905_v20  ;;  %v1900_v46 = vld [vmem:[%s2513_s7 + $0xa8] sm:$0xff]  }
  0x4b   :  { %659 = vmatpush1.bf16.msra.mxu0 %v1876_v3  ;;  %686 = vmatprep.mubr.bf16.mxu0 %v1942_v17  ;;  %v1935_v3 = vld [vmem:[%s2514_s6 + $0x20] sm:$0xff]  }
  0x4c   :  { %660 = vmatprep.subr.bf16.mxu0 %v1881_v11  ;;  %v1936_v11 = vld [vmem:[%s2514_s6 + $0x68] sm:$0xff]  }
  0x4d   :  { %1646 = vmatpush3.bf16.msra.mxu1 %v1907_v24 }
  0x4e   :  { %1647 = vmatprep.subr.bf16.mxu1 %v1908_v26 }
  0x4f   :  { %661 = vmatpush1.bf16.msra.mxu0 %v1879_v14  ;;  %v1938_v14 = vld [vmem:[%s2514_s6 + $0x70] sm:$0xff]  }
  0x50   :  { %662 = vmatprep.subr.bf16.mxu0 %v1884_v16 }
  0x51   :  { %1648 = vmatpush3.bf16.msra.mxu1 %v1910_v28 }
  0x52   :  { %1649 = vmatprep.subr.bf16.mxu1 %v1911_v29  ;;  %v805_v29 = vld [vmem:[%s2515_s4] sm:$0x7] }
  0x53   :  { %663 = vmatpush1.bf16.msra.mxu0 %v1882_v21  ;;  %v814_v60 = vrot.slane %v805_v29, %v2086_v32 }
  0x54   :  { %664 = vmatprep.subr.bf16.mxu0 %v1887_v22 }
  0x55   :  { %1650 = vmatpush3.bf16.msra.mxu1 %v1913_v35 }
  0x56   :  { %1651 = vmatprep.subr.bf16.mxu1 %v1914_v36 }
  0x57   :  { %665 = vmatpush1.bf16.msra.mxu0 %v1885_v23 }
  0x58   :  { %666 = vmatprep.subr.bf16.mxu0 %v1890_v25 }
  0x59   :  { %1652 = vmatpush3.bf16.msra.mxu1 %v1916_v53 }
  0x5a   :  { %1653 = vmatprep.subr.bf16.mxu1 %v1917_v55 }
  0x5b   :  { %667 = vmatpush1.bf16.msra.mxu0 %v1888_v31  ;;  %v834_v31 = vld [vmem:[%s2516_s5] sm:$0x7] }
  0x5c   :  { %668 = vmatprep.subr.bf16.mxu0 %v1893_v34  ;;  %v818_v34 = vrot.slane %v805_v29, %v2169_v6 }
  0x5d   :  { %1654 = vmatpush3.bf16.msra.mxu1 %v1919_v56 }
  0x5e   :  { %1655 = vmatprep.subr.bf16.mxu1 %v1920_v57 }
  0x5f   :  { %669 = vmatpush1.bf16.msra.mxu0 %v1891_v37  ;;  %v847_v37 = vrot.slane %v834_v31, %v2169_v6 }
  0x60   :  { %1737 = vmatprep.subr.bf16.mxu0 %v1894_v40 }
  0x61   :  { %1656 = vmatpush3.bf16.msra.mxu1 %v1922_v59  ;;  %v810_v59 = vrot.slane %v805_v29, %v2089_v33 }
  0x62   :  { %687 = vmatmul.mubr.bf16.vlgmr.msra.gmra.mrb[0].mxu0 %v2253_v54  ;;  %v1912_v54 = vld [vmem:[%s2514_s6 + $0x88] sm:$0xff]   ;;  %1679 = vmatprep.subr.bf16.mxu1 %v1924_v63  ;;  %v843_v63 = vrot.slane %v834_v31, %v2086_v32 }
  0x63   :  { %696 = vmatprep.mubr.bf16.mxu0 %v1942_v17  ;;  %1738 = vmatpush3.bf16.msra.mxu0 %v1894_v40 }
  0x64   :  { %1739 = vmatprep.subr.bf16.mxu0 %v1895_v41  ;;  %1160 = vmatmul.mubr.bf16.vlgmr.msra.gmra.mrb[12].mxu1 %v929_v61  ;;  %v839_v61 = vrot.slane %v834_v31, %v2089_v33 }
  0x65   :  { %1680 = vmatpush3.bf16.msra.mxu1 %v1925_v0 }
  0x66   :  { %1681 = vmatprep.subr.bf16.mxu1 %v1927_v39 }
  0x67   :  { %1740 = vmatpush3.bf16.msra.mxu0 %v1895_v41 }
  0x68   :  { %1741 = vmatprep.subr.bf16.mxu0 %v1896_v42 }
  0x69   :  { %1682 = vmatpush3.bf16.msra.mxu1 %v1928_v47 }
  0x6a   :  { %697 = vmatmul.mubr.bf16.gmra.mrb[4].mxu0 %v120_v8  ;;  %1683 = vmatprep.subr.bf16.mxu1 %v1930_v1  ;;  %v933_v8 = vpack.c.bf16 %v2185_v10, %v2180_v9  ;;  %v1939_v9 = vld [vmem:[%s2514_s6 + $0x30] sm:$0xff]   ;;  %v1940_v10 = vld [vmem:[%s2514_s6 + $0x78] sm:$0xff]  }
  0x6b   :  { %1742 = vmatpush3.bf16.msra.mxu0 %v1896_v42  ;;  %1753 = vmatprep.mubr.bf16.mxu0 %v931_v43 }
  0x6c   :  { %1743 = vmatprep.subr.bf16.mxu0 %v1897_v44  ;;  %1167 = vmatprep.mubr.bf16.mxu1 %v933_v8 }
  0x6d   :  { %1684 = vmatpush3.bf16.msra.mxu1 %v1931_v2 }
  0x6e   :  { %1685 = vmatprep.subr.bf16.mxu1 %v1932_v4  ;;  %1168 = vmatmul.mubr.bf16.gmra.mrb[16].mxu1 %v932_v12 }
  0x6f   :  { %1744 = vmatpush3.bf16.msra.mxu0 %v1897_v44 }
  0x70   :  { %1745 = vmatprep.subr.bf16.mxu0 %v1898_v45 }
  0x71   :  { %1686 = vmatpush3.bf16.msra.mxu1 %v1933_v5 }
  0x72   :  { %1687 = vmatprep.subr.bf16.mxu1 %v1934_v7 }
  0x73   :  { %1746 = vmatpush3.bf16.msra.mxu0 %v1898_v45 }
  0x74   :  { %1747 = vmatprep.subr.bf16.mxu0 %v1900_v46 }
  0x75   :  { %1688 = vmatpush3.bf16.msra.mxu1 %v1935_v3 }
  0x76   :  { %1689 = vmatprep.subr.bf16.mxu1 %v1936_v11 }
  0x77   :  { %1748 = vmatpush3.bf16.msra.mxu0 %v1900_v46 }
  0x78   :  { %1749 = vmatprep.subr.bf16.mxu0 %v1903_v27 }
  0x79   :  { %1690 = vmatpush3.bf16.msra.mxu1 %v1937_v13 }
  0x7a   :  { %1691 = vmatprep.subr.bf16.mxu1 %v1938_v14 }
  0x7b   :  { %1750 = vmatpush3.bf16.msra.mxu0 %v1903_v27 }
  0x7c   :  { %1751 = vmatprep.subr.bf16.mxu0 %v1906_v30 }
  0x7d   :  { %1692 = vmatpush3.bf16.msra.mxu1 %v1939_v9 }
  0x7e   :  { %1693 = vmatprep.subr.bf16.mxu1 %v1940_v10 }
  0x7f   :  { %1752 = vmatpush3.bf16.msra.mxu0 %v1906_v30 }
  0x80   :  { %1757 = vmatprep.subr.bf16.mxu0 %v1909_v49 }
  0x81   :  { %1694 = vmatpush3.bf16.msra.mxu1 %v1941_v15 }
  0x82   :  { %1754 = vmatmul.mubr.bf16.vlgmr.msra.gmra.mrb[8].mxu0 %v934_v50 }
  0x83   :  { %1758 = vmatpush3.bf16.msra.mxu0 %v1909_v49 }
  0x84   :  { %1759 = vmatprep.subr.bf16.mxu0 %v1912_v54 }
  0x87   :  { %1760 = vmatpush3.bf16.msra.mxu0 %v1912_v54 }
  0x88   :  { %1761 = vmatprep.subr.bf16.mxu0 %v1915_v51 }
  0x8b   :  { %1762 = vmatpush3.bf16.msra.mxu0 %v1915_v51 }
  0x8c   :  { %1763 = vmatprep.subr.bf16.mxu0 %v1918_v52 }
  0x8f   :  { %1764 = vmatpush3.bf16.msra.mxu0 %v1918_v52 }
  0x90   :  { %1765 = vmatprep.subr.bf16.mxu0 %v1921_v58 }
  0x93   :  { %1766 = vmatpush3.bf16.msra.mxu0 %v1921_v58 }
  0x94   :  { %1767 = vmatprep.subr.bf16.mxu0 %v1923_v62 }
  0x97   :  { %1768 = vmatpush3.bf16.msra.mxu0 %v1923_v62 }
  0x98   :  { %1769 = vmatprep.subr.bf16.mxu0 %v1926_v38 }
  0x9b   :  { %1770 = vmatpush3.bf16.msra.mxu0 %v1926_v38 }
  0x9c   :  { %1771 = vmatprep.subr.bf16.mxu0 %v1929_v48 }
  0x9f   :  { %1772 = vmatpush3.bf16.msra.mxu0 %v1929_v48 }
  0xf7   :  { %v1619_v18 = vpop.f32.mrb[0].mxu1 }
  0xf8   :  { %v1620_v16 = vpop.f32.mrb[1].mxu1 }
  0xf9   :  { %v1621_v17 = vadd.f32 %v1620_v16, %v1619_v18  ;;  %v1622_v19 = vpop.f32.mrb[2].mxu1 }
  0xfa   :  { %v1623_v20 = vpop.f32.mrb[3].mxu1 }
  0xfb   :  { %v1624_v21 = vadd.f32 %v1623_v20, %v1622_v19 }
  0xff   :  { %v1625_v22 = vpop.f32.mrb[4].mxu1 }
 0x100   :  { %v1626_v23 = vpop.f32.mrb[5].mxu1 }
 0x101   :  { %v1627_v24 = vadd.f32 %v1626_v23, %v1625_v22  ;;  %v1628_v25 = vpop.f32.mrb[6].mxu1 }
 0x102   :  { %v1629_v26 = vpop.f32.mrb[7].mxu1 }
 0x103   :  { %v1630_v28 = vadd.f32 %v1629_v26, %v1628_v25 }
 0x117   :  { %v1735_v35 = vpop.f32.mrb[8].mxu1 }
 0x118   :  { %v799_v36 = vadd.f32 %v1735_v35, %v1627_v24  ;;  %v790_v40 = vpop.f32.mrb[9].mxu1 }
 0x119   :  { %v791_v41 = vadd.f32 %v1621_v17, %v790_v40  ;;  %v1736_v42 = vpop.f32.mrb[10].mxu1 }
 0x11a   :  { %v830_v43 = vmul.f32 %v818_v34, %v799_v36  ;;  %v802_v44 = vadd.f32 %v1736_v42, %v1630_v28  ;;  %v793_v45 = vpop.f32.mrb[11].mxu1 }
 0x11b   :  { %v824_v46 = vmul.f32 %v818_v34, %v791_v41  ;;  %v794_v27 = vadd.f32 %v1624_v21, %v793_v45 }
 0x11c   :  { %v859_v30 = vadd.f32 %v847_v37, %v830_v43  ;;  %v833_v49 = vmul.f32 %v818_v34, %v802_v44 }
 0x11d   :  { %v853_v50 = vadd.f32 %v847_v37, %v824_v46  ;;  %v827_v53 = vmul.f32 %v818_v34, %v794_v27 }
 0x11e   :  { %v871_v54 = vmax.f32 %v859_v30, 0.0  ;;  %v862_v55 = vadd.f32 %v847_v37, %v833_v49 }
 0x11f   :  { %v865_v51 = vmax.f32 %v853_v50, 0.0  ;;  %v856_v52 = vadd.f32 %v847_v37, %v827_v53 }
 0x120   :  { %v874_v56 = vmax.f32 %v862_v55, 0.0 }
 0x121   :  { %v868_v57 = vmax.f32 %v856_v52, 0.0 }
 0x122   :  { %v880_v58 = vpack.c.bf16 %v874_v56, %v871_v54 }
 0x123   :  { %v877_v6 = vpack.c.bf16 %v868_v57, %v865_v51 }
 0x125   :  { %1773 = vmatprep.mubr.bf16.mxu0 %v877_v6  ;;  %v1467_v6 = vld [vmem:[%s2517_s8] sm:$0xff] }
 0x126   :  { %1774 = vmatmul.mubr.bf16.vlgmr.msra.gmra.mrb[8].mxu0 %v880_v58 }
 0x135   :  { %v688_v62 = vpop.f32.mrb[0].mxu0 }
 0x136   :  { %v822_v0 = vmul.f32 %v810_v59, %v688_v62  ;;  %v690_v38 = vpop.f32.mrb[1].mxu0 }
 0x137   :  { %v823_v39 = vmul.f32 %v814_v60, %v690_v38  ;;  %v692_v47 = vpop.f32.mrb[2].mxu0  ;;  %v1657_v34 = vpop.f32.mrb[12].mxu1 }
 0x138   :  { %v851_v48 = vadd.f32 %v839_v61, %v822_v0  ;;  %v825_v1 = vmul.f32 %v810_v59, %v692_v47  ;;  %v694_v2 = vpop.f32.mrb[3].mxu0  ;;  %v1658_v35 = vpop.f32.mrb[13].mxu1 }
 0x139   :  { %v852_v4 = vadd.f32 %v843_v63, %v823_v39  ;;  %v826_v5 = vmul.f32 %v814_v60, %v694_v2  ;;  %v1659_v36 = vadd.f32 %v1658_v35, %v1657_v34  ;;  %v1660_v37 = vpop.f32.mrb[14].mxu1 }
 0x13a   :  { %v854_v7 = vadd.f32 %v839_v61, %v825_v1  ;;  %v863_v8 = vmax.f32 %v851_v48, 0.0  ;;  %v1661_v40 = vpop.f32.mrb[15].mxu1 }
 0x13b   :  { %v855_v3 = vadd.f32 %v843_v63, %v826_v5  ;;  %v864_v12 = vmax.f32 %v852_v4, 0.0  ;;  %v1662_v41 = vadd.f32 %v1661_v40, %v1660_v37  ;;  %v1469_v5 = vld [vmem:[%s2517_s8 + $0x10] sm:$0xff] }
 0x13c   :  { %v866_v11 = vmax.f32 %v854_v7, 0.0 }
 0x13d   :  { %v867_v13 = vmax.f32 %v855_v3, 0.0  ;;  %v698_v14 = vpop.f32.mrb[4].mxu0 }
 0x13e   :  { %v875_v33 = vpack.c.bf16 %v866_v11, %v863_v8  ;;  %v828_v9 = vmul.f32 %v810_v59, %v698_v14  ;;  %v700_v10 = vpop.f32.mrb[5].mxu0  ;;  %v1470_v8 = vld [vmem:[%s2517_s8 + $0x18] sm:$0xff] }
 0x13f   :  { %v829_v32 = vmul.f32 %v814_v60, %v700_v10  ;;  %v702_v15 = vpop.f32.mrb[6].mxu0  ;;  %v876_v18 = vpack.c.bf16 %v867_v13, %v864_v12 }
 0x140   :  { %v857_v16 = vadd.f32 %v839_v61, %v828_v9  ;;  %v831_v17 = vmul.f32 %v810_v59, %v702_v15  ;;  %v704_v19 = vpop.f32.mrb[7].mxu0 }
 0x141   :  { %v858_v20 = vadd.f32 %v843_v63, %v829_v32  ;;  %v832_v21 = vmul.f32 %v814_v60, %v704_v19  ;;  %1401 = vmatprep.mubr.bf16.mxu1 %v876_v18  ;;  %v1663_v42 = vpop.f32.mrb[16].mxu1 }
 0x142   :  { %v860_v22 = vadd.f32 %v839_v61, %v831_v17  ;;  %1402 = vmatmul.mubr.bf16.vlgmr.msra.gmra.mrb[20].mxu1 %v875_v33  ;;  %v869_v24 = vmax.f32 %v857_v16, 0.0  ;;  %v1664_v43 = vpop.f32.mrb[17].mxu1  ;;  %v1468_v61 = vld [vmem:[%s2517_s8 + $0x8] sm:$0xff] }
 0x143   :  { %v861_v23 = vadd.f32 %v843_v63, %v832_v21  ;;  %v870_v26 = vmax.f32 %v858_v20, 0.0  ;;  %v1665_v44 = vadd.f32 %v1664_v43, %v1663_v42  ;;  %v1666_v45 = vpop.f32.mrb[18].mxu1 }
 0x144   :  { %v872_v25 = vmax.f32 %v860_v22, 0.0  ;;  %v1667_v46 = vpop.f32.mrb[19].mxu1 }
 0x145   :  { %v873_v28 = vmax.f32 %v861_v23, 0.0  ;;  %v1668_v27 = vadd.f32 %v1667_v46, %v1666_v45 }
 0x146   :  { %v878_v29 = vpack.c.bf16 %v872_v25, %v869_v24 }
 0x147   :  { %v879_v31 = vpack.c.bf16 %v873_v28, %v870_v26 }
 0x149   :  { %1409 = vmatprep.mubr.bf16.mxu1 %v879_v31 }
 0x14a   :  { %1410 = vmatmul.mubr.bf16.gmra.mrb[24].mxu1 %v878_v29 }
 0x1f9   :  { %v1775_v30 = vpop.f32.mrb[8].mxu0 }
 0x1fa   :  { %v1452_v49 = vpop.f32.mrb[9].mxu0 }
 0x1fb   :  { %v1776_v50 = vpop.f32.mrb[10].mxu0 }
 0x1fc   :  { %v1455_v53 = vpop.f32.mrb[11].mxu0 }
 0x215   :  { %v1695_v54 = vpop.f32.mrb[20].mxu1 }
 0x216   :  { %v1696_v55 = vpop.f32.mrb[21].mxu1 }
 0x217   :  { %v1697_v51 = vadd.f32 %v1696_v55, %v1695_v54  ;;  %v1698_v52 = vpop.f32.mrb[22].mxu1 }
 0x218   :  { %v1699_v56 = vpop.f32.mrb[23].mxu1 }
 0x219   :  { %v1779_v57 = vadd.f32 %v1697_v51, %v1659_v36  ;;  %v1700_v58 = vadd.f32 %v1699_v56, %v1698_v52 }
 0x21b   :  { %v1780_v59 = vadd.f32 %v1779_v57, %v1452_v49  ;;  %v1783_v60 = vadd.f32 %v1700_v58, %v1662_v41 }
 0x21d   :  { %v1471_v62 = vadd.f32 %v1780_v59, %v1467_v6  ;;  %v1784_v63 = vadd.f32 %v1783_v60, %v1455_v53  ;;  %v1701_v0 = vpop.f32.mrb[24].mxu1 }
 0x21e   :  { %v1702_v38 = vpop.f32.mrb[25].mxu1 }
 0x21f   :  { %1475 = vst [vmem:[%s2518_s9] sm:$0xff] %v1471_v62  ;;  %v1472_v39 = vadd.f32 %v1784_v63, %v1468_v61  ;;  %v1703_v47 = vadd.f32 %v1702_v38, %v1701_v0  ;;  %v1704_v48 = vpop.f32.mrb[26].mxu1 }
 0x220   :  { %v1705_v1 = vpop.f32.mrb[27].mxu1 }
 0x221   :  { %1476 = vst [vmem:[%s2518_s9 + $0x8] sm:$0xff] %v1472_v39  ;;  %v1777_v2 = vadd.f32 %v1703_v47, %v1665_v44  ;;  %v1706_v4 = vadd.f32 %v1705_v1, %v1704_v48 }
 0x223   :  { %v1778_v7 = vadd.f32 %v1777_v2, %v1775_v30  ;;  %v1781_v3 = vadd.f32 %v1706_v4, %v1668_v27 }
 0x225   :  { %v1473_v11 = vadd.f32 %v1778_v7, %v1469_v5  ;;  %v1782_v12 = vadd.f32 %v1781_v3, %v1776_v50 }
 0x227   :  { %1477 = vst [vmem:[%s2518_s9 + $0x10] sm:$0xff] %v1473_v11  ;;  %v1474_v13 = vadd.f32 %v1782_v12, %v1470_v8 }
 0x229   :  { %1478 = vst [vmem:[%s2518_s9 + $0x18] sm:$0xff] %v1474_v13 }

// kernel: tile.153
= control target key start
LH: loop header
LB: loop body
LE: loop exit
PB: predicated region body
PF: predicated region fallthrough
CT: control target
= control target key end

     0   :  { %s28_s0 = inlined_call_operand.vmem [shape: f32[32], index: 0, kind: input, shape index: {}]   ;;  %s29_s1 = inlined_call_operand.vmem [shape: f32[16,32], index: 1, kind: output, shape index: {}]  }
   0x1   :  { %v4_v0 = vld [vmem:[%s28_s0] ss:$0 sm:$0xff] }
   0x2   :  { %5 = vst [vmem:[%s29_s1] sm:$0xff] %v4_v0  ;;  %8 = vst [vmem:[%s29_s1 + $0x8] sm:$0xff] %v4_v0 }

// kernel: tile.154
= control target key start
LH: loop header
LB: loop body
LE: loop exit
PB: predicated region body
PF: predicated region fallthrough
CT: control target
= control target key end

     0   :  { %s57_s8 = smov 96   ;;  %vm3_vm0 = vcmask 261120   ;;  %s59_s15 = smov 64   ;;  %vm9_vm1 = vcmask 1048320   ;;  %vm15_vm2 = vcmask 785920   ;;  %vm21_vm3 = vcmask 523520   ;;  %s94_s0 = inlined_call_operand.vmem [shape: f32[16,32], index: 0, kind: input, shape index: {}]   ;;  %s95_s1 = inlined_call_operand.vmem [shape: f32[1,512], index: 1, kind: output, shape index: {}]  }
   0x1   :  { %v48_v0 = vld [vmem:[%s94_s0 + $0x3] ss:$4 sm:$0xf]   ;;  %v49_v1 = vld [vmem:[%s94_s0 + $0x2] ss:$4 sm:$0xf]  }
   0x2   :  { %7 = vrot.lane.b32.xlu0 %v48_v0, %s57_s8  ;;  %v50_v2 = vld [vmem:[%s94_s0 + $0x1] ss:$4 sm:$0xf]   ;;  %v2_v3 = vld [vmem:[%s94_s0] ss:$4 sm:$0xf]  }
   0x3   :  { %s58_s0 = smov 32   ;;  %4 = vst.msk [vmem:[#allocation0] ss:$8 sm:$0xf] %vm3_vm0, %v2_v3  }
   0x4   :  { %19 = vrot.lane.b32.xlu1 %v50_v2, %s58_s0 }
   0x6   :  { %13 = vrot.lane.b32.xlu0 %v49_v1, %s59_s15 }
  0x74   :  { %v8_v4 = vpop.permute.xlu0 %7  }
  0x75   :  { %10 = vst.msk [vmem:[#allocation0] ss:$8 sm:$0xf] %vm9_vm1, %v8_v4  }
  0x76   :  { %v20_v5 = vpop.permute.xlu1 %19  }
  0x78   :  { %v14_v6 = vpop.permute.xlu0 %13  }
  0x79   :  { %16 = vst.msk [vmem:[#allocation0] ss:$8 sm:$0xf] %vm15_vm2, %v14_v6  }
  0x7a   :  { %22 = vst.msk [vmem:[#allocation0] ss:$8 sm:$0xf] %vm21_vm3, %v20_v5  }
  0x81   :  { %v26_v7 = vld [vmem:[#allocation0] sm:$0x1]  ;;  %v30_v8 = vld [vmem:[#allocation0 + $0x8] sm:$0x1]  ;;  %v35_v9 = vld [vmem:[#allocation0 + $0x10] sm:$0x1] }
  0x82   :  { %28 = vst [vmem:[%s95_s1] sm:$0x1] %v26_v7  ;;  %51 = vst [vmem:[%s95_s1 + $0x1] sm:$0x1] %v30_v8  ;;  %v41_v10 = vld [vmem:[#allocation0 + $0x18] sm:$0x1] }
  0x83   :  { %52 = vst [vmem:[%s95_s1 + $0x2] sm:$0x1] %v35_v9  ;;  %53 = vst [vmem:[%s95_s1 + $0x3] sm:$0x1] %v41_v10 }

// kernel: feature_extractor_img.9
= control target key start
LH: loop header
LB: loop body
LE: loop exit
PB: predicated region body
PF: predicated region fallthrough
CT: control target
= control target key end

     0   :  { %v39_v37 = vlaneseq  ;;  %s3037_s3 = inlined_call_operand.vmem [shape: bf16[512,512], index: 3, kind: input, shape index: {}]   ;;  %s3038_s0 = inlined_call_operand.vmem [shape: f32[8,512], index: 0, kind: input, shape index: {}]   ;;  %s3039_s1 = inlined_call_operand.vmem [shape: f32[1,512], index: 1, kind: input, shape index: {}]   ;;  %s3040_s2 = inlined_call_operand.vmem [shape: f32[1,512], index: 2, kind: input, shape index: {}]   ;;  %s3041_s7 = inlined_call_operand.vmem [shape: bf16[512,128], index: 7, kind: input, shape index: {}]   ;;  %s3042_s6 = inlined_call_operand.vmem [shape: bf16[512,128], index: 6, kind: input, shape index: {}]   ;;  %s3043_s4 = inlined_call_operand.vmem [shape: f32[1,512], index: 4, kind: input, shape index: {}]   ;;  %s3044_s5 = inlined_call_operand.vmem [shape: f32[1,512], index: 5, kind: input, shape index: {}]   ;;  %s3045_s8 = inlined_call_operand.vmem [shape: f32[8,128], index: 8, kind: input, shape index: {}]   ;;  %s3046_s9 = inlined_call_operand.vmem [shape: f32[8,128], index: 9, kind: output, shape index: {}]  }
   0x1   :  { %v2060_v0 = vld [vmem:[%s3037_s3 + $0x4] ss:$16 sps:$4 sm:$0xff]   ;;  %v2062_v1 = vld [vmem:[%s3037_s3 + $0xc] ss:$16 sps:$4 sm:$0xff]   ;;  %v2064_v2 = vld [vmem:[%s3037_s3] ss:$16 sps:$4 sm:$0xff]  }
   0x2   :  { %865 = vmatprep.subr.bf16.mxu0 %v2060_v0  ;;  %v2065_v3 = vld [vmem:[%s3037_s3 + $0x8] ss:$16 sps:$4 sm:$0xff]   ;;  %947 = vmatprep.subr.bf16.mxu1 %v2062_v1  ;;  %v2066_v4 = vld [vmem:[%s3037_s3 + $0x24] ss:$16 sps:$4 sm:$0xff]   ;;  %v2068_v5 = vld [vmem:[%s3037_s3 + $0x2c] ss:$16 sps:$4 sm:$0xff]  }
   0x3   :  { %866 = vmatpush1.bf16.msra.mxu0 %v2064_v2  ;;  %948 = vmatpush1.bf16.msra.mxu1 %v2065_v3  ;;  %v2070_v6 = vld [vmem:[%s3037_s3 + $0x20] ss:$16 sps:$4 sm:$0xff]   ;;  %v2071_v7 = vld [vmem:[%s3037_s3 + $0x28] ss:$16 sps:$4 sm:$0xff]   ;;  %v2072_v8 = vld [vmem:[%s3037_s3 + $0x44] ss:$16 sps:$4 sm:$0xff]  }
   0x4   :  { %867 = vmatprep.subr.bf16.mxu0 %v2066_v4  ;;  %949 = vmatprep.subr.bf16.mxu1 %v2068_v5  ;;  %v2074_v9 = vld [vmem:[%s3037_s3 + $0x4c] ss:$16 sps:$4 sm:$0xff]   ;;  %v2076_v10 = vld [vmem:[%s3037_s3 + $0x40] ss:$16 sps:$4 sm:$0xff]   ;;  %v2077_v11 = vld [vmem:[%s3037_s3 + $0x48] ss:$16 sps:$4 sm:$0xff]  }
   0x5   :  { %v2078_v12 = vld [vmem:[%s3037_s3 + $0x64] ss:$16 sps:$4 sm:$0xff]   ;;  %v2080_v13 = vld [vmem:[%s3037_s3 + $0x6c] ss:$16 sps:$4 sm:$0xff]   ;;  %v2082_v14 = vld [vmem:[%s3037_s3 + $0x60] ss:$16 sps:$4 sm:$0xff]  }
   0x6   :  { %v2083_v15 = vld [vmem:[%s3037_s3 + $0x68] ss:$16 sps:$4 sm:$0xff]   ;;  %v2084_v16 = vld [vmem:[%s3037_s3 + $0x84] ss:$16 sps:$4 sm:$0xff]   ;;  %v2086_v17 = vld [vmem:[%s3037_s3 + $0x8c] ss:$16 sps:$4 sm:$0xff]  }
   0x7   :  { %868 = vmatpush1.bf16.msra.mxu0 %v2070_v6  ;;  %950 = vmatpush1.bf16.msra.mxu1 %v2071_v7  ;;  %v2088_v18 = vld [vmem:[%s3037_s3 + $0x80] ss:$16 sps:$4 sm:$0xff]   ;;  %v2089_v19 = vld [vmem:[%s3037_s3 + $0x88] ss:$16 sps:$4 sm:$0xff]   ;;  %v2090_v20 = vld [vmem:[%s3037_s3 + $0xa4] ss:$16 sps:$4 sm:$0xff]  }
   0x8   :  { %869 = vmatprep.subr.bf16.mxu0 %v2072_v8  ;;  %951 = vmatprep.subr.bf16.mxu1 %v2074_v9  ;;  %v2092_v21 = vld [vmem:[%s3037_s3 + $0xac] ss:$16 sps:$4 sm:$0xff]   ;;  %v2094_v22 = vld [vmem:[%s3037_s3 + $0xa0] ss:$16 sps:$4 sm:$0xff]   ;;  %v2095_v23 = vld [vmem:[%s3037_s3 + $0xa8] ss:$16 sps:$4 sm:$0xff]  }
   0x9   :  { %v2096_v24 = vld [vmem:[%s3037_s3 + $0xc4] ss:$16 sps:$4 sm:$0xff]   ;;  %v2098_v25 = vld [vmem:[%s3037_s3 + $0xcc] ss:$16 sps:$4 sm:$0xff]   ;;  %v2100_v26 = vld [vmem:[%s3037_s3 + $0xc0] ss:$16 sps:$4 sm:$0xff]  }
   0xa   :  { %v2101_v27 = vld [vmem:[%s3037_s3 + $0xc8] ss:$16 sps:$4 sm:$0xff]   ;;  %v2102_v28 = vld [vmem:[%s3037_s3 + $0xe4] ss:$16 sps:$4 sm:$0xff]   ;;  %v2104_v29 = vld [vmem:[%s3037_s3 + $0xec] ss:$16 sps:$4 sm:$0xff]  }
   0xb   :  { %870 = vmatpush1.bf16.msra.mxu0 %v2076_v10  ;;  %952 = vmatpush1.bf16.msra.mxu1 %v2077_v11  ;;  %v2106_v30 = vld [vmem:[%s3037_s3 + $0xe0] ss:$16 sps:$4 sm:$0xff]   ;;  %v2107_v31 = vld [vmem:[%s3037_s3 + $0xe8] ss:$16 sps:$4 sm:$0xff]   ;;  %v2108_v32 = vld [vmem:[%s3037_s3 + $0x104] ss:$16 sps:$4 sm:$0xff]  }
   0xc   :  { %871 = vmatprep.subr.bf16.mxu0 %v2078_v12  ;;  %953 = vmatprep.subr.bf16.mxu1 %v2080_v13  ;;  %v2110_v33 = vld [vmem:[%s3037_s3 + $0x10c] ss:$16 sps:$4 sm:$0xff]   ;;  %v2112_v34 = vld [vmem:[%s3037_s3 + $0x100] ss:$16 sps:$4 sm:$0xff]   ;;  %v2113_v35 = vld [vmem:[%s3037_s3 + $0x108] ss:$16 sps:$4 sm:$0xff]  }
   0xd   :  { %v2114_v36 = vld [vmem:[%s3037_s3 + $0x124] ss:$16 sps:$4 sm:$0xff]   ;;  %v2116_v38 = vld [vmem:[%s3037_s3 + $0x12c] ss:$16 sps:$4 sm:$0xff]   ;;  %v2118_v39 = vld [vmem:[%s3037_s3 + $0x120] ss:$16 sps:$4 sm:$0xff]  }
   0xe   :  { %v2119_v40 = vld [vmem:[%s3037_s3 + $0x128] ss:$16 sps:$4 sm:$0xff]   ;;  %v2120_v41 = vld [vmem:[%s3037_s3 + $0x144] ss:$16 sps:$4 sm:$0xff]   ;;  %v2489_v42 = vshrl.u32 %v39_v37, 7 }
   0xf   :  { %872 = vmatpush1.bf16.msra.mxu0 %v2082_v14  ;;  %954 = vmatpush1.bf16.msra.mxu1 %v2083_v15  ;;  %v2122_v43 = vld [vmem:[%s3037_s3 + $0x14c] ss:$16 sps:$4 sm:$0xff]   ;;  %v2124_v44 = vld [vmem:[%s3037_s3 + $0x140] ss:$16 sps:$4 sm:$0xff]   ;;  %v2125_v45 = vld [vmem:[%s3037_s3 + $0x148] ss:$16 sps:$4 sm:$0xff]  }
  0x10   :  { %873 = vmatprep.subr.bf16.mxu0 %v2084_v16  ;;  %955 = vmatprep.subr.bf16.mxu1 %v2086_v17  ;;  %v2126_v46 = vld [vmem:[%s3037_s3 + $0x164] ss:$16 sps:$4 sm:$0xff]   ;;  %v2504_v47 = vsub.s32 1, %v2489_v42  ;;  %v2128_v48 = vld [vmem:[%s3037_s3 + $0x16c] ss:$16 sps:$4 sm:$0xff]   ;;  %v2528_v53 = vsub.s32 0, %v2489_v42 }
  0x11   :  { %v2130_v49 = vld [vmem:[%s3037_s3 + $0x160] ss:$16 sps:$4 sm:$0xff]   ;;  %v2515_v50 = vld [vmem:[%s3038_s0 + $0x8] sm:$0xff]  ;;  %v2132_v55 = vld [vmem:[%s3037_s3 + $0x184] ss:$16 sps:$4 sm:$0xff]  }
  0x12   :  { %v2520_v51 = vld [vmem:[%s3039_s1] sm:$0xf]  ;;  %v2131_v54 = vld [vmem:[%s3037_s3 + $0x168] ss:$16 sps:$4 sm:$0xff]   ;;  %v2134_v58 = vld [vmem:[%s3037_s3 + $0x18c] ss:$16 sps:$4 sm:$0xff]  }
  0x13   :  { %874 = vmatpush1.bf16.msra.mxu0 %v2088_v18  ;;  %956 = vmatpush1.bf16.msra.mxu1 %v2089_v19  ;;  %v2525_v52 = vld [vmem:[%s3040_s2] sm:$0xf]  ;;  %v46_v56 = vrot.slane %v2520_v51, %v2504_v47  ;;  %v2137_v61 = vld [vmem:[%s3037_s3 + $0x188] ss:$16 sps:$4 sm:$0xff]   ;;  %v2138_v62 = vld [vmem:[%s3037_s3 + $0x1a4] ss:$16 sps:$4 sm:$0xff]   ;;  %v42_v63 = vrot.slane %v2520_v51, %v2528_v53 }
  0x14   :  { %875 = vmatprep.subr.bf16.mxu0 %v2090_v20  ;;  %957 = vmatprep.subr.bf16.mxu1 %v2092_v21  ;;  %v72_v57 = vrot.slane %v2525_v52, %v2504_v47  ;;  %v2136_v59 = vld [vmem:[%s3037_s3 + $0x180] ss:$16 sps:$4 sm:$0xff]   ;;  %v2140_v2 = vld [vmem:[%s3037_s3 + $0x1ac] ss:$16 sps:$4 sm:$0xff]   ;;  %v2143_v5 = vld [vmem:[%s3037_s3 + $0x1a8] ss:$16 sps:$4 sm:$0xff]   ;;  %v68_v7 = vrot.slane %v2525_v52, %v2528_v53 }
  0x15   :  { %v60_v60 = vmul.f32 %v46_v56, %v2515_v50  ;;  %v2558_v1 = vld [vmem:[%s3038_s0] sm:$0xff]  ;;  %v2146_v10 = vld [vmem:[%s3037_s3 + $0x1cc] ss:$16 sps:$4 sm:$0xff]   ;;  %v2149_v12 = vld [vmem:[%s3037_s3 + $0x1c8] ss:$16 sps:$4 sm:$0xff]  }
  0x16   :  { %v2142_v4 = vld [vmem:[%s3037_s3 + $0x1a0] ss:$16 sps:$4 sm:$0xff]   ;;  %v59_v6 = vmul.f32 %v42_v63, %v2558_v1  ;;  %v2144_v8 = vld [vmem:[%s3037_s3 + $0x1c4] ss:$16 sps:$4 sm:$0xff]   ;;  %v2152_v15 = vld [vmem:[%s3037_s3 + $0x1ec] ss:$16 sps:$4 sm:$0xff]  }
  0x17   :  { %876 = vmatpush1.bf16.msra.mxu0 %v2094_v22  ;;  %958 = vmatpush1.bf16.msra.mxu1 %v2095_v23  ;;  %v86_v0 = vadd.f32 %v72_v57, %v60_v60  ;;  %v2148_v11 = vld [vmem:[%s3037_s3 + $0x1c0] ss:$16 sps:$4 sm:$0xff]   ;;  %v2150_v14 = vld [vmem:[%s3037_s3 + $0x1e4] ss:$16 sps:$4 sm:$0xff]   ;;  %v2155_v17 = vld [vmem:[%s3037_s3 + $0x1e8] ss:$16 sps:$4 sm:$0xff]  }
  0x18   :  { %877 = vmatprep.subr.bf16.mxu0 %v2096_v24  ;;  %959 = vmatprep.subr.bf16.mxu1 %v2098_v25  ;;  %v85_v13 = vadd.f32 %v68_v7, %v59_v6  ;;  %v2154_v16 = vld [vmem:[%s3037_s3 + $0x1e0] ss:$16 sps:$4 sm:$0xff]   ;;  %v2158_v19 = vld [vmem:[%s3037_s3 + $0x204] ss:$16 sps:$4 sm:$0xff]   ;;  %v2161_v20 = vld [vmem:[%s3037_s3 + $0x20c] ss:$16 sps:$4 sm:$0xff]  }
  0x19   :  { %v90_v3 = vmax.f32 %v86_v0, 0.0  ;;  %v2156_v21 = vld [vmem:[%s3037_s3 + $0x200] ss:$16 sps:$4 sm:$0xff]   ;;  %v2159_v22 = vld [vmem:[%s3037_s3 + $0x208] ss:$16 sps:$4 sm:$0xff]  }
  0x1a   :  { %v89_v18 = vmax.f32 %v85_v13, 0.0  ;;  %v2164_v24 = vld [vmem:[%s3037_s3 + $0x224] ss:$16 sps:$4 sm:$0xff]   ;;  %v2167_v25 = vld [vmem:[%s3037_s3 + $0x22c] ss:$16 sps:$4 sm:$0xff]  }
  0x1b   :  { %878 = vmatpush1.bf16.msra.mxu0 %v2100_v26  ;;  %960 = vmatpush1.bf16.msra.mxu1 %v2101_v27  ;;  %v94_v9 = vpack.c.bf16 %v90_v3, %v90_v3  ;;  %v2162_v26 = vld [vmem:[%s3037_s3 + $0x220] ss:$16 sps:$4 sm:$0xff]   ;;  %v2165_v27 = vld [vmem:[%s3037_s3 + $0x228] ss:$16 sps:$4 sm:$0xff]   ;;  %v2185_v37 = vld [vmem:[%s3037_s3 + $0x28c] ss:$16 sps:$4 sm:$0xff]  }
  0x1c   :  { %879 = vmatprep.subr.bf16.mxu0 %v2102_v28  ;;  %961 = vmatprep.subr.bf16.mxu1 %v2104_v29  ;;  %v93_v23 = vpack.c.bf16 %v89_v18, %v89_v18  ;;  %v2170_v28 = vld [vmem:[%s3037_s3 + $0x244] ss:$16 sps:$4 sm:$0xff]   ;;  %v2173_v29 = vld [vmem:[%s3037_s3 + $0x24c] ss:$16 sps:$4 sm:$0xff]   ;;  %v2192_v56 = vld [vmem:[%s3037_s3 + $0x2c0] ss:$16 sps:$4 sm:$0xff]  }
  0x1d   :  { %897 = vmatprep.mubr.bf16.mxu0 %v94_v9  ;;  %979 = vmatprep.mubr.bf16.mxu1 %v94_v9  ;;  %v2195_v57 = vld [vmem:[%s3037_s3 + $0x2c8] ss:$16 sps:$4 sm:$0xff]   ;;  %v2703_v60 = vld [vmem:[%s3038_s0 + $0x10] sm:$0xff]  ;;  %v2209_v6 = vld [vmem:[%s3037_s3 + $0x30c] ss:$16 sps:$4 sm:$0xff]  }
  0x1e   :  { %v2198_v0 = vld [vmem:[%s3037_s3 + $0x2e0] ss:$16 sps:$4 sm:$0xff]   ;;  %v2207_v9 = vld [vmem:[%s3037_s3 + $0x308] ss:$16 sps:$4 sm:$0xff]   ;;  %v2224_v18 = vld [vmem:[%s3037_s3 + $0x364] ss:$16 sps:$4 sm:$0xff]  }
  0x1f   :  { %880 = vmatpush1.bf16.msra.mxu0 %v2106_v30  ;;  %962 = vmatpush1.bf16.msra.mxu1 %v2107_v31  ;;  %v2168_v30 = vld [vmem:[%s3037_s3 + $0x240] ss:$16 sps:$4 sm:$0xff]   ;;  %v2171_v31 = vld [vmem:[%s3037_s3 + $0x248] ss:$16 sps:$4 sm:$0xff]  }
  0x20   :  { %881 = vmatprep.subr.bf16.mxu0 %v2108_v32  ;;  %963 = vmatprep.subr.bf16.mxu1 %v2110_v33  ;;  %v2176_v32 = vld [vmem:[%s3037_s3 + $0x264] ss:$16 sps:$4 sm:$0xff]   ;;  %v2179_v33 = vld [vmem:[%s3037_s3 + $0x26c] ss:$16 sps:$4 sm:$0xff]   ;;  %v2213_v13 = vld [vmem:[%s3037_s3 + $0x328] ss:$16 sps:$4 sm:$0xff]  }
  0x23   :  { %882 = vmatpush1.bf16.msra.mxu0 %v2112_v34  ;;  %964 = vmatpush1.bf16.msra.mxu1 %v2113_v35  ;;  %v2174_v34 = vld [vmem:[%s3037_s3 + $0x260] ss:$16 sps:$4 sm:$0xff]   ;;  %v2177_v35 = vld [vmem:[%s3037_s3 + $0x268] ss:$16 sps:$4 sm:$0xff]  }
  0x24   :  { %883 = vmatprep.subr.bf16.mxu0 %v2114_v36  ;;  %965 = vmatprep.subr.bf16.mxu1 %v2116_v38  ;;  %v2182_v36 = vld [vmem:[%s3037_s3 + $0x284] ss:$16 sps:$4 sm:$0xff]   ;;  %v2180_v38 = vld [vmem:[%s3037_s3 + $0x280] ss:$16 sps:$4 sm:$0xff]  }
  0x27   :  { %884 = vmatpush1.bf16.msra.mxu0 %v2118_v39  ;;  %966 = vmatpush1.bf16.msra.mxu1 %v2119_v40  ;;  %v2183_v39 = vld [vmem:[%s3037_s3 + $0x288] ss:$16 sps:$4 sm:$0xff]   ;;  %v2657_v40 = vsub.s32 3, %v2489_v42 }
  0x28   :  { %885 = vmatprep.subr.bf16.mxu0 %v2120_v41  ;;  %967 = vmatprep.subr.bf16.mxu1 %v2122_v43  ;;  %v2188_v41 = vld [vmem:[%s3037_s3 + $0x2a4] ss:$16 sps:$4 sm:$0xff]   ;;  %v2663_v43 = vsub.s32 2, %v2489_v42 }
  0x29   :  { %v2194_v42 = vld [vmem:[%s3037_s3 + $0x2c4] ss:$16 sps:$4 sm:$0xff]  }
  0x2b   :  { %886 = vmatpush1.bf16.msra.mxu0 %v2124_v44  ;;  %968 = vmatpush1.bf16.msra.mxu1 %v2125_v45  ;;  %v2191_v44 = vld [vmem:[%s3037_s3 + $0x2ac] ss:$16 sps:$4 sm:$0xff]   ;;  %v2186_v45 = vld [vmem:[%s3037_s3 + $0x2a0] ss:$16 sps:$4 sm:$0xff]  }
  0x2c   :  { %887 = vmatprep.subr.bf16.mxu0 %v2126_v46  ;;  %969 = vmatprep.subr.bf16.mxu1 %v2128_v48  ;;  %v2189_v46 = vld [vmem:[%s3037_s3 + $0x2a8] ss:$16 sps:$4 sm:$0xff]   ;;  %v54_v48 = vrot.slane %v2520_v51, %v2657_v40 }
  0x2f   :  { %888 = vmatpush1.bf16.msra.mxu0 %v2130_v49  ;;  %970 = vmatpush1.bf16.msra.mxu1 %v2131_v54  ;;  %v50_v49 = vrot.slane %v2520_v51, %v2663_v43  ;;  %v2197_v54 = vld [vmem:[%s3037_s3 + $0x2cc] ss:$16 sps:$4 sm:$0xff]  }
  0x30   :  { %889 = vmatprep.subr.bf16.mxu0 %v2132_v55  ;;  %971 = vmatprep.subr.bf16.mxu1 %v2134_v58  ;;  %v80_v55 = vrot.slane %v2525_v52, %v2657_v40  ;;  %v2695_v51 = vld [vmem:[%s3038_s0 + $0x18] sm:$0xff]  ;;  %v76_v58 = vrot.slane %v2525_v52, %v2663_v43 }
  0x31   :  { %v2203_v52 = vld [vmem:[%s3037_s3 + $0x2ec] ss:$16 sps:$4 sm:$0xff]  }
  0x33   :  { %890 = vmatpush1.bf16.msra.mxu0 %v2136_v59  ;;  %972 = vmatpush1.bf16.msra.mxu1 %v2137_v61  ;;  %v62_v59 = vmul.f32 %v54_v48, %v2695_v51  ;;  %v2200_v61 = vld [vmem:[%s3037_s3 + $0x2e4] ss:$16 sps:$4 sm:$0xff]   ;;  %v2256_v48 = vld [vmem:[%s3041_s7 + $0x48] sm:$0xff]  }
  0x34   :  { %891 = vmatprep.subr.bf16.mxu0 %v2138_v62  ;;  %973 = vmatprep.subr.bf16.mxu1 %v2140_v2  ;;  %v61_v62 = vmul.f32 %v50_v49, %v2703_v60  ;;  %v2201_v2 = vld [vmem:[%s3037_s3 + $0x2e8] ss:$16 sps:$4 sm:$0xff]  }
  0x35   :  { %v88_v63 = vadd.f32 %v80_v55, %v62_v59  ;;  %v2257_v49 = vld [vmem:[%s3041_s7 + $0x8] sm:$0xff]   ;;  %v1156_v55 = vpack.c.bf16 %v2695_v51, %v2695_v51  ;;  %v2261_v51 = vld [vmem:[%s3041_s7 + $0x10] sm:$0xff]   ;;  %v2264_v59 = vld [vmem:[%s3041_s7 + $0x58] sm:$0xff]  }
  0x36   :  { %v2718_v3 = vadd.f32 %v76_v58, %v61_v62  ;;  %v2263_v58 = vld [vmem:[%s3041_s7 + $0x90] sm:$0xff]   ;;  %v2265_v62 = vld [vmem:[%s3041_s7 + $0x18] sm:$0xff]  }
  0x37   :  { %892 = vmatpush1.bf16.msra.mxu0 %v2142_v4  ;;  %974 = vmatpush1.bf16.msra.mxu1 %v2143_v5  ;;  %v92_v4 = vmax.f32 %v88_v63, 0.0  ;;  %v2206_v5 = vld [vmem:[%s3037_s3 + $0x304] ss:$16 sps:$4 sm:$0xff]  }
  0x38   :  { %893 = vmatprep.subr.bf16.mxu0 %v2144_v8  ;;  %975 = vmatprep.subr.bf16.mxu1 %v2146_v10  ;;  %v2204_v8 = vld [vmem:[%s3037_s3 + $0x300] ss:$16 sps:$4 sm:$0xff]   ;;  %v2212_v10 = vld [vmem:[%s3037_s3 + $0x324] ss:$16 sps:$4 sm:$0xff]  }
  0x39   :  { %v96_v7 = vpack.c.bf16 %v92_v4, %v92_v4  ;;  %v2268_v63 = vld [vmem:[%s3041_s7 + $0x60] sm:$0xff]   ;;  %v2272_v4 = vld [vmem:[%s3041_s7 + $0x68] sm:$0xff]  }
  0x3b   :  { %894 = vmatpush1.bf16.msra.mxu0 %v2148_v11  ;;  %976 = vmatpush1.bf16.msra.mxu1 %v2149_v12  ;;  %v2215_v11 = vld [vmem:[%s3037_s3 + $0x32c] ss:$16 sps:$4 sm:$0xff]   ;;  %v2210_v12 = vld [vmem:[%s3037_s3 + $0x320] ss:$16 sps:$4 sm:$0xff]  }
  0x3c   :  { %895 = vmatprep.subr.bf16.mxu0 %v2150_v14  ;;  %977 = vmatprep.subr.bf16.mxu1 %v2152_v15  ;;  %v2218_v14 = vld [vmem:[%s3037_s3 + $0x344] ss:$16 sps:$4 sm:$0xff]   ;;  %v2221_v15 = vld [vmem:[%s3037_s3 + $0x34c] ss:$16 sps:$4 sm:$0xff]  }
  0x3f   :  { %896 = vmatpush1.bf16.msra.mxu0 %v2154_v16  ;;  %978 = vmatpush1.bf16.msra.mxu1 %v2155_v17  ;;  %v2216_v16 = vld [vmem:[%s3037_s3 + $0x340] ss:$16 sps:$4 sm:$0xff]   ;;  %v2219_v17 = vld [vmem:[%s3037_s3 + $0x348] ss:$16 sps:$4 sm:$0xff]  }
  0x40   :  { %906 = vmatprep.subr.bf16.mxu0 %v2158_v19  ;;  %988 = vmatprep.subr.bf16.mxu1 %v2161_v20  ;;  %v2227_v19 = vld [vmem:[%s3037_s3 + $0x36c] ss:$16 sps:$4 sm:$0xff]   ;;  %v2222_v20 = vld [vmem:[%s3037_s3 + $0x360] ss:$16 sps:$4 sm:$0xff]  }
  0x42   :  { %898 = vmatmul.mubr.bf16.vlgmr.msra.gmra.mrb[0].mxu0 %v93_v23  ;;  %980 = vmatmul.mubr.bf16.vlgmr.msra.gmra.mrb[0].mxu1 %v93_v23  ;;  %v2233_v23 = vld [vmem:[%s3037_s3 + $0x38c] ss:$16 sps:$4 sm:$0xff]  }
  0x43   :  { %907 = vmatpush1.bf16.msra.mxu0 %v2156_v21  ;;  %989 = vmatpush1.bf16.msra.mxu1 %v2159_v22  ;;  %v2225_v21 = vld [vmem:[%s3037_s3 + $0x368] ss:$16 sps:$4 sm:$0xff]   ;;  %v2230_v22 = vld [vmem:[%s3037_s3 + $0x384] ss:$16 sps:$4 sm:$0xff]  }
  0x44   :  { %908 = vmatprep.subr.bf16.mxu0 %v2164_v24  ;;  %990 = vmatprep.subr.bf16.mxu1 %v2167_v25  ;;  %v2228_v24 = vld [vmem:[%s3037_s3 + $0x380] ss:$16 sps:$4 sm:$0xff]   ;;  %v2231_v25 = vld [vmem:[%s3037_s3 + $0x388] ss:$16 sps:$4 sm:$0xff]  }
  0x45   :  { %938 = vmatprep.mubr.bf16.mxu0 %v96_v7  ;;  %1020 = vmatprep.mubr.bf16.mxu1 %v96_v7  ;;  %v2275_v7 = vld [vmem:[%s3041_s7 + $0xa8] sm:$0xff]  }
  0x47   :  { %909 = vmatpush1.bf16.msra.mxu0 %v2162_v26  ;;  %991 = vmatpush1.bf16.msra.mxu1 %v2165_v27  ;;  %v2236_v26 = vld [vmem:[%s3037_s3 + $0x3a4] ss:$16 sps:$4 sm:$0xff]   ;;  %v2239_v27 = vld [vmem:[%s3037_s3 + $0x3ac] ss:$16 sps:$4 sm:$0xff]  }
  0x48   :  { %910 = vmatprep.subr.bf16.mxu0 %v2170_v28  ;;  %992 = vmatprep.subr.bf16.mxu1 %v2173_v29  ;;  %v2234_v28 = vld [vmem:[%s3037_s3 + $0x3a0] ss:$16 sps:$4 sm:$0xff]   ;;  %v2237_v29 = vld [vmem:[%s3037_s3 + $0x3a8] ss:$16 sps:$4 sm:$0xff]  }
  0x4b   :  { %911 = vmatpush1.bf16.msra.mxu0 %v2168_v30  ;;  %993 = vmatpush1.bf16.msra.mxu1 %v2171_v31  ;;  %v2242_v30 = vld [vmem:[%s3037_s3 + $0x3c4] ss:$16 sps:$4 sm:$0xff]   ;;  %v2245_v31 = vld [vmem:[%s3037_s3 + $0x3cc] ss:$16 sps:$4 sm:$0xff]  }
  0x4c   :  { %912 = vmatprep.subr.bf16.mxu0 %v2176_v32  ;;  %994 = vmatprep.subr.bf16.mxu1 %v2179_v33  ;;  %v2240_v32 = vld [vmem:[%s3037_s3 + $0x3c0] ss:$16 sps:$4 sm:$0xff]   ;;  %v2243_v33 = vld [vmem:[%s3037_s3 + $0x3c8] ss:$16 sps:$4 sm:$0xff]  }
  0x4f   :  { %913 = vmatpush1.bf16.msra.mxu0 %v2174_v34  ;;  %995 = vmatpush1.bf16.msra.mxu1 %v2177_v35  ;;  %v2248_v34 = vld [vmem:[%s3037_s3 + $0x3e4] ss:$16 sps:$4 sm:$0xff]   ;;  %v2251_v35 = vld [vmem:[%s3037_s3 + $0x3ec] ss:$16 sps:$4 sm:$0xff]  }
  0x50   :  { %914 = vmatprep.subr.bf16.mxu0 %v2182_v36  ;;  %996 = vmatprep.subr.bf16.mxu1 %v2185_v37  ;;  %v2246_v36 = vld [vmem:[%s3037_s3 + $0x3e0] ss:$16 sps:$4 sm:$0xff]   ;;  %v2249_v37 = vld [vmem:[%s3037_s3 + $0x3e8] ss:$16 sps:$4 sm:$0xff]  }
  0x53   :  { %915 = vmatpush1.bf16.msra.mxu0 %v2180_v38  ;;  %997 = vmatpush1.bf16.msra.mxu1 %v2183_v39  ;;  %v91_v38 = vmax.f32 %v2718_v3, 0.0  ;;  %v2252_v39 = vld [vmem:[%s3041_s7 + $0x40] sm:$0xff]  }
  0x54   :  { %916 = vmatprep.subr.bf16.mxu0 %v2188_v41  ;;  %998 = vmatprep.subr.bf16.mxu1 %v2191_v44  ;;  %v2254_v41 = vld [vmem:[%s3041_s7 + $0xc0] sm:$0xff]  }
  0x55   :  { %v2253_v44 = vld [vmem:[%s3041_s7] sm:$0xff]  }
  0x56   :  { %v2271_v3 = vld [vmem:[%s3041_s7 + $0xa0] sm:$0xff]  }
  0x57   :  { %917 = vmatpush1.bf16.msra.mxu0 %v2186_v45  ;;  %999 = vmatpush1.bf16.msra.mxu1 %v2189_v46  ;;  %v95_v45 = vpack.c.bf16 %v91_v38, %v91_v38  ;;  %v2255_v46 = vld [vmem:[%s3041_s7 + $0x80] sm:$0xff]   ;;  %v2306_v38 = vld [vmem:[%s3042_s6 + $0x28] sm:$0xff]  }
  0x58   :  { %918 = vmatprep.subr.bf16.mxu0 %v2194_v42  ;;  %1000 = vmatprep.subr.bf16.mxu1 %v2197_v54  ;;  %v2258_v42 = vld [vmem:[%s3041_s7 + $0xc8] sm:$0xff]   ;;  %v1154_v54 = vpack.c.bf16 %v2515_v50, %v2515_v50  ;;  %v2262_v50 = vld [vmem:[%s3041_s7 + $0xd0] sm:$0xff]  }
  0x5b   :  { %919 = vmatpush1.bf16.msra.mxu0 %v2192_v56  ;;  %1001 = vmatpush1.bf16.msra.mxu1 %v2195_v57  ;;  %v2259_v56 = vld [vmem:[%s3041_s7 + $0x88] sm:$0xff]   ;;  %v2260_v57 = vld [vmem:[%s3041_s7 + $0x50] sm:$0xff]  }
  0x5c   :  { %920 = vmatprep.subr.bf16.mxu0 %v2200_v61  ;;  %1002 = vmatprep.subr.bf16.mxu1 %v2203_v52  ;;  %v2266_v61 = vld [vmem:[%s3041_s7 + $0xd8] sm:$0xff]  }
  0x5d   :  { %v2267_v52 = vld [vmem:[%s3041_s7 + $0x98] sm:$0xff]  }
  0x5f   :  { %921 = vmatpush1.bf16.msra.mxu0 %v2198_v0  ;;  %1003 = vmatpush1.bf16.msra.mxu1 %v2201_v2  ;;  %v2270_v0 = vld [vmem:[%s3041_s7 + $0xe0] sm:$0xff]  }
  0x60   :  { %922 = vmatprep.subr.bf16.mxu0 %v2206_v5  ;;  %1004 = vmatprep.subr.bf16.mxu1 %v2209_v6  ;;  %v2269_v2 = vld [vmem:[%s3041_s7 + $0x20] sm:$0xff]   ;;  %v2274_v5 = vld [vmem:[%s3041_s7 + $0xe8] sm:$0xff]  }
  0x61   :  { %v2273_v6 = vld [vmem:[%s3041_s7 + $0x28] sm:$0xff]  }
  0x63   :  { %923 = vmatpush1.bf16.msra.mxu0 %v2204_v8  ;;  %1005 = vmatpush1.bf16.msra.mxu1 %v2207_v9  ;;  %v2276_v8 = vld [vmem:[%s3041_s7 + $0x70] sm:$0xff]  }
  0x64   :  { %924 = vmatprep.subr.bf16.mxu0 %v2212_v10  ;;  %1006 = vmatprep.subr.bf16.mxu1 %v2215_v11  ;;  %v2278_v9 = vld [vmem:[%s3041_s7 + $0xf0] sm:$0xff]  }
  0x65   :  { %v2277_v10 = vld [vmem:[%s3041_s7 + $0x30] sm:$0xff]  }
  0x66   :  { %v2279_v11 = vld [vmem:[%s3041_s7 + $0xb0] sm:$0xff]  }
  0x67   :  { %925 = vmatpush1.bf16.msra.mxu0 %v2210_v12  ;;  %1007 = vmatpush1.bf16.msra.mxu1 %v2213_v13  ;;  %v2280_v12 = vld [vmem:[%s3041_s7 + $0x78] sm:$0xff]  }
  0x68   :  { %926 = vmatprep.subr.bf16.mxu0 %v2218_v14  ;;  %1008 = vmatprep.subr.bf16.mxu1 %v2221_v15  ;;  %v2282_v13 = vld [vmem:[%s3041_s7 + $0xf8] sm:$0xff]  }
  0x69   :  { %v2281_v14 = vld [vmem:[%s3041_s7 + $0x38] sm:$0xff]  }
  0x6a   :  { %v2283_v15 = vld [vmem:[%s3041_s7 + $0xb8] sm:$0xff]  }
  0x6b   :  { %927 = vmatpush1.bf16.msra.mxu0 %v2216_v16  ;;  %1009 = vmatpush1.bf16.msra.mxu1 %v2219_v17  ;;  %v2284_v16 = vld [vmem:[%s3042_s6 + $0x40] sm:$0xff]  }
  0x6c   :  { %928 = vmatprep.subr.bf16.mxu0 %v2224_v18  ;;  %1010 = vmatprep.subr.bf16.mxu1 %v2227_v19  ;;  %v2285_v17 = vld [vmem:[%s3042_s6 + $0xc0] sm:$0xff]   ;;  %v1153_v18 = vpack.c.bf16 %v2558_v1, %v2558_v1  ;;  %v1155_v19 = vpack.c.bf16 %v2703_v60, %v2703_v60  ;;  %v2289_v1 = vld [vmem:[%s3042_s6 + $0xc8] sm:$0xff]  }
  0x6d   :  { %v2290_v60 = vld [vmem:[%s3042_s6 + $0x8] sm:$0xff]  }
  0x6f   :  { %929 = vmatpush1.bf16.msra.mxu0 %v2222_v20  ;;  %1011 = vmatpush1.bf16.msra.mxu1 %v2225_v21  ;;  %v2286_v20 = vld [vmem:[%s3042_s6] sm:$0xff]  }
  0x70   :  { %930 = vmatprep.subr.bf16.mxu0 %v2230_v22  ;;  %1012 = vmatprep.subr.bf16.mxu1 %v2233_v23  ;;  %v2287_v21 = vld [vmem:[%s3042_s6 + $0x80] sm:$0xff]   ;;  %v2288_v22 = vld [vmem:[%s3042_s6 + $0x48] sm:$0xff]  }
  0x71   :  { %v2291_v23 = vld [vmem:[%s3042_s6 + $0x88] sm:$0xff]  }
  0x73   :  { %931 = vmatpush1.bf16.msra.mxu0 %v2228_v24  ;;  %1013 = vmatpush1.bf16.msra.mxu1 %v2231_v25  ;;  %v2292_v24 = vld [vmem:[%s3042_s6 + $0x50] sm:$0xff]  }
  0x74   :  { %932 = vmatprep.subr.bf16.mxu0 %v2236_v26  ;;  %1014 = vmatprep.subr.bf16.mxu1 %v2239_v27  ;;  %v2293_v25 = vld [vmem:[%s3042_s6 + $0xd0] sm:$0xff]  }
  0x75   :  { %v2294_v26 = vld [vmem:[%s3042_s6 + $0x10] sm:$0xff]  }
  0x76   :  { %v2295_v27 = vld [vmem:[%s3042_s6 + $0x90] sm:$0xff]  }
  0x77   :  { %933 = vmatpush1.bf16.msra.mxu0 %v2234_v28  ;;  %1015 = vmatpush1.bf16.msra.mxu1 %v2237_v29  ;;  %v2296_v28 = vld [vmem:[%s3042_s6 + $0x58] sm:$0xff]  }
  0x78   :  { %934 = vmatprep.subr.bf16.mxu0 %v2242_v30  ;;  %1016 = vmatprep.subr.bf16.mxu1 %v2245_v31  ;;  %v2297_v29 = vld [vmem:[%s3042_s6 + $0xd8] sm:$0xff]  }
  0x79   :  { %v2298_v30 = vld [vmem:[%s3042_s6 + $0x18] sm:$0xff]  }
  0x7a   :  { %v2299_v31 = vld [vmem:[%s3042_s6 + $0x98] sm:$0xff]  }
  0x7b   :  { %935 = vmatpush1.bf16.msra.mxu0 %v2240_v32  ;;  %1017 = vmatpush1.bf16.msra.mxu1 %v2243_v33  ;;  %v2300_v32 = vld [vmem:[%s3042_s6 + $0x60] sm:$0xff]  }
  0x7c   :  { %936 = vmatprep.subr.bf16.mxu0 %v2248_v34  ;;  %1018 = vmatprep.subr.bf16.mxu1 %v2251_v35  ;;  %v2301_v33 = vld [vmem:[%s3042_s6 + $0xe0] sm:$0xff]  }
  0x7d   :  { %v2302_v34 = vld [vmem:[%s3042_s6 + $0x20] sm:$0xff]  }
  0x7e   :  { %v2303_v35 = vld [vmem:[%s3042_s6 + $0xa0] sm:$0xff]  }
  0x7f   :  { %937 = vmatpush1.bf16.msra.mxu0 %v2246_v36  ;;  %1019 = vmatpush1.bf16.msra.mxu1 %v2249_v37  ;;  %v2304_v36 = vld [vmem:[%s3042_s6 + $0x68] sm:$0xff]  }
  0x80   :  { %1964 = vmatprep.subr.bf16.mxu0 %v2252_v39  ;;  %1986 = vmatprep.subr.bf16.mxu1 %v2254_v41  ;;  %v2305_v37 = vld [vmem:[%s3042_s6 + $0xe8] sm:$0xff]   ;;  %v2308_v41 = vld [vmem:[%s3042_s6 + $0x70] sm:$0xff]  }
  0x81   :  { %v2307_v39 = vld [vmem:[%s3042_s6 + $0xa8] sm:$0xff]  }
  0x82   :  { %939 = vmatmul.mubr.bf16.vlgmr.msra.gmra.mrb[0].mxu0 %v95_v45  ;;  %1021 = vmatmul.mubr.bf16.vlgmr.msra.gmra.mrb[0].mxu1 %v95_v45  ;;  %v2310_v45 = vld [vmem:[%s3042_s6 + $0x30] sm:$0xff]  }
  0x83   :  { %1965 = vmatpush3.bf16.msra.mxu0 %v2253_v44  ;;  %1987 = vmatpush3.bf16.msra.mxu1 %v2255_v46  ;;  %v2309_v44 = vld [vmem:[%s3042_s6 + $0xf0] sm:$0xff]  }
  0x84   :  { %1966 = vmatprep.subr.bf16.mxu0 %v2256_v48  ;;  %1988 = vmatprep.subr.bf16.mxu1 %v2258_v42  ;;  %v2311_v46 = vld [vmem:[%s3042_s6 + $0xb0] sm:$0xff]   ;;  %v2312_v48 = vld [vmem:[%s3042_s6 + $0x78] sm:$0xff]  }
  0x85   :  { %1445 = vmatprep.mubr.bf16.mxu0 %v1154_v54  ;;  %1485 = vmatprep.mubr.bf16.mxu1 %v1156_v55  ;;  %v2313_v42 = vld [vmem:[%s3042_s6 + $0xf8] sm:$0xff]   ;;  %v1029_v55 = vld [vmem:[%s3043_s4] sm:$0xf] }
  0x86   :  { %v2315_v54 = vld [vmem:[%s3042_s6 + $0xb8] sm:$0xff]  }
  0x87   :  { %1967 = vmatpush3.bf16.msra.mxu0 %v2257_v49  ;;  %1989 = vmatpush3.bf16.msra.mxu1 %v2259_v56  ;;  %v2314_v49 = vld [vmem:[%s3042_s6 + $0x38] sm:$0xff]   ;;  %v1055_v56 = vld [vmem:[%s3044_s5] sm:$0xf] }
  0x88   :  { %1968 = vmatprep.subr.bf16.mxu0 %v2260_v57  ;;  %1990 = vmatprep.subr.bf16.mxu1 %v2262_v50  ;;  %v1034_v57 = vrot.slane %v1029_v55, %v2528_v53  ;;  %v1042_v50 = vrot.slane %v1029_v55, %v2663_v43 }
  0x8b   :  { %1969 = vmatpush3.bf16.msra.mxu0 %v2261_v51  ;;  %1991 = vmatpush3.bf16.msra.mxu1 %v2263_v58  ;;  %v1038_v51 = vrot.slane %v1029_v55, %v2504_v47  ;;  %v1046_v58 = vrot.slane %v1029_v55, %v2657_v40 }
  0x8c   :  { %1970 = vmatprep.subr.bf16.mxu0 %v2264_v59  ;;  %1992 = vmatprep.subr.bf16.mxu1 %v2266_v61  ;;  %v1060_v59 = vrot.slane %v1055_v56, %v2528_v53  ;;  %v1068_v61 = vrot.slane %v1055_v56, %v2663_v43 }
  0x8f   :  { %1971 = vmatpush3.bf16.msra.mxu0 %v2265_v62  ;;  %1993 = vmatpush3.bf16.msra.mxu1 %v2267_v52 }
  0x90   :  { %1972 = vmatprep.subr.bf16.mxu0 %v2268_v63  ;;  %1994 = vmatprep.subr.bf16.mxu1 %v2270_v0  ;;  %v1064_v63 = vrot.slane %v1055_v56, %v2504_v47  ;;  %v1072_v0 = vrot.slane %v1055_v56, %v2657_v40 }
  0x93   :  { %1973 = vmatpush3.bf16.msra.mxu0 %v2269_v2  ;;  %1995 = vmatpush3.bf16.msra.mxu1 %v2271_v3 }
  0x94   :  { %1974 = vmatprep.subr.bf16.mxu0 %v2272_v4  ;;  %1996 = vmatprep.subr.bf16.mxu1 %v2274_v5 }
  0x97   :  { %1975 = vmatpush3.bf16.msra.mxu0 %v2273_v6  ;;  %1997 = vmatpush3.bf16.msra.mxu1 %v2275_v7 }
  0x98   :  { %1976 = vmatprep.subr.bf16.mxu0 %v2276_v8  ;;  %1998 = vmatprep.subr.bf16.mxu1 %v2278_v9 }
  0x9b   :  { %1977 = vmatpush3.bf16.msra.mxu0 %v2277_v10  ;;  %1999 = vmatpush3.bf16.msra.mxu1 %v2279_v11 }
  0x9c   :  { %1978 = vmatprep.subr.bf16.mxu0 %v2280_v12  ;;  %2000 = vmatprep.subr.bf16.mxu1 %v2282_v13 }
  0x9f   :  { %1979 = vmatpush3.bf16.msra.mxu0 %v2281_v14  ;;  %2001 = vmatpush3.bf16.msra.mxu1 %v2283_v15 }
  0xa0   :  { %2008 = vmatprep.subr.bf16.mxu0 %v2284_v16  ;;  %2030 = vmatprep.subr.bf16.mxu1 %v2285_v17 }
  0xa2   :  { %1446 = vmatmul.mubr.bf16.vlgmr.msra.gmra.mrb[4].mxu0 %v1153_v18  ;;  %1486 = vmatmul.mubr.bf16.vlgmr.msra.gmra.mrb[4].mxu1 %v1155_v19 }
  0xa3   :  { %2009 = vmatpush3.bf16.msra.mxu0 %v2286_v20  ;;  %2031 = vmatpush3.bf16.msra.mxu1 %v2287_v21 }
  0xa4   :  { %2010 = vmatprep.subr.bf16.mxu0 %v2288_v22  ;;  %2032 = vmatprep.subr.bf16.mxu1 %v2289_v1 }
  0xa7   :  { %2011 = vmatpush3.bf16.msra.mxu0 %v2290_v60  ;;  %2033 = vmatpush3.bf16.msra.mxu1 %v2291_v23 }
  0xa8   :  { %2012 = vmatprep.subr.bf16.mxu0 %v2292_v24  ;;  %2034 = vmatprep.subr.bf16.mxu1 %v2293_v25 }
  0xab   :  { %2013 = vmatpush3.bf16.msra.mxu0 %v2294_v26  ;;  %2035 = vmatpush3.bf16.msra.mxu1 %v2295_v27 }
  0xac   :  { %2014 = vmatprep.subr.bf16.mxu0 %v2296_v28  ;;  %2036 = vmatprep.subr.bf16.mxu1 %v2297_v29 }
  0xaf   :  { %2015 = vmatpush3.bf16.msra.mxu0 %v2298_v30  ;;  %2037 = vmatpush3.bf16.msra.mxu1 %v2299_v31 }
  0xb0   :  { %2016 = vmatprep.subr.bf16.mxu0 %v2300_v32  ;;  %2038 = vmatprep.subr.bf16.mxu1 %v2301_v33 }
  0xb3   :  { %2017 = vmatpush3.bf16.msra.mxu0 %v2302_v34  ;;  %2039 = vmatpush3.bf16.msra.mxu1 %v2303_v35 }
  0xb4   :  { %2018 = vmatprep.subr.bf16.mxu0 %v2304_v36  ;;  %2040 = vmatprep.subr.bf16.mxu1 %v2305_v37 }
  0xb7   :  { %2019 = vmatpush3.bf16.msra.mxu0 %v2306_v38  ;;  %2041 = vmatpush3.bf16.msra.mxu1 %v2307_v39 }
  0xb8   :  { %2020 = vmatprep.subr.bf16.mxu0 %v2308_v41  ;;  %2042 = vmatprep.subr.bf16.mxu1 %v2309_v44  ;;  %v1765_v41 = vld [vmem:[%s3045_s8] sm:$0xff] }
  0xbb   :  { %2021 = vmatpush3.bf16.msra.mxu0 %v2310_v45  ;;  %2043 = vmatpush3.bf16.msra.mxu1 %v2311_v46 }
  0xbc   :  { %2022 = vmatprep.subr.bf16.mxu0 %v2312_v48  ;;  %2044 = vmatprep.subr.bf16.mxu1 %v2313_v42 }
  0xbf   :  { %2023 = vmatpush3.bf16.msra.mxu0 %v2314_v49  ;;  %2045 = vmatpush3.bf16.msra.mxu1 %v2315_v54 }
 0x155   :  { %v940_v62 = vpop.f32.mrb[0].mxu0  ;;  %v1022_v52 = vpop.f32.mrb[0].mxu1 }
 0x156   :  { %v1051_v2 = vmul.f32 %v1034_v57, %v940_v62  ;;  %v1053_v3 = vmul.f32 %v1042_v50, %v1022_v52  ;;  %v942_v4 = vpop.f32.mrb[1].mxu0  ;;  %v1024_v5 = vpop.f32.mrb[1].mxu1 }
 0x157   :  { %v1052_v6 = vmul.f32 %v1038_v51, %v942_v4  ;;  %v1054_v7 = vmul.f32 %v1046_v58, %v1024_v5  ;;  %v944_v8 = vpop.f32.mrb[2].mxu0  ;;  %v1026_v9 = vpop.f32.mrb[2].mxu1 }
 0x158   :  { %v1077_v10 = vadd.f32 %v1060_v59, %v1051_v2  ;;  %v1079_v11 = vadd.f32 %v1068_v61, %v1053_v3  ;;  %v945_v12 = vpop.f32.mrb[3].mxu0  ;;  %v1027_v53 = vpop.f32.mrb[3].mxu1 }
 0x159   :  { %v1078_v13 = vadd.f32 %v1064_v63, %v1052_v6  ;;  %v1080_v43 = vadd.f32 %v1072_v0, %v1054_v7 }
 0x15a   :  { %v1081_v14 = vmax.f32 %v1077_v10, 0.0  ;;  %v1083_v15 = vmax.f32 %v1079_v11, 0.0 }
 0x15b   :  { %v1082_v16 = vmax.f32 %v1078_v13, 0.0  ;;  %v1084_v47 = vmax.f32 %v1080_v43, 0.0 }
 0x15c   :  { %v1085_v18 = vpack.c.bf16 %v1081_v14, %v1081_v14  ;;  %v1087_v19 = vpack.c.bf16 %v1083_v15, %v1083_v15 }
 0x15d   :  { %v1086_v17 = vpack.c.bf16 %v1082_v16, %v1082_v16  ;;  %v1088_v40 = vpack.c.bf16 %v1084_v47, %v1084_v47 }
 0x15f   :  { %1717 = vmatprep.mubr.bf16.mxu0 %v1086_v17  ;;  %1757 = vmatprep.mubr.bf16.mxu1 %v1088_v40 }
 0x160   :  { %1718 = vmatmul.mubr.bf16.vlgmr.msra.gmra.mrb[8].mxu0 %v1085_v18  ;;  %1758 = vmatmul.mubr.bf16.vlgmr.msra.gmra.mrb[8].mxu1 %v1087_v19 }
 0x175   :  { %v1980_v20 = vpop.f32.mrb[4].mxu0  ;;  %v2002_v21 = vpop.f32.mrb[4].mxu1 }
 0x176   :  { %v1981_v22 = vpop.f32.mrb[5].mxu0  ;;  %v2003_v1 = vpop.f32.mrb[5].mxu1 }
 0x177   :  { %v1982_v60 = vadd.f32 %v1981_v22, %v1980_v20  ;;  %v1983_v23 = vpop.f32.mrb[6].mxu0  ;;  %v2004_v24 = vadd.f32 %v2003_v1, %v2002_v21  ;;  %v2005_v25 = vpop.f32.mrb[6].mxu1 }
 0x178   :  { %v1984_v26 = vpop.f32.mrb[7].mxu0  ;;  %v2006_v27 = vpop.f32.mrb[7].mxu1 }
 0x179   :  { %v1488_v28 = vadd.f32 %v2004_v24, %v1982_v60 }
 0x233   :  { %v2024_v29 = vpop.f32.mrb[8].mxu0  ;;  %v2046_v30 = vpop.f32.mrb[8].mxu1 }
 0x234   :  { %v2025_v31 = vpop.f32.mrb[9].mxu0  ;;  %v2047_v32 = vpop.f32.mrb[9].mxu1 }
 0x235   :  { %v2026_v33 = vadd.f32 %v2025_v31, %v2024_v29  ;;  %v2048_v34 = vadd.f32 %v2047_v32, %v2046_v30  ;;  %v2027_v35 = vpop.f32.mrb[10].mxu0  ;;  %v2049_v36 = vpop.f32.mrb[10].mxu1 }
 0x236   :  { %v2028_v37 = vpop.f32.mrb[11].mxu0  ;;  %v2050_v38 = vpop.f32.mrb[11].mxu1 }
 0x237   :  { %v1720_v39 = vadd.f32 %v2026_v33, %v1488_v28 }
 0x239   :  { %v1760_v44 = vadd.f32 %v2048_v34, %v1720_v39 }
 0x23b   :  { %v1766_v45 = vadd.f32 %v1765_v41, %v1760_v44 }
 0x23d   :  { %1767 = vst [vmem:[%s3046_s9] sm:$0xff] %v1766_v45 }

</bundles_post_ra>
